<compile_context>
chip_gen: v7x
topology: tpu7x:2x2x1
jax: 0.10.0
libtpu: 0.0.40
codegen_flags: <defaults>
</compile_context>

<pallas_src>
import jax
import jax.numpy as jnp
from jax import lax
from jax.experimental import pallas as pl
from jax.experimental.pallas import tpu as pltpu


# ----------------------------------------------------------------------------
# Pallas kernel: full UpBlock forward for one batch element.
# ----------------------------------------------------------------------------
def upblock_kernel(x_ref, wt_ref, bt_ref,
                   w1_ref, b1_ref, g1_ref, be1_ref,
                   w2_ref, b2_ref, g2_ref, be2_ref,
                   m_ref, mt_ref,
                   out_ref, pad_ref):
    f32 = jnp.float32
    H = x_ref.shape[1]            # input spatial height
    W = x_ref.shape[2]            # input spatial width  (= parity column count)
    Cin = x_ref.shape[3]
    S = out_ref.shape[2]          # output spatial height = 2*H
    C = out_ref.shape[4]
    G = m_ref.shape[1]
    Cg = C // G
    eps = 1e-5
    Wp = pad_ref.shape[2]         # W + 16 (8 pad cols left, 8 right)
    L = 8                         # data columns live at [L, L+W)

    # ---- zero only the padding ring of the scratch (rows 0 / S+1, pad cols).
    # Done every grid step: with dimension_semantics=("parallel",) each core
    # owns its own scratch, so a program_id==0 gate would be unsafe.
    pad_ref[:, 0:1, :, :] = jnp.zeros((2, 1, Wp, C), f32)
    pad_ref[:, S + 1:S + 2, :, :] = jnp.zeros((2, 1, Wp, C), f32)
    pad_ref[:, :, 0:L, :] = jnp.zeros((2, S + 2, L, C), f32)
    pad_ref[:, :, L + W:Wp, :] = jnp.zeros((2, S + 2, Wp - L - W, C), f32)

    # ---------------- ConvTranspose2d(kernel=2, stride=2) -------------------
    # out[2i+di, 2j+dj, co] = sum_ci x[i, j, ci] * Wt[ci, co, di, dj] + bt[co]
    # 4 matmuls on the ORIGINAL (H, W) grid (no upsample, no masks).
    xflat = x_ref[0].reshape(H * W, Cin)
    y = [[None, None], [None, None]]
    for di in range(2):
        for dj in range(2):
            y[di][dj] = jnp.dot(xflat, wt_ref[di * 2 + dj],
                                preferred_element_type=f32).reshape(H, 1, W, C)

    bt = bt_ref[...]                                       # (1, C)
    for p in range(2):
        # interleave the di taps along the output row axis; only leading dims
        # are touched (concat on axis 1, then merge (H, 2) -> 2H).
        t_p = jnp.concatenate([y[0][p], y[1][p]], axis=1).reshape(S, W, C) + bt
        out_ref[0, p] = t_p                                # park shortcut here
        pad_ref[p, 1:S + 1, L:L + W, :] = t_p              # conv-1 input

    count = float(S * 2 * W * Cg)                          # elems / group

    # ---------------- 2 x [Conv3x3(pad=1) -> GroupNorm -> SiLU] -------------
    blocks = ((w1_ref, b1_ref, g1_ref, be1_ref),
              (w2_ref, b2_ref, g2_ref, be2_ref))
    for blk in range(2):
        w_ref, b_ref, g_ref, be_ref = blocks[blk]

        # column taps of the interleaved image, parity-split:
        #   p0[h,j]  = img[h, 2j]      p1[h,j]  = img[h, 2j+1]
        #   p1m[h,j] = img[h, 2j-1]    p0p[h,j] = img[h, 2j+2]
        p0 = pad_ref[0, :, L:L + W, :]                     # aligned
        p1 = pad_ref[1, :, L:L + W, :]                     # aligned
        p1m = pad_ref[1, :, L - 1:L - 1 + W, :]            # 1 unaligned read
        p0p = pad_ref[0, :, L + 1:L + 1 + W, :]            # 1 unaligned read

        def tap(t, a):
            return t[a:a + S].reshape(S * W, C)

        acc0 = jnp.zeros((S * W, C), f32) + b_ref[...]     # even output cols
        acc1 = jnp.zeros((S * W, C), f32) + b_ref[...]     # odd output cols
        for dh in range(3):                                # row taps: free slices
            a_p1m = tap(p1m, dh)
            a_p0 = tap(p0, dh)
            a_p1 = tap(p1, dh)
            a_p0p = tap(p0p, dh)
            # parity 0: cols 2j -> inputs at (2j-1, 2j, 2j+1)
            acc0 = acc0 + jnp.dot(a_p1m, w_ref[dh, 0], preferred_element_type=f32)
            acc0 = acc0 + jnp.dot(a_p0, w_ref[dh, 1], preferred_element_type=f32)
            acc0 = acc0 + jnp.dot(a_p1, w_ref[dh, 2], preferred_element_type=f32)
            # parity 1: cols 2j+1 -> inputs at (2j, 2j+1, 2j+2)
            acc1 = acc1 + jnp.dot(a_p0, w_ref[dh, 0], preferred_element_type=f32)
            acc1 = acc1 + jnp.dot(a_p1, w_ref[dh, 1], preferred_element_type=f32)
            acc1 = acc1 + jnp.dot(a_p0p, w_ref[dh, 2], preferred_element_type=f32)

        # ---------------- GroupNorm (centered, two-pass variance) -----------
        s1 = (jnp.sum(acc0, axis=0, keepdims=True)
              + jnp.sum(acc1, axis=0, keepdims=True))                  # (1, C)
        mean_g = jnp.dot(s1, m_ref[...], preferred_element_type=f32) / count
        mean_c = jnp.dot(mean_g, mt_ref[...], preferred_element_type=f32)
        d0 = acc0 - mean_c
        d1 = acc1 - mean_c
        s2 = (jnp.sum(d0 * d0, axis=0, keepdims=True)
              + jnp.sum(d1 * d1, axis=0, keepdims=True))               # (1, C)
        var_g = jnp.dot(s2, m_ref[...], preferred_element_type=f32) / count
        var_c = jnp.dot(var_g, mt_ref[...], preferred_element_type=f32)
        inv = lax.rsqrt(var_c + eps)

        gamma = g_ref[...]
        beta = be_ref[...]
        for p, d in ((0, d0), (1, d1)):
            z = d * inv * gamma + beta
            # SiLU: z * sigmoid(z); exact reciprocal keeps 1e-3 accuracy.
            z = z * pl.reciprocal(1.0 + jnp.exp(-z), approx=False)
            z3 = z.reshape(S, W, C)
            if blk == 0:
                pad_ref[p, 1:S + 1, L:L + W, :] = z3       # conv-2 input
            else:
                out_ref[0, p] = z3 + out_ref[0, p]         # + shortcut


# ----------------------------------------------------------------------------
# Wrapper: parameter re-layout + pallas_call (+ parity de-interleave).
# ----------------------------------------------------------------------------
def upblock_forward(x_nchw, params):
    N, Cin, H, W = x_nchw.shape
    assert H == W, "square spatial assumed for this example"
    assert W % 8 == 0, "W must be a multiple of 8 for clean (sublane) reshapes"
    Cout = params["wt"].shape[1]
    G = params["num_groups"]
    Cg = Cout // G
    S = 2 * H
    Wp = W + 16

    # NCHW -> NHWC (no upsample: the kernel works on the original grid).
    xh = jnp.transpose(x_nchw, (0, 2, 3, 1)).astype(jnp.float32)      # (N,H,W,Cin)

    # ConvTranspose2d weight (Cin, Cout, 2, 2) -> (4, Cin, Cout), idx = di*2+dj
    wt4 = jnp.transpose(params["wt"], (2, 3, 0, 1)).reshape(4, Cin, Cout)
    bt = params["bt"].reshape(1, Cout)

    def conv_w(w):  # (Cout, Cin, 3, 3) -> (3, 3, Cin, Cout)
        return jnp.transpose(w, (2, 3, 1, 0))

    w1, b1 = conv_w(params["w1"]), params["b1"].reshape(1, Cout)
    g1, be1 = params["g1"].reshape(1, Cout), params["be1"].reshape(1, Cout)
    w2, b2 = conv_w(params["w2"]), params["b2"].reshape(1, Cout)
    g2, be2 = params["g2"].reshape(1, Cout), params["be2"].reshape(1, Cout)

    # Group membership matrices for GroupNorm statistics.
    M = (jnp.arange(Cout)[:, None] // Cg == jnp.arange(G)[None, :]).astype(jnp.float32)
    Mt = M.T

    vec_spec = pl.BlockSpec((1, Cout), lambda n: (0, 0))
    out = pl.pallas_call(
        upblock_kernel,
        out_shape=jax.ShapeDtypeStruct((N, 2, S, W, Cout), jnp.float32),
        grid_spec=pltpu.PrefetchScalarGridSpec(
            num_scalar_prefetch=0,
            grid=(N,),
            in_specs=[
                pl.BlockSpec((1, H, W, Cin), lambda n: (n, 0, 0, 0)),
                pl.BlockSpec((4, Cin, Cout), lambda n: (0, 0, 0)),
                vec_spec,
                pl.BlockSpec((3, 3, Cout, Cout), lambda n: (0, 0, 0, 0)),
                vec_spec, vec_spec, vec_spec,
                pl.BlockSpec((3, 3, Cout, Cout), lambda n: (0, 0, 0, 0)),
                vec_spec, vec_spec, vec_spec,
                pl.BlockSpec((Cout, G), lambda n: (0, 0)),
                pl.BlockSpec((G, Cout), lambda n: (0, 0)),
            ],
            out_specs=pl.BlockSpec((1, 2, S, W, Cout), lambda n: (n, 0, 0, 0, 0)),
            scratch_shapes=[pltpu.VMEM((2, S + 2, Wp, Cout), jnp.float32)],
        ),
        compiler_params=pltpu.CompilerParams(
            dimension_semantics=("parallel",),
            vmem_limit_bytes=64 * 1024 * 1024),
    )(xh, wt4, bt, w1, b1, g1, be1, w2, b2, g2, be2, M, Mt)

    # parity-split (N, 2, S, W, C) -> NCHW (N, C, S, 2W); w = 2*j + parity.
    o = jnp.transpose(out, (0, 4, 2, 3, 1)).reshape(N, Cout, S, 2 * W)
    return o


# ----------------------------------------------------------------------------
# Pure-JAX reference (NCHW, mirrors the PyTorch module).
# ----------------------------------------------------------------------------
def _ref_conv_transpose(x, w, b):           # x:(N,Cin,H,W), w:(Cin,Cout,2,2)
    N, Cin, H, W = x.shape
    Cout = w.shape[1]
    out = jnp.zeros((N, Cout, 2 * H, 2 * W), jnp.float32)
    for di in range(2):
        for dj in range(2):
            contrib = jnp.einsum("ncij,cd->ndij", x, w[:, :, di, dj])
            out = out.at[:, :, di::2, dj::2].set(contrib)
    return out + b[None, :, None, None]


def _ref_conv3x3(x, w, b):                  # x:(N,C,H,W), w:(Co,Ci,3,3)
    N, Ci, H, W = x.shape
    xp = jnp.pad(x, ((0, 0), (0, 0), (1, 1), (1, 1)))
    out = jnp.zeros((N, w.shape[0], H, W), jnp.float32) + b[None, :, None, None]
    for kh in range(3):
        for kw in range(3):
            out = out + jnp.einsum("ncij,dc->ndij",
                                   xp[:, :, kh:kh + H, kw:kw + W], w[:, :, kh, kw])
    return out


def _ref_groupnorm(x, G, gamma, beta, eps=1e-5):
    N, C, H, W = x.shape
    xg = x.reshape(N, G, C // G, H, W)
    mean = xg.mean(axis=(2, 3, 4), keepdims=True)
    var = xg.var(axis=(2, 3, 4), keepdims=True)
    xn = ((xg - mean) / jnp.sqrt(var + eps)).reshape(N, C, H, W)
    return xn * gamma[None, :, None, None] + beta[None, :, None, None]


def upblock_reference(x, params):
    G = params["num_groups"]
    y = _ref_conv_transpose(x, params["wt"], params["bt"])
    sc = y
    h = y
    for w, b, g, be in ((params["w1"], params["b1"], params["g1"], params["be1"]),
                        (params["w2"], params["b2"], params["g2"], params["be2"])):
        h = _ref_conv3x3(h, w, b)
        h = _ref_groupnorm(h, G, g, be)
        h = h * jax.nn.sigmoid(h)
    return h + sc


# ----------------------------------------------------------------------------
if __name__ == "__main__":
    key = jax.random.PRNGKey(0)
    N, Cin, H, W = 2, 8, 8, 8
    Cout, G = 16, 4

    ks = jax.random.split(key, 11)
    params = {
        "wt": 0.3 * jax.random.normal(ks[0], (Cin, Cout, 2, 2), jnp.float32),
        "bt": 0.1 * jax.random.normal(ks[1], (Cout,), jnp.float32),
        "w1": 0.2 * jax.random.normal(ks[2], (Cout, Cout, 3, 3), jnp.float32),
        "b1": 0.1 * jax.random.normal(ks[3], (Cout,), jnp.float32),
        "g1": 1.0 + 0.1 * jax.random.normal(ks[4], (Cout,), jnp.float32),
        "be1": 0.1 * jax.random.normal(ks[5], (Cout,), jnp.float32),
        "w2": 0.2 * jax.random.normal(ks[6], (Cout, Cout, 3, 3), jnp.float32),
        "b2": 0.1 * jax.random.normal(ks[7], (Cout,), jnp.float32),
        "g2": 1.0 + 0.1 * jax.random.normal(ks[8], (Cout,), jnp.float32),
        "be2": 0.1 * jax.random.normal(ks[9], (Cout,), jnp.float32),
        "num_groups": G,
    }
    x = jax.random.normal(ks[10], (N, Cin, H, W), jnp.float32)

    out = upblock_forward(x, params)
    out = jax.block_until_ready(out)

    ref = upblock_reference(x, params)
    assert out.shape == ref.shape == (N, Cout, 2 * H, 2 * W)
    max_err = float(jnp.max(jnp.abs(out - ref)))
    if not jnp.allclose(out, ref, atol=1e-3, rtol=1e-3):
        raise AssertionError(f"Pallas kernel mismatch vs reference, max |err| = {max_err}")

    print("KERNEL_OK")
</pallas_src>

<mosaic_0001>
module attributes {stable_mosaic.version = 11 : i64} {
  func.func @upblock_kernel(%arg0: i32, %arg1: memref<1x8x8x8xf32, #tpu.memory_space<vmem>>, %arg2: memref<4x8x16xf32, #tpu.memory_space<vmem>>, %arg3: memref<1x16xf32, #tpu.memory_space<vmem>>, %arg4: memref<3x3x16x16xf32, #tpu.memory_space<vmem>>, %arg5: memref<1x16xf32, #tpu.memory_space<vmem>>, %arg6: memref<1x16xf32, #tpu.memory_space<vmem>>, %arg7: memref<1x16xf32, #tpu.memory_space<vmem>>, %arg8: memref<3x3x16x16xf32, #tpu.memory_space<vmem>>, %arg9: memref<1x16xf32, #tpu.memory_space<vmem>>, %arg10: memref<1x16xf32, #tpu.memory_space<vmem>>, %arg11: memref<1x16xf32, #tpu.memory_space<vmem>>, %arg12: memref<16x4xf32, #tpu.memory_space<vmem>>, %arg13: memref<4x16xf32, #tpu.memory_space<vmem>>, %arg14: memref<1x2x16x8x16xf32, #tpu.memory_space<vmem>>, %arg15: memref<2x18x24x16xf32, #tpu.memory_space<vmem>>) attributes {dimension_semantics = [#tpu.dimension_semantics<parallel>], iteration_bounds = array<i64: 2>, scalar_prefetch = 0 : i64, scratch_operands = 1 : i64, tpu.core_type = #tpu.core_type<tc>, window_params = [{transform_indices = @transform_0, window_bounds = array<i64: 1, 8, 8, 8>}, {pipeline_mode = #tpu.pipeline_mode<synchronous>, transform_indices = @transform_1, window_bounds = array<i64: 4, 8, 16>}, {pipeline_mode = #tpu.pipeline_mode<synchronous>, transform_indices = @transform_2, window_bounds = array<i64: 1, 16>}, {pipeline_mode = #tpu.pipeline_mode<synchronous>, transform_indices = @transform_3, window_bounds = array<i64: 3, 3, 16, 16>}, {pipeline_mode = #tpu.pipeline_mode<synchronous>, transform_indices = @transform_4, window_bounds = array<i64: 1, 16>}, {pipeline_mode = #tpu.pipeline_mode<synchronous>, transform_indices = @transform_5, window_bounds = array<i64: 1, 16>}, {pipeline_mode = #tpu.pipeline_mode<synchronous>, transform_indices = @transform_6, window_bounds = array<i64: 1, 16>}, {pipeline_mode = #tpu.pipeline_mode<synchronous>, transform_indices = @transform_7, window_bounds = array<i64: 3, 3, 16, 16>}, {pipeline_mode = #tpu.pipeline_mode<synchronous>, transform_indices = @transform_8, window_bounds = array<i64: 1, 16>}, {pipeline_mode = #tpu.pipeline_mode<synchronous>, transform_indices = @transform_9, window_bounds = array<i64: 1, 16>}, {pipeline_mode = #tpu.pipeline_mode<synchronous>, transform_indices = @transform_10, window_bounds = array<i64: 1, 16>}, {pipeline_mode = #tpu.pipeline_mode<synchronous>, transform_indices = @transform_11, window_bounds = array<i64: 16, 4>}, {pipeline_mode = #tpu.pipeline_mode<synchronous>, transform_indices = @transform_12, window_bounds = array<i64: 4, 16>}, {transform_indices = @transform_13, window_bounds = array<i64: 1, 2, 16, 8, 16>}]} {
    %cst = arith.constant 0.000000e+00 : f32
    %0 = vector.broadcast %cst : f32 to vector<2x1x24x16xf32>
    %c0 = arith.constant 0 : index
    %c0_0 = arith.constant 0 : index
    %c0_1 = arith.constant 0 : index
    %c0_2 = arith.constant 0 : index
    %1 = vector.load %arg15[%c0, %c0_0, %c0_1, %c0_2] : memref<2x18x24x16xf32, #tpu.memory_space<vmem>>, vector<2x1x24x16xf32>
    tpu.vector_store %arg15[%c0, %c0_0, %c0_1, %c0_2], %0 {strides = array<i32>} : memref<2x18x24x16xf32, #tpu.memory_space<vmem>>, vector<2x1x24x16xf32>,
    %cst_3 = arith.constant 0.000000e+00 : f32
    %2 = vector.broadcast %cst_3 : f32 to vector<2x1x24x16xf32>
    %c0_4 = arith.constant 0 : index
    %c17 = arith.constant 17 : index
    %c0_5 = arith.constant 0 : index
    %c0_6 = arith.constant 0 : index
    %3 = vector.load %arg15[%c0_4, %c17, %c0_5, %c0_6] : memref<2x18x24x16xf32, #tpu.memory_space<vmem>>, vector<2x1x24x16xf32>
    tpu.vector_store %arg15[%c0_4, %c17, %c0_5, %c0_6], %2 {strides = array<i32>} : memref<2x18x24x16xf32, #tpu.memory_space<vmem>>, vector<2x1x24x16xf32>,
    %cst_7 = arith.constant 0.000000e+00 : f32
    %4 = vector.broadcast %cst_7 : f32 to vector<2x18x8x16xf32>
    %c0_8 = arith.constant 0 : index
    %c0_9 = arith.constant 0 : index
    %c0_10 = arith.constant 0 : index
    %c0_11 = arith.constant 0 : index
    %5 = vector.load %arg15[%c0_8, %c0_9, %c0_10, %c0_11] : memref<2x18x24x16xf32, #tpu.memory_space<vmem>>, vector<2x18x8x16xf32>
    tpu.vector_store %arg15[%c0_8, %c0_9, %c0_10, %c0_11], %4 {strides = array<i32>} : memref<2x18x24x16xf32, #tpu.memory_space<vmem>>, vector<2x18x8x16xf32>,
    %cst_12 = arith.constant 0.000000e+00 : f32
    %6 = vector.broadcast %cst_12 : f32 to vector<2x18x8x16xf32>
    %c0_13 = arith.constant 0 : index
    %c0_14 = arith.constant 0 : index
    %c16 = arith.constant 16 : index
    %c0_15 = arith.constant 0 : index
    %7 = vector.load %arg15[%c0_13, %c0_14, %c16, %c0_15] : memref<2x18x24x16xf32, #tpu.memory_space<vmem>>, vector<2x18x8x16xf32>
    tpu.vector_store %arg15[%c0_13, %c0_14, %c16, %c0_15], %6 {strides = array<i32>} : memref<2x18x24x16xf32, #tpu.memory_space<vmem>>, vector<2x18x8x16xf32>,
    %c0_16 = arith.constant 0 : index
    %c0_17 = arith.constant 0 : index
    %c0_18 = arith.constant 0 : index
    %c0_19 = arith.constant 0 : index
    %8 = vector.load %arg1[%c0_16, %c0_17, %c0_18, %c0_19] : memref<1x8x8x8xf32, #tpu.memory_space<vmem>>, vector<1x8x8x8xf32>
    %9 = vector.shape_cast %8 : vector<1x8x8x8xf32> to vector<8x8x8xf32>
    %10 = vector.shape_cast %9 : vector<8x8x8xf32> to vector<64x8xf32>
    %c0_20 = arith.constant 0 : index
    %c0_21 = arith.constant 0 : index
    %c0_22 = arith.constant 0 : index
    %11 = vector.load %arg2[%c0_20, %c0_21, %c0_22] : memref<4x8x16xf32, #tpu.memory_space<vmem>>, vector<1x8x16xf32>
    %12 = vector.shape_cast %11 : vector<1x8x16xf32> to vector<8x16xf32>
    %cst_23 = arith.constant dense<0.000000e+00> : vector<64x16xf32>
    %13 = tpu.matmul %10, %12, %cst_23 {dimension_numbers = #tpu.dot_dimension_numbers<[1], [0], [0], [1], [0, 0, 1, 1], [], []>} : vector<64x8xf32>, vector<8x16xf32>, vector<64x16xf32> -> vector<64x16xf32>
    %14 = vector.shape_cast %13 : vector<64x16xf32> to vector<8x1x8x16xf32>
    %c1 = arith.constant 1 : index
    %c0_24 = arith.constant 0 : index
    %c0_25 = arith.constant 0 : index
    %15 = vector.load %arg2[%c1, %c0_24, %c0_25] : memref<4x8x16xf32, #tpu.memory_space<vmem>>, vector<1x8x16xf32>
    %16 = vector.shape_cast %15 : vector<1x8x16xf32> to vector<8x16xf32>
    %cst_26 = arith.constant dense<0.000000e+00> : vector<64x16xf32>
    %17 = tpu.matmul %10, %16, %cst_26 {dimension_numbers = #tpu.dot_dimension_numbers<[1], [0], [0], [1], [0, 0, 1, 1], [], []>} : vector<64x8xf32>, vector<8x16xf32>, vector<64x16xf32> -> vector<64x16xf32>
    %18 = vector.shape_cast %17 : vector<64x16xf32> to vector<8x1x8x16xf32>
    %c2 = arith.constant 2 : index
    %c0_27 = arith.constant 0 : index
    %c0_28 = arith.constant 0 : index
    %19 = vector.load %arg2[%c2, %c0_27, %c0_28] : memref<4x8x16xf32, #tpu.memory_space<vmem>>, vector<1x8x16xf32>
    %20 = vector.shape_cast %19 : vector<1x8x16xf32> to vector<8x16xf32>
    %cst_29 = arith.constant dense<0.000000e+00> : vector<64x16xf32>
    %21 = tpu.matmul %10, %20, %cst_29 {dimension_numbers = #tpu.dot_dimension_numbers<[1], [0], [0], [1], [0, 0, 1, 1], [], []>} : vector<64x8xf32>, vector<8x16xf32>, vector<64x16xf32> -> vector<64x16xf32>
    %22 = vector.shape_cast %21 : vector<64x16xf32> to vector<8x1x8x16xf32>
    %c3 = arith.constant 3 : index
    %c0_30 = arith.constant 0 : index
    %c0_31 = arith.constant 0 : index
    %23 = vector.load %arg2[%c3, %c0_30, %c0_31] : memref<4x8x16xf32, #tpu.memory_space<vmem>>, vector<1x8x16xf32>
    %24 = vector.shape_cast %23 : vector<1x8x16xf32> to vector<8x16xf32>
    %cst_32 = arith.constant dense<0.000000e+00> : vector<64x16xf32>
    %25 = tpu.matmul %10, %24, %cst_32 {dimension_numbers = #tpu.dot_dimension_numbers<[1], [0], [0], [1], [0, 0, 1, 1], [], []>} : vector<64x8xf32>, vector<8x16xf32>, vector<64x16xf32> -> vector<64x16xf32>
    %26 = vector.shape_cast %25 : vector<64x16xf32> to vector<8x1x8x16xf32>
    %c0_33 = arith.constant 0 : index
    %c0_34 = arith.constant 0 : index
    %27 = vector.load %arg3[%c0_33, %c0_34] : memref<1x16xf32, #tpu.memory_space<vmem>>, vector<1x16xf32>
    %28 = tpu.concatenate %14, %22 in 1 : vector<8x1x8x16xf32>, vector<8x1x8x16xf32> -> vector<8x2x8x16xf32>
    %29 = vector.shape_cast %28 : vector<8x2x8x16xf32> to vector<16x8x16xf32>
    %30 = vector.shape_cast %27 : vector<1x16xf32> to vector<1x1x16xf32>
    %31 = vector.broadcast %30 : vector<1x1x16xf32> to vector<16x8x16xf32>
    %32 = arith.addf %29, %31 : vector<16x8x16xf32>
    %c0_35 = arith.constant 0 : index
    %c0_36 = arith.constant 0 : index
    %c0_37 = arith.constant 0 : index
    %c0_38 = arith.constant 0 : index
    %c0_39 = arith.constant 0 : index
    %33 = vector.load %arg14[%c0_35, %c0_36, %c0_37, %c0_38, %c0_39] : memref<1x2x16x8x16xf32, #tpu.memory_space<vmem>>, vector<1x1x16x8x16xf32>
    %34 = vector.shape_cast %33 : vector<1x1x16x8x16xf32> to vector<16x8x16xf32>
    %35 = vector.shape_cast %32 : vector<16x8x16xf32> to vector<1x1x16x8x16xf32>
    tpu.vector_store %arg14[%c0_35, %c0_36, %c0_37, %c0_38, %c0_39], %35 {strides = array<i32>} : memref<1x2x16x8x16xf32, #tpu.memory_space<vmem>>, vector<1x1x16x8x16xf32>,
    %c0_40 = arith.constant 0 : index
    %c1_41 = arith.constant 1 : index
    %c8 = arith.constant 8 : index
    %c0_42 = arith.constant 0 : index
    %36 = vector.load %arg15[%c0_40, %c1_41, %c8, %c0_42] : memref<2x18x24x16xf32, #tpu.memory_space<vmem>>, vector<1x16x8x16xf32>
    %37 = vector.shape_cast %36 : vector<1x16x8x16xf32> to vector<16x8x16xf32>
    %38 = vector.shape_cast %32 : vector<16x8x16xf32> to vector<1x16x8x16xf32>
    tpu.vector_store %arg15[%c0_40, %c1_41, %c8, %c0_42], %38 {strides = array<i32>} : memref<2x18x24x16xf32, #tpu.memory_space<vmem>>, vector<1x16x8x16xf32>,
    %39 = tpu.concatenate %18, %26 in 1 : vector<8x1x8x16xf32>, vector<8x1x8x16xf32> -> vector<8x2x8x16xf32>
    %40 = vector.shape_cast %39 : vector<8x2x8x16xf32> to vector<16x8x16xf32>
    %41 = vector.shape_cast %27 : vector<1x16xf32> to vector<1x1x16xf32>
    %42 = vector.broadcast %41 : vector<1x1x16xf32> to vector<16x8x16xf32>
    %43 = arith.addf %40, %42 : vector<16x8x16xf32>
    %c0_43 = arith.constant 0 : index
    %c1_44 = arith.constant 1 : index
    %c0_45 = arith.constant 0 : index
    %c0_46 = arith.constant 0 : index
    %c0_47 = arith.constant 0 : index
    %44 = vector.load %arg14[%c0_43, %c1_44, %c0_45, %c0_46, %c0_47] : memref<1x2x16x8x16xf32, #tpu.memory_space<vmem>>, vector<1x1x16x8x16xf32>
    %45 = vector.shape_cast %44 : vector<1x1x16x8x16xf32> to vector<16x8x16xf32>
    %46 = vector.shape_cast %43 : vector<16x8x16xf32> to vector<1x1x16x8x16xf32>
    tpu.vector_store %arg14[%c0_43, %c1_44, %c0_45, %c0_46, %c0_47], %46 {strides = array<i32>} : memref<1x2x16x8x16xf32, #tpu.memory_space<vmem>>, vector<1x1x16x8x16xf32>,
    %c1_48 = arith.constant 1 : index
    %c1_49 = arith.constant 1 : index
    %c8_50 = arith.constant 8 : index
    %c0_51 = arith.constant 0 : index
    %47 = vector.load %arg15[%c1_48, %c1_49, %c8_50, %c0_51] : memref<2x18x24x16xf32, #tpu.memory_space<vmem>>, vector<1x16x8x16xf32>
    %48 = vector.shape_cast %47 : vector<1x16x8x16xf32> to vector<16x8x16xf32>
    %49 = vector.shape_cast %43 : vector<16x8x16xf32> to vector<1x16x8x16xf32>
    tpu.vector_store %arg15[%c1_48, %c1_49, %c8_50, %c0_51], %49 {strides = array<i32>} : memref<2x18x24x16xf32, #tpu.memory_space<vmem>>, vector<1x16x8x16xf32>,
    %c0_52 = arith.constant 0 : index
    %c0_53 = arith.constant 0 : index
    %c8_54 = arith.constant 8 : index
    %c0_55 = arith.constant 0 : index
    %50 = vector.load %arg15[%c0_52, %c0_53, %c8_54, %c0_55] : memref<2x18x24x16xf32, #tpu.memory_space<vmem>>, vector<1x18x8x16xf32>
    %51 = vector.shape_cast %50 : vector<1x18x8x16xf32> to vector<18x8x16xf32>
    %c1_56 = arith.constant 1 : index
    %c0_57 = arith.constant 0 : index
    %c8_58 = arith.constant 8 : index
    %c0_59 = arith.constant 0 : index
    %52 = vector.load %arg15[%c1_56, %c0_57, %c8_58, %c0_59] : memref<2x18x24x16xf32, #tpu.memory_space<vmem>>, vector<1x18x8x16xf32>
    %53 = vector.shape_cast %52 : vector<1x18x8x16xf32> to vector<18x8x16xf32>
    %c1_60 = arith.constant 1 : index
    %c0_61 = arith.constant 0 : index
    %c7 = arith.constant 7 : index
    %c0_62 = arith.constant 0 : index
    %54 = vector.load %arg15[%c1_60, %c0_61, %c7, %c0_62] : memref<2x18x24x16xf32, #tpu.memory_space<vmem>>, vector<1x18x8x16xf32>
    %55 = vector.shape_cast %54 : vector<1x18x8x16xf32> to vector<18x8x16xf32>
    %c0_63 = arith.constant 0 : index
    %c0_64 = arith.constant 0 : index
    %c9 = arith.constant 9 : index
    %c0_65 = arith.constant 0 : index
    %56 = vector.load %arg15[%c0_63, %c0_64, %c9, %c0_65] : memref<2x18x24x16xf32, #tpu.memory_space<vmem>>, vector<1x18x8x16xf32>
    %57 = vector.shape_cast %56 : vector<1x18x8x16xf32> to vector<18x8x16xf32>
    %cst_66 = arith.constant 0.000000e+00 : f32
    %58 = vector.broadcast %cst_66 : f32 to vector<128x16xf32>
    %c0_67 = arith.constant 0 : index
    %c0_68 = arith.constant 0 : index
    %59 = vector.load %arg5[%c0_67, %c0_68] : memref<1x16xf32, #tpu.memory_space<vmem>>, vector<1x16xf32>
    %60 = vector.broadcast %59 : vector<1x16xf32> to vector<128x16xf32>
    %61 = arith.addf %58, %60 : vector<128x16xf32>
    %cst_69 = arith.constant 0.000000e+00 : f32
    %62 = vector.broadcast %cst_69 : f32 to vector<128x16xf32>
    %c0_70 = arith.constant 0 : index
    %c0_71 = arith.constant 0 : index
    %63 = vector.load %arg5[%c0_70, %c0_71] : memref<1x16xf32, #tpu.memory_space<vmem>>, vector<1x16xf32>
    %64 = vector.broadcast %63 : vector<1x16xf32> to vector<128x16xf32>
    %65 = arith.addf %62, %64 : vector<128x16xf32>
    %66 = vector.extract_strided_slice %55 {offsets = [0, 0, 0], sizes = [16, 8, 16], strides = [1, 1, 1]} : vector<18x8x16xf32> to vector<16x8x16xf32>
    %67 = vector.shape_cast %66 : vector<16x8x16xf32> to vector<128x16xf32>
    %68 = vector.extract_strided_slice %51 {offsets = [0, 0, 0], sizes = [16, 8, 16], strides = [1, 1, 1]} : vector<18x8x16xf32> to vector<16x8x16xf32>
    %69 = vector.shape_cast %68 : vector<16x8x16xf32> to vector<128x16xf32>
    %70 = vector.extract_strided_slice %53 {offsets = [0, 0, 0], sizes = [16, 8, 16], strides = [1, 1, 1]} : vector<18x8x16xf32> to vector<16x8x16xf32>
    %71 = vector.shape_cast %70 : vector<16x8x16xf32> to vector<128x16xf32>
    %72 = vector.extract_strided_slice %57 {offsets = [0, 0, 0], sizes = [16, 8, 16], strides = [1, 1, 1]} : vector<18x8x16xf32> to vector<16x8x16xf32>
    %73 = vector.shape_cast %72 : vector<16x8x16xf32> to vector<128x16xf32>
    %c0_72 = arith.constant 0 : index
    %c0_73 = arith.constant 0 : index
    %c0_74 = arith.constant 0 : index
    %c0_75 = arith.constant 0 : index
    %74 = vector.load %arg4[%c0_72, %c0_73, %c0_74, %c0_75] : memref<3x3x16x16xf32, #tpu.memory_space<vmem>>, vector<1x1x16x16xf32>
    %75 = vector.shape_cast %74 : vector<1x1x16x16xf32> to vector<16x16xf32>
    %cst_76 = arith.constant dense<0.000000e+00> : vector<128x16xf32>
    %76 = tpu.matmul %67, %75, %cst_76 {dimension_numbers = #tpu.dot_dimension_numbers<[1], [0], [0], [1], [0, 0, 1, 1], [], []>} : vector<128x16xf32>, vector<16x16xf32>, vector<128x16xf32> -> vector<128x16xf32>
    %77 = arith.addf %61, %76 : vector<128x16xf32>
    %c0_77 = arith.constant 0 : index
    %c1_78 = arith.constant 1 : index
    %c0_79 = arith.constant 0 : index
    %c0_80 = arith.constant 0 : index
    %78 = vector.load %arg4[%c0_77, %c1_78, %c0_79, %c0_80] : memref<3x3x16x16xf32, #tpu.memory_space<vmem>>, vector<1x1x16x16xf32>
    %79 = vector.shape_cast %78 : vector<1x1x16x16xf32> to vector<16x16xf32>
    %cst_81 = arith.constant dense<0.000000e+00> : vector<128x16xf32>
    %80 = tpu.matmul %69, %79, %cst_81 {dimension_numbers = #tpu.dot_dimension_numbers<[1], [0], [0], [1], [0, 0, 1, 1], [], []>} : vector<128x16xf32>, vector<16x16xf32>, vector<128x16xf32> -> vector<128x16xf32>
    %81 = arith.addf %77, %80 : vector<128x16xf32>
    %c0_82 = arith.constant 0 : index
    %c2_83 = arith.constant 2 : index
    %c0_84 = arith.constant 0 : index
    %c0_85 = arith.constant 0 : index
    %82 = vector.load %arg4[%c0_82, %c2_83, %c0_84, %c0_85] : memref<3x3x16x16xf32, #tpu.memory_space<vmem>>, vector<1x1x16x16xf32>
    %83 = vector.shape_cast %82 : vector<1x1x16x16xf32> to vector<16x16xf32>
    %cst_86 = arith.constant dense<0.000000e+00> : vector<128x16xf32>
    %84 = tpu.matmul %71, %83, %cst_86 {dimension_numbers = #tpu.dot_dimension_numbers<[1], [0], [0], [1], [0, 0, 1, 1], [], []>} : vector<128x16xf32>, vector<16x16xf32>, vector<128x16xf32> -> vector<128x16xf32>
    %85 = arith.addf %81, %84 : vector<128x16xf32>
    %c0_87 = arith.constant 0 : index
    %c0_88 = arith.constant 0 : index
    %c0_89 = arith.constant 0 : index
    %c0_90 = arith.constant 0 : index
    %86 = vector.load %arg4[%c0_87, %c0_88, %c0_89, %c0_90] : memref<3x3x16x16xf32, #tpu.memory_space<vmem>>, vector<1x1x16x16xf32>
    %87 = vector.shape_cast %86 : vector<1x1x16x16xf32> to vector<16x16xf32>
    %cst_91 = arith.constant dense<0.000000e+00> : vector<128x16xf32>
    %88 = tpu.matmul %69, %87, %cst_91 {dimension_numbers = #tpu.dot_dimension_numbers<[1], [0], [0], [1], [0, 0, 1, 1], [], []>} : vector<128x16xf32>, vector<16x16xf32>, vector<128x16xf32> -> vector<128x16xf32>
    %89 = arith.addf %65, %88 : vector<128x16xf32>
    %c0_92 = arith.constant 0 : index
    %c1_93 = arith.constant 1 : index
    %c0_94 = arith.constant 0 : index
    %c0_95 = arith.constant 0 : index
    %90 = vector.load %arg4[%c0_92, %c1_93, %c0_94, %c0_95] : memref<3x3x16x16xf32, #tpu.memory_space<vmem>>, vector<1x1x16x16xf32>
    %91 = vector.shape_cast %90 : vector<1x1x16x16xf32> to vector<16x16xf32>
    %cst_96 = arith.constant dense<0.000000e+00> : vector<128x16xf32>
    %92 = tpu.matmul %71, %91, %cst_96 {dimension_numbers = #tpu.dot_dimension_numbers<[1], [0], [0], [1], [0, 0, 1, 1], [], []>} : vector<128x16xf32>, vector<16x16xf32>, vector<128x16xf32> -> vector<128x16xf32>
    %93 = arith.addf %89, %92 : vector<128x16xf32>
    %c0_97 = arith.constant 0 : index
    %c2_98 = arith.constant 2 : index
    %c0_99 = arith.constant 0 : index
    %c0_100 = arith.constant 0 : index
    %94 = vector.load %arg4[%c0_97, %c2_98, %c0_99, %c0_100] : memref<3x3x16x16xf32, #tpu.memory_space<vmem>>, vector<1x1x16x16xf32>
    %95 = vector.shape_cast %94 : vector<1x1x16x16xf32> to vector<16x16xf32>
    %cst_101 = arith.constant dense<0.000000e+00> : vector<128x16xf32>
    %96 = tpu.matmul %73, %95, %cst_101 {dimension_numbers = #tpu.dot_dimension_numbers<[1], [0], [0], [1], [0, 0, 1, 1], [], []>} : vector<128x16xf32>, vector<16x16xf32>, vector<128x16xf32> -> vector<128x16xf32>
    %97 = arith.addf %93, %96 : vector<128x16xf32>
    %98 = vector.extract_strided_slice %55 {offsets = [1, 0, 0], sizes = [16, 8, 16], strides = [1, 1, 1]} : vector<18x8x16xf32> to vector<16x8x16xf32>
    %99 = vector.shape_cast %98 : vector<16x8x16xf32> to vector<128x16xf32>
    %100 = vector.extract_strided_slice %51 {offsets = [1, 0, 0], sizes = [16, 8, 16], strides = [1, 1, 1]} : vector<18x8x16xf32> to vector<16x8x16xf32>
    %101 = vector.shape_cast %100 : vector<16x8x16xf32> to vector<128x16xf32>
    %102 = vector.extract_strided_slice %53 {offsets = [1, 0, 0], sizes = [16, 8, 16], strides = [1, 1, 1]} : vector<18x8x16xf32> to vector<16x8x16xf32>
    %103 = vector.shape_cast %102 : vector<16x8x16xf32> to vector<128x16xf32>
    %104 = vector.extract_strided_slice %57 {offsets = [1, 0, 0], sizes = [16, 8, 16], strides = [1, 1, 1]} : vector<18x8x16xf32> to vector<16x8x16xf32>
    %105 = vector.shape_cast %104 : vector<16x8x16xf32> to vector<128x16xf32>
    %c1_102 = arith.constant 1 : index
    %c0_103 = arith.constant 0 : index
    %c0_104 = arith.constant 0 : index
    %c0_105 = arith.constant 0 : index
    %106 = vector.load %arg4[%c1_102, %c0_103, %c0_104, %c0_105] : memref<3x3x16x16xf32, #tpu.memory_space<vmem>>, vector<1x1x16x16xf32>
    %107 = vector.shape_cast %106 : vector<1x1x16x16xf32> to vector<16x16xf32>
    %cst_106 = arith.constant dense<0.000000e+00> : vector<128x16xf32>
    %108 = tpu.matmul %99, %107, %cst_106 {dimension_numbers = #tpu.dot_dimension_numbers<[1], [0], [0], [1], [0, 0, 1, 1], [], []>} : vector<128x16xf32>, vector<16x16xf32>, vector<128x16xf32> -> vector<128x16xf32>
    %109 = arith.addf %85, %108 : vector<128x16xf32>
    %c1_107 = arith.constant 1 : index
    %c1_108 = arith.constant 1 : index
    %c0_109 = arith.constant 0 : index
    %c0_110 = arith.constant 0 : index
    %110 = vector.load %arg4[%c1_107, %c1_108, %c0_109, %c0_110] : memref<3x3x16x16xf32, #tpu.memory_space<vmem>>, vector<1x1x16x16xf32>
    %111 = vector.shape_cast %110 : vector<1x1x16x16xf32> to vector<16x16xf32>
    %cst_111 = arith.constant dense<0.000000e+00> : vector<128x16xf32>
    %112 = tpu.matmul %101, %111, %cst_111 {dimension_numbers = #tpu.dot_dimension_numbers<[1], [0], [0], [1], [0, 0, 1, 1], [], []>} : vector<128x16xf32>, vector<16x16xf32>, vector<128x16xf32> -> vector<128x16xf32>
    %113 = arith.addf %109, %112 : vector<128x16xf32>
    %c1_112 = arith.constant 1 : index
    %c2_113 = arith.constant 2 : index
    %c0_114 = arith.constant 0 : index
    %c0_115 = arith.constant 0 : index
    %114 = vector.load %arg4[%c1_112, %c2_113, %c0_114, %c0_115] : memref<3x3x16x16xf32, #tpu.memory_space<vmem>>, vector<1x1x16x16xf32>
    %115 = vector.shape_cast %114 : vector<1x1x16x16xf32> to vector<16x16xf32>
    %cst_116 = arith.constant dense<0.000000e+00> : vector<128x16xf32>
    %116 = tpu.matmul %103, %115, %cst_116 {dimension_numbers = #tpu.dot_dimension_numbers<[1], [0], [0], [1], [0, 0, 1, 1], [], []>} : vector<128x16xf32>, vector<16x16xf32>, vector<128x16xf32> -> vector<128x16xf32>
    %117 = arith.addf %113, %116 : vector<128x16xf32>
    %c1_117 = arith.constant 1 : index
    %c0_118 = arith.constant 0 : index
    %c0_119 = arith.constant 0 : index
    %c0_120 = arith.constant 0 : index
    %118 = vector.load %arg4[%c1_117, %c0_118, %c0_119, %c0_120] : memref<3x3x16x16xf32, #tpu.memory_space<vmem>>, vector<1x1x16x16xf32>
    %119 = vector.shape_cast %118 : vector<1x1x16x16xf32> to vector<16x16xf32>
    %cst_121 = arith.constant dense<0.000000e+00> : vector<128x16xf32>
    %120 = tpu.matmul %101, %119, %cst_121 {dimension_numbers = #tpu.dot_dimension_numbers<[1], [0], [0], [1], [0, 0, 1, 1], [], []>} : vector<128x16xf32>, vector<16x16xf32>, vector<128x16xf32> -> vector<128x16xf32>
    %121 = arith.addf %97, %120 : vector<128x16xf32>
    %c1_122 = arith.constant 1 : index
    %c1_123 = arith.constant 1 : index
    %c0_124 = arith.constant 0 : index
    %c0_125 = arith.constant 0 : index
    %122 = vector.load %arg4[%c1_122, %c1_123, %c0_124, %c0_125] : memref<3x3x16x16xf32, #tpu.memory_space<vmem>>, vector<1x1x16x16xf32>
    %123 = vector.shape_cast %122 : vector<1x1x16x16xf32> to vector<16x16xf32>
    %cst_126 = arith.constant dense<0.000000e+00> : vector<128x16xf32>
    %124 = tpu.matmul %103, %123, %cst_126 {dimension_numbers = #tpu.dot_dimension_numbers<[1], [0], [0], [1], [0, 0, 1, 1], [], []>} : vector<128x16xf32>, vector<16x16xf32>, vector<128x16xf32> -> vector<128x16xf32>
    %125 = arith.addf %121, %124 : vector<128x16xf32>
    %c1_127 = arith.constant 1 : index
    %c2_128 = arith.constant 2 : index
    %c0_129 = arith.constant 0 : index
    %c0_130 = arith.constant 0 : index
    %126 = vector.load %arg4[%c1_127, %c2_128, %c0_129, %c0_130] : memref<3x3x16x16xf32, #tpu.memory_space<vmem>>, vector<1x1x16x16xf32>
    %127 = vector.shape_cast %126 : vector<1x1x16x16xf32> to vector<16x16xf32>
    %cst_131 = arith.constant dense<0.000000e+00> : vector<128x16xf32>
    %128 = tpu.matmul %105, %127, %cst_131 {dimension_numbers = #tpu.dot_dimension_numbers<[1], [0], [0], [1], [0, 0, 1, 1], [], []>} : vector<128x16xf32>, vector<16x16xf32>, vector<128x16xf32> -> vector<128x16xf32>
    %129 = arith.addf %125, %128 : vector<128x16xf32>
    %130 = vector.extract_strided_slice %55 {offsets = [2, 0, 0], sizes = [16, 8, 16], strides = [1, 1, 1]} : vector<18x8x16xf32> to vector<16x8x16xf32>
    %131 = vector.shape_cast %130 : vector<16x8x16xf32> to vector<128x16xf32>
    %132 = vector.extract_strided_slice %51 {offsets = [2, 0, 0], sizes = [16, 8, 16], strides = [1, 1, 1]} : vector<18x8x16xf32> to vector<16x8x16xf32>
    %133 = vector.shape_cast %132 : vector<16x8x16xf32> to vector<128x16xf32>
    %134 = vector.extract_strided_slice %53 {offsets = [2, 0, 0], sizes = [16, 8, 16], strides = [1, 1, 1]} : vector<18x8x16xf32> to vector<16x8x16xf32>
    %135 = vector.shape_cast %134 : vector<16x8x16xf32> to vector<128x16xf32>
    %136 = vector.extract_strided_slice %57 {offsets = [2, 0, 0], sizes = [16, 8, 16], strides = [1, 1, 1]} : vector<18x8x16xf32> to vector<16x8x16xf32>
    %137 = vector.shape_cast %136 : vector<16x8x16xf32> to vector<128x16xf32>
    %c2_132 = arith.constant 2 : index
    %c0_133 = arith.constant 0 : index
    %c0_134 = arith.constant 0 : index
    %c0_135 = arith.constant 0 : index
    %138 = vector.load %arg4[%c2_132, %c0_133, %c0_134, %c0_135] : memref<3x3x16x16xf32, #tpu.memory_space<vmem>>, vector<1x1x16x16xf32>
    %139 = vector.shape_cast %138 : vector<1x1x16x16xf32> to vector<16x16xf32>
    %cst_136 = arith.constant dense<0.000000e+00> : vector<128x16xf32>
    %140 = tpu.matmul %131, %139, %cst_136 {dimension_numbers = #tpu.dot_dimension_numbers<[1], [0], [0], [1], [0, 0, 1, 1], [], []>} : vector<128x16xf32>, vector<16x16xf32>, vector<128x16xf32> -> vector<128x16xf32>
    %141 = arith.addf %117, %140 : vector<128x16xf32>
    %c2_137 = arith.constant 2 : index
    %c1_138 = arith.constant 1 : index
    %c0_139 = arith.constant 0 : index
    %c0_140 = arith.constant 0 : index
    %142 = vector.load %arg4[%c2_137, %c1_138, %c0_139, %c0_140] : memref<3x3x16x16xf32, #tpu.memory_space<vmem>>, vector<1x1x16x16xf32>
    %143 = vector.shape_cast %142 : vector<1x1x16x16xf32> to vector<16x16xf32>
    %cst_141 = arith.constant dense<0.000000e+00> : vector<128x16xf32>
    %144 = tpu.matmul %133, %143, %cst_141 {dimension_numbers = #tpu.dot_dimension_numbers<[1], [0], [0], [1], [0, 0, 1, 1], [], []>} : vector<128x16xf32>, vector<16x16xf32>, vector<128x16xf32> -> vector<128x16xf32>
    %145 = arith.addf %141, %144 : vector<128x16xf32>
    %c2_142 = arith.constant 2 : index
    %c2_143 = arith.constant 2 : index
    %c0_144 = arith.constant 0 : index
    %c0_145 = arith.constant 0 : index
    %146 = vector.load %arg4[%c2_142, %c2_143, %c0_144, %c0_145] : memref<3x3x16x16xf32, #tpu.memory_space<vmem>>, vector<1x1x16x16xf32>
    %147 = vector.shape_cast %146 : vector<1x1x16x16xf32> to vector<16x16xf32>
    %cst_146 = arith.constant dense<0.000000e+00> : vector<128x16xf32>
    %148 = tpu.matmul %135, %147, %cst_146 {dimension_numbers = #tpu.dot_dimension_numbers<[1], [0], [0], [1], [0, 0, 1, 1], [], []>} : vector<128x16xf32>, vector<16x16xf32>, vector<128x16xf32> -> vector<128x16xf32>
    %149 = arith.addf %145, %148 : vector<128x16xf32>
    %c2_147 = arith.constant 2 : index
    %c0_148 = arith.constant 0 : index
    %c0_149 = arith.constant 0 : index
    %c0_150 = arith.constant 0 : index
    %150 = vector.load %arg4[%c2_147, %c0_148, %c0_149, %c0_150] : memref<3x3x16x16xf32, #tpu.memory_space<vmem>>, vector<1x1x16x16xf32>
    %151 = vector.shape_cast %150 : vector<1x1x16x16xf32> to vector<16x16xf32>
    %cst_151 = arith.constant dense<0.000000e+00> : vector<128x16xf32>
    %152 = tpu.matmul %133, %151, %cst_151 {dimension_numbers = #tpu.dot_dimension_numbers<[1], [0], [0], [1], [0, 0, 1, 1], [], []>} : vector<128x16xf32>, vector<16x16xf32>, vector<128x16xf32> -> vector<128x16xf32>
    %153 = arith.addf %129, %152 : vector<128x16xf32>
    %c2_152 = arith.constant 2 : index
    %c1_153 = arith.constant 1 : index
    %c0_154 = arith.constant 0 : index
    %c0_155 = arith.constant 0 : index
    %154 = vector.load %arg4[%c2_152, %c1_153, %c0_154, %c0_155] : memref<3x3x16x16xf32, #tpu.memory_space<vmem>>, vector<1x1x16x16xf32>
    %155 = vector.shape_cast %154 : vector<1x1x16x16xf32> to vector<16x16xf32>
    %cst_156 = arith.constant dense<0.000000e+00> : vector<128x16xf32>
    %156 = tpu.matmul %135, %155, %cst_156 {dimension_numbers = #tpu.dot_dimension_numbers<[1], [0], [0], [1], [0, 0, 1, 1], [], []>} : vector<128x16xf32>, vector<16x16xf32>, vector<128x16xf32> -> vector<128x16xf32>
    %157 = arith.addf %153, %156 : vector<128x16xf32>
    %c2_157 = arith.constant 2 : index
    %c2_158 = arith.constant 2 : index
    %c0_159 = arith.constant 0 : index
    %c0_160 = arith.constant 0 : index
    %158 = vector.load %arg4[%c2_157, %c2_158, %c0_159, %c0_160] : memref<3x3x16x16xf32, #tpu.memory_space<vmem>>, vector<1x1x16x16xf32>
    %159 = vector.shape_cast %158 : vector<1x1x16x16xf32> to vector<16x16xf32>
    %cst_161 = arith.constant dense<0.000000e+00> : vector<128x16xf32>
    %160 = tpu.matmul %137, %159, %cst_161 {dimension_numbers = #tpu.dot_dimension_numbers<[1], [0], [0], [1], [0, 0, 1, 1], [], []>} : vector<128x16xf32>, vector<16x16xf32>, vector<128x16xf32> -> vector<128x16xf32>
    %161 = arith.addf %157, %160 : vector<128x16xf32>
    %cst_162 = arith.constant dense<0.000000e+00> : vector<16xf32>
    %162 = vector.multi_reduction <add>, %149, %cst_162 [0] : vector<128x16xf32> to vector<16xf32>
    %163 = vector.shape_cast %162 : vector<16xf32> to vector<1x16xf32>
    %cst_163 = arith.constant dense<0.000000e+00> : vector<16xf32>
    %164 = vector.multi_reduction <add>, %161, %cst_163 [0] : vector<128x16xf32> to vector<16xf32>
    %165 = vector.shape_cast %164 : vector<16xf32> to vector<1x16xf32>
    %166 = arith.addf %163, %165 : vector<1x16xf32>
    %c0_164 = arith.constant 0 : index
    %c0_165 = arith.constant 0 : index
    %167 = vector.load %arg12[%c0_164, %c0_165] : memref<16x4xf32, #tpu.memory_space<vmem>>, vector<16x4xf32>
    %cst_166 = arith.constant dense<0.000000e+00> : vector<1x4xf32>
    %168 = tpu.matmul %166, %167, %cst_166 {dimension_numbers = #tpu.dot_dimension_numbers<[1], [0], [0], [1], [0, 0, 1, 1], [], []>} : vector<1x16xf32>, vector<16x4xf32>, vector<1x4xf32> -> vector<1x4xf32>
    %cst_167 = arith.constant 1.024000e+03 : f32
    %169 = vector.broadcast %cst_167 : f32 to vector<1x4xf32>
    %170 = arith.divf %168, %169 : vector<1x4xf32>
    %c0_168 = arith.constant 0 : index
    %c0_169 = arith.constant 0 : index
    %171 = vector.load %arg13[%c0_168, %c0_169] : memref<4x16xf32, #tpu.memory_space<vmem>>, vector<4x16xf32>
    %cst_170 = arith.constant dense<0.000000e+00> : vector<1x16xf32>
    %172 = tpu.matmul %170, %171, %cst_170 {dimension_numbers = #tpu.dot_dimension_numbers<[1], [0], [0], [1], [0, 0, 1, 1], [], []>} : vector<1x4xf32>, vector<4x16xf32>, vector<1x16xf32> -> vector<1x16xf32>
    %173 = vector.broadcast %172 : vector<1x16xf32> to vector<128x16xf32>
    %174 = arith.subf %149, %173 : vector<128x16xf32>
    %175 = vector.broadcast %172 : vector<1x16xf32> to vector<128x16xf32>
    %176 = arith.subf %161, %175 : vector<128x16xf32>
    %177 = arith.mulf %174, %174 : vector<128x16xf32>
    %cst_171 = arith.constant dense<0.000000e+00> : vector<16xf32>
    %178 = vector.multi_reduction <add>, %177, %cst_171 [0] : vector<128x16xf32> to vector<16xf32>
    %179 = vector.shape_cast %178 : vector<16xf32> to vector<1x16xf32>
    %180 = arith.mulf %176, %176 : vector<128x16xf32>
    %cst_172 = arith.constant dense<0.000000e+00> : vector<16xf32>
    %181 = vector.multi_reduction <add>, %180, %cst_172 [0] : vector<128x16xf32> to vector<16xf32>
    %182 = vector.shape_cast %181 : vector<16xf32> to vector<1x16xf32>
    %183 = arith.addf %179, %182 : vector<1x16xf32>
    %c0_173 = arith.constant 0 : index
    %c0_174 = arith.constant 0 : index
    %184 = vector.load %arg12[%c0_173, %c0_174] : memref<16x4xf32, #tpu.memory_space<vmem>>, vector<16x4xf32>
    %cst_175 = arith.constant dense<0.000000e+00> : vector<1x4xf32>
    %185 = tpu.matmul %183, %184, %cst_175 {dimension_numbers = #tpu.dot_dimension_numbers<[1], [0], [0], [1], [0, 0, 1, 1], [], []>} : vector<1x16xf32>, vector<16x4xf32>, vector<1x4xf32> -> vector<1x4xf32>
    %cst_176 = arith.constant 1.024000e+03 : f32
    %186 = vector.broadcast %cst_176 : f32 to vector<1x4xf32>
    %187 = arith.divf %185, %186 : vector<1x4xf32>
    %c0_177 = arith.constant 0 : index
    %c0_178 = arith.constant 0 : index
    %188 = vector.load %arg13[%c0_177, %c0_178] : memref<4x16xf32, #tpu.memory_space<vmem>>, vector<4x16xf32>
    %cst_179 = arith.constant dense<0.000000e+00> : vector<1x16xf32>
    %189 = tpu.matmul %187, %188, %cst_179 {dimension_numbers = #tpu.dot_dimension_numbers<[1], [0], [0], [1], [0, 0, 1, 1], [], []>} : vector<1x4xf32>, vector<4x16xf32>, vector<1x16xf32> -> vector<1x16xf32>
    %cst_180 = arith.constant 9.99999974E-6 : f32
    %190 = vector.broadcast %cst_180 : f32 to vector<1x16xf32>
    %191 = arith.addf %189, %190 : vector<1x16xf32>
    %192 = math.rsqrt %191 : vector<1x16xf32>
    %c0_181 = arith.constant 0 : index
    %c0_182 = arith.constant 0 : index
    %193 = vector.load %arg6[%c0_181, %c0_182] : memref<1x16xf32, #tpu.memory_space<vmem>>, vector<1x16xf32>
    %c0_183 = arith.constant 0 : index
    %c0_184 = arith.constant 0 : index
    %194 = vector.load %arg7[%c0_183, %c0_184] : memref<1x16xf32, #tpu.memory_space<vmem>>, vector<1x16xf32>
    %195 = vector.broadcast %192 : vector<1x16xf32> to vector<128x16xf32>
    %196 = arith.mulf %174, %195 : vector<128x16xf32>
    %197 = vector.broadcast %193 : vector<1x16xf32> to vector<128x16xf32>
    %198 = arith.mulf %196, %197 : vector<128x16xf32>
    %199 = vector.broadcast %194 : vector<1x16xf32> to vector<128x16xf32>
    %200 = arith.addf %198, %199 : vector<128x16xf32>
    %cst_185 = arith.constant 0.000000e+00 : f32
    %201 = vector.broadcast %cst_185 : f32 to vector<128x16xf32>
    %202 = arith.subf %201, %200 : vector<128x16xf32>
    %203 = math.exp %202 : vector<128x16xf32>
    %cst_186 = arith.constant 1.000000e+00 : f32
    %204 = vector.broadcast %cst_186 : f32 to vector<128x16xf32>
    %205 = arith.addf %204, %203 : vector<128x16xf32>
    %206 = tpu.reciprocal %205 : vector<128x16xf32> -> vector<128x16xf32>
    %207 = arith.mulf %200, %206 : vector<128x16xf32>
    %208 = vector.shape_cast %207 : vector<128x16xf32> to vector<16x8x16xf32>
    %c0_187 = arith.constant 0 : index
    %c1_188 = arith.constant 1 : index
    %c8_189 = arith.constant 8 : index
    %c0_190 = arith.constant 0 : index
    %209 = vector.load %arg15[%c0_187, %c1_188, %c8_189, %c0_190] : memref<2x18x24x16xf32, #tpu.memory_space<vmem>>, vector<1x16x8x16xf32>
    %210 = vector.shape_cast %209 : vector<1x16x8x16xf32> to vector<16x8x16xf32>
    %211 = vector.shape_cast %208 : vector<16x8x16xf32> to vector<1x16x8x16xf32>
    tpu.vector_store %arg15[%c0_187, %c1_188, %c8_189, %c0_190], %211 {strides = array<i32>} : memref<2x18x24x16xf32, #tpu.memory_space<vmem>>, vector<1x16x8x16xf32>,
    %212 = vector.broadcast %192 : vector<1x16xf32> to vector<128x16xf32>
    %213 = arith.mulf %176, %212 : vector<128x16xf32>
    %214 = vector.broadcast %193 : vector<1x16xf32> to vector<128x16xf32>
    %215 = arith.mulf %213, %214 : vector<128x16xf32>
    %216 = vector.broadcast %194 : vector<1x16xf32> to vector<128x16xf32>
    %217 = arith.addf %215, %216 : vector<128x16xf32>
    %cst_191 = arith.constant 0.000000e+00 : f32
    %218 = vector.broadcast %cst_191 : f32 to vector<128x16xf32>
    %219 = arith.subf %218, %217 : vector<128x16xf32>
    %220 = math.exp %219 : vector<128x16xf32>
    %cst_192 = arith.constant 1.000000e+00 : f32
    %221 = vector.broadcast %cst_192 : f32 to vector<128x16xf32>
    %222 = arith.addf %221, %220 : vector<128x16xf32>
    %223 = tpu.reciprocal %222 : vector<128x16xf32> -> vector<128x16xf32>
    %224 = arith.mulf %217, %223 : vector<128x16xf32>
    %225 = vector.shape_cast %224 : vector<128x16xf32> to vector<16x8x16xf32>
    %c1_193 = arith.constant 1 : index
    %c1_194 = arith.constant 1 : index
    %c8_195 = arith.constant 8 : index
    %c0_196 = arith.constant 0 : index
    %226 = vector.load %arg15[%c1_193, %c1_194, %c8_195, %c0_196] : memref<2x18x24x16xf32, #tpu.memory_space<vmem>>, vector<1x16x8x16xf32>
    %227 = vector.shape_cast %226 : vector<1x16x8x16xf32> to vector<16x8x16xf32>
    %228 = vector.shape_cast %225 : vector<16x8x16xf32> to vector<1x16x8x16xf32>
    tpu.vector_store %arg15[%c1_193, %c1_194, %c8_195, %c0_196], %228 {strides = array<i32>} : memref<2x18x24x16xf32, #tpu.memory_space<vmem>>, vector<1x16x8x16xf32>,
    %c0_197 = arith.constant 0 : index
    %c0_198 = arith.constant 0 : index
    %c8_199 = arith.constant 8 : index
    %c0_200 = arith.constant 0 : index
    %229 = vector.load %arg15[%c0_197, %c0_198, %c8_199, %c0_200] : memref<2x18x24x16xf32, #tpu.memory_space<vmem>>, vector<1x18x8x16xf32>
    %230 = vector.shape_cast %229 : vector<1x18x8x16xf32> to vector<18x8x16xf32>
    %c1_201 = arith.constant 1 : index
    %c0_202 = arith.constant 0 : index
    %c8_203 = arith.constant 8 : index
    %c0_204 = arith.constant 0 : index
    %231 = vector.load %arg15[%c1_201, %c0_202, %c8_203, %c0_204] : memref<2x18x24x16xf32, #tpu.memory_space<vmem>>, vector<1x18x8x16xf32>
    %232 = vector.shape_cast %231 : vector<1x18x8x16xf32> to vector<18x8x16xf32>
    %c1_205 = arith.constant 1 : index
    %c0_206 = arith.constant 0 : index
    %c7_207 = arith.constant 7 : index
    %c0_208 = arith.constant 0 : index
    %233 = vector.load %arg15[%c1_205, %c0_206, %c7_207, %c0_208] : memref<2x18x24x16xf32, #tpu.memory_space<vmem>>, vector<1x18x8x16xf32>
    %234 = vector.shape_cast %233 : vector<1x18x8x16xf32> to vector<18x8x16xf32>
    %c0_209 = arith.constant 0 : index
    %c0_210 = arith.constant 0 : index
    %c9_211 = arith.constant 9 : index
    %c0_212 = arith.constant 0 : index
    %235 = vector.load %arg15[%c0_209, %c0_210, %c9_211, %c0_212] : memref<2x18x24x16xf32, #tpu.memory_space<vmem>>, vector<1x18x8x16xf32>
    %236 = vector.shape_cast %235 : vector<1x18x8x16xf32> to vector<18x8x16xf32>
    %cst_213 = arith.constant 0.000000e+00 : f32
    %237 = vector.broadcast %cst_213 : f32 to vector<128x16xf32>
    %c0_214 = arith.constant 0 : index
    %c0_215 = arith.constant 0 : index
    %238 = vector.load %arg9[%c0_214, %c0_215] : memref<1x16xf32, #tpu.memory_space<vmem>>, vector<1x16xf32>
    %239 = vector.broadcast %238 : vector<1x16xf32> to vector<128x16xf32>
    %240 = arith.addf %237, %239 : vector<128x16xf32>
    %cst_216 = arith.constant 0.000000e+00 : f32
    %241 = vector.broadcast %cst_216 : f32 to vector<128x16xf32>
    %c0_217 = arith.constant 0 : index
    %c0_218 = arith.constant 0 : index
    %242 = vector.load %arg9[%c0_217, %c0_218] : memref<1x16xf32, #tpu.memory_space<vmem>>, vector<1x16xf32>
    %243 = vector.broadcast %242 : vector<1x16xf32> to vector<128x16xf32>
    %244 = arith.addf %241, %243 : vector<128x16xf32>
    %245 = vector.extract_strided_slice %234 {offsets = [0, 0, 0], sizes = [16, 8, 16], strides = [1, 1, 1]} : vector<18x8x16xf32> to vector<16x8x16xf32>
    %246 = vector.shape_cast %245 : vector<16x8x16xf32> to vector<128x16xf32>
    %247 = vector.extract_strided_slice %230 {offsets = [0, 0, 0], sizes = [16, 8, 16], strides = [1, 1, 1]} : vector<18x8x16xf32> to vector<16x8x16xf32>
    %248 = vector.shape_cast %247 : vector<16x8x16xf32> to vector<128x16xf32>
    %249 = vector.extract_strided_slice %232 {offsets = [0, 0, 0], sizes = [16, 8, 16], strides = [1, 1, 1]} : vector<18x8x16xf32> to vector<16x8x16xf32>
    %250 = vector.shape_cast %249 : vector<16x8x16xf32> to vector<128x16xf32>
    %251 = vector.extract_strided_slice %236 {offsets = [0, 0, 0], sizes = [16, 8, 16], strides = [1, 1, 1]} : vector<18x8x16xf32> to vector<16x8x16xf32>
    %252 = vector.shape_cast %251 : vector<16x8x16xf32> to vector<128x16xf32>
    %c0_219 = arith.constant 0 : index
    %c0_220 = arith.constant 0 : index
    %c0_221 = arith.constant 0 : index
    %c0_222 = arith.constant 0 : index
    %253 = vector.load %arg8[%c0_219, %c0_220, %c0_221, %c0_222] : memref<3x3x16x16xf32, #tpu.memory_space<vmem>>, vector<1x1x16x16xf32>
    %254 = vector.shape_cast %253 : vector<1x1x16x16xf32> to vector<16x16xf32>
    %cst_223 = arith.constant dense<0.000000e+00> : vector<128x16xf32>
    %255 = tpu.matmul %246, %254, %cst_223 {dimension_numbers = #tpu.dot_dimension_numbers<[1], [0], [0], [1], [0, 0, 1, 1], [], []>} : vector<128x16xf32>, vector<16x16xf32>, vector<128x16xf32> -> vector<128x16xf32>
    %256 = arith.addf %240, %255 : vector<128x16xf32>
    %c0_224 = arith.constant 0 : index
    %c1_225 = arith.constant 1 : index
    %c0_226 = arith.constant 0 : index
    %c0_227 = arith.constant 0 : index
    %257 = vector.load %arg8[%c0_224, %c1_225, %c0_226, %c0_227] : memref<3x3x16x16xf32, #tpu.memory_space<vmem>>, vector<1x1x16x16xf32>
    %258 = vector.shape_cast %257 : vector<1x1x16x16xf32> to vector<16x16xf32>
    %cst_228 = arith.constant dense<0.000000e+00> : vector<128x16xf32>
    %259 = tpu.matmul %248, %258, %cst_228 {dimension_numbers = #tpu.dot_dimension_numbers<[1], [0], [0], [1], [0, 0, 1, 1], [], []>} : vector<128x16xf32>, vector<16x16xf32>, vector<128x16xf32> -> vector<128x16xf32>
    %260 = arith.addf %256, %259 : vector<128x16xf32>
    %c0_229 = arith.constant 0 : index
    %c2_230 = arith.constant 2 : index
    %c0_231 = arith.constant 0 : index
    %c0_232 = arith.constant 0 : index
    %261 = vector.load %arg8[%c0_229, %c2_230, %c0_231, %c0_232] : memref<3x3x16x16xf32, #tpu.memory_space<vmem>>, vector<1x1x16x16xf32>
    %262 = vector.shape_cast %261 : vector<1x1x16x16xf32> to vector<16x16xf32>
    %cst_233 = arith.constant dense<0.000000e+00> : vector<128x16xf32>
    %263 = tpu.matmul %250, %262, %cst_233 {dimension_numbers = #tpu.dot_dimension_numbers<[1], [0], [0], [1], [0, 0, 1, 1], [], []>} : vector<128x16xf32>, vector<16x16xf32>, vector<128x16xf32> -> vector<128x16xf32>
    %264 = arith.addf %260, %263 : vector<128x16xf32>
    %c0_234 = arith.constant 0 : index
    %c0_235 = arith.constant 0 : index
    %c0_236 = arith.constant 0 : index
    %c0_237 = arith.constant 0 : index
    %265 = vector.load %arg8[%c0_234, %c0_235, %c0_236, %c0_237] : memref<3x3x16x16xf32, #tpu.memory_space<vmem>>, vector<1x1x16x16xf32>
    %266 = vector.shape_cast %265 : vector<1x1x16x16xf32> to vector<16x16xf32>
    %cst_238 = arith.constant dense<0.000000e+00> : vector<128x16xf32>
    %267 = tpu.matmul %248, %266, %cst_238 {dimension_numbers = #tpu.dot_dimension_numbers<[1], [0], [0], [1], [0, 0, 1, 1], [], []>} : vector<128x16xf32>, vector<16x16xf32>, vector<128x16xf32> -> vector<128x16xf32>
    %268 = arith.addf %244, %267 : vector<128x16xf32>
    %c0_239 = arith.constant 0 : index
    %c1_240 = arith.constant 1 : index
    %c0_241 = arith.constant 0 : index
    %c0_242 = arith.constant 0 : index
    %269 = vector.load %arg8[%c0_239, %c1_240, %c0_241, %c0_242] : memref<3x3x16x16xf32, #tpu.memory_space<vmem>>, vector<1x1x16x16xf32>
    %270 = vector.shape_cast %269 : vector<1x1x16x16xf32> to vector<16x16xf32>
    %cst_243 = arith.constant dense<0.000000e+00> : vector<128x16xf32>
    %271 = tpu.matmul %250, %270, %cst_243 {dimension_numbers = #tpu.dot_dimension_numbers<[1], [0], [0], [1], [0, 0, 1, 1], [], []>} : vector<128x16xf32>, vector<16x16xf32>, vector<128x16xf32> -> vector<128x16xf32>
    %272 = arith.addf %268, %271 : vector<128x16xf32>
    %c0_244 = arith.constant 0 : index
    %c2_245 = arith.constant 2 : index
    %c0_246 = arith.constant 0 : index
    %c0_247 = arith.constant 0 : index
    %273 = vector.load %arg8[%c0_244, %c2_245, %c0_246, %c0_247] : memref<3x3x16x16xf32, #tpu.memory_space<vmem>>, vector<1x1x16x16xf32>
    %274 = vector.shape_cast %273 : vector<1x1x16x16xf32> to vector<16x16xf32>
    %cst_248 = arith.constant dense<0.000000e+00> : vector<128x16xf32>
    %275 = tpu.matmul %252, %274, %cst_248 {dimension_numbers = #tpu.dot_dimension_numbers<[1], [0], [0], [1], [0, 0, 1, 1], [], []>} : vector<128x16xf32>, vector<16x16xf32>, vector<128x16xf32> -> vector<128x16xf32>
    %276 = arith.addf %272, %275 : vector<128x16xf32>
    %277 = vector.extract_strided_slice %234 {offsets = [1, 0, 0], sizes = [16, 8, 16], strides = [1, 1, 1]} : vector<18x8x16xf32> to vector<16x8x16xf32>
    %278 = vector.shape_cast %277 : vector<16x8x16xf32> to vector<128x16xf32>
    %279 = vector.extract_strided_slice %230 {offsets = [1, 0, 0], sizes = [16, 8, 16], strides = [1, 1, 1]} : vector<18x8x16xf32> to vector<16x8x16xf32>
    %280 = vector.shape_cast %279 : vector<16x8x16xf32> to vector<128x16xf32>
    %281 = vector.extract_strided_slice %232 {offsets = [1, 0, 0], sizes = [16, 8, 16], strides = [1, 1, 1]} : vector<18x8x16xf32> to vector<16x8x16xf32>
    %282 = vector.shape_cast %281 : vector<16x8x16xf32> to vector<128x16xf32>
    %283 = vector.extract_strided_slice %236 {offsets = [1, 0, 0], sizes = [16, 8, 16], strides = [1, 1, 1]} : vector<18x8x16xf32> to vector<16x8x16xf32>
    %284 = vector.shape_cast %283 : vector<16x8x16xf32> to vector<128x16xf32>
    %c1_249 = arith.constant 1 : index
    %c0_250 = arith.constant 0 : index
    %c0_251 = arith.constant 0 : index
    %c0_252 = arith.constant 0 : index
    %285 = vector.load %arg8[%c1_249, %c0_250, %c0_251, %c0_252] : memref<3x3x16x16xf32, #tpu.memory_space<vmem>>, vector<1x1x16x16xf32>
    %286 = vector.shape_cast %285 : vector<1x1x16x16xf32> to vector<16x16xf32>
    %cst_253 = arith.constant dense<0.000000e+00> : vector<128x16xf32>
    %287 = tpu.matmul %278, %286, %cst_253 {dimension_numbers = #tpu.dot_dimension_numbers<[1], [0], [0], [1], [0, 0, 1, 1], [], []>} : vector<128x16xf32>, vector<16x16xf32>, vector<128x16xf32> -> vector<128x16xf32>
    %288 = arith.addf %264, %287 : vector<128x16xf32>
    %c1_254 = arith.constant 1 : index
    %c1_255 = arith.constant 1 : index
    %c0_256 = arith.constant 0 : index
    %c0_257 = arith.constant 0 : index
    %289 = vector.load %arg8[%c1_254, %c1_255, %c0_256, %c0_257] : memref<3x3x16x16xf32, #tpu.memory_space<vmem>>, vector<1x1x16x16xf32>
    %290 = vector.shape_cast %289 : vector<1x1x16x16xf32> to vector<16x16xf32>
    %cst_258 = arith.constant dense<0.000000e+00> : vector<128x16xf32>
    %291 = tpu.matmul %280, %290, %cst_258 {dimension_numbers = #tpu.dot_dimension_numbers<[1], [0], [0], [1], [0, 0, 1, 1], [], []>} : vector<128x16xf32>, vector<16x16xf32>, vector<128x16xf32> -> vector<128x16xf32>
    %292 = arith.addf %288, %291 : vector<128x16xf32>
    %c1_259 = arith.constant 1 : index
    %c2_260 = arith.constant 2 : index
    %c0_261 = arith.constant 0 : index
    %c0_262 = arith.constant 0 : index
    %293 = vector.load %arg8[%c1_259, %c2_260, %c0_261, %c0_262] : memref<3x3x16x16xf32, #tpu.memory_space<vmem>>, vector<1x1x16x16xf32>
    %294 = vector.shape_cast %293 : vector<1x1x16x16xf32> to vector<16x16xf32>
    %cst_263 = arith.constant dense<0.000000e+00> : vector<128x16xf32>
    %295 = tpu.matmul %282, %294, %cst_263 {dimension_numbers = #tpu.dot_dimension_numbers<[1], [0], [0], [1], [0, 0, 1, 1], [], []>} : vector<128x16xf32>, vector<16x16xf32>, vector<128x16xf32> -> vector<128x16xf32>
    %296 = arith.addf %292, %295 : vector<128x16xf32>
    %c1_264 = arith.constant 1 : index
    %c0_265 = arith.constant 0 : index
    %c0_266 = arith.constant 0 : index
    %c0_267 = arith.constant 0 : index
    %297 = vector.load %arg8[%c1_264, %c0_265, %c0_266, %c0_267] : memref<3x3x16x16xf32, #tpu.memory_space<vmem>>, vector<1x1x16x16xf32>
    %298 = vector.shape_cast %297 : vector<1x1x16x16xf32> to vector<16x16xf32>
    %cst_268 = arith.constant dense<0.000000e+00> : vector<128x16xf32>
    %299 = tpu.matmul %280, %298, %cst_268 {dimension_numbers = #tpu.dot_dimension_numbers<[1], [0], [0], [1], [0, 0, 1, 1], [], []>} : vector<128x16xf32>, vector<16x16xf32>, vector<128x16xf32> -> vector<128x16xf32>
    %300 = arith.addf %276, %299 : vector<128x16xf32>
    %c1_269 = arith.constant 1 : index
    %c1_270 = arith.constant 1 : index
    %c0_271 = arith.constant 0 : index
    %c0_272 = arith.constant 0 : index
    %301 = vector.load %arg8[%c1_269, %c1_270, %c0_271, %c0_272] : memref<3x3x16x16xf32, #tpu.memory_space<vmem>>, vector<1x1x16x16xf32>
    %302 = vector.shape_cast %301 : vector<1x1x16x16xf32> to vector<16x16xf32>
    %cst_273 = arith.constant dense<0.000000e+00> : vector<128x16xf32>
    %303 = tpu.matmul %282, %302, %cst_273 {dimension_numbers = #tpu.dot_dimension_numbers<[1], [0], [0], [1], [0, 0, 1, 1], [], []>} : vector<128x16xf32>, vector<16x16xf32>, vector<128x16xf32> -> vector<128x16xf32>
    %304 = arith.addf %300, %303 : vector<128x16xf32>
    %c1_274 = arith.constant 1 : index
    %c2_275 = arith.constant 2 : index
    %c0_276 = arith.constant 0 : index
    %c0_277 = arith.constant 0 : index
    %305 = vector.load %arg8[%c1_274, %c2_275, %c0_276, %c0_277] : memref<3x3x16x16xf32, #tpu.memory_space<vmem>>, vector<1x1x16x16xf32>
    %306 = vector.shape_cast %305 : vector<1x1x16x16xf32> to vector<16x16xf32>
    %cst_278 = arith.constant dense<0.000000e+00> : vector<128x16xf32>
    %307 = tpu.matmul %284, %306, %cst_278 {dimension_numbers = #tpu.dot_dimension_numbers<[1], [0], [0], [1], [0, 0, 1, 1], [], []>} : vector<128x16xf32>, vector<16x16xf32>, vector<128x16xf32> -> vector<128x16xf32>
    %308 = arith.addf %304, %307 : vector<128x16xf32>
    %309 = vector.extract_strided_slice %234 {offsets = [2, 0, 0], sizes = [16, 8, 16], strides = [1, 1, 1]} : vector<18x8x16xf32> to vector<16x8x16xf32>
    %310 = vector.shape_cast %309 : vector<16x8x16xf32> to vector<128x16xf32>
    %311 = vector.extract_strided_slice %230 {offsets = [2, 0, 0], sizes = [16, 8, 16], strides = [1, 1, 1]} : vector<18x8x16xf32> to vector<16x8x16xf32>
    %312 = vector.shape_cast %311 : vector<16x8x16xf32> to vector<128x16xf32>
    %313 = vector.extract_strided_slice %232 {offsets = [2, 0, 0], sizes = [16, 8, 16], strides = [1, 1, 1]} : vector<18x8x16xf32> to vector<16x8x16xf32>
    %314 = vector.shape_cast %313 : vector<16x8x16xf32> to vector<128x16xf32>
    %315 = vector.extract_strided_slice %236 {offsets = [2, 0, 0], sizes = [16, 8, 16], strides = [1, 1, 1]} : vector<18x8x16xf32> to vector<16x8x16xf32>
    %316 = vector.shape_cast %315 : vector<16x8x16xf32> to vector<128x16xf32>
    %c2_279 = arith.constant 2 : index
    %c0_280 = arith.constant 0 : index
    %c0_281 = arith.constant 0 : index
    %c0_282 = arith.constant 0 : index
    %317 = vector.load %arg8[%c2_279, %c0_280, %c0_281, %c0_282] : memref<3x3x16x16xf32, #tpu.memory_space<vmem>>, vector<1x1x16x16xf32>
    %318 = vector.shape_cast %317 : vector<1x1x16x16xf32> to vector<16x16xf32>
    %cst_283 = arith.constant dense<0.000000e+00> : vector<128x16xf32>
    %319 = tpu.matmul %310, %318, %cst_283 {dimension_numbers = #tpu.dot_dimension_numbers<[1], [0], [0], [1], [0, 0, 1, 1], [], []>} : vector<128x16xf32>, vector<16x16xf32>, vector<128x16xf32> -> vector<128x16xf32>
    %320 = arith.addf %296, %319 : vector<128x16xf32>
    %c2_284 = arith.constant 2 : index
    %c1_285 = arith.constant 1 : index
    %c0_286 = arith.constant 0 : index
    %c0_287 = arith.constant 0 : index
    %321 = vector.load %arg8[%c2_284, %c1_285, %c0_286, %c0_287] : memref<3x3x16x16xf32, #tpu.memory_space<vmem>>, vector<1x1x16x16xf32>
    %322 = vector.shape_cast %321 : vector<1x1x16x16xf32> to vector<16x16xf32>
    %cst_288 = arith.constant dense<0.000000e+00> : vector<128x16xf32>
    %323 = tpu.matmul %312, %322, %cst_288 {dimension_numbers = #tpu.dot_dimension_numbers<[1], [0], [0], [1], [0, 0, 1, 1], [], []>} : vector<128x16xf32>, vector<16x16xf32>, vector<128x16xf32> -> vector<128x16xf32>
    %324 = arith.addf %320, %323 : vector<128x16xf32>
    %c2_289 = arith.constant 2 : index
    %c2_290 = arith.constant 2 : index
    %c0_291 = arith.constant 0 : index
    %c0_292 = arith.constant 0 : index
    %325 = vector.load %arg8[%c2_289, %c2_290, %c0_291, %c0_292] : memref<3x3x16x16xf32, #tpu.memory_space<vmem>>, vector<1x1x16x16xf32>
    %326 = vector.shape_cast %325 : vector<1x1x16x16xf32> to vector<16x16xf32>
    %cst_293 = arith.constant dense<0.000000e+00> : vector<128x16xf32>
    %327 = tpu.matmul %314, %326, %cst_293 {dimension_numbers = #tpu.dot_dimension_numbers<[1], [0], [0], [1], [0, 0, 1, 1], [], []>} : vector<128x16xf32>, vector<16x16xf32>, vector<128x16xf32> -> vector<128x16xf32>
    %328 = arith.addf %324, %327 : vector<128x16xf32>
    %c2_294 = arith.constant 2 : index
    %c0_295 = arith.constant 0 : index
    %c0_296 = arith.constant 0 : index
    %c0_297 = arith.constant 0 : index
    %329 = vector.load %arg8[%c2_294, %c0_295, %c0_296, %c0_297] : memref<3x3x16x16xf32, #tpu.memory_space<vmem>>, vector<1x1x16x16xf32>
    %330 = vector.shape_cast %329 : vector<1x1x16x16xf32> to vector<16x16xf32>
    %cst_298 = arith.constant dense<0.000000e+00> : vector<128x16xf32>
    %331 = tpu.matmul %312, %330, %cst_298 {dimension_numbers = #tpu.dot_dimension_numbers<[1], [0], [0], [1], [0, 0, 1, 1], [], []>} : vector<128x16xf32>, vector<16x16xf32>, vector<128x16xf32> -> vector<128x16xf32>
    %332 = arith.addf %308, %331 : vector<128x16xf32>
    %c2_299 = arith.constant 2 : index
    %c1_300 = arith.constant 1 : index
    %c0_301 = arith.constant 0 : index
    %c0_302 = arith.constant 0 : index
    %333 = vector.load %arg8[%c2_299, %c1_300, %c0_301, %c0_302] : memref<3x3x16x16xf32, #tpu.memory_space<vmem>>, vector<1x1x16x16xf32>
    %334 = vector.shape_cast %333 : vector<1x1x16x16xf32> to vector<16x16xf32>
    %cst_303 = arith.constant dense<0.000000e+00> : vector<128x16xf32>
    %335 = tpu.matmul %314, %334, %cst_303 {dimension_numbers = #tpu.dot_dimension_numbers<[1], [0], [0], [1], [0, 0, 1, 1], [], []>} : vector<128x16xf32>, vector<16x16xf32>, vector<128x16xf32> -> vector<128x16xf32>
    %336 = arith.addf %332, %335 : vector<128x16xf32>
    %c2_304 = arith.constant 2 : index
    %c2_305 = arith.constant 2 : index
    %c0_306 = arith.constant 0 : index
    %c0_307 = arith.constant 0 : index
    %337 = vector.load %arg8[%c2_304, %c2_305, %c0_306, %c0_307] : memref<3x3x16x16xf32, #tpu.memory_space<vmem>>, vector<1x1x16x16xf32>
    %338 = vector.shape_cast %337 : vector<1x1x16x16xf32> to vector<16x16xf32>
    %cst_308 = arith.constant dense<0.000000e+00> : vector<128x16xf32>
    %339 = tpu.matmul %316, %338, %cst_308 {dimension_numbers = #tpu.dot_dimension_numbers<[1], [0], [0], [1], [0, 0, 1, 1], [], []>} : vector<128x16xf32>, vector<16x16xf32>, vector<128x16xf32> -> vector<128x16xf32>
    %340 = arith.addf %336, %339 : vector<128x16xf32>
    %cst_309 = arith.constant dense<0.000000e+00> : vector<16xf32>
    %341 = vector.multi_reduction <add>, %328, %cst_309 [0] : vector<128x16xf32> to vector<16xf32>
    %342 = vector.shape_cast %341 : vector<16xf32> to vector<1x16xf32>
    %cst_310 = arith.constant dense<0.000000e+00> : vector<16xf32>
    %343 = vector.multi_reduction <add>, %340, %cst_310 [0] : vector<128x16xf32> to vector<16xf32>
    %344 = vector.shape_cast %343 : vector<16xf32> to vector<1x16xf32>
    %345 = arith.addf %342, %344 : vector<1x16xf32>
    %c0_311 = arith.constant 0 : index
    %c0_312 = arith.constant 0 : index
    %346 = vector.load %arg12[%c0_311, %c0_312] : memref<16x4xf32, #tpu.memory_space<vmem>>, vector<16x4xf32>
    %cst_313 = arith.constant dense<0.000000e+00> : vector<1x4xf32>
    %347 = tpu.matmul %345, %346, %cst_313 {dimension_numbers = #tpu.dot_dimension_numbers<[1], [0], [0], [1], [0, 0, 1, 1], [], []>} : vector<1x16xf32>, vector<16x4xf32>, vector<1x4xf32> -> vector<1x4xf32>
    %cst_314 = arith.constant 1.024000e+03 : f32
    %348 = vector.broadcast %cst_314 : f32 to vector<1x4xf32>
    %349 = arith.divf %347, %348 : vector<1x4xf32>
    %c0_315 = arith.constant 0 : index
    %c0_316 = arith.constant 0 : index
    %350 = vector.load %arg13[%c0_315, %c0_316] : memref<4x16xf32, #tpu.memory_space<vmem>>, vector<4x16xf32>
    %cst_317 = arith.constant dense<0.000000e+00> : vector<1x16xf32>
    %351 = tpu.matmul %349, %350, %cst_317 {dimension_numbers = #tpu.dot_dimension_numbers<[1], [0], [0], [1], [0, 0, 1, 1], [], []>} : vector<1x4xf32>, vector<4x16xf32>, vector<1x16xf32> -> vector<1x16xf32>
    %352 = vector.broadcast %351 : vector<1x16xf32> to vector<128x16xf32>
    %353 = arith.subf %328, %352 : vector<128x16xf32>
    %354 = vector.broadcast %351 : vector<1x16xf32> to vector<128x16xf32>
    %355 = arith.subf %340, %354 : vector<128x16xf32>
    %356 = arith.mulf %353, %353 : vector<128x16xf32>
    %cst_318 = arith.constant dense<0.000000e+00> : vector<16xf32>
    %357 = vector.multi_reduction <add>, %356, %cst_318 [0] : vector<128x16xf32> to vector<16xf32>
    %358 = vector.shape_cast %357 : vector<16xf32> to vector<1x16xf32>
    %359 = arith.mulf %355, %355 : vector<128x16xf32>
    %cst_319 = arith.constant dense<0.000000e+00> : vector<16xf32>
    %360 = vector.multi_reduction <add>, %359, %cst_319 [0] : vector<128x16xf32> to vector<16xf32>
    %361 = vector.shape_cast %360 : vector<16xf32> to vector<1x16xf32>
    %362 = arith.addf %358, %361 : vector<1x16xf32>
    %c0_320 = arith.constant 0 : index
    %c0_321 = arith.constant 0 : index
    %363 = vector.load %arg12[%c0_320, %c0_321] : memref<16x4xf32, #tpu.memory_space<vmem>>, vector<16x4xf32>
    %cst_322 = arith.constant dense<0.000000e+00> : vector<1x4xf32>
    %364 = tpu.matmul %362, %363, %cst_322 {dimension_numbers = #tpu.dot_dimension_numbers<[1], [0], [0], [1], [0, 0, 1, 1], [], []>} : vector<1x16xf32>, vector<16x4xf32>, vector<1x4xf32> -> vector<1x4xf32>
    %cst_323 = arith.constant 1.024000e+03 : f32
    %365 = vector.broadcast %cst_323 : f32 to vector<1x4xf32>
    %366 = arith.divf %364, %365 : vector<1x4xf32>
    %c0_324 = arith.constant 0 : index
    %c0_325 = arith.constant 0 : index
    %367 = vector.load %arg13[%c0_324, %c0_325] : memref<4x16xf32, #tpu.memory_space<vmem>>, vector<4x16xf32>
    %cst_326 = arith.constant dense<0.000000e+00> : vector<1x16xf32>
    %368 = tpu.matmul %366, %367, %cst_326 {dimension_numbers = #tpu.dot_dimension_numbers<[1], [0], [0], [1], [0, 0, 1, 1], [], []>} : vector<1x4xf32>, vector<4x16xf32>, vector<1x16xf32> -> vector<1x16xf32>
    %cst_327 = arith.constant 9.99999974E-6 : f32
    %369 = vector.broadcast %cst_327 : f32 to vector<1x16xf32>
    %370 = arith.addf %368, %369 : vector<1x16xf32>
    %371 = math.rsqrt %370 : vector<1x16xf32>
    %c0_328 = arith.constant 0 : index
    %c0_329 = arith.constant 0 : index
    %372 = vector.load %arg10[%c0_328, %c0_329] : memref<1x16xf32, #tpu.memory_space<vmem>>, vector<1x16xf32>
    %c0_330 = arith.constant 0 : index
    %c0_331 = arith.constant 0 : index
    %373 = vector.load %arg11[%c0_330, %c0_331] : memref<1x16xf32, #tpu.memory_space<vmem>>, vector<1x16xf32>
    %374 = vector.broadcast %371 : vector<1x16xf32> to vector<128x16xf32>
    %375 = arith.mulf %353, %374 : vector<128x16xf32>
    %376 = vector.broadcast %372 : vector<1x16xf32> to vector<128x16xf32>
    %377 = arith.mulf %375, %376 : vector<128x16xf32>
    %378 = vector.broadcast %373 : vector<1x16xf32> to vector<128x16xf32>
    %379 = arith.addf %377, %378 : vector<128x16xf32>
    %cst_332 = arith.constant 0.000000e+00 : f32
    %380 = vector.broadcast %cst_332 : f32 to vector<128x16xf32>
    %381 = arith.subf %380, %379 : vector<128x16xf32>
    %382 = math.exp %381 : vector<128x16xf32>
    %cst_333 = arith.constant 1.000000e+00 : f32
    %383 = vector.broadcast %cst_333 : f32 to vector<128x16xf32>
    %384 = arith.addf %383, %382 : vector<128x16xf32>
    %385 = tpu.reciprocal %384 : vector<128x16xf32> -> vector<128x16xf32>
    %386 = arith.mulf %379, %385 : vector<128x16xf32>
    %387 = vector.shape_cast %386 : vector<128x16xf32> to vector<16x8x16xf32>
    %c0_334 = arith.constant 0 : index
    %c0_335 = arith.constant 0 : index
    %c0_336 = arith.constant 0 : index
    %c0_337 = arith.constant 0 : index
    %c0_338 = arith.constant 0 : index
    %388 = vector.load %arg14[%c0_334, %c0_335, %c0_336, %c0_337, %c0_338] : memref<1x2x16x8x16xf32, #tpu.memory_space<vmem>>, vector<1x1x16x8x16xf32>
    %389 = vector.shape_cast %388 : vector<1x1x16x8x16xf32> to vector<16x8x16xf32>
    %390 = arith.addf %387, %389 : vector<16x8x16xf32>
    %c0_339 = arith.constant 0 : index
    %c0_340 = arith.constant 0 : index
    %c0_341 = arith.constant 0 : index
    %c0_342 = arith.constant 0 : index
    %c0_343 = arith.constant 0 : index
    %391 = vector.load %arg14[%c0_339, %c0_340, %c0_341, %c0_342, %c0_343] : memref<1x2x16x8x16xf32, #tpu.memory_space<vmem>>, vector<1x1x16x8x16xf32>
    %392 = vector.shape_cast %391 : vector<1x1x16x8x16xf32> to vector<16x8x16xf32>
    %393 = vector.shape_cast %390 : vector<16x8x16xf32> to vector<1x1x16x8x16xf32>
    tpu.vector_store %arg14[%c0_339, %c0_340, %c0_341, %c0_342, %c0_343], %393 {strides = array<i32>} : memref<1x2x16x8x16xf32, #tpu.memory_space<vmem>>, vector<1x1x16x8x16xf32>,
    %394 = vector.broadcast %371 : vector<1x16xf32> to vector<128x16xf32>
    %395 = arith.mulf %355, %394 : vector<128x16xf32>
    %396 = vector.broadcast %372 : vector<1x16xf32> to vector<128x16xf32>
    %397 = arith.mulf %395, %396 : vector<128x16xf32>
    %398 = vector.broadcast %373 : vector<1x16xf32> to vector<128x16xf32>
    %399 = arith.addf %397, %398 : vector<128x16xf32>
    %cst_344 = arith.constant 0.000000e+00 : f32
    %400 = vector.broadcast %cst_344 : f32 to vector<128x16xf32>
    %401 = arith.subf %400, %399 : vector<128x16xf32>
    %402 = math.exp %401 : vector<128x16xf32>
    %cst_345 = arith.constant 1.000000e+00 : f32
    %403 = vector.broadcast %cst_345 : f32 to vector<128x16xf32>
    %404 = arith.addf %403, %402 : vector<128x16xf32>
    %405 = tpu.reciprocal %404 : vector<128x16xf32> -> vector<128x16xf32>
    %406 = arith.mulf %399, %405 : vector<128x16xf32>
    %407 = vector.shape_cast %406 : vector<128x16xf32> to vector<16x8x16xf32>
    %c0_346 = arith.constant 0 : index
    %c1_347 = arith.constant 1 : index
    %c0_348 = arith.constant 0 : index
    %c0_349 = arith.constant 0 : index
    %c0_350 = arith.constant 0 : index
    %408 = vector.load %arg14[%c0_346, %c1_347, %c0_348, %c0_349, %c0_350] : memref<1x2x16x8x16xf32, #tpu.memory_space<vmem>>, vector<1x1x16x8x16xf32>
    %409 = vector.shape_cast %408 : vector<1x1x16x8x16xf32> to vector<16x8x16xf32>
    %410 = arith.addf %407, %409 : vector<16x8x16xf32>
    %c0_351 = arith.constant 0 : index
    %c1_352 = arith.constant 1 : index
    %c0_353 = arith.constant 0 : index
    %c0_354 = arith.constant 0 : index
    %c0_355 = arith.constant 0 : index
    %411 = vector.load %arg14[%c0_351, %c1_352, %c0_353, %c0_354, %c0_355] : memref<1x2x16x8x16xf32, #tpu.memory_space<vmem>>, vector<1x1x16x8x16xf32>
    %412 = vector.shape_cast %411 : vector<1x1x16x8x16xf32> to vector<16x8x16xf32>
    %413 = vector.shape_cast %410 : vector<16x8x16xf32> to vector<1x1x16x8x16xf32>
    tpu.vector_store %arg14[%c0_351, %c1_352, %c0_353, %c0_354, %c0_355], %413 {strides = array<i32>} : memref<1x2x16x8x16xf32, #tpu.memory_space<vmem>>, vector<1x1x16x8x16xf32>,
    return
  }
  func.func @transform_0(%arg0: i32) -> (i32, i32, i32, i32) {
    %c0_i32 = arith.constant 0 : i32
    %c0_i32_0 = arith.constant 0 : i32
    %c0_i32_1 = arith.constant 0 : i32
    %c0_i32_2 = arith.constant 0 : i32
    return %arg0, %c0_i32, %c0_i32_0, %c0_i32_1 : i32, i32, i32, i32
  }
  func.func @transform_1(%arg0: i32) -> (i32, i32, i32) {
    %c0_i32 = arith.constant 0 : i32
    %c0_i32_0 = arith.constant 0 : i32
    %c0_i32_1 = arith.constant 0 : i32
    %c0_i32_2 = arith.constant 0 : i32
    return %c0_i32, %c0_i32_0, %c0_i32_1 : i32, i32, i32
  }
  func.func @transform_2(%arg0: i32) -> (i32, i32) {
    %c0_i32 = arith.constant 0 : i32
    %c0_i32_0 = arith.constant 0 : i32
    %c0_i32_1 = arith.constant 0 : i32
    return %c0_i32, %c0_i32_0 : i32, i32
  }
  func.func @transform_3(%arg0: i32) -> (i32, i32, i32, i32) {
    %c0_i32 = arith.constant 0 : i32
    %c0_i32_0 = arith.constant 0 : i32
    %c0_i32_1 = arith.constant 0 : i32
    %c0_i32_2 = arith.constant 0 : i32
    %c0_i32_3 = arith.constant 0 : i32
    return %c0_i32, %c0_i32_0, %c0_i32_1, %c0_i32_2 : i32, i32, i32, i32
  }
  func.func @transform_4(%arg0: i32) -> (i32, i32) {
    %c0_i32 = arith.constant 0 : i32
    %c0_i32_0 = arith.constant 0 : i32
    %c0_i32_1 = arith.constant 0 : i32
    return %c0_i32, %c0_i32_0 : i32, i32
  }
  func.func @transform_5(%arg0: i32) -> (i32, i32) {
    %c0_i32 = arith.constant 0 : i32
    %c0_i32_0 = arith.constant 0 : i32
    %c0_i32_1 = arith.constant 0 : i32
    return %c0_i32, %c0_i32_0 : i32, i32
  }
  func.func @transform_6(%arg0: i32) -> (i32, i32) {
    %c0_i32 = arith.constant 0 : i32
    %c0_i32_0 = arith.constant 0 : i32
    %c0_i32_1 = arith.constant 0 : i32
    return %c0_i32, %c0_i32_0 : i32, i32
  }
  func.func @transform_7(%arg0: i32) -> (i32, i32, i32, i32) {
    %c0_i32 = arith.constant 0 : i32
    %c0_i32_0 = arith.constant 0 : i32
    %c0_i32_1 = arith.constant 0 : i32
    %c0_i32_2 = arith.constant 0 : i32
    %c0_i32_3 = arith.constant 0 : i32
    return %c0_i32, %c0_i32_0, %c0_i32_1, %c0_i32_2 : i32, i32, i32, i32
  }
  func.func @transform_8(%arg0: i32) -> (i32, i32) {
    %c0_i32 = arith.constant 0 : i32
    %c0_i32_0 = arith.constant 0 : i32
    %c0_i32_1 = arith.constant 0 : i32
    return %c0_i32, %c0_i32_0 : i32, i32
  }
  func.func @transform_9(%arg0: i32) -> (i32, i32) {
    %c0_i32 = arith.constant 0 : i32
    %c0_i32_0 = arith.constant 0 : i32
    %c0_i32_1 = arith.constant 0 : i32
    return %c0_i32, %c0_i32_0 : i32, i32
  }
  func.func @transform_10(%arg0: i32) -> (i32, i32) {
    %c0_i32 = arith.constant 0 : i32
    %c0_i32_0 = arith.constant 0 : i32
    %c0_i32_1 = arith.constant 0 : i32
    return %c0_i32, %c0_i32_0 : i32, i32
  }
  func.func @transform_11(%arg0: i32) -> (i32, i32) {
    %c0_i32 = arith.constant 0 : i32
    %c0_i32_0 = arith.constant 0 : i32
    %c0_i32_1 = arith.constant 0 : i32
    return %c0_i32, %c0_i32_0 : i32, i32
  }
  func.func @transform_12(%arg0: i32) -> (i32, i32) {
    %c0_i32 = arith.constant 0 : i32
    %c0_i32_0 = arith.constant 0 : i32
    %c0_i32_1 = arith.constant 0 : i32
    return %c0_i32, %c0_i32_0 : i32, i32
  }
  func.func @transform_13(%arg0: i32) -> (i32, i32, i32, i32, i32) {
    %c0_i32 = arith.constant 0 : i32
    %c0_i32_0 = arith.constant 0 : i32
    %c0_i32_1 = arith.constant 0 : i32
    %c0_i32_2 = arith.constant 0 : i32
    %c0_i32_3 = arith.constant 0 : i32
    return %arg0, %c0_i32, %c0_i32_0, %c0_i32_1, %c0_i32_2 : i32, i32, i32, i32, i32
  }
}

</mosaic_0001>

<bundles_post_ra>
// kernel: tpu_custom_call.1
= control target key start
LH: loop header
LB: loop body
LE: loop exit
PB: predicated region body
PF: predicated region fallthrough
CT: control target
= control target key end

     0   :  { %s17675_s0 = inlined_call_operand.hbm [shape: f32[2,8,8,8], index: 0, kind: input, shape index: {}]   ;;  %s17676_s1 = inlined_call_operand.hbm [shape: f32[4,8,16], index: 1, kind: input, shape index: {}]   ;;  %s17677_s2 = inlined_call_operand.hbm [shape: f32[1,16], index: 2, kind: input, shape index: {}]   ;;  %s17678_s3 = inlined_call_operand.hbm [shape: f32[3,3,16,16], index: 3, kind: input, shape index: {}]   ;;  %s17679_s4 = inlined_call_operand.hbm [shape: f32[1,16], index: 4, kind: input, shape index: {}]   ;;  %s17680_s5 = inlined_call_operand.hbm [shape: f32[1,16], index: 5, kind: input, shape index: {}]   ;;  %s17681_s6 = inlined_call_operand.hbm [shape: f32[1,16], index: 6, kind: input, shape index: {}]   ;;  %s17682_s7 = inlined_call_operand.hbm [shape: f32[3,3,16,16], index: 7, kind: input, shape index: {}]   ;;  %s17683_s8 = inlined_call_operand.hbm [shape: f32[1,16], index: 8, kind: input, shape index: {}]   ;;  %s17684_s9 = inlined_call_operand.hbm [shape: f32[1,16], index: 9, kind: input, shape index: {}]   ;;  %s17685_s10 = inlined_call_operand.hbm [shape: f32[1,16], index: 10, kind: input, shape index: {}]   ;;  %s17686_s11 = inlined_call_operand.hbm [shape: f32[16,4], index: 11, kind: input, shape index: {}]   ;;  %s17687_s12 = inlined_call_operand.hbm [shape: f32[4,16], index: 12, kind: input, shape index: {}]   ;;  %s17688_s13 = inlined_call_operand.hbm [shape: f32[2,2,16,8,16], index: 13, kind: output, shape index: {}]  }
   0x1   :  { %17713 = sst [smem:[#allocation39_spill]] %s17675_s0 }
   0x2   :  { %17714 = sst [smem:[#allocation40_spill]] %s17676_s1 }
   0x3   :  { %17715 = sst [smem:[#allocation41_spill]] %s17677_s2 }
   0x4   :  { %17716 = sst [smem:[#allocation42_spill]] %s17678_s3 }
   0x5   :  { %17717 = sst [smem:[#allocation43_spill]] %s17688_s13 }
   0x6   :  { %18 = vsyncpa [#allocation4], 0 }
   0x7   :  { %20 = vsyncpa [#allocation4 + $0x1], 0 }
   0x8   :  { %21 = vsyncpa [#allocation7], 0 }
   0x9   :  { %22 = vsyncpa [#allocation10], 0 }
   0xa   :  { %23 = vsyncpa [#allocation13], 0 }
   0xb   :  { %24 = vsyncpa [#allocation16], 0 }
   0xc   :  { %25 = vsyncpa [#allocation19], 0 }
   0xd   :  { %26 = vsyncpa [#allocation22], 0 }
   0xe   :  { %27 = vsyncpa [#allocation5], 0 }
   0xf   :  { %29 = vsyncpa [#allocation5 + $0x1], 0  ;;  %s13938_s25 = smov 0   ;;  %s13940_s26 = smov 0  }
  0x10   :  { %s13942_s27 = smov 0   ;;  %s13944_s28 = smov 0  }
  0x11 LB: > { %17718 = sst [smem:[#allocation33_spill]] %s13833_s25  ;;  %s13847_s29 = smov [#allocation6]   ;;  %s13845_s28 = sphi %s13944_s28, %s17774_s28   ;;  %s13841_s27 = sphi %s13942_s27, %s17773_s27   ;;  %s13837_s26 = sphi %s13940_s26, %s17772_s26   ;;  %s13833_s25 = sphi %s13938_s25, %s17771_s25  }
  0x12   : > { %s356_s30 = sshll.u32 %s13847_s29, 4  ;;  %s13959_s14 = sadd.s32 4294967295, %s13845_s28   ;;  %s13964_s30 = int_to_ptr.vmem [resolvable:$true] %s356_s30 }
  0x13   : > { %17719 = sst [smem:[#allocation34_spill]] %s13959_s14  ;;  %p9693_p0 = scmp.ge.s32.totalorder %s13845_s28, 1 }
  0x14   : > { %p17697_p1 = scmp.eq.s32.totalorder %s13959_s14, 0  ;;  %p344_p2 = scmp.lt.s32.totalorder %s13845_s28, 3 }
  0x15   : > { %s13848_s16 = smov [#allocation9]   ;;  %s13849_s19 = smov [#allocation12]  }
  0x16   : > { %p13966_p3 = pnand %p9693_p0, %p344_p2  ;;  %s380_s17 = sshll.u32 %s13848_s16, 4  ;;  %s13979_s17 = int_to_ptr.vmem [resolvable:$true] %s380_s17 }
  0x17   : > { %s405_s20 = sshll.u32 %s13849_s19, 4  ;;  %s17723_s1 = sld [smem:[#allocation40_spill]]  ;;  %s13981_s20 = int_to_ptr.vmem [resolvable:$true] %s405_s20 }
  0x18   : > { %s17720_s15 = scalar_select %p13966_p3, 1, 0 }
  0x19   : > { %p13007_p5 = pneg %p13966_p3 }
  0x1a   : > { %17721 = sst [smem:[#allocation35_spill]] %s17720_s15 }
  0x1b   : > { %p13975_p6 = pnand %p13007_p5, %p17697_p1 }
  0x1d   : > { %s13389_s23 = scalar_lea.hbm %s17723_s1, 512  ;;  %p13991_p8 = pneg %p13975_p6 }
  0x1e   : > { %p13390_p7 = scmp.ne.s32.totalorder %s17723_s1, %s13389_s23  ;;  %p13396_p11 = scmp.lt.u32.totalorder %s13389_s23, %s17723_s1 }
  0x20   : > { %p13392_p9 = pnand %p13991_p8, %p13390_p7 }
  0x22   : > { %p13393_p10 = pneg %p13392_p9 }
  0x24   : > { %p13398_p12 = pnand %p13396_p11, %p13393_p10 }
  0x26   : > { %13401 = shalt.err (!%p13398_p12)
}
  0x27   : > { %s13402_s21 = scalar_lea.vmem %s13964_s30, 512  ;;  %p13410_p5 = scmp.lt.s32.totalorder %s13964_s30, %s13964_s30 }
  0x28   : > { %p13403_p13 = scmp.ne.s32.totalorder %s13964_s30, %s13402_s21  ;;  %p13411_p4 = scmp.lt.s32.totalorder %s13402_s21, %s13402_s21 }
  0x2a   : > { %p13405_p0 = pnand %p13403_p13, %p13991_p8  ;;  %p13412_p7 = por %p13411_p4, %p13410_p5 }
  0x2c   : > { %p13406_p2 = pneg %p13405_p0 }
  0x2e   : > { %p13413_p9 = pnand %p13412_p7, %p13406_p2 }
  0x30   : > { %13416 = shalt.err (!%p13413_p9)
}
  0x31   : > { %s17695_s22 = smov 128   ;;  %s17699_s13 = smov 8  }
  0x32   : > { %13010 = dma.hbm_to_vmem [thread:$0]  (!%p13975_p6), %s17723_s1, 512, %s13964_s30, [#allocation7], %s17695_s22, %s17695_s22, %s17699_s13  }
  0x33   : > { %s17725_s3 = sld [smem:[#allocation42_spill]] }
  0x39   : > { %s13417_s21 = scalar_lea.hbm %s17725_s3, 2304 }
  0x3a   : > { %p13418_p4 = scmp.ne.s32.totalorder %s17725_s3, %s13417_s21  ;;  %p13424_p12 = scmp.lt.u32.totalorder %s13417_s21, %s17725_s3 }
  0x3c   : > { %p13420_p10 = pnand %p13418_p4, %p13991_p8 }
  0x3e   : > { %p13421_p11 = pneg %p13420_p10 }
  0x40   : > { %p13426_p13 = pnand %p13424_p12, %p13421_p11 }
  0x42   : > { %13429 = shalt.err (!%p13426_p13)
}
  0x43   : > { %s13430_s30 = scalar_lea.vmem %s13979_s17, 2304  ;;  %p13438_p7 = scmp.lt.s32.totalorder %s13979_s17, %s13979_s17 }
  0x44   : > { %p13431_p0 = scmp.ne.s32.totalorder %s13979_s17, %s13430_s30  ;;  %p13439_p9 = scmp.lt.s32.totalorder %s13430_s30, %s13430_s30 }
  0x46   : > { %p13433_p2 = pnand %p13431_p0, %p13991_p8  ;;  %p13440_p4 = por %p13439_p9, %p13438_p7 }
  0x48   : > { %p13434_p5 = pneg %p13433_p2 }
  0x4a   : > { %p13441_p10 = pnand %p13440_p4, %p13434_p5 }
  0x4c   : > { %13444 = shalt.err (!%p13441_p10)
}
  0x4d   : > { %13016 = dma.hbm_to_vmem [thread:$0]  (!%p13975_p6), %s17725_s3, 2304, %s13979_s17, [#allocation10], %s17695_s22, %s17695_s22, %s17699_s13  }
  0x4e   : > { %s13445_s23 = scalar_lea.hbm %s17680_s5, 16 }
  0x4f   : > { %p13446_p11 = scmp.ne.s32.totalorder %s17680_s5, %s13445_s23  ;;  %p13452_p0 = scmp.lt.u32.totalorder %s13445_s23, %s17680_s5 }
  0x51   : > { %p13448_p12 = pnand %p13446_p11, %p13991_p8 }
  0x53   : > { %p13449_p13 = pneg %p13448_p12 }
  0x55   : > { %p13454_p2 = pnand %p13452_p0, %p13449_p13 }
  0x57   : > { %13457 = shalt.err (!%p13454_p2)
}
  0x58   : > { %s13458_s17 = scalar_lea.vmem %s13981_s20, 16  ;;  %s13465_s30 = scalar_lea.vmem %s13981_s20, 32 }
  0x59   : > { %p13459_p5 = scmp.ne.s32.totalorder %s13981_s20, %s13458_s17  ;;  %p13466_p4 = scmp.lt.s32.totalorder %s13981_s20, %s13981_s20 }
  0x5a   : > { %p13467_p10 = scmp.lt.s32.totalorder %s13465_s30, %s13458_s17 }
  0x5b   : > { %p13461_p7 = pnand %p13459_p5, %p13991_p8 }
  0x5c   : > { %p13468_p11 = por %p13467_p10, %p13466_p4 }
  0x5d   : > { %p13462_p9 = pneg %p13461_p7 }
  0x5f   : > { %p13469_p12 = pnand %p13468_p11, %p13462_p9 }
  0x61   : > { %13472 = shalt.err (!%p13469_p12)
}
  0x62   : > { %13022 = dma.hbm_to_vmem [thread:$0]  (!%p13975_p6), %s17680_s5, 16, %s13981_s20, [#allocation13]  }
  0x63   : > { %s13852_s14 = smov [#allocation15]   ;;  %s13853_s23 = smov [#allocation18]  }
  0x64   : > { %s426_s15 = sshll.u32 %s13852_s14, 4  ;;  %s451_s24 = sshll.u32 %s13853_s23, 4  ;;  %s427_s15 = int_to_ptr.vmem [resolvable:$true] %s426_s15  ;;  %s452_s24 = int_to_ptr.vmem [resolvable:$true] %s451_s24 }
  0x65   : > { %s13473_s21 = scalar_lea.hbm %s17682_s7, 2304 }
  0x66   : > { %p13474_p13 = scmp.ne.s32.totalorder %s17682_s7, %s13473_s21  ;;  %p13480_p5 = scmp.lt.u32.totalorder %s13473_s21, %s17682_s7 }
  0x68   : > { %p13476_p0 = pnand %p13474_p13, %p13991_p8 }
  0x6a   : > { %p13477_p2 = pneg %p13476_p0 }
  0x6c   : > { %p13482_p7 = pnand %p13480_p5, %p13477_p2 }
  0x6e   : > { %13485 = shalt.err (!%p13482_p7)
}
  0x6f   : > { %s13486_s20 = scalar_lea.vmem %s427_s15, 2304  ;;  %p13494_p11 = scmp.lt.s32.totalorder %s427_s15, %s427_s15 }
  0x70   : > { %p13487_p9 = scmp.ne.s32.totalorder %s427_s15, %s13486_s20  ;;  %p13495_p12 = scmp.lt.s32.totalorder %s13486_s20, %s13486_s20 }
  0x72   : > { %p13489_p4 = pnand %p13487_p9, %p13991_p8  ;;  %p13496_p1 = por %p13495_p12, %p13494_p11 }
  0x74   : > { %p13490_p10 = pneg %p13489_p4 }
  0x76   : > { %p13497_p3 = pnand %p13496_p1, %p13490_p10 }
  0x78   : > { %13500 = shalt.err (!%p13497_p3)
}
  0x79   : > { %s17726_s25 = smov 128   ;;  %s13501_s19 = scalar_lea.hbm %s17684_s9, 16 }
  0x7a   : > { %13028 = dma.hbm_to_vmem [thread:$0]  (!%p13975_p6), %s17682_s7, 2304, %s427_s15, [#allocation16], %s17726_s25, %s17726_s25, %s17699_s13  }
  0x7b   : > { %p13502_p1 = scmp.ne.s32.totalorder %s17684_s9, %s13501_s19  ;;  %p13508_p0 = scmp.lt.u32.totalorder %s13501_s19, %s17684_s9 }
  0x7d   : > { %p13504_p3 = pnand %p13502_p1, %p13991_p8 }
  0x7f   : > { %p13505_p13 = pneg %p13504_p3 }
  0x81   : > { %p13510_p2 = pnand %p13508_p0, %p13505_p13 }
  0x83   : > { %13513 = shalt.err (!%p13510_p2)
}
  0x84   : > { %s13514_s20 = scalar_lea.vmem %s452_s24, 16  ;;  %s13521_s15 = scalar_lea.vmem %s452_s24, 32 }
  0x85   : > { %p13515_p5 = scmp.ne.s32.totalorder %s452_s24, %s13514_s20  ;;  %p13522_p4 = scmp.lt.s32.totalorder %s452_s24, %s452_s24 }
  0x86   : > { %p13523_p10 = scmp.lt.s32.totalorder %s13521_s15, %s13514_s20 }
  0x87   : > { %p13517_p7 = pnand %p13515_p5, %p13991_p8 }
  0x88   : > { %p13524_p11 = por %p13523_p10, %p13522_p4 }
  0x89   : > { %p13518_p9 = pneg %p13517_p7 }
  0x8b   : > { %p13525_p12 = pnand %p13524_p11, %p13518_p9 }
  0x8d   : > { %13528 = shalt.err (!%p13525_p12)
}
  0x8e   : > { %13034 = dma.hbm_to_vmem [thread:$0]  (!%p13975_p6), %s17684_s9, 16, %s452_s24, [#allocation19]  }
  0x8f   : > { %s13854_s23 = smov [#allocation21]   ;;  %s13855_s19 = smov [#allocation8]  }
  0x90   : > { %s472_s29 = sshll.u32 %s13854_s23, 4  ;;  %s370_s21 = sshll.u32 %s13855_s19, 4  ;;  %s473_s29 = int_to_ptr.vmem [resolvable:$true] %s472_s29  ;;  %s371_s21 = int_to_ptr.vmem [resolvable:$true] %s370_s21 }
  0x91   : > { %s13529_s0 = scalar_lea.hbm %s17686_s11, 256 }
  0x92   : > { %p13530_p1 = scmp.ne.s32.totalorder %s17686_s11, %s13529_s0  ;;  %p13536_p0 = scmp.lt.u32.totalorder %s13529_s0, %s17686_s11 }
  0x94   : > { %p13532_p3 = pnand %p13530_p1, %p13991_p8 }
  0x96   : > { %p13533_p13 = pneg %p13532_p3 }
  0x98   : > { %p13538_p2 = pnand %p13536_p0, %p13533_p13 }
  0x9a   : > { %13541 = shalt.err (!%p13538_p2)
}
  0x9b   : > { %s13542_s24 = scalar_lea.vmem %s473_s29, 256  ;;  %p13550_p4 = scmp.lt.s32.totalorder %s473_s29, %s473_s29 }
  0x9c   : > { %p13543_p5 = scmp.ne.s32.totalorder %s473_s29, %s13542_s24  ;;  %p13551_p10 = scmp.lt.s32.totalorder %s13542_s24, %s13542_s24 }
  0x9e   : > { %p13545_p7 = pnand %p13543_p5, %p13991_p8  ;;  %p13552_p11 = por %p13551_p10, %p13550_p4 }
  0xa0   : > { %p13546_p9 = pneg %p13545_p7 }
  0xa2   : > { %p13553_p12 = pnand %p13552_p11, %p13546_p9 }
  0xa4   : > { %13556 = shalt.err (!%p13553_p12)
}
  0xa5   : > { %s17727_s14 = smov 8   ;;  %s17728_s2 = sld [smem:[#allocation41_spill]] }
  0xa6   : > { %13040 = dma.hbm_to_vmem [thread:$0]  (!%p13975_p6), %s17686_s11, 256, %s473_s29, [#allocation22], %s17726_s25, %s17726_s25, %s17727_s14  }
  0xab   : > { %s13557_s30 = scalar_lea.hbm %s17728_s2, 16 }
  0xac   : > { %p13558_p1 = scmp.ne.s32.totalorder %s17728_s2, %s13557_s30  ;;  %p13564_p0 = scmp.lt.u32.totalorder %s13557_s30, %s17728_s2 }
  0xae   : > { %p13560_p3 = pnand %p13558_p1, %p13991_p8 }
  0xb0   : > { %p13561_p13 = pneg %p13560_p3 }
  0xb2   : > { %p13566_p2 = pnand %p13564_p0, %p13561_p13 }
  0xb4   : > { %13569 = shalt.err (!%p13566_p2)
}
  0xb5   : > { %s13570_s24 = scalar_lea.vmem %s371_s21, 16  ;;  %s13577_s29 = scalar_lea.vmem %s371_s21, 32 }
  0xb6   : > { %p13571_p5 = scmp.ne.s32.totalorder %s371_s21, %s13570_s24  ;;  %p13578_p4 = scmp.lt.s32.totalorder %s371_s21, %s371_s21 }
  0xb7   : > { %p13579_p10 = scmp.lt.s32.totalorder %s13577_s29, %s13570_s24 }
  0xb8   : > { %p13573_p7 = pnand %p13571_p5, %p13991_p8 }
  0xb9   : > { %p13580_p11 = por %p13579_p10, %p13578_p4 }
  0xba   : > { %p13574_p9 = pneg %p13573_p7 }
  0xbc   : > { %p13581_p12 = pnand %p13580_p11, %p13574_p9 }
  0xbe   : > { %13584 = shalt.err (!%p13581_p12)
}
  0xbf   : > { %13013 = dma.hbm_to_vmem [thread:$0]  (!%p13975_p6), %s17728_s2, 16, %s371_s21, [#allocation7]  }
  0xc0   : > { %s13856_s19 = smov [#allocation11]   ;;  %s13857_s30 = smov [#allocation14]  }
  0xc1   : > { %s394_s17 = sshll.u32 %s13856_s19, 4  ;;  %s416_s0 = sshll.u32 %s13857_s30, 4  ;;  %s395_s17 = int_to_ptr.vmem [resolvable:$true] %s394_s17  ;;  %s417_s0 = int_to_ptr.vmem [resolvable:$true] %s416_s0 }
  0xc2   : > { %s13585_s22 = scalar_lea.hbm %s17679_s4, 16 }
  0xc3   : > { %p13586_p1 = scmp.ne.s32.totalorder %s17679_s4, %s13585_s22  ;;  %p13592_p0 = scmp.lt.u32.totalorder %s13585_s22, %s17679_s4 }
  0xc5   : > { %p13588_p3 = pnand %p13586_p1, %p13991_p8 }
  0xc7   : > { %p13589_p13 = pneg %p13588_p3 }
  0xc9   : > { %p13594_p2 = pnand %p13592_p0, %p13589_p13 }
  0xcb   : > { %13597 = shalt.err (!%p13594_p2)
}
  0xcc   : > { %s13598_s21 = scalar_lea.vmem %s395_s17, 16  ;;  %s13605_s23 = scalar_lea.vmem %s395_s17, 32 }
  0xcd   : > { %p13599_p5 = scmp.ne.s32.totalorder %s395_s17, %s13598_s21  ;;  %p13606_p4 = scmp.lt.s32.totalorder %s395_s17, %s395_s17 }
  0xce   : > { %p13607_p10 = scmp.lt.s32.totalorder %s13605_s23, %s13598_s21 }
  0xcf   : > { %p13601_p7 = pnand %p13599_p5, %p13991_p8 }
  0xd0   : > { %p13608_p11 = por %p13607_p10, %p13606_p4 }
  0xd1   : > { %p13602_p9 = pneg %p13601_p7 }
  0xd3   : > { %p13609_p12 = pnand %p13608_p11, %p13602_p9 }
  0xd5   : > { %13612 = shalt.err (!%p13609_p12)
}
  0xd6   : > { %13019 = dma.hbm_to_vmem [thread:$0]  (!%p13975_p6), %s17679_s4, 16, %s395_s17, [#allocation10]  }
  0xd7   : > { %s13613_s15 = scalar_lea.hbm %s17681_s6, 16 }
  0xd8   : > { %p13614_p1 = scmp.ne.s32.totalorder %s17681_s6, %s13613_s15  ;;  %p13620_p0 = scmp.lt.u32.totalorder %s13613_s15, %s17681_s6 }
  0xda   : > { %p13616_p3 = pnand %p13614_p1, %p13991_p8 }
  0xdc   : > { %p13617_p13 = pneg %p13616_p3 }
  0xde   : > { %p13622_p2 = pnand %p13620_p0, %p13617_p13 }
  0xe0   : > { %13625 = shalt.err (!%p13622_p2)
}
  0xe1   : > { %s13626_s21 = scalar_lea.vmem %s417_s0, 16  ;;  %s13633_s17 = scalar_lea.vmem %s417_s0, 32 }
  0xe2   : > { %p13627_p5 = scmp.ne.s32.totalorder %s417_s0, %s13626_s21  ;;  %p13634_p4 = scmp.lt.s32.totalorder %s417_s0, %s417_s0 }
  0xe3   : > { %p13635_p10 = scmp.lt.s32.totalorder %s13633_s17, %s13626_s21 }
  0xe4   : > { %p13629_p7 = pnand %p13627_p5, %p13991_p8 }
  0xe5   : > { %p13636_p11 = por %p13635_p10, %p13634_p4 }
  0xe6   : > { %p13630_p9 = pneg %p13629_p7 }
  0xe8   : > { %p13637_p12 = pnand %p13636_p11, %p13630_p9 }
  0xea   : > { %13640 = shalt.err (!%p13637_p12)
}
  0xeb   : > { %13025 = dma.hbm_to_vmem [thread:$0]  (!%p13975_p6), %s17681_s6, 16, %s417_s0, [#allocation13]  }
  0xec   : > { %s13858_s30 = smov [#allocation17]   ;;  %s13859_s20 = smov [#allocation20]  }
  0xed   : > { %s440_s1 = sshll.u32 %s13858_s30, 4  ;;  %s462_s15 = sshll.u32 %s13859_s20, 4  ;;  %s441_s1 = int_to_ptr.vmem [resolvable:$true] %s440_s1  ;;  %s463_s15 = int_to_ptr.vmem [resolvable:$true] %s462_s15 }
  0xee   : > { %s13641_s29 = scalar_lea.hbm %s17683_s8, 16 }
  0xef   : > { %p13642_p1 = scmp.ne.s32.totalorder %s17683_s8, %s13641_s29  ;;  %p13648_p0 = scmp.lt.u32.totalorder %s13641_s29, %s17683_s8 }
  0xf1   : > { %p13644_p3 = pnand %p13642_p1, %p13991_p8 }
  0xf3   : > { %p13645_p13 = pneg %p13644_p3 }
  0xf5   : > { %p13650_p2 = pnand %p13648_p0, %p13645_p13 }
  0xf7   : > { %13653 = shalt.err (!%p13650_p2)
}
  0xf8   : > { %s13654_s0 = scalar_lea.vmem %s441_s1, 16  ;;  %s13661_s19 = scalar_lea.vmem %s441_s1, 32 }
  0xf9   : > { %p13655_p5 = scmp.ne.s32.totalorder %s441_s1, %s13654_s0  ;;  %p13662_p4 = scmp.lt.s32.totalorder %s441_s1, %s441_s1 }
  0xfa   : > { %p13663_p10 = scmp.lt.s32.totalorder %s13661_s19, %s13654_s0 }
  0xfb   : > { %p13657_p7 = pnand %p13655_p5, %p13991_p8 }
  0xfc   : > { %p13664_p11 = por %p13663_p10, %p13662_p4 }
  0xfd   : > { %p13658_p9 = pneg %p13657_p7 }
  0xff   : > { %p13665_p12 = pnand %p13664_p11, %p13658_p9 }
 0x101   : > { %13668 = shalt.err (!%p13665_p12)
}
 0x102   : > { %13031 = dma.hbm_to_vmem [thread:$0]  (!%p13975_p6), %s17683_s8, 16, %s441_s1, [#allocation16]  }
 0x103   : > { %s13669_s29 = scalar_lea.hbm %s17685_s10, 16 }
 0x104   : > { %p13670_p1 = scmp.ne.s32.totalorder %s17685_s10, %s13669_s29  ;;  %p13676_p0 = scmp.lt.u32.totalorder %s13669_s29, %s17685_s10 }
 0x106   : > { %p13672_p3 = pnand %p13670_p1, %p13991_p8 }
 0x108   : > { %p13673_p13 = pneg %p13672_p3 }
 0x10a   : > { %p13678_p2 = pnand %p13676_p0, %p13673_p13 }
 0x10c   : > { %13681 = shalt.err (!%p13678_p2)
}
 0x10d   : > { %s13682_s0 = scalar_lea.vmem %s463_s15, 16  ;;  %s13689_s1 = scalar_lea.vmem %s463_s15, 32 }
 0x10e   : > { %p13683_p5 = scmp.ne.s32.totalorder %s463_s15, %s13682_s0  ;;  %p13690_p4 = scmp.lt.s32.totalorder %s463_s15, %s463_s15 }
 0x10f   : > { %p13691_p10 = scmp.lt.s32.totalorder %s13689_s1, %s13682_s0 }
 0x110   : > { %p13685_p7 = pnand %p13683_p5, %p13991_p8 }
 0x111   : > { %p13692_p11 = por %p13691_p10, %p13690_p4 }
 0x112   : > { %p13686_p9 = pneg %p13685_p7 }
 0x114   : > { %p13693_p12 = pnand %p13692_p11, %p13686_p9 }
 0x116   : > { %13696 = shalt.err (!%p13693_p12)
}
 0x117   : > { %13037 = dma.hbm_to_vmem [thread:$0]  (!%p13975_p6), %s17685_s10, 16, %s463_s15, [#allocation19]  }
 0x118   : > { %s13860_s20 = smov [#allocation23]   ;;  %s13697_s13 = scalar_lea.hbm %s17687_s12, 64 }
 0x119   : > { %s486_s22 = sshll.u32 %s13860_s20, 4  ;;  %p13698_p1 = scmp.ne.s32.totalorder %s17687_s12, %s13697_s13  ;;  %s487_s22 = int_to_ptr.vmem [resolvable:$true] %s486_s22 }
 0x11a   : > { %p13704_p0 = scmp.lt.u32.totalorder %s13697_s13, %s17687_s12 }
 0x11b   : > { %p13700_p3 = pnand %p13698_p1, %p13991_p8 }
 0x11d   : > { %p13701_p13 = pneg %p13700_p3 }
 0x11f   : > { %p13706_p2 = pnand %p13704_p0, %p13701_p13 }
 0x121   : > { %13709 = shalt.err (!%p13706_p2)
}
 0x122   : > { %s13710_s15 = scalar_lea.vmem %s487_s22, 64  ;;  %p13718_p4 = scmp.lt.s32.totalorder %s487_s22, %s487_s22 }
 0x123   : > { %p13711_p5 = scmp.ne.s32.totalorder %s487_s22, %s13710_s15  ;;  %p13719_p10 = scmp.lt.s32.totalorder %s13710_s15, %s13710_s15 }
 0x125   : > { %p13713_p7 = pnand %p13711_p5, %p13991_p8  ;;  %p13720_p11 = por %p13719_p10, %p13718_p4 }
 0x127   : > { %p13714_p9 = pneg %p13713_p7 }
 0x129   : > { %p13721_p12 = pnand %p13720_p11, %p13714_p9 }
 0x12b   : > { %13724 = shalt.err (!%p13721_p12)
}
 0x12c   : > { %s17729_s16 = sld [smem:[#allocation33_spill]]  ;;  %s17730_s30 = sld [smem:[#allocation34_spill]] }
 0x12d   : > { %13043 = dma.hbm_to_vmem [thread:$0]  (!%p13975_p6), %s17687_s12, 64, %s487_s22, [#allocation22]  }
 0x12e   : > { %s9692_s20 = sadd.s32 4294967294, %s13845_s28   ;;  %s14235_s18 = sadd.s32 1, %s13845_s28  }
 0x12f   : > { %s39_s24 = ssub.s32 %s13845_s28, %s14235_s18  ;;  %s42_s29 = sadd.s32 1, %s13841_s27 }
 0x130   : > { %p40_p8 = scmp.eq.s32.totalorder %s39_s24, 0  ;;  %p49_p1 = scmp.ne.s32.totalorder %s13841_s27, %s13837_s26 }
 0x131   : > { %p50_p3 = scmp.eq.s32.totalorder %s13845_s28, 0  ;;  %p337_p7 = scmp.eq.s32.totalorder %s9692_s20, 1 }
 0x132   : > { %p55_p13 = scmp.ne.s32.totalorder %s13837_s26, %s17729_s16  ;;  %p17732_p2 = scmp.eq.s32.totalorder %s17730_s30, 0 }
 0x133   : > { %s14246_s13 = scalar_select %p40_p8, %s13841_s27, %s42_s29  }
 0x134   : > { %p14248_p0 = por %p50_p3, %p49_p1  ;;  %p14254_p6 = por %p17732_p2, %p55_p13 }
 0x135   : > { %p331_p5 = scmp.eq.s32.totalorder %s17730_s30, 1  ;;  %p13064_p9 = scmp.lt.s32.totalorder %s13845_s28, 2 }
 0x136   : > { %s497_s17 = sand.u32 1, %s13841_s27   ;;  %p14265_p10 = por %p337_p7, %p55_p13 }
 0x137   : > { %p14261_p4 = por %p331_p5, %p49_p1  ;;  %s9707_s15 = sshll.u32 %s497_s17, 6 }
 0x138   : > { %s17735_s0 = scalar_select %p14265_p10, 1, 0 }
 0x139   : > { %s17734_s23 = scalar_select %p14261_p4, 1, 0 }
 0x13a   : > { %s10405_s1 = sshll.u32 %s13845_s28, 10  ;;  %s17736_s24 = sld [smem:[#allocation39_spill]] }
 0x13b   : > { %s501_s30 = scalar_lea.vmem [#allocation3], %s9707_s15  ;;  %p14279_p11 = pnand %p13064_p9, %p14248_p0 }
 0x13c   : > { %s508_s20 = sshll.u32 %s501_s30, 4  ;;  %s14283_s3 = scalar_lea.sflag [#allocation4], %s497_s17  ;;  %s14275_s20 = int_to_ptr.vmem [resolvable:$true] %s508_s20 }
 0x13d   : > { %p13727_p8 = pneg %p14279_p11 }
 0x140   : > { %s14273_s29 = scalar_lea.hbm %s17736_s24, %s10405_s1  ;;  %s13730_s21 = scalar_lea.hbm %s17736_s24, 2048 }
 0x141   : > { %s13725_s19 = scalar_lea.hbm %s14273_s29, 1024  ;;  %p13731_p13 = scmp.lt.u32.totalorder %s14273_s29, %s17736_s24 }
 0x142   : > { %p13726_p12 = scmp.ne.s32.totalorder %s14273_s29, %s13725_s19  ;;  %p13732_p0 = scmp.lt.u32.totalorder %s13730_s21, %s13725_s19 }
 0x143   : > { %p13734_p5 = scmp.lt.u32.totalorder %s13725_s19, %s14273_s29 }
 0x144   : > { %p13728_p1 = pnand %p13727_p8, %p13726_p12  ;;  %p13733_p2 = por %p13732_p0, %p13731_p13 }
 0x146   : > { %p13729_p3 = pneg %p13728_p1  ;;  %p13735_p7 = por %p13734_p5, %p13733_p2 }
 0x148   : > { %p13736_p9 = pnand %p13735_p7, %p13729_p3 }
 0x14a   : > { %13739 = shalt.err (!%p13736_p9)
}
 0x14b   : > { %s13740_s17 = scalar_lea.vmem %s14275_s20, 1024  ;;  %s13861_s15 = smov [#allocation3]  }
 0x14c   : > { %p13741_p12 = scmp.ne.s32.totalorder %s14275_s20, %s13740_s17  ;;  %s13745_s1 = sshll.u32 %s13861_s15, 4  ;;  %s13746_s1 = int_to_ptr.vmem [resolvable:$false] %s13745_s1 }
 0x14d   : > { %s13747_s16 = scalar_lea.vmem %s13746_s1, 2048  ;;  %p13748_p4 = scmp.lt.s32.totalorder %s14275_s20, %s13746_s1 }
 0x14e   : > { %p13743_p1 = pnand %p13741_p12, %p13727_p8  ;;  %p13749_p13 = scmp.lt.s32.totalorder %s13747_s16, %s13740_s17 }
 0x150   : > { %p13744_p10 = pneg %p13743_p1  ;;  %p13750_p0 = por %p13749_p13, %p13748_p4 }
 0x152   : > { %p13751_p2 = pnand %p13750_p0, %p13744_p10 }
 0x154   : > { %13754 = shalt.err (!%p13751_p2)
}
 0x155   : > { %13047 = dma.hbm_to_vmem [thread:$0]  (!%p14279_p11), %s14273_s29, 1024, %s14275_s20, %s14283_s3, %s17726_s25, %s17726_s25, %s17727_s14  }
 0x156   : > { %s17738_s19 = sld [smem:[#allocation35_spill]] }
 0x15c   : > { %p17739_p8 = scmp.ne.s32.totalorder %s17738_s19, 0 }
 0x15e   : > { %520 = sbr.rel (%p17739_p8) target bundleno = 3704 (0xe78), region = 72 }
 0x165   : > { %s14317_s21 = sand.u32 1, %s13837_s26  }
 0x166   : > { %s9711_s30 = sshll.u32 %s14317_s21, 6  ;;  %s523_s17 = scalar_lea.sflag [#allocation4], %s14317_s21 }
 0x167   : > { %s14321_s15 = scalar_lea.vmem [#allocation3], %s9711_s30 }
 0x168   : > { %13800 = dma.done.wait (%p14254_p6), %s523_s17, 1024  }
 0x169   : > { %13802 = vsyncadd (%p14254_p6), %s523_s17, 4294966272  ;;  %s17740_s2 = sld [smem:[#allocation34_spill]] }
 0x16f   : > { %p17741_p4 = scmp.eq.s32.totalorder %s17740_s2, 0 }
 0x171   : > { %13804 = dma.done.wait (%p17741_p4), [#allocation7], 528   ;;  %p17742_p10 = pmov %p17741_p4 }
 0x172   : > { %p17743_p11 = pmov %p17741_p4 }
 0x173   : > { %13806 = vsyncadd (%p17742_p10), [#allocation7], 4294966768 }
 0x174   : > { %13808 = dma.done.wait (%p17743_p11), [#allocation10], 2320   ;;  %p17744_p3 = pmov %p17741_p4 }
 0x176   : > { %13810 = vsyncadd (%p17744_p3), [#allocation10], 4294964976  ;;  %p17745_p5 = pmov %p17744_p3 }
 0x177   : > { %p17746_p7 = pmov %p17744_p3 }
 0x178   : > { %13812 = dma.done.wait (%p17745_p5), [#allocation13], 32  }
 0x179   : > { %13814 = vsyncadd (%p17746_p7), [#allocation13], 4294967264  ;;  %p17747_p6 = pmov %p17744_p3 }
 0x17a   : > { %p17748_p9 = pmov %p17744_p3 }
 0x17b   : > { %13816 = dma.done.wait (%p17747_p6), [#allocation16], 2320  }
 0x17c   : > { %13818 = vsyncadd (%p17748_p9), [#allocation16], 4294964976  ;;  %p17749_p12 = pmov %p17744_p3 }
 0x17d   : > { %p17750_p1 = pmov %p17744_p3 }
 0x17e   : > { %13820 = dma.done.wait (%p17749_p12), [#allocation19], 32  }
 0x17f   : > { %13822 = vsyncadd (%p17750_p1), [#allocation19], 4294967264  ;;  %p17751_p13 = pmov %p17750_p1 }
 0x180   : > { %p17752_p0 = pmov %p17750_p1 }
 0x181   : > { %13824 = dma.done.wait (%p17751_p13), [#allocation22], 320  }
 0x182   : > { %13826 = vsyncadd (%p17752_p0), [#allocation22], 4294966976  ;;  %vm617_vm0 = vcmask 130048   ;;  %v17702_v0 = vmov 0.0   ;;  %vm712_vm1 = vcmask 64512   ;;  %v711_v1 = vld [vmem:[#allocation6] sm:$0xff] }
 0x183   : > { %619 = vst.msk [vmem:[#allocation2 + $0x8] sm:$0xff] %vm617_vm0, %v17702_v0  ;;  %620 = vst.msk [vmem:[#allocation2 + $0x10] sm:$0xff] %vm617_vm0, %v17702_v0  ;;  %v843_v2 = vld [vmem:[#allocation6 + $0x8] sm:$0xff]  ;;  %v703_v3 = vld [vmem:[%s14321_s15] sm:$0xff]  ;;  %11111 = vmatprep.subr.mxu0 %v711_v1  ;;  %s9724_s3 = sshll.u32 %s14317_s21, 8  ;;  %vm13864_vm2 = vmmov 0  }
 0x184   : > { %621 = vst.msk [vmem:[#allocation2 + $0x1b0] sm:$0xff] %vm617_vm0, %v17702_v0  ;;  %622 = vst.msk [vmem:[#allocation2 + $0x1b8] sm:$0xff] %vm617_vm0, %v17702_v0  ;;  %11125 = vmatprep.subr.mxu1 %v843_v2  ;;  %v704_v4 = vld [vmem:[%s14321_s15 + $0x8] sm:$0xff]  ;;  %11112 = vmatpush3.msra.mxu0 %v711_v1  ;;  %v950_v5 = vld [vmem:[#allocation6 + $0x10] sm:$0xff]  ;;  %s14495_s25 = scalar_lea.vmem [#allocation24], %s9724_s3  ;;  %vm4647_vm3 = vcmask 1043456  }
 0x185   : > { %626 = vst.msk [vmem:[#allocation2 + $0x1a0] sm:$0xff] %vm617_vm0, %v17702_v0  ;;  %627 = vst.msk [vmem:[#allocation2 + $0x1a8] sm:$0xff] %vm617_vm0, %v17702_v0  ;;  %11113 = vmatprep.mubr.msk.f32.mxu0 %vm712_vm1, %v703_v3  ;;  %v1057_v6 = vld [vmem:[#allocation6 + $0x18] sm:$0xff]  ;;  %11126 = vmatpush3.msra.mxu1 %v843_v2  ;;  %v705_v7 = vld [vmem:[%s14321_s15 + $0x10] sm:$0xff]  ;;  %vm4643_vm4 = vcmask 31744   ;;  %s10406_s14 = sshll.u32 %s17740_s2, 12 }
 0x186   : > { %628 = vst.msk [vmem:[#allocation2 + $0x348] sm:$0xff] %vm617_vm0, %v17702_v0  ;;  %629 = vst.msk [vmem:[#allocation2 + $0x350] sm:$0xff] %vm617_vm0, %v17702_v0  ;;  %11127 = vmatprep.mubr.msk.f32.mxu1 %vm712_vm1, %v703_v3  ;;  %11114 = vmatmul.mubr.msk.f32.vlgmr.msra.gmra.mrb[0].mxu0 %vm712_vm1, %v704_v4  ;;  %v706_v8 = vld [vmem:[%s14321_s15 + $0x18] sm:$0xff]  ;;  %v707_v9 = vld [vmem:[%s14321_s15 + $0x20] sm:$0xff]  ;;  %s9505_s22 = sshll.u32 %s14495_s25, 4  ;;  %s17766_s1 = sld [smem:[#allocation43_spill]]  ;;  %s17625_s22 = int_to_ptr.vmem [resolvable:$true] %s9505_s22 }
 0x187   : > { %650 = vst.msk [vmem:[#allocation2 + $0x1c8] sm:$0xff] %vm617_vm0, %v17702_v0  ;;  %651 = vst.msk [vmem:[#allocation2 + $0x1e0] sm:$0xff] %vm617_vm0, %v17702_v0  ;;  %11128 = vmatmul.mubr.msk.f32.vlgmr.msra.gmra.mrb[0].mxu1 %vm712_vm1, %v704_v4  ;;  %11139 = vmatprep.subr.mxu0 %v950_v5  ;;  %v708_v10 = vld [vmem:[%s14321_s15 + $0x28] sm:$0xff]  ;;  %v709_v11 = vld [vmem:[%s14321_s15 + $0x30] sm:$0xff]  ;;  %s9492_s19 = scalar_lea.sflag [#allocation5], %s14317_s21  ;;  %s13755_s30 = scalar_lea.vmem %s17625_s22, 4096 }
 0x188   : > { %652 = vst.msk [vmem:[#allocation2 + $0x1f8] sm:$0xff] %vm617_vm0, %v17702_v0  ;;  %653 = vst.msk [vmem:[#allocation2 + $0x210] sm:$0xff] %vm617_vm0, %v17702_v0  ;;  %11153 = vmatprep.subr.mxu1 %v1057_v6  ;;  %11140 = vmatpush3.msra.mxu0 %v950_v5  ;;  %v710_v12 = vld [vmem:[%s14321_s15 + $0x38] sm:$0xff]  ;;  %v1350_v13 = vld [vmem:[#allocation9] sm:$0xff]  ;;  %p13756_p2 = scmp.ne.s32.totalorder %s17625_s22, %s13755_s30  ;;  %p17767_p8 = scmp.ne.s32.totalorder %s17734_s23, 0 }
 0x189   : > { %654 = vst.msk [vmem:[#allocation2 + $0x228] sm:$0xff] %vm617_vm0, %v17702_v0  ;;  %655 = vst.msk [vmem:[#allocation2 + $0x240] sm:$0xff] %vm617_vm0, %v17702_v0  ;;  %11154 = vmatpush3.msra.mxu1 %v1057_v6  ;;  %11116 = vmatprep.mubr.msk.f32.mxu0 %vm712_vm1, %v705_v7  ;;  %v1351_v14 = vld [vmem:[#allocation9 + $0x8] sm:$0xff]  ;;  %v1562_v18 = vld [vmem:[#allocation9 + $0x10] sm:$0xff]  ;;  %s13865_s17 = smov [#allocation24]  }
 0x18a   : > { %656 = vst.msk [vmem:[#allocation2 + $0x258] sm:$0xff] %vm617_vm0, %v17702_v0  ;;  %657 = vst.msk [vmem:[#allocation2 + $0x270] sm:$0xff] %vm617_vm0, %v17702_v0  ;;  %11130 = vmatprep.mubr.msk.f32.mxu1 %vm712_vm1, %v705_v7  ;;  %11117 = vmatmul.mubr.msk.f32.gmra.mrb[2].mxu0 %vm712_vm1, %v706_v8  ;;  %v12223_v15 = vpack.c.bf16 %v1351_v14, %v1350_v13  ;;  %v14479_v17 = vld [vmem:[#allocation2 + $0x8] sm:$0xff]  ;;  %v1563_v19 = vld [vmem:[#allocation9 + $0x18] sm:$0xff]  ;;  %p13757_p4 = pnand %p13756_p2, %p17767_p8  ;;  %s13759_s15 = sshll.u32 %s13865_s17, 4  ;;  %s13760_s15 = int_to_ptr.vmem [resolvable:$false] %s13759_s15 }
 0x18b   : > { %658 = vst.msk [vmem:[#allocation2 + $0x288] sm:$0xff] %vm617_vm0, %v17702_v0  ;;  %659 = vst.msk [vmem:[#allocation2 + $0x2a0] sm:$0xff] %vm617_vm0, %v17702_v0  ;;  %11131 = vmatmul.mubr.msk.f32.gmra.mrb[2].mxu1 %vm712_vm1, %v706_v8  ;;  %11119 = vmatprep.mubr.msk.f32.mxu0 %vm712_vm1, %v707_v9  ;;  %v14484_v20 = vpack.c.bf16 %v1563_v19, %v1562_v18  ;;  %v14489_v21 = vld [vmem:[#allocation8] ss:$0 sm:$0xff]  ;;  %v1774_v38 = vld [vmem:[#allocation9 + $0x20] sm:$0xff]  ;;  %s13761_s2 = scalar_lea.vmem %s13760_s15, 8192  ;;  %p13762_p11 = scmp.lt.s32.totalorder %s17625_s22, %s13760_s15 }
 0x18c   : > { %660 = vst.msk [vmem:[#allocation2 + $0x2b8] sm:$0xff] %vm617_vm0, %v17702_v0  ;;  %661 = vst.msk [vmem:[#allocation2 + $0x2d0] sm:$0xff] %vm617_vm0, %v17702_v0  ;;  %11133 = vmatprep.mubr.msk.f32.mxu1 %vm712_vm1, %v707_v9  ;;  %12224 = vmatprep.subr.bf16.mxu0 %v12223_v15  ;;  %v1775_v39 = vld [vmem:[#allocation9 + $0x28] sm:$0xff]  ;;  %s17623_s16 = scalar_lea.hbm %s17766_s1, %s10406_s14  ;;  %p13758_p10 = pneg %p13757_p4 }
 0x18d   : > { %662 = vst.msk [vmem:[#allocation2 + $0x2e8] sm:$0xff] %vm617_vm0, %v17702_v0  ;;  %663 = vst.msk [vmem:[#allocation2 + $0x300] sm:$0xff] %vm617_vm0, %v17702_v0  ;;  %12236 = vmatprep.subr.bf16.mxu1 %v12223_v15  ;;  %v14529_v48 = vpack.c.bf16 %v1775_v39, %v1774_v38  ;;  %p13763_p3 = scmp.lt.s32.totalorder %s13761_s2, %s13755_s30 }
 0x18e   : > { %664 = vst.msk [vmem:[#allocation2 + $0x318] sm:$0xff] %vm617_vm0, %v17702_v0  ;;  %665 = vst.msk [vmem:[#allocation2 + $0x330] sm:$0xff] %vm617_vm0, %v17702_v0  ;;  %11120 = vmatmul.mubr.msk.f32.gmra.mrb[4].mxu0 %vm712_vm1, %v708_v10 }
 0x18f   : > { %668 = vst.msk [vmem:[#allocation2 + $0x28] sm:$0xff] %vm617_vm0, %v17702_v0  ;;  %669 = vst.msk [vmem:[#allocation2 + $0x40] sm:$0xff] %vm617_vm0, %v17702_v0  ;;  %11134 = vmatmul.mubr.msk.f32.gmra.mrb[4].mxu1 %vm712_vm1, %v708_v10  ;;  %11122 = vmatprep.mubr.msk.f32.mxu0 %vm712_vm1, %v709_v11  ;;  %p13764_p5 = por %p13763_p3, %p13762_p11 }
 0x190   : > { %670 = vst.msk [vmem:[#allocation2 + $0x58] sm:$0xff] %vm617_vm0, %v17702_v0  ;;  %671 = vst.msk [vmem:[#allocation2 + $0x70] sm:$0xff] %vm617_vm0, %v17702_v0  ;;  %11136 = vmatprep.mubr.msk.f32.mxu1 %vm712_vm1, %v709_v11 }
 0x191   : > { %672 = vst.msk [vmem:[#allocation2 + $0x88] sm:$0xff] %vm617_vm0, %v17702_v0  ;;  %673 = vst.msk [vmem:[#allocation2 + $0xa0] sm:$0xff] %vm617_vm0, %v17702_v0  ;;  %p13765_p7 = pnand %p13764_p5, %p13758_p10 }
 0x192   : > { %674 = vst.msk [vmem:[#allocation2 + $0xb8] sm:$0xff] %vm617_vm0, %v17702_v0  ;;  %675 = vst.msk [vmem:[#allocation2 + $0xd0] sm:$0xff] %vm617_vm0, %v17702_v0  ;;  %11123 = vmatmul.mubr.msk.f32.gmra.mrb[6].mxu0 %vm712_vm1, %v710_v12 }
 0x193   : > { %676 = vst.msk [vmem:[#allocation2 + $0xe8] sm:$0xff] %vm617_vm0, %v17702_v0  ;;  %677 = vst.msk [vmem:[#allocation2 + $0x100] sm:$0xff] %vm617_vm0, %v17702_v0  ;;  %11137 = vmatmul.mubr.msk.f32.gmra.mrb[6].mxu1 %vm712_vm1, %v710_v12  ;;  %11141 = vmatprep.mubr.msk.f32.mxu0 %vm712_vm1, %v703_v3 }
 0x194   : > { %678 = vst.msk [vmem:[#allocation2 + $0x118] sm:$0xff] %vm617_vm0, %v17702_v0  ;;  %679 = vst.msk [vmem:[#allocation2 + $0x130] sm:$0xff] %vm617_vm0, %v17702_v0  ;;  %11155 = vmatprep.mubr.msk.f32.mxu1 %vm712_vm1, %v703_v3 }
 0x195   : > { %680 = vst.msk [vmem:[#allocation2 + $0x148] sm:$0xff] %vm617_vm0, %v17702_v0  ;;  %681 = vst.msk [vmem:[#allocation2 + $0x160] sm:$0xff] %vm617_vm0, %v17702_v0 }
 0x196   : > { %682 = vst.msk [vmem:[#allocation2 + $0x178] sm:$0xff] %vm617_vm0, %v17702_v0  ;;  %683 = vst.msk [vmem:[#allocation2 + $0x190] sm:$0xff] %vm617_vm0, %v17702_v0  ;;  %11142 = vmatmul.mubr.msk.f32.vlgmr.msra.gmra.mrb[8].mxu0 %vm712_vm1, %v704_v4 }
 0x197   : > { %649 = vst.msk [vmem:[#allocation2 + $0x1b0] sm:$0xff] %vm617_vm0, %v17702_v0  ;;  %666 = vst.msk [vmem:[#allocation2 + $0x348] sm:$0xff] %vm617_vm0, %v17702_v0  ;;  %11156 = vmatmul.mubr.msk.f32.vlgmr.msra.gmra.mrb[8].mxu1 %vm712_vm1, %v704_v4  ;;  %11144 = vmatprep.mubr.msk.f32.mxu0 %vm712_vm1, %v705_v7 }
 0x198   : > { %667 = vst.msk [vmem:[#allocation2 + $0x10] sm:$0xff] %vm617_vm0, %v17702_v0  ;;  %684 = vst.msk [vmem:[#allocation2 + $0x1a8] sm:$0xff] %vm617_vm0, %v17702_v0  ;;  %11158 = vmatprep.mubr.msk.f32.mxu1 %vm712_vm1, %v705_v7  ;;  %12226 = vmatpush3.bf16.msra.mxu0 %v12223_v15 }
 0x199   : > { %12238 = vmatpush3.bf16.msra.mxu1 %v12223_v15  ;;  %12228 = vmatprep.subr.bf16.mxu0 %v14484_v20 }
 0x19a   : > { %11145 = vmatmul.mubr.msk.f32.gmra.mrb[10].mxu0 %vm712_vm1, %v706_v8  ;;  %12240 = vmatprep.subr.bf16.mxu1 %v14484_v20 }
 0x19b   : > { %11159 = vmatmul.mubr.msk.f32.gmra.mrb[10].mxu1 %vm712_vm1, %v706_v8  ;;  %11147 = vmatprep.mubr.msk.f32.mxu0 %vm712_vm1, %v707_v9 }
 0x19c   : > { %11161 = vmatprep.mubr.msk.f32.mxu1 %vm712_vm1, %v707_v9 }
 0x19e   : > { %11148 = vmatmul.mubr.msk.f32.gmra.mrb[12].mxu0 %vm712_vm1, %v708_v10  ;;  %v1306_v16 = vld [vmem:[#allocation2 + $0x1b7] sm:$0xff] }
 0x19f   : > { %11162 = vmatmul.mubr.msk.f32.gmra.mrb[12].mxu1 %vm712_vm1, %v708_v10  ;;  %11150 = vmatprep.mubr.msk.f32.mxu0 %vm712_vm1, %v709_v11 }
 0x1a0   : > { %11164 = vmatprep.mubr.msk.f32.mxu1 %vm712_vm1, %v709_v11 }
 0x1a2   : > { %11151 = vmatmul.mubr.msk.f32.gmra.mrb[14].mxu0 %vm712_vm1, %v710_v12 }
 0x1a3   : > { %11165 = vmatmul.mubr.msk.f32.gmra.mrb[14].mxu1 %vm712_vm1, %v710_v12  ;;  %11171 = vmatprep.mubr.msk.f32.mxu0 %vm617_vm0, %v1306_v16 }
 0x1a4   : > { %11255 = vmatprep.mubr.msk.f32.mxu1 %vm617_vm0, %v14479_v17 }
 0x259   : > { %v11115_v22 = vpop.f32.mrb[0].mxu0 }
 0x25a   : > { %v11129_v23 = vpop.f32.mrb[0].mxu1  ;;  %v1172_v24 = vadd.f32 %v11115_v22, %v14489_v21  ;;  %v803_v26 = vpop.f32.mrb[1].mxu0 }
 0x25b   : > { %v1221_v25 = vadd.f32 %v11129_v23, %v14489_v21  ;;  %v910_v27 = vpop.f32.mrb[1].mxu1  ;;  %v1170_v28 = vadd.f32 %v14489_v21, %v803_v26 }
 0x25c   : > { %v1219_v29 = vadd.f32 %v14489_v21, %v910_v27  ;;  %1188 = vst.msk [vmem:[%s14495_s25 + $0x10] sm:$0xff] %vm617_vm0, %v1172_v24  ;;  %1205 = vst.msk [vmem:[#allocation2 + $0x50] sm:$0xff] %vm617_vm0, %v1172_v24 }
 0x25d   : > { %9760 = vst.msk [vmem:[%s14495_s25 + $0x90] sm:$0xff] %vm617_vm0, %v1221_v25  ;;  %1255 = vst.msk [vmem:[#allocation2 + $0x200] sm:$0xff] %vm617_vm0, %v1221_v25  ;;  %v11118_v30 = vpop.f32.mrb[2].mxu0 }
 0x25e   : > { %1186 = vst.msk [vmem:[%s14495_s25] sm:$0xff] %vm617_vm0, %v1170_v28  ;;  %1203 = vst.msk [vmem:[#allocation2 + $0x20] sm:$0xff] %vm617_vm0, %v1170_v28  ;;  %v11132_v31 = vpop.f32.mrb[2].mxu1  ;;  %v1176_v32 = vadd.f32 %v11118_v30, %v14489_v21  ;;  %v813_v34 = vpop.f32.mrb[3].mxu0 }
 0x25f   : > { %9758 = vst.msk [vmem:[%s14495_s25 + $0x80] sm:$0xff] %vm617_vm0, %v1219_v29  ;;  %1253 = vst.msk [vmem:[#allocation2 + $0x1d0] sm:$0xff] %vm617_vm0, %v1219_v29  ;;  %v1225_v33 = vadd.f32 %v11132_v31, %v14489_v21  ;;  %v920_v35 = vpop.f32.mrb[3].mxu1  ;;  %v1174_v36 = vadd.f32 %v14489_v21, %v813_v34 }
 0x260   : > { %v1223_v37 = vadd.f32 %v14489_v21, %v920_v35  ;;  %1192 = vst.msk [vmem:[%s14495_s25 + $0x30] sm:$0xff] %vm617_vm0, %v1176_v32  ;;  %1209 = vst.msk [vmem:[#allocation2 + $0xb0] sm:$0xff] %vm617_vm0, %v1176_v32 }
 0x261   : > { %9764 = vst.msk [vmem:[%s14495_s25 + $0xb0] sm:$0xff] %vm617_vm0, %v1225_v33  ;;  %1259 = vst.msk [vmem:[#allocation2 + $0x260] sm:$0xff] %vm617_vm0, %v1225_v33  ;;  %v11121_v40 = vpop.f32.mrb[4].mxu0 }
 0x262   : > { %1190 = vst.msk [vmem:[%s14495_s25 + $0x20] sm:$0xff] %vm617_vm0, %v1174_v36  ;;  %1207 = vst.msk [vmem:[#allocation2 + $0x80] sm:$0xff] %vm617_vm0, %v1174_v36  ;;  %v11135_v41 = vpop.f32.mrb[4].mxu1  ;;  %v1180_v42 = vadd.f32 %v11121_v40, %v14489_v21  ;;  %v823_v44 = vpop.f32.mrb[5].mxu0 }
 0x263   : > { %9762 = vst.msk [vmem:[%s14495_s25 + $0xa0] sm:$0xff] %vm617_vm0, %v1223_v37  ;;  %1257 = vst.msk [vmem:[#allocation2 + $0x230] sm:$0xff] %vm617_vm0, %v1223_v37  ;;  %v1229_v43 = vadd.f32 %v11135_v41, %v14489_v21  ;;  %v930_v45 = vpop.f32.mrb[5].mxu1  ;;  %v1178_v46 = vadd.f32 %v14489_v21, %v823_v44  ;;  %v14623_v25 = vld [vmem:[#allocation2 + $0x50] sm:$0xff] }
 0x264   : > { %v1227_v47 = vadd.f32 %v14489_v21, %v930_v45  ;;  %1196 = vst.msk [vmem:[%s14495_s25 + $0x50] sm:$0xff] %vm617_vm0, %v1180_v42  ;;  %1213 = vst.msk [vmem:[#allocation2 + $0x110] sm:$0xff] %vm617_vm0, %v1180_v42  ;;  %v14621_v24 = vld [vmem:[#allocation2 + $0x1ff] sm:$0xff] }
 0x265   : > { %9768 = vst.msk [vmem:[%s14495_s25 + $0xd0] sm:$0xff] %vm617_vm0, %v1229_v43  ;;  %1263 = vst.msk [vmem:[#allocation2 + $0x2c0] sm:$0xff] %vm617_vm0, %v1229_v43  ;;  %v14539_v50 = vld [vmem:[#allocation2 + $0x20] sm:$0xff]  ;;  %v11124_v51 = vpop.f32.mrb[6].mxu0 }
 0x266   : > { %v14537_v49 = vld [vmem:[#allocation2 + $0x1cf] sm:$0xff]  ;;  %1194 = vst.msk [vmem:[%s14495_s25 + $0x40] sm:$0xff] %vm617_vm0, %v1178_v46  ;;  %1211 = vst.msk [vmem:[#allocation2 + $0xe0] sm:$0xff] %vm617_vm0, %v1178_v46  ;;  %v11138_v52 = vpop.f32.mrb[6].mxu1  ;;  %11256 = vmatmul.mubr.msk.f32.vlgmr.msra.gmra.mrb[16].mxu1 %vm617_vm0, %v14539_v50  ;;  %v1184_v53 = vadd.f32 %v11124_v51, %v14489_v21  ;;  %v833_v55 = vpop.f32.mrb[7].mxu0 }
 0x267   : > { %9766 = vst.msk [vmem:[%s14495_s25 + $0xc0] sm:$0xff] %vm617_vm0, %v1227_v47  ;;  %1261 = vst.msk [vmem:[#allocation2 + $0x290] sm:$0xff] %vm617_vm0, %v1227_v47  ;;  %11172 = vmatmul.mubr.msk.f32.vlgmr.msra.gmra.mrb[16].mxu0 %vm617_vm0, %v14537_v49  ;;  %v1233_v54 = vadd.f32 %v11138_v52, %v14489_v21  ;;  %v940_v56 = vpop.f32.mrb[7].mxu1  ;;  %12242 = vmatpush3.bf16.msra.mxu1 %v14484_v20  ;;  %v1182_v57 = vadd.f32 %v14489_v21, %v833_v55  ;;  %v14677_v40 = vld [vmem:[#allocation2 + $0xb0] sm:$0xff] }
 0x268   : > { %12230 = vmatpush3.bf16.msra.mxu0 %v14484_v20  ;;  %v1231_v58 = vadd.f32 %v14489_v21, %v940_v56  ;;  %12244 = vmatprep.subr.bf16.mxu1 %v14529_v48  ;;  %1200 = vst.msk [vmem:[%s14495_s25 + $0x70] sm:$0xff] %vm617_vm0, %v1184_v53  ;;  %1217 = vst.msk [vmem:[#allocation2 + $0x170] sm:$0xff] %vm617_vm0, %v1184_v53 }
 0x269   : > { %12232 = vmatprep.subr.bf16.mxu0 %v14529_v48  ;;  %9772 = vst.msk [vmem:[%s14495_s25 + $0xf0] sm:$0xff] %vm617_vm0, %v1233_v54  ;;  %1267 = vst.msk [vmem:[#allocation2 + $0x320] sm:$0xff] %vm617_vm0, %v1233_v54  ;;  %v11143_v59 = vpop.f32.mrb[8].mxu0  ;;  %v14659_v39 = vld [vmem:[#allocation2 + $0x80] sm:$0xff] }
 0x26a   : > { %1198 = vst.msk [vmem:[%s14495_s25 + $0x60] sm:$0xff] %vm617_vm0, %v1182_v57  ;;  %1215 = vst.msk [vmem:[#allocation2 + $0x140] sm:$0xff] %vm617_vm0, %v1182_v57  ;;  %v11157_v60 = vpop.f32.mrb[8].mxu1  ;;  %v1173_v61 = vadd.f32 %v11143_v59, %v14489_v21  ;;  %v1017_v63 = vpop.f32.mrb[9].mxu0  ;;  %v14657_v38 = vld [vmem:[#allocation2 + $0x22f] sm:$0xff] }
 0x26b   : > { %9770 = vst.msk [vmem:[%s14495_s25 + $0xe0] sm:$0xff] %vm617_vm0, %v1231_v58  ;;  %1265 = vst.msk [vmem:[#allocation2 + $0x2f0] sm:$0xff] %vm617_vm0, %v1231_v58  ;;  %v1222_v62 = vadd.f32 %v11157_v60, %v14489_v21  ;;  %v1124_v1 = vpop.f32.mrb[9].mxu1  ;;  %v1171_v2 = vadd.f32 %v14489_v21, %v1017_v63  ;;  %v14709_v51 = vld [vmem:[#allocation2 + $0x110] sm:$0xff]  ;;  %v1288_v58 = vld [vmem:[#allocation2 + $0x1b8] sm:$0xff] }
 0x26c   : > { %v1220_v3 = vadd.f32 %v14489_v21, %v1124_v1  ;;  %1189 = vst.msk [vmem:[%s14495_s25 + $0x18] sm:$0xff] %vm617_vm0, %v1173_v61  ;;  %1206 = vst.msk [vmem:[#allocation2 + $0x68] sm:$0xff] %vm617_vm0, %v1173_v61  ;;  %v14707_v47 = vld [vmem:[#allocation2 + $0x2bf] sm:$0xff]  ;;  %v2517_v61 = vld [vmem:[#allocation9 + $0x30] sm:$0xff] }
 0x26d   : > { %9761 = vst.msk [vmem:[%s14495_s25 + $0x98] sm:$0xff] %vm617_vm0, %v1222_v62  ;;  %1256 = vst.msk [vmem:[#allocation2 + $0x218] sm:$0xff] %vm617_vm0, %v1222_v62  ;;  %v11146_v4 = vpop.f32.mrb[10].mxu0  ;;  %v14697_v46 = vld [vmem:[#allocation2 + $0xe0] sm:$0xff]  ;;  %v14750_v63 = vld [vmem:[#allocation2 + $0x1d0] sm:$0xff] }
 0x26e   : > { %1187 = vst.msk [vmem:[%s14495_s25 + $0x8] sm:$0xff] %vm617_vm0, %v1171_v2  ;;  %1204 = vst.msk [vmem:[#allocation2 + $0x38] sm:$0xff] %vm617_vm0, %v1171_v2  ;;  %v11160_v5 = vpop.f32.mrb[10].mxu1  ;;  %v1177_v6 = vadd.f32 %v11146_v4, %v14489_v21  ;;  %v1027_v8 = vpop.f32.mrb[11].mxu0  ;;  %v14695_v45 = vld [vmem:[#allocation2 + $0x28f] sm:$0xff]  ;;  %v2518_v62 = vld [vmem:[#allocation9 + $0x38] sm:$0xff] }
 0x26f   : > { %9759 = vst.msk [vmem:[%s14495_s25 + $0x88] sm:$0xff] %vm617_vm0, %v1220_v3  ;;  %1254 = vst.msk [vmem:[#allocation2 + $0x1e8] sm:$0xff] %vm617_vm0, %v1220_v3  ;;  %v1226_v7 = vadd.f32 %v11160_v5, %v14489_v21  ;;  %v1134_v9 = vpop.f32.mrb[11].mxu1  ;;  %v1175_v10 = vadd.f32 %v14489_v21, %v1027_v8  ;;  %v14741_v60 = vld [vmem:[#allocation2 + $0x170] sm:$0xff]  ;;  %v12247_v1 = vpack.c.bf16 %v2518_v62, %v2517_v61  ;;  %v14788_v5 = vld [vmem:[#allocation2 + $0x260] sm:$0xff] }
 0x270   : > { %v1224_v11 = vadd.f32 %v14489_v21, %v1134_v9  ;;  %1193 = vst.msk [vmem:[%s14495_s25 + $0x38] sm:$0xff] %vm617_vm0, %v1177_v6  ;;  %1210 = vst.msk [vmem:[#allocation2 + $0xc8] sm:$0xff] %vm617_vm0, %v1177_v6  ;;  %v14739_v59 = vld [vmem:[#allocation2 + $0x31f] sm:$0xff]  ;;  %v14776_v4 = vld [vmem:[#allocation2 + $0x230] sm:$0xff] }
 0x271   : > { %9765 = vst.msk [vmem:[%s14495_s25 + $0xb8] sm:$0xff] %vm617_vm0, %v1226_v7  ;;  %1260 = vst.msk [vmem:[#allocation2 + $0x278] sm:$0xff] %vm617_vm0, %v1226_v7  ;;  %v11149_v12 = vpop.f32.mrb[12].mxu0  ;;  %v14729_v57 = vld [vmem:[#allocation2 + $0x140] sm:$0xff]  ;;  %v14800_v7 = vld [vmem:[#allocation2 + $0x290] sm:$0xff] }
 0x272   : > { %1191 = vst.msk [vmem:[%s14495_s25 + $0x28] sm:$0xff] %vm617_vm0, %v1175_v10  ;;  %1208 = vst.msk [vmem:[#allocation2 + $0x98] sm:$0xff] %vm617_vm0, %v1175_v10  ;;  %v11163_v13 = vpop.f32.mrb[12].mxu1  ;;  %v1181_v14 = vadd.f32 %v11149_v12, %v14489_v21  ;;  %v1037_v16 = vpop.f32.mrb[13].mxu0  ;;  %v14727_v56 = vld [vmem:[#allocation2 + $0x2ef] sm:$0xff]  ;;  %v14812_v9 = vld [vmem:[#allocation2 + $0x2c0] sm:$0xff] }
 0x273   : > { %9763 = vst.msk [vmem:[%s14495_s25 + $0xa8] sm:$0xff] %vm617_vm0, %v1224_v11  ;;  %1258 = vst.msk [vmem:[#allocation2 + $0x248] sm:$0xff] %vm617_vm0, %v1224_v11  ;;  %v1230_v15 = vadd.f32 %v11163_v13, %v14489_v21  ;;  %v1144_v18 = vpop.f32.mrb[13].mxu1  ;;  %v1179_v19 = vadd.f32 %v14489_v21, %v1037_v16  ;;  %v14637_v29 = vld [vmem:[#allocation2 + $0x68] sm:$0xff]  ;;  %v14824_v11 = vld [vmem:[#allocation2 + $0x2f0] sm:$0xff] }
 0x274   : > { %v1228_v20 = vadd.f32 %v14489_v21, %v1144_v18  ;;  %1197 = vst.msk [vmem:[%s14495_s25 + $0x58] sm:$0xff] %vm617_vm0, %v1181_v14  ;;  %1214 = vst.msk [vmem:[#allocation2 + $0x128] sm:$0xff] %vm617_vm0, %v1181_v14  ;;  %v14635_v28 = vld [vmem:[#allocation2 + $0x217] sm:$0xff]  ;;  %v1324_v13 = vld [vmem:[#allocation2 + $0x9] sm:$0xff] }
 0x275   : > { %v14609_v23 = vld [vmem:[#allocation2 + $0x38] sm:$0xff]  ;;  %9769 = vst.msk [vmem:[%s14495_s25 + $0xd8] sm:$0xff] %vm617_vm0, %v1230_v15  ;;  %1264 = vst.msk [vmem:[#allocation2 + $0x2d8] sm:$0xff] %vm617_vm0, %v1230_v15  ;;  %v11152_v26 = vpop.f32.mrb[14].mxu0  ;;  %v14836_v14 = vld [vmem:[#allocation2 + $0x320] sm:$0xff] }
 0x276   : > { %v14607_v22 = vld [vmem:[#allocation2 + $0x1e7] sm:$0xff]  ;;  %11258 = vmatprep.mubr.msk.f32.mxu1 %vm617_vm0, %v14609_v23  ;;  %1195 = vst.msk [vmem:[%s14495_s25 + $0x48] sm:$0xff] %vm617_vm0, %v1179_v19  ;;  %1212 = vst.msk [vmem:[#allocation2 + $0xf8] sm:$0xff] %vm617_vm0, %v1179_v19  ;;  %v11166_v27 = vpop.f32.mrb[14].mxu1  ;;  %v1185_v30 = vadd.f32 %v11152_v26, %v14489_v21  ;;  %v1047_v32 = vpop.f32.mrb[15].mxu0  ;;  %v14770_v3 = vld [vmem:[#allocation2 + $0x218] sm:$0xff] }
 0x277   : > { %11174 = vmatprep.mubr.msk.f32.mxu0 %vm617_vm0, %v14607_v22  ;;  %9767 = vst.msk [vmem:[%s14495_s25 + $0xc8] sm:$0xff] %vm617_vm0, %v1228_v20  ;;  %1262 = vst.msk [vmem:[#allocation2 + $0x2a8] sm:$0xff] %vm617_vm0, %v1228_v20  ;;  %11259 = vmatmul.mubr.msk.f32.gmra.mrb[18].mxu1 %vm617_vm0, %v14623_v25  ;;  %v1234_v31 = vadd.f32 %v11166_v27, %v14489_v21  ;;  %v1154_v33 = vpop.f32.mrb[15].mxu1  ;;  %v1183_v34 = vadd.f32 %v14489_v21, %v1047_v32  ;;  %v14685_v42 = vld [vmem:[#allocation2 + $0xc8] sm:$0xff]  ;;  %v14850_v20 = vld [vmem:[#allocation2 + $0x39] sm:$0xff] }
 0x278   : > { %11175 = vmatmul.mubr.msk.f32.gmra.mrb[18].mxu0 %vm617_vm0, %v14621_v24  ;;  %11261 = vmatprep.mubr.msk.f32.mxu1 %vm617_vm0, %v14637_v29  ;;  %v1232_v35 = vadd.f32 %v14489_v21, %v1154_v33  ;;  %1201 = vst.msk [vmem:[%s14495_s25 + $0x78] sm:$0xff] %vm617_vm0, %v1185_v30  ;;  %1218 = vst.msk [vmem:[#allocation2 + $0x188] sm:$0xff] %vm617_vm0, %v1185_v30  ;;  %v14675_v21 = vld [vmem:[#allocation2 + $0x25f] sm:$0xff]  ;;  %v14683_v41 = vld [vmem:[#allocation2 + $0x277] sm:$0xff] }
 0x279   : > { %11177 = vmatprep.mubr.msk.f32.mxu0 %vm617_vm0, %v14635_v28  ;;  %v14649_v37 = vld [vmem:[#allocation2 + $0x98] sm:$0xff]  ;;  %9773 = vst.msk [vmem:[%s14495_s25 + $0xf8] sm:$0xff] %vm617_vm0, %v1234_v31  ;;  %1268 = vst.msk [vmem:[#allocation2 + $0x338] sm:$0xff] %vm617_vm0, %v1234_v31  ;;  %v14759_v2 = vld [vmem:[#allocation2 + $0x1e8] sm:$0xff] }
 0x27a   : > { %v14647_v36 = vld [vmem:[#allocation2 + $0x247] sm:$0xff]  ;;  %1199 = vst.msk [vmem:[%s14495_s25 + $0x68] sm:$0xff] %vm617_vm0, %v1183_v34  ;;  %1216 = vst.msk [vmem:[#allocation2 + $0x158] sm:$0xff] %vm617_vm0, %v1183_v34  ;;  %v14794_v6 = vld [vmem:[#allocation2 + $0x278] sm:$0xff] }
 0x27b   : > { %9771 = vst.msk [vmem:[%s14495_s25 + $0xe8] sm:$0xff] %vm617_vm0, %v1232_v35  ;;  %1266 = vst.msk [vmem:[#allocation2 + $0x308] sm:$0xff] %vm617_vm0, %v1232_v35  ;;  %11262 = vmatmul.mubr.msk.f32.gmra.mrb[20].mxu1 %vm617_vm0, %v14659_v39  ;;  %v14717_v53 = vld [vmem:[#allocation2 + $0x128] sm:$0xff]  ;;  %v14856_v26 = vld [vmem:[#allocation2 + $0x51] sm:$0xff] }
 0x27c   : > { %11178 = vmatmul.mubr.msk.f32.gmra.mrb[20].mxu0 %vm617_vm0, %v14657_v38  ;;  %11264 = vmatprep.mubr.msk.f32.mxu1 %vm617_vm0, %v14649_v37  ;;  %v14715_v52 = vld [vmem:[#allocation2 + $0x2d7] sm:$0xff]  ;;  %17753 = vst [vmem:[#allocation36_spill] sm:$0xff] %v14739_v59  ;;  %v2684_v15 = vld [vmem:[#allocation9 + $0x40] sm:$0xff]  ;;  %v2685_v16 = vld [vmem:[#allocation9 + $0x48] sm:$0xff] }
 0x27d   : > { %11180 = vmatprep.mubr.msk.f32.mxu0 %vm617_vm0, %v14647_v36  ;;  %v14693_v44 = vld [vmem:[#allocation2 + $0xf8] sm:$0xff]  ;;  %v14844_v18 = vld [vmem:[#allocation2 + $0x21] sm:$0xff]  ;;  %v12251_v19 = vpack.c.bf16 %v2685_v16, %v2684_v15  ;;  %v14862_v27 = vld [vmem:[#allocation2 + $0x69] sm:$0xff] }
 0x27e   : > { %v14691_v43 = vld [vmem:[#allocation2 + $0x2a7] sm:$0xff]  ;;  %v14818_v10 = vld [vmem:[#allocation2 + $0x2d8] sm:$0xff] }
 0x27f   : > { %11265 = vmatmul.mubr.msk.f32.gmra.mrb[22].mxu1 %vm617_vm0, %v14677_v40  ;;  %v14806_v8 = vld [vmem:[#allocation2 + $0x2a8] sm:$0xff]  ;;  %v14874_v31 = vld [vmem:[#allocation2 + $0x99] sm:$0xff]  ;;  %v14880_v32 = vld [vmem:[#allocation2 + $0xb1] sm:$0xff] }
 0x280   : > { %11181 = vmatmul.mubr.msk.f32.gmra.mrb[22].mxu0 %vm617_vm0, %v14675_v21  ;;  %11267 = vmatprep.mubr.msk.f32.mxu1 %vm617_vm0, %v14685_v42  ;;  %v14868_v30 = vld [vmem:[#allocation2 + $0x81] sm:$0xff]  ;;  %v14886_v33 = vld [vmem:[#allocation2 + $0xc9] sm:$0xff]  ;;  %v14898_v35 = vld [vmem:[#allocation2 + $0xf9] sm:$0xff] }
 0x281   : > { %11183 = vmatprep.mubr.msk.f32.mxu0 %vm617_vm0, %v14683_v41  ;;  %v14725_v55 = vld [vmem:[#allocation2 + $0x158] sm:$0xff]  ;;  %v14892_v34 = vld [vmem:[#allocation2 + $0xe1] sm:$0xff]  ;;  %v14910_v61 = vld [vmem:[#allocation2 + $0x129] sm:$0xff] }
 0x282   : > { %v14723_v54 = vld [vmem:[#allocation2 + $0x307] sm:$0xff]  ;;  %v2851_v15 = vld [vmem:[#allocation9 + $0x50] sm:$0xff]  ;;  %v2852_v16 = vld [vmem:[#allocation9 + $0x58] sm:$0xff] }
 0x283   : > { %11268 = vmatmul.mubr.msk.f32.gmra.mrb[24].mxu1 %vm617_vm0, %v14697_v46  ;;  %v14830_v12 = vld [vmem:[#allocation2 + $0x308] sm:$0xff]  ;;  %v12255_v0 = vpack.c.bf16 %v2852_v16, %v2851_v15 }
 0x284   : > { %11184 = vmatmul.mubr.msk.f32.gmra.mrb[24].mxu0 %vm617_vm0, %v14695_v45  ;;  %11270 = vmatprep.mubr.msk.f32.mxu1 %vm617_vm0, %v14693_v44  ;;  %v14916_v62 = vld [vmem:[#allocation2 + $0x141] sm:$0xff]  ;;  %v3505_v16 = vld [vmem:[#allocation9 + $0x68] sm:$0xff] }
 0x285   : > { %11186 = vmatprep.mubr.msk.f32.mxu0 %vm617_vm0, %v14691_v43  ;;  %v3504_v15 = vld [vmem:[#allocation9 + $0x60] sm:$0xff] }
 0x287   : > { %11271 = vmatmul.mubr.msk.f32.gmra.mrb[26].mxu1 %vm617_vm0, %v14709_v51 }
 0x288   : > { %11187 = vmatmul.mubr.msk.f32.gmra.mrb[26].mxu0 %vm617_vm0, %v14707_v47  ;;  %11273 = vmatprep.mubr.msk.f32.mxu1 %vm617_vm0, %v14717_v53 }
 0x289   : > { %11189 = vmatprep.mubr.msk.f32.mxu0 %vm617_vm0, %v14715_v52 }
 0x28b   : > { %11274 = vmatmul.mubr.msk.f32.gmra.mrb[28].mxu1 %vm617_vm0, %v14729_v57 }
 0x28c   : > { %11190 = vmatmul.mubr.msk.f32.gmra.mrb[28].mxu0 %vm617_vm0, %v14727_v56  ;;  %11276 = vmatprep.mubr.msk.f32.mxu1 %vm617_vm0, %v14725_v55 }
 0x28d   : > { %11192 = vmatprep.mubr.msk.f32.mxu0 %vm617_vm0, %v14723_v54 }
 0x28f   : > { %11277 = vmatmul.mubr.msk.f32.gmra.mrb[30].mxu1 %vm617_vm0, %v14741_v60 }
 0x290   : > { %11193 = vmatmul.mubr.msk.f32.gmra.mrb[30].mxu0 %vm617_vm0, %v14739_v59  ;;  %11283 = vmatprep.mubr.msk.f32.mxu1 %vm617_vm0, %v1288_v58 }
 0x291   : > { %11199 = vmatprep.mubr.msk.f32.mxu0 %vm617_vm0, %v14479_v17  ;;  %v14764_v17 = vld [vmem:[#allocation2 + $0x200] sm:$0xff] }
 0x293   : > { %11284 = vmatmul.mubr.msk.f32.vlgmr.msra.gmra.mrb[16].mxu1 %vm617_vm0, %v14750_v63 }
 0x294   : > { %11200 = vmatmul.mubr.msk.f32.vlgmr.msra.gmra.mrb[16].mxu0 %vm617_vm0, %v14539_v50  ;;  %11286 = vmatprep.mubr.msk.f32.mxu1 %vm617_vm0, %v14759_v2 }
 0x295   : > { %11202 = vmatprep.mubr.msk.f32.mxu0 %vm617_vm0, %v14609_v23  ;;  %12234 = vmatpush3.bf16.msra.mxu0 %v14529_v48 }
 0x296   : > { %12246 = vmatpush3.bf16.msra.mxu1 %v14529_v48  ;;  %12248 = vmatprep.subr.bf16.mxu0 %v12247_v1  ;;  %v14782_v48 = vld [vmem:[#allocation2 + $0x248] sm:$0xff] }
 0x297   : > { %12260 = vmatprep.subr.bf16.mxu1 %v12247_v1  ;;  %11287 = vmatmul.mubr.msk.f32.gmra.mrb[18].mxu1 %vm617_vm0, %v14764_v17 }
 0x298   : > { %11203 = vmatmul.mubr.msk.f32.gmra.mrb[18].mxu0 %vm617_vm0, %v14623_v25  ;;  %11289 = vmatprep.mubr.msk.f32.mxu1 %vm617_vm0, %v14770_v3 }
 0x299   : > { %11205 = vmatprep.mubr.msk.f32.mxu0 %vm617_vm0, %v14637_v29 }
 0x29b   : > { %11290 = vmatmul.mubr.msk.f32.gmra.mrb[20].mxu1 %vm617_vm0, %v14776_v4 }
 0x29c   : > { %11206 = vmatmul.mubr.msk.f32.gmra.mrb[20].mxu0 %vm617_vm0, %v14659_v39  ;;  %11292 = vmatprep.mubr.msk.f32.mxu1 %vm617_vm0, %v14782_v48 }
 0x29d   : > { %11208 = vmatprep.mubr.msk.f32.mxu0 %vm617_vm0, %v14649_v37 }
 0x29f   : > { %11293 = vmatmul.mubr.msk.f32.gmra.mrb[22].mxu1 %vm617_vm0, %v14788_v5 }
 0x2a0   : > { %11209 = vmatmul.mubr.msk.f32.gmra.mrb[22].mxu0 %vm617_vm0, %v14677_v40  ;;  %11295 = vmatprep.mubr.msk.f32.mxu1 %vm617_vm0, %v14794_v6 }
 0x2a1   : > { %11211 = vmatprep.mubr.msk.f32.mxu0 %vm617_vm0, %v14685_v42 }
 0x2a3   : > { %11296 = vmatmul.mubr.msk.f32.gmra.mrb[24].mxu1 %vm617_vm0, %v14800_v7 }
 0x2a4   : > { %11212 = vmatmul.mubr.msk.f32.gmra.mrb[24].mxu0 %vm617_vm0, %v14697_v46  ;;  %11298 = vmatprep.mubr.msk.f32.mxu1 %vm617_vm0, %v14806_v8 }
 0x2a5   : > { %11214 = vmatprep.mubr.msk.f32.mxu0 %vm617_vm0, %v14693_v44 }
 0x2a7   : > { %11299 = vmatmul.mubr.msk.f32.gmra.mrb[26].mxu1 %vm617_vm0, %v14812_v9 }
 0x2a8   : > { %11215 = vmatmul.mubr.msk.f32.gmra.mrb[26].mxu0 %vm617_vm0, %v14709_v51  ;;  %11301 = vmatprep.mubr.msk.f32.mxu1 %vm617_vm0, %v14818_v10 }
 0x2a9   : > { %11217 = vmatprep.mubr.msk.f32.mxu0 %vm617_vm0, %v14717_v53 }
 0x2ab   : > { %11302 = vmatmul.mubr.msk.f32.gmra.mrb[28].mxu1 %vm617_vm0, %v14824_v11 }
 0x2ac   : > { %11218 = vmatmul.mubr.msk.f32.gmra.mrb[28].mxu0 %vm617_vm0, %v14729_v57  ;;  %11304 = vmatprep.mubr.msk.f32.mxu1 %vm617_vm0, %v14830_v12 }
 0x2ad   : > { %11220 = vmatprep.mubr.msk.f32.mxu0 %vm617_vm0, %v14725_v55 }
 0x2af   : > { %11305 = vmatmul.mubr.msk.f32.gmra.mrb[30].mxu1 %vm617_vm0, %v14836_v14 }
 0x2b0   : > { %11221 = vmatmul.mubr.msk.f32.gmra.mrb[30].mxu0 %vm617_vm0, %v14741_v60  ;;  %11311 = vmatprep.mubr.msk.f32.mxu1 %vm617_vm0, %v1324_v13  ;;  %v14928_v13 = vld [vmem:[#allocation2 + $0x171] sm:$0xff] }
 0x2b1   : > { %11227 = vmatprep.mubr.msk.f32.mxu0 %vm617_vm0, %v1288_v58  ;;  %v14904_v58 = vld [vmem:[#allocation2 + $0x111] sm:$0xff] }
 0x2b3   : > { %11312 = vmatmul.mubr.msk.f32.vlgmr.msra.gmra.mrb[16].mxu1 %vm617_vm0, %v14844_v18 }
 0x2b4   : > { %11228 = vmatmul.mubr.msk.f32.vlgmr.msra.gmra.mrb[16].mxu0 %vm617_vm0, %v14750_v63  ;;  %11314 = vmatprep.mubr.msk.f32.mxu1 %vm617_vm0, %v14850_v20 }
 0x2b5   : > { %11230 = vmatprep.mubr.msk.f32.mxu0 %vm617_vm0, %v14759_v2  ;;  %12250 = vmatpush3.bf16.msra.mxu0 %v12247_v1 }
 0x2b6   : > { %12262 = vmatpush3.bf16.msra.mxu1 %v12247_v1  ;;  %12252 = vmatprep.subr.bf16.mxu0 %v12251_v19  ;;  %v14922_v1 = vld [vmem:[#allocation2 + $0x159] sm:$0xff] }
 0x2b7   : > { %12264 = vmatprep.subr.bf16.mxu1 %v12251_v19  ;;  %11315 = vmatmul.mubr.msk.f32.gmra.mrb[18].mxu1 %vm617_vm0, %v14856_v26 }
 0x2b8   : > { %11231 = vmatmul.mubr.msk.f32.gmra.mrb[18].mxu0 %vm617_vm0, %v14764_v17  ;;  %11317 = vmatprep.mubr.msk.f32.mxu1 %vm617_vm0, %v14862_v27 }
 0x2b9   : > { %11233 = vmatprep.mubr.msk.f32.mxu0 %vm617_vm0, %v14770_v3 }
 0x2bb   : > { %11318 = vmatmul.mubr.msk.f32.gmra.mrb[20].mxu1 %vm617_vm0, %v14868_v30 }
 0x2bc   : > { %11234 = vmatmul.mubr.msk.f32.gmra.mrb[20].mxu0 %vm617_vm0, %v14776_v4  ;;  %11320 = vmatprep.mubr.msk.f32.mxu1 %vm617_vm0, %v14874_v31 }
 0x2bd   : > { %11236 = vmatprep.mubr.msk.f32.mxu0 %vm617_vm0, %v14782_v48 }
 0x2bf   : > { %11321 = vmatmul.mubr.msk.f32.gmra.mrb[22].mxu1 %vm617_vm0, %v14880_v32 }
 0x2c0   : > { %11237 = vmatmul.mubr.msk.f32.gmra.mrb[22].mxu0 %vm617_vm0, %v14788_v5  ;;  %11323 = vmatprep.mubr.msk.f32.mxu1 %vm617_vm0, %v14886_v33 }
 0x2c1   : > { %11239 = vmatprep.mubr.msk.f32.mxu0 %vm617_vm0, %v14794_v6 }
 0x2c3   : > { %11324 = vmatmul.mubr.msk.f32.gmra.mrb[24].mxu1 %vm617_vm0, %v14892_v34 }
 0x2c4   : > { %11240 = vmatmul.mubr.msk.f32.gmra.mrb[24].mxu0 %vm617_vm0, %v14800_v7  ;;  %11326 = vmatprep.mubr.msk.f32.mxu1 %vm617_vm0, %v14898_v35 }
 0x2c5   : > { %11242 = vmatprep.mubr.msk.f32.mxu0 %vm617_vm0, %v14806_v8 }
 0x2c7   : > { %11327 = vmatmul.mubr.msk.f32.gmra.mrb[26].mxu1 %vm617_vm0, %v14904_v58 }
 0x2c8   : > { %11243 = vmatmul.mubr.msk.f32.gmra.mrb[26].mxu0 %vm617_vm0, %v14812_v9  ;;  %11329 = vmatprep.mubr.msk.f32.mxu1 %vm617_vm0, %v14910_v61 }
 0x2c9   : > { %11245 = vmatprep.mubr.msk.f32.mxu0 %vm617_vm0, %v14818_v10 }
 0x2cb   : > { %11330 = vmatmul.mubr.msk.f32.gmra.mrb[28].mxu1 %vm617_vm0, %v14916_v62 }
 0x2cc   : > { %11246 = vmatmul.mubr.msk.f32.gmra.mrb[28].mxu0 %vm617_vm0, %v14824_v11  ;;  %11332 = vmatprep.mubr.msk.f32.mxu1 %vm617_vm0, %v14922_v1 }
 0x2cd   : > { %11248 = vmatprep.mubr.msk.f32.mxu0 %vm617_vm0, %v14830_v12 }
 0x2cf   : > { %11333 = vmatmul.mubr.msk.f32.gmra.mrb[30].mxu1 %vm617_vm0, %v14928_v13 }
 0x2d0   : > { %11249 = vmatmul.mubr.msk.f32.gmra.mrb[30].mxu0 %vm617_vm0, %v14836_v14  ;;  %11423 = vmatprep.mubr.msk.f32.mxu1 %vm617_vm0, %v14539_v50 }
 0x2d1   : > { %11339 = vmatprep.mubr.msk.f32.mxu0 %vm617_vm0, %v14537_v49  ;;  %v14994_v49 = vld [vmem:[#allocation2 + $0x337] sm:$0xff] }
 0x2d3   : > { %11424 = vmatmul.mubr.msk.f32.vlgmr.msra.gmra.mrb[16].mxu1 %vm617_vm0, %v14609_v23 }
 0x2d4   : > { %11340 = vmatmul.mubr.msk.f32.vlgmr.msra.gmra.mrb[16].mxu0 %vm617_vm0, %v14607_v22  ;;  %11426 = vmatprep.mubr.msk.f32.mxu1 %vm617_vm0, %v14623_v25 }
 0x2d5   : > { %11342 = vmatprep.mubr.msk.f32.mxu0 %vm617_vm0, %v14621_v24  ;;  %12254 = vmatpush3.bf16.msra.mxu0 %v12251_v19 }
 0x2d6   : > { %12266 = vmatpush3.bf16.msra.mxu1 %v12251_v19  ;;  %12256 = vmatprep.subr.bf16.mxu0 %v12255_v0  ;;  %v14996_v19 = vld [vmem:[#allocation2 + $0x188] sm:$0xff] }
 0x2d7   : > { %12268 = vmatprep.subr.bf16.mxu1 %v12255_v0  ;;  %11427 = vmatmul.mubr.msk.f32.gmra.mrb[18].mxu1 %vm617_vm0, %v14637_v29 }
 0x2d8   : > { %11343 = vmatmul.mubr.msk.f32.gmra.mrb[18].mxu0 %vm617_vm0, %v14635_v28  ;;  %11429 = vmatprep.mubr.msk.f32.mxu1 %vm617_vm0, %v14659_v39 }
 0x2d9   : > { %11345 = vmatprep.mubr.msk.f32.mxu0 %vm617_vm0, %v14657_v38 }
 0x2db   : > { %11430 = vmatmul.mubr.msk.f32.gmra.mrb[20].mxu1 %vm617_vm0, %v14649_v37 }
 0x2dc   : > { %11346 = vmatmul.mubr.msk.f32.gmra.mrb[20].mxu0 %vm617_vm0, %v14647_v36  ;;  %11432 = vmatprep.mubr.msk.f32.mxu1 %vm617_vm0, %v14677_v40 }
 0x2dd   : > { %11348 = vmatprep.mubr.msk.f32.mxu0 %vm617_vm0, %v14675_v21 }
 0x2df   : > { %11433 = vmatmul.mubr.msk.f32.gmra.mrb[22].mxu1 %vm617_vm0, %v14685_v42 }
 0x2e0   : > { %11349 = vmatmul.mubr.msk.f32.gmra.mrb[22].mxu0 %vm617_vm0, %v14683_v41  ;;  %11435 = vmatprep.mubr.msk.f32.mxu1 %vm617_vm0, %v14697_v46 }
 0x2e1   : > { %11351 = vmatprep.mubr.msk.f32.mxu0 %vm617_vm0, %v14695_v45 }
 0x2e3   : > { %11436 = vmatmul.mubr.msk.f32.gmra.mrb[24].mxu1 %vm617_vm0, %v14693_v44 }
 0x2e4   : > { %11352 = vmatmul.mubr.msk.f32.gmra.mrb[24].mxu0 %vm617_vm0, %v14691_v43  ;;  %11438 = vmatprep.mubr.msk.f32.mxu1 %vm617_vm0, %v14709_v51 }
 0x2e5   : > { %11354 = vmatprep.mubr.msk.f32.mxu0 %vm617_vm0, %v14707_v47 }
 0x2e7   : > { %11439 = vmatmul.mubr.msk.f32.gmra.mrb[26].mxu1 %vm617_vm0, %v14717_v53 }
 0x2e8   : > { %11355 = vmatmul.mubr.msk.f32.gmra.mrb[26].mxu0 %vm617_vm0, %v14715_v52  ;;  %11441 = vmatprep.mubr.msk.f32.mxu1 %vm617_vm0, %v14729_v57 }
 0x2e9   : > { %11357 = vmatprep.mubr.msk.f32.mxu0 %vm617_vm0, %v14727_v56 }
 0x2eb   : > { %11442 = vmatmul.mubr.msk.f32.gmra.mrb[28].mxu1 %vm617_vm0, %v14725_v55 }
 0x2ec   : > { %11358 = vmatmul.mubr.msk.f32.gmra.mrb[28].mxu0 %vm617_vm0, %v14723_v54  ;;  %11444 = vmatprep.mubr.msk.f32.mxu1 %vm617_vm0, %v14741_v60 }
 0x2ed   : > { %11360 = vmatprep.mubr.msk.f32.mxu0 %vm617_vm0, %v14739_v59  ;;  %v12271_v59 = vpack.c.bf16 %v3505_v16, %v3504_v15  ;;  %v3672_v15 = vld [vmem:[#allocation9 + $0x78] sm:$0xff] }
 0x2ef   : > { %11445 = vmatmul.mubr.msk.f32.gmra.mrb[30].mxu1 %vm617_vm0, %v14996_v19 }
 0x2f0   : > { %11361 = vmatmul.mubr.msk.f32.gmra.mrb[30].mxu0 %vm617_vm0, %v14994_v49  ;;  %11451 = vmatprep.mubr.msk.f32.mxu1 %vm617_vm0, %v14750_v63 }
 0x2f1   : > { %11367 = vmatprep.mubr.msk.f32.mxu0 %vm617_vm0, %v14539_v50  ;;  %v3671_v50 = vld [vmem:[#allocation9 + $0x70] sm:$0xff] }
 0x2f2   : > { %v12275_v16 = vpack.c.bf16 %v3672_v15, %v3671_v50 }
 0x2f3   : > { %11452 = vmatmul.mubr.msk.f32.vlgmr.msra.gmra.mrb[16].mxu1 %vm617_vm0, %v14759_v2 }
 0x2f4   : > { %11368 = vmatmul.mubr.msk.f32.vlgmr.msra.gmra.mrb[16].mxu0 %vm617_vm0, %v14609_v23  ;;  %11454 = vmatprep.mubr.msk.f32.mxu1 %vm617_vm0, %v14764_v17 }
 0x2f5   : > { %11370 = vmatprep.mubr.msk.f32.mxu0 %vm617_vm0, %v14623_v25  ;;  %12258 = vmatpush3.bf16.msra.mxu0 %v12255_v0 }
 0x2f6   : > { %12270 = vmatpush3.bf16.msra.mxu1 %v12255_v0  ;;  %12272 = vmatprep.subr.bf16.mxu0 %v12271_v59  ;;  %v15062_v0 = vld [vmem:[#allocation2 + $0x338] sm:$0xff] }
 0x2f7   : > { %12284 = vmatprep.subr.bf16.mxu1 %v12271_v59  ;;  %11455 = vmatmul.mubr.msk.f32.gmra.mrb[18].mxu1 %vm617_vm0, %v14770_v3 }
 0x2f8   : > { %11371 = vmatmul.mubr.msk.f32.gmra.mrb[18].mxu0 %vm617_vm0, %v14637_v29  ;;  %11457 = vmatprep.mubr.msk.f32.mxu1 %vm617_vm0, %v14776_v4 }
 0x2f9   : > { %11373 = vmatprep.mubr.msk.f32.mxu0 %vm617_vm0, %v14659_v39 }
 0x2fb   : > { %11458 = vmatmul.mubr.msk.f32.gmra.mrb[20].mxu1 %vm617_vm0, %v14782_v48 }
 0x2fc   : > { %11374 = vmatmul.mubr.msk.f32.gmra.mrb[20].mxu0 %vm617_vm0, %v14649_v37  ;;  %11460 = vmatprep.mubr.msk.f32.mxu1 %vm617_vm0, %v14788_v5 }
 0x2fd   : > { %11376 = vmatprep.mubr.msk.f32.mxu0 %vm617_vm0, %v14677_v40 }
 0x2ff   : > { %11461 = vmatmul.mubr.msk.f32.gmra.mrb[22].mxu1 %vm617_vm0, %v14794_v6 }
 0x300   : > { %11377 = vmatmul.mubr.msk.f32.gmra.mrb[22].mxu0 %vm617_vm0, %v14685_v42  ;;  %11463 = vmatprep.mubr.msk.f32.mxu1 %vm617_vm0, %v14800_v7 }
 0x301   : > { %11379 = vmatprep.mubr.msk.f32.mxu0 %vm617_vm0, %v14697_v46 }
 0x303   : > { %11464 = vmatmul.mubr.msk.f32.gmra.mrb[24].mxu1 %vm617_vm0, %v14806_v8 }
 0x304   : > { %11380 = vmatmul.mubr.msk.f32.gmra.mrb[24].mxu0 %vm617_vm0, %v14693_v44  ;;  %11466 = vmatprep.mubr.msk.f32.mxu1 %vm617_vm0, %v14812_v9 }
 0x305   : > { %11382 = vmatprep.mubr.msk.f32.mxu0 %vm617_vm0, %v14709_v51 }
 0x307   : > { %11467 = vmatmul.mubr.msk.f32.gmra.mrb[26].mxu1 %vm617_vm0, %v14818_v10 }
 0x308   : > { %11383 = vmatmul.mubr.msk.f32.gmra.mrb[26].mxu0 %vm617_vm0, %v14717_v53  ;;  %11469 = vmatprep.mubr.msk.f32.mxu1 %vm617_vm0, %v14824_v11 }
 0x309   : > { %11385 = vmatprep.mubr.msk.f32.mxu0 %vm617_vm0, %v14729_v57 }
 0x30b   : > { %11470 = vmatmul.mubr.msk.f32.gmra.mrb[28].mxu1 %vm617_vm0, %v14830_v12 }
 0x30c   : > { %11386 = vmatmul.mubr.msk.f32.gmra.mrb[28].mxu0 %vm617_vm0, %v14725_v55  ;;  %11472 = vmatprep.mubr.msk.f32.mxu1 %vm617_vm0, %v14836_v14 }
 0x30d   : > { %11388 = vmatprep.mubr.msk.f32.mxu0 %vm617_vm0, %v14741_v60 }
 0x30f   : > { %11473 = vmatmul.mubr.msk.f32.gmra.mrb[30].mxu1 %vm617_vm0, %v15062_v0 }
 0x310   : > { %11389 = vmatmul.mubr.msk.f32.gmra.mrb[30].mxu0 %vm617_vm0, %v14996_v19  ;;  %11479 = vmatprep.mubr.msk.f32.mxu1 %vm617_vm0, %v14844_v18  ;;  %v3839_v18 = vld [vmem:[#allocation9 + $0x88] sm:$0xff] }
 0x311   : > { %11395 = vmatprep.mubr.msk.f32.mxu0 %vm617_vm0, %v14750_v63  ;;  %v3838_v63 = vld [vmem:[#allocation9 + $0x80] sm:$0xff] }
 0x312   : > { %v12279_v50 = vpack.c.bf16 %v3839_v18, %v3838_v63 }
 0x313   : > { %11480 = vmatmul.mubr.msk.f32.vlgmr.msra.gmra.mrb[16].mxu1 %vm617_vm0, %v14850_v20 }
 0x314   : > { %11396 = vmatmul.mubr.msk.f32.vlgmr.msra.gmra.mrb[16].mxu0 %vm617_vm0, %v14759_v2  ;;  %11482 = vmatprep.mubr.msk.f32.mxu1 %vm617_vm0, %v14856_v26 }
 0x315   : > { %11398 = vmatprep.mubr.msk.f32.mxu0 %vm617_vm0, %v14764_v17  ;;  %12274 = vmatpush3.bf16.msra.mxu0 %v12271_v59 }
 0x316   : > { %12286 = vmatpush3.bf16.msra.mxu1 %v12271_v59  ;;  %12276 = vmatprep.subr.bf16.mxu0 %v12275_v16  ;;  %v15128_v59 = vld [vmem:[#allocation2 + $0x189] sm:$0xff] }
 0x317   : > { %12288 = vmatprep.subr.bf16.mxu1 %v12275_v16  ;;  %11483 = vmatmul.mubr.msk.f32.gmra.mrb[18].mxu1 %vm617_vm0, %v14862_v27 }
 0x318   : > { %11399 = vmatmul.mubr.msk.f32.gmra.mrb[18].mxu0 %vm617_vm0, %v14770_v3  ;;  %11485 = vmatprep.mubr.msk.f32.mxu1 %vm617_vm0, %v14868_v30 }
 0x319   : > { %11401 = vmatprep.mubr.msk.f32.mxu0 %vm617_vm0, %v14776_v4 }
 0x31b   : > { %11486 = vmatmul.mubr.msk.f32.gmra.mrb[20].mxu1 %vm617_vm0, %v14874_v31 }
 0x31c   : > { %11402 = vmatmul.mubr.msk.f32.gmra.mrb[20].mxu0 %vm617_vm0, %v14782_v48  ;;  %11488 = vmatprep.mubr.msk.f32.mxu1 %vm617_vm0, %v14880_v32 }
 0x31d   : > { %11404 = vmatprep.mubr.msk.f32.mxu0 %vm617_vm0, %v14788_v5 }
 0x31f   : > { %11489 = vmatmul.mubr.msk.f32.gmra.mrb[22].mxu1 %vm617_vm0, %v14886_v33 }
 0x320   : > { %11405 = vmatmul.mubr.msk.f32.gmra.mrb[22].mxu0 %vm617_vm0, %v14794_v6  ;;  %11491 = vmatprep.mubr.msk.f32.mxu1 %vm617_vm0, %v14892_v34 }
 0x321   : > { %11407 = vmatprep.mubr.msk.f32.mxu0 %vm617_vm0, %v14800_v7 }
 0x323   : > { %11492 = vmatmul.mubr.msk.f32.gmra.mrb[24].mxu1 %vm617_vm0, %v14898_v35 }
 0x324   : > { %11408 = vmatmul.mubr.msk.f32.gmra.mrb[24].mxu0 %vm617_vm0, %v14806_v8  ;;  %11494 = vmatprep.mubr.msk.f32.mxu1 %vm617_vm0, %v14904_v58 }
 0x325   : > { %11410 = vmatprep.mubr.msk.f32.mxu0 %vm617_vm0, %v14812_v9 }
 0x327   : > { %11495 = vmatmul.mubr.msk.f32.gmra.mrb[26].mxu1 %vm617_vm0, %v14910_v61 }
 0x328   : > { %11411 = vmatmul.mubr.msk.f32.gmra.mrb[26].mxu0 %vm617_vm0, %v14818_v10  ;;  %11497 = vmatprep.mubr.msk.f32.mxu1 %vm617_vm0, %v14916_v62 }
 0x329   : > { %11413 = vmatprep.mubr.msk.f32.mxu0 %vm617_vm0, %v14824_v11 }
 0x32b   : > { %11498 = vmatmul.mubr.msk.f32.gmra.mrb[28].mxu1 %vm617_vm0, %v14922_v1 }
 0x32c   : > { %11414 = vmatmul.mubr.msk.f32.gmra.mrb[28].mxu0 %vm617_vm0, %v14830_v12  ;;  %11500 = vmatprep.mubr.msk.f32.mxu1 %vm617_vm0, %v14928_v13 }
 0x32d   : > { %11416 = vmatprep.mubr.msk.f32.mxu0 %vm617_vm0, %v14836_v14 }
 0x32f   : > { %11501 = vmatmul.mubr.msk.f32.gmra.mrb[30].mxu1 %vm617_vm0, %v15128_v59 }
 0x330   : > { %11417 = vmatmul.mubr.msk.f32.gmra.mrb[30].mxu0 %vm617_vm0, %v15062_v0  ;;  %11591 = vmatprep.mubr.msk.f32.mxu1 %vm617_vm0, %v14609_v23 }
 0x331   : > { %11507 = vmatprep.mubr.msk.f32.mxu0 %vm617_vm0, %v14607_v22  ;;  %v17754_v22 = vld [vmem:[#allocation36_spill] sm:$0xff] }
 0x333   : > { %11592 = vmatmul.mubr.msk.f32.vlgmr.msra.gmra.mrb[16].mxu1 %vm617_vm0, %v14623_v25 }
 0x334   : > { %11508 = vmatmul.mubr.msk.f32.vlgmr.msra.gmra.mrb[16].mxu0 %vm617_vm0, %v14621_v24  ;;  %11594 = vmatprep.mubr.msk.f32.mxu1 %vm617_vm0, %v14637_v29  ;;  %v1323_v24 = vld [vmem:[#allocation2 + $0x34f] sm:$0xff] }
 0x335   : > { %11510 = vmatprep.mubr.msk.f32.mxu0 %vm617_vm0, %v14635_v28  ;;  %12278 = vmatpush3.bf16.msra.mxu0 %v12275_v16  ;;  %v1286_v28 = vld [vmem:[#allocation2 + $0x1a0] sm:$0xff] }
 0x336   : > { %12290 = vmatpush3.bf16.msra.mxu1 %v12275_v16  ;;  %12280 = vmatprep.subr.bf16.mxu0 %v12279_v50 }
 0x337   : > { %12292 = vmatprep.subr.bf16.mxu1 %v12279_v50  ;;  %11595 = vmatmul.mubr.msk.f32.gmra.mrb[18].mxu1 %vm617_vm0, %v14659_v39 }
 0x338   : > { %11511 = vmatmul.mubr.msk.f32.gmra.mrb[18].mxu0 %vm617_vm0, %v14657_v38  ;;  %11597 = vmatprep.mubr.msk.f32.mxu1 %vm617_vm0, %v14649_v37  ;;  %v4566_v38 = vld [vmem:[#allocation21 + $0x8] sm:$0xff] }
 0x339   : > { %11513 = vmatprep.mubr.msk.f32.mxu0 %vm617_vm0, %v14647_v36  ;;  %v17755_v36 = vmov 0.0  }
 0x33b   : > { %11598 = vmatmul.mubr.msk.f32.gmra.mrb[20].mxu1 %vm617_vm0, %v14677_v40 }
 0x33c   : > { %11514 = vmatmul.mubr.msk.f32.gmra.mrb[20].mxu0 %vm617_vm0, %v14675_v21  ;;  %11600 = vmatprep.mubr.msk.f32.mxu1 %vm617_vm0, %v14685_v42  ;;  %v15330_v21 = vld [vmem:[#allocation23] sm:$0xf] }
 0x33d   : > { %11516 = vmatprep.mubr.msk.f32.mxu0 %vm617_vm0, %v14683_v41 }
 0x33f   : > { %11601 = vmatmul.mubr.msk.f32.gmra.mrb[22].mxu1 %vm617_vm0, %v14697_v46 }
 0x340   : > { %11517 = vmatmul.mubr.msk.f32.gmra.mrb[22].mxu0 %vm617_vm0, %v14695_v45  ;;  %11603 = vmatprep.mubr.msk.f32.mxu1 %vm617_vm0, %v14693_v44 }
 0x341   : > { %11519 = vmatprep.mubr.msk.f32.mxu0 %vm617_vm0, %v14691_v43 }
 0x343   : > { %11604 = vmatmul.mubr.msk.f32.gmra.mrb[24].mxu1 %vm617_vm0, %v14709_v51 }
 0x344   : > { %11520 = vmatmul.mubr.msk.f32.gmra.mrb[24].mxu0 %vm617_vm0, %v14707_v47  ;;  %11606 = vmatprep.mubr.msk.f32.mxu1 %vm617_vm0, %v14717_v53 }
 0x345   : > { %11522 = vmatprep.mubr.msk.f32.mxu0 %vm617_vm0, %v14715_v52 }
 0x347   : > { %11607 = vmatmul.mubr.msk.f32.gmra.mrb[26].mxu1 %vm617_vm0, %v14729_v57 }
 0x348   : > { %11523 = vmatmul.mubr.msk.f32.gmra.mrb[26].mxu0 %vm617_vm0, %v14727_v56  ;;  %11609 = vmatprep.mubr.msk.f32.mxu1 %vm617_vm0, %v14725_v55 }
 0x349   : > { %11525 = vmatprep.mubr.msk.f32.mxu0 %vm617_vm0, %v14723_v54 }
 0x34b   : > { %11610 = vmatmul.mubr.msk.f32.gmra.mrb[28].mxu1 %vm617_vm0, %v14741_v60 }
 0x34c   : > { %11526 = vmatmul.mubr.msk.f32.gmra.mrb[28].mxu0 %vm617_vm0, %v17754_v22  ;;  %11612 = vmatprep.mubr.msk.f32.mxu1 %vm617_vm0, %v14996_v19 }
 0x34d   : > { %11528 = vmatprep.mubr.msk.f32.mxu0 %vm617_vm0, %v14994_v49 }
 0x34f   : > { %11613 = vmatmul.mubr.msk.f32.gmra.mrb[30].mxu1 %vm617_vm0, %v1286_v28 }
 0x350   : > { %11529 = vmatmul.mubr.msk.f32.gmra.mrb[30].mxu0 %vm617_vm0, %v1323_v24  ;;  %11619 = vmatprep.mubr.msk.f32.mxu1 %vm617_vm0, %v14759_v2 }
 0x351   : > { %11535 = vmatprep.mubr.msk.f32.mxu0 %vm617_vm0, %v14609_v23  ;;  %v1305_v23 = vld [vmem:[#allocation2 + $0x350] sm:$0xff] }
 0x353   : > { %11620 = vmatmul.mubr.msk.f32.vlgmr.msra.gmra.mrb[16].mxu1 %vm617_vm0, %v14764_v17 }
 0x354   : > { %11536 = vmatmul.mubr.msk.f32.vlgmr.msra.gmra.mrb[16].mxu0 %vm617_vm0, %v14623_v25  ;;  %11622 = vmatprep.mubr.msk.f32.mxu1 %vm617_vm0, %v14770_v3  ;;  %v1341_v25 = vld [vmem:[#allocation2 + $0x1a1] sm:$0xff] }
 0x355   : > { %11538 = vmatprep.mubr.msk.f32.mxu0 %vm617_vm0, %v14637_v29  ;;  %12282 = vmatpush3.bf16.msra.mxu0 %v12279_v50  ;;  %v17705_v29 = vmov 0.0|0.0  }
 0x356   : > { %12294 = vmatpush3.bf16.msra.mxu1 %v12279_v50  ;;  %12295 = vmatprep.subr.bf16.mxu0 %v17705_v29 }
 0x357   : > { %11678 = vmatprep.subr.mxu1 %v17755_v36  ;;  %11623 = vmatmul.mubr.msk.f32.gmra.mrb[18].mxu1 %vm617_vm0, %v14776_v4 }
 0x358   : > { %11539 = vmatmul.mubr.msk.f32.gmra.mrb[18].mxu0 %vm617_vm0, %v14659_v39  ;;  %11625 = vmatprep.mubr.msk.f32.mxu1 %vm617_vm0, %v14782_v48 }
 0x359   : > { %11541 = vmatprep.mubr.msk.f32.mxu0 %vm617_vm0, %v14649_v37  ;;  %v4565_v37 = vld [vmem:[#allocation21] sm:$0xff] }
 0x35a   : > { %v15322_v39 = vpack.c.bf16 %v4566_v38, %v4565_v37 }
 0x35b   : > { %11626 = vmatmul.mubr.msk.f32.gmra.mrb[20].mxu1 %vm617_vm0, %v14788_v5 }
 0x35c   : > { %11542 = vmatmul.mubr.msk.f32.gmra.mrb[20].mxu0 %vm617_vm0, %v14677_v40  ;;  %11628 = vmatprep.mubr.msk.f32.mxu1 %vm617_vm0, %v14794_v6  ;;  %v15335_v40 = vld [vmem:[#allocation11] ss:$0 sm:$0xff] }
 0x35d   : > { %11544 = vmatprep.mubr.msk.f32.mxu0 %vm617_vm0, %v14685_v42 }
 0x35f   : > { %11629 = vmatmul.mubr.msk.f32.gmra.mrb[22].mxu1 %vm617_vm0, %v14800_v7 }
 0x360   : > { %11545 = vmatmul.mubr.msk.f32.gmra.mrb[22].mxu0 %vm617_vm0, %v14697_v46  ;;  %11631 = vmatprep.mubr.msk.f32.mxu1 %vm617_vm0, %v14806_v8 }
 0x361   : > { %11547 = vmatprep.mubr.msk.f32.mxu0 %vm617_vm0, %v14693_v44 }
 0x363   : > { %11632 = vmatmul.mubr.msk.f32.gmra.mrb[24].mxu1 %vm617_vm0, %v14812_v9 }
 0x364   : > { %11548 = vmatmul.mubr.msk.f32.gmra.mrb[24].mxu0 %vm617_vm0, %v14709_v51  ;;  %11634 = vmatprep.mubr.msk.f32.mxu1 %vm617_vm0, %v14818_v10 }
 0x365   : > { %11550 = vmatprep.mubr.msk.f32.mxu0 %vm617_vm0, %v14717_v53 }
 0x367   : > { %11635 = vmatmul.mubr.msk.f32.gmra.mrb[26].mxu1 %vm617_vm0, %v14824_v11 }
 0x368   : > { %11551 = vmatmul.mubr.msk.f32.gmra.mrb[26].mxu0 %vm617_vm0, %v14729_v57  ;;  %11637 = vmatprep.mubr.msk.f32.mxu1 %vm617_vm0, %v14830_v12 }
 0x369   : > { %11553 = vmatprep.mubr.msk.f32.mxu0 %vm617_vm0, %v14725_v55 }
 0x36b   : > { %11638 = vmatmul.mubr.msk.f32.gmra.mrb[28].mxu1 %vm617_vm0, %v14836_v14 }
 0x36c   : > { %11554 = vmatmul.mubr.msk.f32.gmra.mrb[28].mxu0 %vm617_vm0, %v14741_v60  ;;  %11640 = vmatprep.mubr.msk.f32.mxu1 %vm617_vm0, %v15062_v0 }
 0x36d   : > { %11556 = vmatprep.mubr.msk.f32.mxu0 %vm617_vm0, %v14996_v19 }
 0x36f   : > { %11641 = vmatmul.mubr.msk.f32.gmra.mrb[30].mxu1 %vm617_vm0, %v1305_v23 }
 0x370   : > { %11557 = vmatmul.mubr.msk.f32.gmra.mrb[30].mxu0 %vm617_vm0, %v1286_v28  ;;  %11647 = vmatprep.mubr.msk.f32.mxu1 %vm617_vm0, %v14850_v20 }
 0x371   : > { %11563 = vmatprep.mubr.msk.f32.mxu0 %vm617_vm0, %v14759_v2 }
 0x373   : > { %11648 = vmatmul.mubr.msk.f32.vlgmr.msra.gmra.mrb[16].mxu1 %vm617_vm0, %v14856_v26 }
 0x374   : > { %11564 = vmatmul.mubr.msk.f32.vlgmr.msra.gmra.mrb[16].mxu0 %vm617_vm0, %v14764_v17  ;;  %11650 = vmatprep.mubr.msk.f32.mxu1 %vm617_vm0, %v14862_v27 }
 0x375   : > { %11566 = vmatprep.mubr.msk.f32.mxu0 %vm617_vm0, %v14770_v3  ;;  %12297 = vmatpush3.bf16.msra.mxu0 %v15322_v39 }
 0x376   : > { %12298 = vmatprep.subr.bf16.mxu0 %v17705_v29  ;;  %11679 = vmatpush3.msk.msra.mxu1 %vm4647_vm3, %v15330_v21 }
 0x377   : > { %11651 = vmatmul.mubr.msk.f32.gmra.mrb[18].mxu1 %vm617_vm0, %v14868_v30  ;;  %11690 = vmatprep.subr.mxu1 %v17755_v36 }
 0x378   : > { %11567 = vmatmul.mubr.msk.f32.gmra.mrb[18].mxu0 %vm617_vm0, %v14776_v4  ;;  %11653 = vmatprep.mubr.msk.f32.mxu1 %vm617_vm0, %v14874_v31 }
 0x379   : > { %11569 = vmatprep.mubr.msk.f32.mxu0 %vm617_vm0, %v14782_v48 }
 0x37b   : > { %11654 = vmatmul.mubr.msk.f32.gmra.mrb[20].mxu1 %vm617_vm0, %v14880_v32 }
 0x37c   : > { %11570 = vmatmul.mubr.msk.f32.gmra.mrb[20].mxu0 %vm617_vm0, %v14788_v5  ;;  %11656 = vmatprep.mubr.msk.f32.mxu1 %vm617_vm0, %v14886_v33 }
 0x37d   : > { %11572 = vmatprep.mubr.msk.f32.mxu0 %vm617_vm0, %v14794_v6 }
 0x37f   : > { %11657 = vmatmul.mubr.msk.f32.gmra.mrb[22].mxu1 %vm617_vm0, %v14892_v34 }
 0x380   : > { %11573 = vmatmul.mubr.msk.f32.gmra.mrb[22].mxu0 %vm617_vm0, %v14800_v7  ;;  %11659 = vmatprep.mubr.msk.f32.mxu1 %vm617_vm0, %v14898_v35 }
 0x381   : > { %11575 = vmatprep.mubr.msk.f32.mxu0 %vm617_vm0, %v14806_v8 }
 0x383   : > { %11660 = vmatmul.mubr.msk.f32.gmra.mrb[24].mxu1 %vm617_vm0, %v14904_v58 }
 0x384   : > { %11576 = vmatmul.mubr.msk.f32.gmra.mrb[24].mxu0 %vm617_vm0, %v14812_v9  ;;  %11662 = vmatprep.mubr.msk.f32.mxu1 %vm617_vm0, %v14910_v61 }
 0x385   : > { %11578 = vmatprep.mubr.msk.f32.mxu0 %vm617_vm0, %v14818_v10 }
 0x387   : > { %11663 = vmatmul.mubr.msk.f32.gmra.mrb[26].mxu1 %vm617_vm0, %v14916_v62 }
 0x388   : > { %11579 = vmatmul.mubr.msk.f32.gmra.mrb[26].mxu0 %vm617_vm0, %v14824_v11  ;;  %11665 = vmatprep.mubr.msk.f32.mxu1 %vm617_vm0, %v14922_v1 }
 0x389   : > { %11581 = vmatprep.mubr.msk.f32.mxu0 %vm617_vm0, %v14830_v12 }
 0x38b   : > { %11666 = vmatmul.mubr.msk.f32.gmra.mrb[28].mxu1 %vm617_vm0, %v14928_v13 }
 0x38c   : > { %11582 = vmatmul.mubr.msk.f32.gmra.mrb[28].mxu0 %vm617_vm0, %v14836_v14  ;;  %11668 = vmatprep.mubr.msk.f32.mxu1 %vm617_vm0, %v15128_v59 }
 0x38d   : > { %11584 = vmatprep.mubr.msk.f32.mxu0 %vm617_vm0, %v15062_v0 }
 0x38f   : > { %11669 = vmatmul.mubr.msk.f32.gmra.mrb[30].mxu1 %vm617_vm0, %v1341_v25 }
 0x390   : > { %11585 = vmatmul.mubr.msk.f32.gmra.mrb[30].mxu0 %vm617_vm0, %v1305_v23  ;;  %11680 = vmatprep.mubr.msk.f32.mxu1 %vm13864_vm2, %v17755_v36 }
 0x391   : > { %11675 = vmatprep.mubr.msk.f32.mxu0 %vm13864_vm2, %v17755_v36 }
 0x446   : > { %v11649_v42 = vpop.f32.mrb[16].mxu1 }
 0x447   : > { %v11565_v41 = vpop.f32.mrb[16].mxu0  ;;  %v15341_v44 = vadd.f32 %v11649_v42, %v15335_v40  ;;  %v4395_v46 = vpop.f32.mrb[17].mxu1 }
 0x448   : > { %v15338_v43 = vadd.f32 %v11565_v41, %v15335_v40  ;;  %v3909_v45 = vpop.f32.mrb[17].mxu0  ;;  %v15347_v51 = vadd.f32 %v15335_v40, %v4395_v46 }
 0x449   : > { %v15344_v47 = vadd.f32 %v15335_v40, %v3909_v45  ;;  %v4528_v53 = vsel %vm617_vm0, %v15341_v44, 0.0 }
 0x44a   : > { %v4491_v52 = vsel %vm617_vm0, %v15338_v43, 0.0  ;;  %v4527_v55 = vsel %vm617_vm0, %v15347_v51, 0.0  ;;  %v11652_v57 = vpop.f32.mrb[18].mxu1 }
 0x44b   : > { %v4490_v54 = vsel %vm617_vm0, %v15344_v47, 0.0  ;;  %v11568_v56 = vpop.f32.mrb[18].mxu0  ;;  %v4405_v2 = vpop.f32.mrb[19].mxu1  ;;  %v15361_v3 = vadd.f32 %v11652_v57, %v15335_v40  ;;  %v4529_v6 = vadd.f32 %v4528_v53, %v4527_v55 }
 0x44c   : > { %v3919_v60 = vpop.f32.mrb[19].mxu0  ;;  %v15358_v17 = vadd.f32 %v11568_v56, %v15335_v40  ;;  %v15367_v48 = vadd.f32 %v15335_v40, %v4405_v2  ;;  %v4492_v5 = vadd.f32 %v4491_v52, %v4490_v54 }
 0x44d   : > { %v15364_v4 = vadd.f32 %v15335_v40, %v3919_v60  ;;  %v4532_v31 = vsel %vm617_vm0, %v15361_v3, 0.0 }
 0x44e   : > { %v4530_v8 = vsel %vm617_vm0, %v15367_v48, 0.0  ;;  %v11655_v10 = vpop.f32.mrb[20].mxu1  ;;  %v4495_v30 = vsel %vm617_vm0, %v15358_v17, 0.0 }
 0x44f   : > { %v4493_v7 = vsel %vm617_vm0, %v15364_v4, 0.0  ;;  %v11571_v9 = vpop.f32.mrb[20].mxu0  ;;  %v4531_v12 = vadd.f32 %v4530_v8, %v4529_v6  ;;  %v15377_v20 = vadd.f32 %v11655_v10, %v15335_v40  ;;  %v4415_v27 = vpop.f32.mrb[21].mxu1 }
 0x450   : > { %v4494_v11 = vadd.f32 %v4493_v7, %v4492_v5  ;;  %v15374_v14 = vadd.f32 %v11571_v9, %v15335_v40  ;;  %v3929_v26 = vpop.f32.mrb[21].mxu0  ;;  %v15387_v33 = vadd.f32 %v15335_v40, %v4415_v27 }
 0x451   : > { %v15384_v32 = vadd.f32 %v15335_v40, %v3929_v26  ;;  %v4533_v35 = vadd.f32 %v4532_v31, %v4531_v12  ;;  %v4536_v49 = vsel %vm617_vm0, %v15377_v20, 0.0 }
 0x452   : > { %v4496_v34 = vadd.f32 %v4495_v30, %v4494_v11  ;;  %v4534_v61 = vsel %vm617_vm0, %v15387_v33, 0.0  ;;  %v11658_v1 = vpop.f32.mrb[22].mxu1  ;;  %v4499_v13 = vsel %vm617_vm0, %v15374_v14, 0.0 }
 0x453   : > { %v4497_v58 = vsel %vm617_vm0, %v15384_v32, 0.0  ;;  %v11574_v62 = vpop.f32.mrb[22].mxu0  ;;  %v4535_v0 = vadd.f32 %v4534_v61, %v4533_v35  ;;  %v4425_v16 = vpop.f32.mrb[23].mxu1  ;;  %v15401_v63 = vadd.f32 %v11658_v1, %v15335_v40 }
 0x454   : > { %v4498_v19 = vadd.f32 %v4497_v58, %v4496_v34  ;;  %v3939_v15 = vpop.f32.mrb[23].mxu0  ;;  %v15398_v59 = vadd.f32 %v11574_v62, %v15335_v40  ;;  %v15407_v50 = vadd.f32 %v15335_v40, %v4425_v16 }
 0x455   : > { %v15404_v18 = vadd.f32 %v15335_v40, %v3939_v15  ;;  %v4537_v24 = vadd.f32 %v4536_v49, %v4535_v0  ;;  %v4540_v54 = vsel %vm617_vm0, %v15401_v63, 0.0 }
 0x456   : > { %v4500_v22 = vadd.f32 %v4499_v13, %v4498_v19  ;;  %v4538_v23 = vsel %vm617_vm0, %v15407_v50, 0.0  ;;  %v11661_v37 = vpop.f32.mrb[24].mxu1  ;;  %v4503_v53 = vsel %vm617_vm0, %v15398_v59, 0.0 }
 0x457   : > { %v4501_v28 = vsel %vm617_vm0, %v15404_v18, 0.0  ;;  %v11577_v25 = vpop.f32.mrb[24].mxu0  ;;  %v4539_v41 = vadd.f32 %v4538_v23, %v4537_v24  ;;  %v15417_v45 = vadd.f32 %v11661_v37, %v15335_v40  ;;  %v4435_v52 = vpop.f32.mrb[25].mxu1 }
 0x458   : > { %v4502_v38 = vadd.f32 %v4501_v28, %v4500_v22  ;;  %v15414_v42 = vadd.f32 %v11577_v25, %v15335_v40  ;;  %v3949_v46 = vpop.f32.mrb[25].mxu0  ;;  %v15427_v56 = vadd.f32 %v15335_v40, %v4435_v52 }
 0x459   : > { %v15424_v55 = vadd.f32 %v15335_v40, %v3949_v46  ;;  %v4541_v60 = vadd.f32 %v4540_v54, %v4539_v41  ;;  %v4544_v9 = vsel %vm617_vm0, %v15417_v45, 0.0 }
 0x45a   : > { %v4504_v57 = vadd.f32 %v4503_v53, %v4502_v38  ;;  %v4542_v5 = vsel %vm617_vm0, %v15427_v56, 0.0  ;;  %v11664_v7 = vpop.f32.mrb[26].mxu1  ;;  %v4507_v8 = vsel %vm617_vm0, %v15414_v42, 0.0 }
 0x45b   : > { %v4505_v2 = vsel %vm617_vm0, %v15424_v55, 0.0  ;;  %v11580_v6 = vpop.f32.mrb[26].mxu0  ;;  %v4543_v11 = vadd.f32 %v4542_v5, %v4541_v60  ;;  %v4445_v26 = vpop.f32.mrb[27].mxu1  ;;  %v15441_v30 = vadd.f32 %v11664_v7, %v15335_v40 }
 0x45c   : > { %v4506_v10 = vadd.f32 %v4505_v2, %v4504_v57  ;;  %v3959_v12 = vpop.f32.mrb[27].mxu0  ;;  %v15438_v27 = vadd.f32 %v11580_v6, %v15335_v40  ;;  %v15447_v34 = vadd.f32 %v15335_v40, %v4445_v26 }
 0x45d   : > { %v15444_v31 = vadd.f32 %v15335_v40, %v3959_v12  ;;  %v4545_v58 = vadd.f32 %v4544_v9, %v4543_v11  ;;  %v4548_v28 = vsel %vm617_vm0, %v15441_v30, 0.0 }
 0x45e   : > { %v4508_v35 = vadd.f32 %v4507_v8, %v4506_v10  ;;  %v4546_v62 = vsel %vm617_vm0, %v15447_v34, 0.0  ;;  %v11667_v13 = vpop.f32.mrb[28].mxu1  ;;  %v4511_v24 = vsel %vm617_vm0, %v15438_v27, 0.0 }
 0x45f   : > { %v4509_v61 = vsel %vm617_vm0, %v15444_v31, 0.0  ;;  %v11583_v1 = vpop.f32.mrb[28].mxu0  ;;  %v4547_v19 = vadd.f32 %v4546_v62, %v4545_v58  ;;  %v15457_v15 = vadd.f32 %v11667_v13, %v15335_v40  ;;  %v4455_v22 = vpop.f32.mrb[29].mxu1 }
 0x460   : > { %v4510_v49 = vadd.f32 %v4509_v61, %v4508_v35  ;;  %v15454_v0 = vadd.f32 %v11583_v1, %v15335_v40  ;;  %v3969_v16 = vpop.f32.mrb[29].mxu0  ;;  %v15467_v25 = vadd.f32 %v15335_v40, %v4455_v22 }
 0x461   : > { %v15464_v23 = vadd.f32 %v15335_v40, %v3969_v16  ;;  %v4549_v38 = vadd.f32 %v4548_v28, %v4547_v19  ;;  %v4552_v57 = vsel %vm617_vm0, %v15457_v15, 0.0 }
 0x462   : > { %v4512_v37 = vadd.f32 %v4511_v24, %v4510_v49  ;;  %v4550_v46 = vsel %vm617_vm0, %v15467_v25, 0.0  ;;  %v11670_v53 = vpop.f32.mrb[30].mxu1  ;;  %v4515_v54 = vsel %vm617_vm0, %v15454_v0, 0.0 }
 0x463   : > { %v4513_v41 = vsel %vm617_vm0, %v15464_v23, 0.0  ;;  %v11586_v52 = vpop.f32.mrb[30].mxu0  ;;  %v4551_v2 = vadd.f32 %v4550_v46, %v4549_v38  ;;  %v4465_v6 = vpop.f32.mrb[31].mxu1  ;;  %v15481_v8 = vadd.f32 %v11670_v53, %v15335_v40 }
 0x464   : > { %v4514_v60 = vadd.f32 %v4513_v41, %v4512_v37  ;;  %v3979_v5 = vpop.f32.mrb[31].mxu0  ;;  %v15478_v7 = vadd.f32 %v11586_v52, %v15335_v40  ;;  %v15487_v10 = vadd.f32 %v15335_v40, %v4465_v6 }
 0x465   : > { %v15484_v9 = vadd.f32 %v15335_v40, %v3979_v5  ;;  %v4553_v12 = vadd.f32 %v4552_v57, %v4551_v2  ;;  %v4556_v1 = vsel %vm617_vm0, %v15481_v8, 0.0  ;;  %v4721_v5 = vlaneseq }
 0x466   : > { %v4516_v11 = vadd.f32 %v4515_v54, %v4514_v60  ;;  %v4554_v35 = vsel %vm617_vm0, %v15487_v10, 0.0  ;;  %v4519_v62 = vsel %vm617_vm0, %v15478_v7, 0.0 }
 0x467   : > { %v4517_v26 = vsel %vm617_vm0, %v15484_v9, 0.0  ;;  %v4555_v61 = vadd.f32 %v4554_v35, %v4553_v12  ;;  %v4722_v6 = vshrl.u32 %v4721_v5, 7 }
 0x468   : > { %v4518_v58 = vadd.f32 %v4517_v26, %v4516_v11 }
 0x469   : > { %v4557_v49 = vadd.f32 %v4556_v1, %v4555_v61 }
 0x46a   : > { %v4520_v13 = vadd.f32 %v4519_v62, %v4518_v58 }
 0x46b   : > { %v4558_v19 = vrot.slane %v4557_v49, 4 }
 0x46c   : > { %v4521_v40 = vrot.slane %v4520_v13, 4 }
 0x46d   : > { %v4559_v22 = vadd.f32 %v4558_v19, %v4557_v49 }
 0x46e   : > { %v4522_v16 = vadd.f32 %v4521_v40, %v4520_v13 }
 0x46f   : > { %v4560_v28 = vrot.slane %v4559_v22, 2 }
 0x470   : > { %v4523_v24 = vrot.slane %v4522_v16, 2 }
 0x471   : > { %v4561_v38 = vadd.f32 %v4560_v28, %v4559_v22 }
 0x472   : > { %v4524_v37 = vadd.f32 %v4523_v24, %v4522_v16 }
 0x473   : > { %v4562_v46 = vrot.slane %v4561_v38, 1 }
 0x474   : > { %v4525_v41 = vrot.slane %v4524_v37, 1 }
 0x475   : > { %v4563_v53 = vadd.f32 %v4562_v46, %v4561_v38 }
 0x476   : > { %v4526_v52 = vadd.f32 %v4525_v41, %v4524_v37 }
 0x478   : > { %v4564_v54 = vadd.f32 %v4563_v53, %v4526_v52 }
 0x47a   : > { %11676 = vmatmul.mubr.msk.f32.vlgmr.msra.gmra.mrb[32].mxu0 %vm617_vm0, %v4564_v54 }
 0x47b   : > { %12300 = vmatpush3.bf16.msra.mxu0 %v15322_v39  ;;  %11687 = vmatprep.mubr.msk.f32.mxu0 %vm13864_vm2, %v17755_v36  ;;  %v15506_v39 = vsub.s32 0, %v4722_v6 }
 0x47d   : > { %17756 = vst [vmem:[#allocation36_spill] sm:$0xff] %v15506_v39 }
 0x54d   : > { %v4636_v57 = vpop.f32.mrb[32].mxu0 }
 0x54e   : > { %v4641_v60 = vmul.f32 0.0009765625, %v4636_v57  ;;  %v11677_v2 = vpop.f32.mrb[33].mxu0 }
 0x550   : > { %11681 = vmatmul.mubr.msk.f32.vlgmr.msra.gmra.mrb[32].mxu1 %vm4643_vm4, %v4641_v60 }
 0x551   : > { %11691 = vmatpush3.msk.msra.mxu1 %vm4647_vm3, %v15330_v21  ;;  %11692 = vmatprep.mubr.msk.f32.mxu1 %vm13864_vm2, %v17755_v36  ;;  %v6931_v36 = vld [vmem:[#allocation15 + $0x50] sm:$0xff] }
 0x623   : > { %v4717_v11 = vpop.f32.mrb[32].mxu1 }
 0x624   : > { %v11682_v12 = vpop.f32.mrb[33].mxu1  ;;  %v15509_v26 = vrot.slane %v4717_v11, %v15506_v39 }
 0x626   : > { %v15513_v35 = vsub.f32 %v15344_v47, %v15509_v26  ;;  %v15517_v58 = vsub.f32 %v15338_v43, %v15509_v26  ;;  %v15521_v21 = vsub.f32 %v15364_v4, %v15509_v26  ;;  %v15525_v61 = vsub.f32 %v15358_v17, %v15509_v26 }
 0x627   : > { %v15529_v62 = vsub.f32 %v15347_v51, %v15509_v26  ;;  %v15533_v47 = vsub.f32 %v15341_v44, %v15509_v26  ;;  %v15541_v4 = vsub.f32 %v15384_v32, %v15509_v26  ;;  %v15545_v17 = vsub.f32 %v15367_v48, %v15509_v26 }
 0x628   : > { %v4757_v43 = vmul.f32 %v15513_v35, %v15513_v35  ;;  %v4758_v1 = vmul.f32 %v15517_v58, %v15517_v58  ;;  %v4759_v51 = vmul.f32 %v15521_v21, %v15521_v21  ;;  %v15551_v44 = vsub.f32 %v15374_v14, %v15509_v26 }
 0x629   : > { %v15555_v13 = vsub.f32 %v15361_v3, %v15509_v26  ;;  %v4760_v49 = vmul.f32 %v15525_v61, %v15525_v61  ;;  %v4810_v32 = vmul.f32 %v15529_v62, %v15529_v62  ;;  %v4811_v48 = vmul.f32 %v15533_v47, %v15533_v47 }
 0x62a   : > { %v4773_v40 = vsel %vm617_vm0, %v4757_v43, 0.0  ;;  %v4774_v19 = vsel %vm617_vm0, %v4758_v1, 0.0  ;;  %v15567_v14 = vsub.f32 %v15404_v18, %v15509_v26  ;;  %v15571_v3 = vsub.f32 %v15387_v33, %v15509_v26 }
 0x62b   : > { %v4775_v16 = vadd.f32 %v4774_v19, %v4773_v40  ;;  %v4761_v22 = vmul.f32 %v15541_v4, %v15541_v4  ;;  %v4812_v24 = vmul.f32 %v15545_v17, %v15545_v17  ;;  %v4776_v28 = vsel %vm617_vm0, %v4759_v51, 0.0 }
 0x62c   : > { %v15580_v37 = vsub.f32 %v15398_v59, %v15509_v26  ;;  %v15584_v18 = vsub.f32 %v15377_v20, %v15509_v26  ;;  %v4762_v33 = vmul.f32 %v15551_v44, %v15551_v44  ;;  %v4813_v41 = vmul.f32 %v15555_v13, %v15555_v13 }
 0x62d   : > { %v4777_v38 = vadd.f32 %v4776_v28, %v4775_v16  ;;  %v4778_v46 = vsel %vm617_vm0, %v4760_v49, 0.0  ;;  %v4826_v52 = vsel %vm617_vm0, %v4810_v32, 0.0  ;;  %v4827_v53 = vsel %vm617_vm0, %v4811_v48, 0.0 }
 0x62e   : > { %v15595_v59 = vsub.f32 %v15424_v55, %v15509_v26  ;;  %v15599_v20 = vsub.f32 %v15407_v50, %v15509_v26  ;;  %v4828_v57 = vadd.f32 %v4827_v53, %v4826_v52  ;;  %v4763_v60 = vmul.f32 %v15567_v14, %v15567_v14 }
 0x62f   : > { %v4779_v54 = vadd.f32 %v4778_v46, %v4777_v38  ;;  %v4814_v2 = vmul.f32 %v15571_v3, %v15571_v3  ;;  %v4780_v5 = vsel %vm617_vm0, %v4761_v22, 0.0  ;;  %v4829_v6 = vsel %vm617_vm0, %v4812_v24, 0.0 }
 0x630   : > { %v15609_v55 = vsub.f32 %v15414_v42, %v15509_v26  ;;  %v15613_v50 = vsub.f32 %v15401_v63, %v15509_v26  ;;  %v4830_v12 = vadd.f32 %v4829_v6, %v4828_v57  ;;  %v4764_v43 = vmul.f32 %v15580_v37, %v15580_v37 }
 0x631   : > { %v4781_v11 = vadd.f32 %v4780_v5, %v4779_v54  ;;  %v4815_v1 = vmul.f32 %v15584_v18, %v15584_v18  ;;  %v4782_v51 = vsel %vm617_vm0, %v4762_v33, 0.0  ;;  %v4831_v49 = vsel %vm617_vm0, %v4813_v41, 0.0 }
 0x632   : > { %v15623_v42 = vsub.f32 %v15444_v31, %v15509_v26  ;;  %v15627_v63 = vsub.f32 %v15427_v56, %v15509_v26  ;;  %v4832_v48 = vadd.f32 %v4831_v49, %v4830_v12  ;;  %v4765_v40 = vmul.f32 %v15595_v59, %v15595_v59 }
 0x633   : > { %v4783_v32 = vadd.f32 %v4782_v51, %v4781_v11  ;;  %v4816_v19 = vmul.f32 %v15599_v20, %v15599_v20  ;;  %v4784_v16 = vsel %vm617_vm0, %v4763_v60, 0.0  ;;  %v4833_v22 = vsel %vm617_vm0, %v4814_v2, 0.0 }
 0x634   : > { %v15637_v31 = vsub.f32 %v15438_v27, %v15509_v26  ;;  %v15641_v56 = vsub.f32 %v15417_v45, %v15509_v26  ;;  %v4834_v28 = vadd.f32 %v4833_v22, %v4832_v48  ;;  %v4766_v33 = vmul.f32 %v15609_v55, %v15609_v55 }
 0x635   : > { %v4785_v24 = vadd.f32 %v4784_v16, %v4783_v32  ;;  %v4817_v38 = vmul.f32 %v15613_v50, %v15613_v50  ;;  %v4786_v41 = vsel %vm617_vm0, %v4764_v43, 0.0  ;;  %v4835_v46 = vsel %vm617_vm0, %v4815_v1, 0.0 }
 0x636   : > { %v15651_v27 = vsub.f32 %v15464_v23, %v15509_v26  ;;  %v15655_v45 = vsub.f32 %v15447_v34, %v15509_v26  ;;  %v4836_v53 = vadd.f32 %v4835_v46, %v4834_v28  ;;  %v4767_v54 = vmul.f32 %v15623_v42, %v15623_v42 }
 0x637   : > { %v4787_v52 = vadd.f32 %v4786_v41, %v4785_v24  ;;  %v4818_v57 = vmul.f32 %v15627_v63, %v15627_v63  ;;  %v4788_v60 = vsel %vm617_vm0, %v4765_v40, 0.0  ;;  %v4837_v2 = vsel %vm617_vm0, %v4816_v19, 0.0 }
 0x638   : > { %v15665_v23 = vsub.f32 %v15454_v0, %v15509_v26  ;;  %v15669_v34 = vsub.f32 %v15441_v30, %v15509_v26  ;;  %v4838_v6 = vadd.f32 %v4837_v2, %v4836_v53  ;;  %v4768_v11 = vmul.f32 %v15637_v31, %v15637_v31 }
 0x639   : > { %v4789_v5 = vadd.f32 %v4788_v60, %v4787_v52  ;;  %v4819_v12 = vmul.f32 %v15641_v56, %v15641_v56  ;;  %v4790_v43 = vsel %vm617_vm0, %v4766_v33, 0.0  ;;  %v4839_v1 = vsel %vm617_vm0, %v4817_v38, 0.0 }
 0x63a   : > { %v15679_v0 = vsub.f32 %v15484_v9, %v15509_v26  ;;  %v15683_v30 = vsub.f32 %v15467_v25, %v15509_v26  ;;  %v4840_v49 = vadd.f32 %v4839_v1, %v4838_v6  ;;  %v4769_v32 = vmul.f32 %v15651_v27, %v15651_v27 }
 0x63b   : > { %v4791_v51 = vadd.f32 %v4790_v43, %v4789_v5  ;;  %v4820_v48 = vmul.f32 %v15655_v45, %v15655_v45  ;;  %v4792_v40 = vsel %vm617_vm0, %v4767_v54, 0.0  ;;  %v4841_v19 = vsel %vm617_vm0, %v4818_v57, 0.0 }
 0x63c   : > { %v15693_v9 = vsub.f32 %v15478_v7, %v15509_v26  ;;  %v15697_v25 = vsub.f32 %v15457_v15, %v15509_v26  ;;  %v4842_v22 = vadd.f32 %v4841_v19, %v4840_v49  ;;  %v4770_v24 = vmul.f32 %v15665_v23, %v15665_v23 }
 0x63d   : > { %v4793_v16 = vadd.f32 %v4792_v40, %v4791_v51  ;;  %v4821_v28 = vmul.f32 %v15669_v34, %v15669_v34  ;;  %v4794_v33 = vsel %vm617_vm0, %v4768_v11, 0.0  ;;  %v4843_v38 = vsel %vm617_vm0, %v4819_v12, 0.0 }
 0x63e   : > { %v15707_v7 = vsub.f32 %v15487_v10, %v15509_v26  ;;  %v4844_v46 = vadd.f32 %v4843_v38, %v4842_v22  ;;  %v4771_v15 = vmul.f32 %v15679_v0, %v15679_v0  ;;  %v4822_v52 = vmul.f32 %v15683_v30, %v15683_v30 }
 0x63f   : > { %v4795_v41 = vadd.f32 %v4794_v33, %v4793_v16  ;;  %v4796_v53 = vsel %vm617_vm0, %v4769_v32, 0.0  ;;  %v4845_v54 = vsel %vm617_vm0, %v4820_v48, 0.0  ;;  %v15717_v57 = vsub.f32 %v15481_v8, %v15509_v26 }
 0x640   : > { %v4846_v2 = vadd.f32 %v4845_v54, %v4844_v46  ;;  %v4772_v10 = vmul.f32 %v15693_v9, %v15693_v9  ;;  %v4823_v5 = vmul.f32 %v15697_v25, %v15697_v25  ;;  %v4798_v6 = vsel %vm617_vm0, %v4770_v24, 0.0 }
 0x641   : > { %v4797_v60 = vadd.f32 %v4796_v53, %v4795_v41  ;;  %v4847_v11 = vsel %vm617_vm0, %v4821_v28, 0.0  ;;  %v4824_v1 = vmul.f32 %v15707_v7, %v15707_v7  ;;  %v4800_v8 = vsel %vm617_vm0, %v4771_v15, 0.0 }
 0x642   : > { %v4848_v43 = vadd.f32 %v4847_v11, %v4846_v2  ;;  %v4849_v26 = vsel %vm617_vm0, %v4822_v52, 0.0  ;;  %v4825_v32 = vmul.f32 %v15717_v57, %v15717_v57  ;;  %v4802_v48 = vsel %vm617_vm0, %v4772_v10, 0.0 }
 0x643   : > { %v4799_v12 = vadd.f32 %v4798_v6, %v4797_v60  ;;  %v4851_v40 = vsel %vm617_vm0, %v4823_v5, 0.0  ;;  %v4853_v22 = vsel %vm617_vm0, %v4824_v1, 0.0 }
 0x644   : > { %v4850_v49 = vadd.f32 %v4849_v26, %v4848_v43  ;;  %v4855_v33 = vsel %vm617_vm0, %v4825_v32, 0.0  ;;  %v5431_v26 = vld [vmem:[#allocation15 + $0x8] sm:$0xff]  ;;  %v15738_v32 = vld [vmem:[#allocation2 + $0x8] sm:$0xff] }
 0x645   : > { %v4801_v51 = vadd.f32 %v4800_v8, %v4799_v12  ;;  %v5430_v8 = vld [vmem:[#allocation15] sm:$0xff] }
 0x646   : > { %v4852_v16 = vadd.f32 %v4851_v40, %v4850_v49  ;;  %v12301_v49 = vpack.c.bf16 %v5431_v26, %v5430_v8  ;;  %v5643_v40 = vld [vmem:[#allocation15 + $0x18] sm:$0xff] }
 0x647   : > { %v4803_v19 = vadd.f32 %v4802_v48, %v4801_v51  ;;  %v5386_v51 = vld [vmem:[#allocation2 + $0x1b7] sm:$0xff]  ;;  %v5642_v48 = vld [vmem:[#allocation15 + $0x10] sm:$0xff] }
 0x648   : > { %v4854_v28 = vadd.f32 %v4853_v22, %v4852_v16  ;;  %12302 = vmatprep.subr.bf16.mxu0 %v12301_v49  ;;  %12314 = vmatprep.subr.bf16.mxu1 %v12301_v49 }
 0x649   : > { %v4804_v24 = vrot.slane %v4803_v19, 4 }
 0x64a   : > { %v4856_v41 = vadd.f32 %v4855_v33, %v4854_v28 }
 0x64b   : > { %v4805_v38 = vadd.f32 %v4804_v24, %v4803_v19  ;;  %v15742_v19 = vpack.c.bf16 %v5643_v40, %v5642_v48 }
 0x64c   : > { %v4857_v15 = vrot.slane %v4856_v41, 4 }
 0x64d   : > { %v4806_v46 = vrot.slane %v4805_v38, 2 }
 0x64e   : > { %v4858_v53 = vadd.f32 %v4857_v15, %v4856_v41  ;;  %v15755_v15 = vld [vmem:[#allocation12] ss:$0 sm:$0xff] }
 0x64f   : > { %v4807_v52 = vadd.f32 %v4806_v46, %v4805_v38 }
 0x650   : > { %v4859_v60 = vrot.slane %v4858_v53, 2 }
 0x651   : > { %v4808_v54 = vrot.slane %v4807_v52, 1 }
 0x652   : > { %v4860_v2 = vadd.f32 %v4859_v60, %v4858_v53 }
 0x653   : > { %v4809_v6 = vadd.f32 %v4808_v54, %v4807_v52 }
 0x654   : > { %v4861_v10 = vrot.slane %v4860_v2, 1 }
 0x656   : > { %v4862_v5 = vadd.f32 %v4861_v10, %v4860_v2  ;;  %v15776_v10 = vld [vmem:[#allocation14] ss:$0 sm:$0xff] }
 0x658   : > { %v4863_v11 = vadd.f32 %v4862_v5, %v4809_v6 }
 0x65a   : > { %11688 = vmatmul.mubr.msk.f32.vlgmr.msra.gmra.mrb[34].mxu0 %vm617_vm0, %v4863_v11 }
 0x65b   : > { %11699 = vmatprep.mubr.msk.f32.mxu0 %vm617_vm0, %v5386_v51  ;;  %12304 = vmatpush3.bf16.msra.mxu0 %v12301_v49 }
 0x65c   : > { %12306 = vmatprep.subr.bf16.mxu0 %v15742_v19 }
 0x72d   : > { %v4933_v12 = vpop.f32.mrb[34].mxu0 }
 0x72e   : > { %v4937_v43 = vmul.f32 0.0009765625, %v4933_v12  ;;  %v11689_v1 = vpop.f32.mrb[35].mxu0 }
 0x730   : > { %11693 = vmatmul.mubr.msk.f32.vlgmr.msra.gmra.mrb[34].mxu1 %vm4643_vm4, %v4937_v43 }
 0x731   : > { %11783 = vmatprep.mubr.msk.f32.mxu1 %vm617_vm0, %v15738_v32  ;;  %12316 = vmatpush3.bf16.msra.mxu1 %v12301_v49 }
 0x732   : > { %12318 = vmatprep.subr.bf16.mxu1 %v15742_v19 }
 0x803   : > { %v5007_v16 = vpop.f32.mrb[34].mxu1 }
 0x804   : > { %v11694_v22 = vpop.f32.mrb[35].mxu1  ;;  %v5008_v24 = vadd.f32 1e-05, %v5007_v16 }
 0x806   : > { %13129 = vrsqrt.f32 %v5008_v24 }
 0x810   : > { %v13130_v28 = vpop.eup %13129 }
 0x811   : > { %v15747_v33 = vrot.slane %v13130_v28, %v15506_v39 }
 0x813   : > { %v5018_v38 = vmul.f32 %v15747_v33, %v15513_v35  ;;  %v5019_v41 = vmul.f32 %v15747_v33, %v15517_v58  ;;  %v5020_v46 = vmul.f32 %v15747_v33, %v15521_v21  ;;  %v5021_v52 = vmul.f32 %v15747_v33, %v15525_v61 }
 0x814   : > { %v5022_v53 = vmul.f32 %v15747_v33, %v15541_v4  ;;  %v5023_v54 = vmul.f32 %v15747_v33, %v15551_v44  ;;  %v5024_v35 = vmul.f32 %v15747_v33, %v15567_v14  ;;  %v5025_v58 = vmul.f32 %v15747_v33, %v15580_v37 }
 0x815   : > { %v5026_v21 = vmul.f32 %v15747_v33, %v15595_v59  ;;  %v5027_v60 = vmul.f32 %v15747_v33, %v15609_v55  ;;  %v5028_v61 = vmul.f32 %v15747_v33, %v15623_v42  ;;  %v5040_v4 = vmul.f32 %v15755_v15, %v5018_v38 }
 0x816   : > { %v5041_v2 = vmul.f32 %v15755_v15, %v5019_v41  ;;  %v5042_v44 = vmul.f32 %v15755_v15, %v5020_v46  ;;  %v5029_v14 = vmul.f32 %v15747_v33, %v15637_v31  ;;  %v5030_v37 = vmul.f32 %v15747_v33, %v15651_v27 }
 0x817   : > { %v5031_v59 = vmul.f32 %v15747_v33, %v15665_v23  ;;  %v5043_v55 = vmul.f32 %v15755_v15, %v5021_v52  ;;  %v5032_v42 = vmul.f32 %v15747_v33, %v15679_v0  ;;  %v5033_v6 = vmul.f32 %v15747_v33, %v15693_v9 }
 0x818   : > { %v15791_v5 = vmul.f32 %v15747_v33, %v15529_v62  ;;  %v5044_v31 = vmul.f32 %v15755_v15, %v5022_v53  ;;  %v15796_v27 = vmul.f32 %v15747_v33, %v15533_v47  ;;  %v15800_v23 = vmul.f32 %v15747_v33, %v15545_v17 }
 0x819   : > { %v5045_v11 = vmul.f32 %v15755_v15, %v5023_v54  ;;  %v5046_v0 = vmul.f32 %v15755_v15, %v5024_v35  ;;  %v15806_v9 = vmul.f32 %v15747_v33, %v15555_v13  ;;  %v15809_v62 = vadd.f32 %v15776_v10, %v5040_v4 }
 0x81a   : > { %v15812_v12 = vadd.f32 %v15776_v10, %v5041_v2  ;;  %v15815_v47 = vadd.f32 %v15776_v10, %v5042_v44  ;;  %v15819_v17 = vmul.f32 %v15747_v33, %v15571_v3  ;;  %v15823_v43 = vmul.f32 %v15747_v33, %v15584_v18 }
 0x81b   : > { %v5047_v13 = vmul.f32 %v15755_v15, %v5025_v58  ;;  %v15827_v1 = vadd.f32 %v15776_v10, %v5043_v55  ;;  %v15831_v8 = vmul.f32 %v15747_v33, %v15599_v20  ;;  %v15835_v26 = vmul.f32 %v15747_v33, %v15613_v50 }
 0x81c   : > { %v5048_v3 = vmul.f32 %v15755_v15, %v5026_v21  ;;  %v15839_v51 = vadd.f32 %v15776_v10, %v5044_v31  ;;  %v15843_v18 = vmul.f32 %v15747_v33, %v15627_v63  ;;  %v5049_v49 = vmul.f32 %v15755_v15, %v5027_v60 }
 0x81d   : > { %v15847_v48 = vadd.f32 %v15776_v10, %v5045_v11  ;;  %v15850_v20 = vadd.f32 %v15776_v10, %v5046_v0  ;;  %v5050_v50 = vmul.f32 %v15755_v15, %v5028_v61  ;;  %v5078_v40 = vsub.f32 0.0, %v15809_v62 }
 0x81e   : > { %v5079_v16 = vsub.f32 0.0, %v15812_v12  ;;  %v5080_v22 = vsub.f32 0.0, %v15815_v47  ;;  %v15858_v63 = vmul.f32 %v15747_v33, %v15641_v56  ;;  %v5051_v24 = vmul.f32 %v15755_v15, %v5029_v14 }
 0x81f   : > { %v15862_v28 = vadd.f32 %v15776_v10, %v5047_v13  ;;  %v5081_v38 = vsub.f32 0.0, %v15827_v1  ;;  %v5052_v41 = vmul.f32 %v15755_v15, %v5030_v37  ;;  %v5053_v46 = vmul.f32 %v15755_v15, %v5031_v59 }
 0x820   : > { %v15868_v52 = vadd.f32 %v15776_v10, %v5048_v3  ;;  %v5082_v53 = vsub.f32 0.0, %v15839_v51  ;;  %v5054_v54 = vmul.f32 %v15755_v15, %v5032_v42  ;;  %v15873_v56 = vadd.f32 %v15776_v10, %v5049_v49 }
 0x821   : > { %v5083_v35 = vsub.f32 0.0, %v15847_v48  ;;  %v5084_v58 = vsub.f32 0.0, %v15850_v20  ;;  %v15878_v21 = vadd.f32 %v15776_v10, %v5050_v50  ;;  %v5094_v60 = vmul.f32 1.442695, %v5078_v40 }
 0x822   : > { %v5096_v61 = vmul.f32 1.442695, %v5079_v16  ;;  %v5098_v4 = vmul.f32 1.442695, %v5080_v22  ;;  %v5055_v2 = vmul.f32 %v15755_v15, %v5033_v6  ;;  %v15882_v44 = vadd.f32 %v15776_v10, %v5051_v24 }
 0x823   : > { %v5085_v14 = vsub.f32 0.0, %v15862_v28  ;;  %v5100_v37 = vmul.f32 1.442695, %v5081_v38  ;;  %v15886_v59 = vadd.f32 %v15776_v10, %v5052_v41  ;;  %v5086_v55 = vsub.f32 0.0, %v15868_v52 }
 0x824   : > { %13131 = vpow2.f32 %v5094_v60  ;;  %v5102_v42 = vmul.f32 1.442695, %v5082_v53  ;;  %v15890_v31 = vadd.f32 %v15776_v10, %v5053_v46  ;;  %v5087_v11 = vsub.f32 0.0, %v15873_v56 }
 0x825   : > { %13133 = vpow2.f32 %v5096_v61  ;;  %v5104_v6 = vmul.f32 1.442695, %v5083_v35  ;;  %v15894_v0 = vadd.f32 %v15776_v10, %v5054_v54  ;;  %v5088_v13 = vsub.f32 0.0, %v15878_v21 }
 0x826   : > { %13135 = vpow2.f32 %v5098_v4  ;;  %v5106_v3 = vmul.f32 1.442695, %v5084_v58  ;;  %v15898_v49 = vadd.f32 %v15776_v10, %v5055_v2  ;;  %v5089_v50 = vsub.f32 0.0, %v15882_v44 }
 0x827   : > { %13137 = vpow2.f32 %v5100_v37  ;;  %v5108_v40 = vmul.f32 1.442695, %v5085_v14  ;;  %v5200_v16 = vmul.f32 %v15747_v33, %v15655_v45  ;;  %v5090_v22 = vsub.f32 0.0, %v15886_v59 }
 0x828   : > { %13139 = vpow2.f32 %v5102_v42  ;;  %v5110_v24 = vmul.f32 1.442695, %v5086_v55  ;;  %v5201_v38 = vmul.f32 %v15747_v33, %v15669_v34  ;;  %v5091_v41 = vsub.f32 0.0, %v15890_v31 }
 0x829   : > { %13141 = vpow2.f32 %v5104_v6  ;;  %v5112_v46 = vmul.f32 1.442695, %v5087_v11  ;;  %v5202_v53 = vmul.f32 %v15747_v33, %v15683_v30  ;;  %v5092_v54 = vsub.f32 0.0, %v15894_v0 }
 0x82a   : > { %13143 = vpow2.f32 %v5106_v3  ;;  %v5114_v35 = vmul.f32 1.442695, %v5088_v13  ;;  %v5203_v45 = vmul.f32 %v15747_v33, %v15697_v25  ;;  %v5093_v58 = vsub.f32 0.0, %v15898_v49 }
 0x82b   : > { %13145 = vpow2.f32 %v5108_v40  ;;  %v5116_v60 = vmul.f32 1.442695, %v5089_v50  ;;  %v5204_v34 = vmul.f32 %v15747_v33, %v15707_v7  ;;  %v5205_v61 = vmul.f32 %v15747_v33, %v15717_v57 }
 0x82c   : > { %13147 = vpow2.f32 %v5110_v24  ;;  %v5118_v4 = vmul.f32 1.442695, %v5090_v22  ;;  %v5206_v30 = vmul.f32 %v15755_v15, %v15791_v5  ;;  %v5207_v2 = vmul.f32 %v15755_v15, %v15796_v27 }
 0x82d   : > { %13149 = vpow2.f32 %v5112_v46  ;;  %v5120_v25 = vmul.f32 1.442695, %v5091_v41  ;;  %v5208_v37 = vmul.f32 %v15755_v15, %v15800_v23  ;;  %v5209_v7 = vmul.f32 %v15755_v15, %v15806_v9 }
 0x82e   : > { %v13132_v14 = vpop.eup %13131  ;;  %13151 = vpow2.f32 %v5114_v35  ;;  %v5122_v55 = vmul.f32 1.442695, %v5092_v54  ;;  %v5210_v33 = vmul.f32 %v15755_v15, %v15819_v17  ;;  %v5211_v5 = vmul.f32 %v15755_v15, %v15823_v43 }
 0x82f   : > { %v13134_v57 = vpop.eup %13133  ;;  %13153 = vpow2.f32 %v5116_v60  ;;  %v5124_v27 = vmul.f32 1.442695, %v5093_v58  ;;  %v5212_v11 = vmul.f32 %v15755_v15, %v15831_v8  ;;  %v5213_v23 = vmul.f32 %v15755_v15, %v15835_v26 }
 0x830   : > { %v13136_v42 = vpop.eup %13135  ;;  %13155 = vpow2.f32 %v5118_v4  ;;  %v5126_v9 = vadd.f32 1.0, %v13132_v14  ;;  %v5214_v13 = vmul.f32 %v15755_v15, %v15843_v18  ;;  %v5215_v17 = vmul.f32 %v15755_v15, %v15858_v63 }
 0x831   : > { %v13138_v6 = vpop.eup %13137  ;;  %13157 = vpow2.f32 %v5120_v25  ;;  %v5127_v43 = vadd.f32 1.0, %v13134_v57  ;;  %v5216_v50 = vmul.f32 %v15755_v15, %v5200_v16  ;;  %v5217_v40 = vmul.f32 %v15755_v15, %v5201_v38 }
 0x832   : > { %v13140_v3 = vpop.eup %13139  ;;  %13159 = vpow2.f32 %v5122_v55  ;;  %v5128_v8 = vadd.f32 1.0, %v13136_v42  ;;  %v5218_v26 = vmul.f32 %v15755_v15, %v5202_v53  ;;  %v5219_v24 = vmul.f32 %v15755_v15, %v5203_v45 }
 0x833   : > { %v13142_v22 = vpop.eup %13141  ;;  %13161 = vpow2.f32 %v5124_v27  ;;  %v5129_v41 = vadd.f32 1.0, %v13138_v6  ;;  %v5220_v46 = vmul.f32 %v15755_v15, %v5204_v34  ;;  %v5221_v63 = vmul.f32 %v15755_v15, %v5205_v61 }
 0x834   : > { %v13144_v18 = vpop.eup %13143  ;;  %v5130_v54 = vadd.f32 1.0, %v13140_v3  ;;  %13163 = vrcp.f32 %v5126_v9  ;;  %v5131_v16 = vadd.f32 1.0, %v13142_v22  ;;  %v15944_v38 = vadd.f32 %v15776_v10, %v5206_v30 }
 0x835   : > { %v13146_v35 = vpop.eup %13145  ;;  %13165 = vrcp.f32 %v5127_v43  ;;  %v15947_v58 = vadd.f32 %v15776_v10, %v5207_v2  ;;  %v5132_v45 = vadd.f32 1.0, %v13144_v18  ;;  %v15950_v60 = vadd.f32 %v15776_v10, %v5208_v37 }
 0x836   : > { %v13148_v53 = vpop.eup %13147  ;;  %13167 = vrcp.f32 %v5128_v8  ;;  %v15953_v34 = vadd.f32 %v15776_v10, %v5209_v7  ;;  %v5133_v61 = vadd.f32 1.0, %v13146_v35  ;;  %v15956_v4 = vadd.f32 %v15776_v10, %v5210_v33 }
 0x837   : > { %v13150_v15 = vpop.eup %13149  ;;  %13169 = vrcp.f32 %v5129_v41  ;;  %v15959_v30 = vadd.f32 %v15776_v10, %v5211_v5  ;;  %v5134_v25 = vadd.f32 1.0, %v13148_v53  ;;  %v15962_v14 = vadd.f32 %v15776_v10, %v5212_v11 }
 0x838   : > { %v13152_v2 = vpop.eup %13151  ;;  %13171 = vrcp.f32 %v5130_v54  ;;  %v15965_v37 = vadd.f32 %v15776_v10, %v5213_v23  ;;  %v5135_v55 = vadd.f32 1.0, %v13150_v15  ;;  %v15968_v57 = vadd.f32 %v15776_v10, %v5214_v13 }
 0x839   : > { %v13154_v7 = vpop.eup %13153  ;;  %13173 = vrcp.f32 %v5131_v16  ;;  %v15971_v33 = vadd.f32 %v15776_v10, %v5215_v17  ;;  %v5136_v27 = vadd.f32 1.0, %v13152_v2  ;;  %v15974_v42 = vadd.f32 %v15776_v10, %v5216_v50 }
 0x83a   : > { %v13156_v5 = vpop.eup %13155  ;;  %13175 = vrcp.f32 %v5132_v45  ;;  %v15977_v11 = vadd.f32 %v15776_v10, %v5217_v40  ;;  %v5137_v9 = vadd.f32 1.0, %v13154_v7  ;;  %v15980_v6 = vadd.f32 %v15776_v10, %v5218_v26 }
 0x83b   : > { %v13158_v23 = vpop.eup %13157  ;;  %13177 = vrcp.f32 %v5133_v61  ;;  %v15983_v13 = vadd.f32 %v15776_v10, %v5219_v24  ;;  %v5138_v43 = vadd.f32 1.0, %v13156_v5  ;;  %v15986_v3 = vadd.f32 %v15776_v10, %v5220_v46 }
 0x83c   : > { %v13160_v17 = vpop.eup %13159  ;;  %13179 = vrcp.f32 %v5134_v25  ;;  %v5238_v50 = vsub.f32 0.0, %v15944_v38  ;;  %v5139_v40 = vadd.f32 1.0, %v13158_v23  ;;  %v15990_v22 = vadd.f32 %v15776_v10, %v5221_v63 }
 0x83d   : > { %v13162_v8 = vpop.eup %13161  ;;  %13181 = vrcp.f32 %v5135_v55  ;;  %v5239_v26 = vsub.f32 0.0, %v15947_v58  ;;  %v5140_v18 = vadd.f32 1.0, %v13160_v17  ;;  %v5240_v24 = vsub.f32 0.0, %v15950_v60 }
 0x83e   : > { %v13164_v41 = vpop.eup %13163  ;;  %13183 = vrcp.f32 %v5136_v27  ;;  %v5241_v54 = vsub.f32 0.0, %v15953_v34  ;;  %v5141_v46 = vadd.f32 1.0, %v13162_v8  ;;  %v5242_v53 = vsub.f32 0.0, %v15956_v4  ;;  %v5854_v8 = vld [vmem:[#allocation15 + $0x20] sm:$0xff] }
 0x83f   : > { %v13166_v35 = vpop.eup %13165  ;;  %13185 = vrcp.f32 %v5137_v9  ;;  %v5158_v16 = vmul.f32 %v13164_v41, %v15809_v62  ;;  %v5243_v63 = vsub.f32 0.0, %v15959_v30  ;;  %v5254_v15 = vmul.f32 1.442695, %v5238_v50 }
 0x840   : > { %v13168_v45 = vpop.eup %13167  ;;  %13187 = vrcp.f32 %v5138_v43  ;;  %v5159_v10 = vmul.f32 %v13166_v35, %v15812_v12  ;;  %v5244_v25 = vsub.f32 0.0, %v15962_v14  ;;  %v5256_v7 = vmul.f32 1.442695, %v5239_v26 }
 0x841   : > { %v13170_v61 = vpop.eup %13169  ;;  %13189 = vrcp.f32 %v5139_v40  ;;  %v5160_v2 = vmul.f32 %v13168_v45, %v15815_v47  ;;  %5174 = vst.msk [vmem:[#allocation2 + $0x20] sm:$0xff] %vm617_vm0, %v5158_v16  ;;  %v5245_v12 = vsub.f32 0.0, %v15965_v37  ;;  %v5258_v5 = vmul.f32 1.442695, %v5240_v24  ;;  %v5855_v40 = vld [vmem:[#allocation15 + $0x28] sm:$0xff] }
 0x842   : > { %v13172_v55 = vpop.eup %13171  ;;  %13191 = vrcp.f32 %v5140_v18  ;;  %v5161_v62 = vmul.f32 %v13170_v61, %v15827_v1  ;;  %5175 = vst.msk [vmem:[#allocation2 + $0x38] sm:$0xff] %vm617_vm0, %v5159_v10  ;;  %v5246_v47 = vsub.f32 0.0, %v15968_v57  ;;  %v5260_v9 = vmul.f32 1.442695, %v5241_v54 }
 0x843   : > { %v13174_v27 = vpop.eup %13173  ;;  %13193 = vrcp.f32 %v5141_v46  ;;  %v5162_v23 = vmul.f32 %v13172_v55, %v15839_v51  ;;  %5176 = vst.msk [vmem:[#allocation2 + $0x50] sm:$0xff] %vm617_vm0, %v5160_v2  ;;  %v5247_v1 = vsub.f32 0.0, %v15971_v33  ;;  %v5262_v50 = vmul.f32 1.442695, %v5242_v53 }
 0x844   : > { %v13176_v17 = vpop.eup %13175  ;;  %v5163_v43 = vmul.f32 %v13174_v27, %v15847_v48  ;;  %5177 = vst.msk [vmem:[#allocation2 + $0x68] sm:$0xff] %vm617_vm0, %v5161_v62  ;;  %13195 = vpow2.f32 %v5254_v15  ;;  %v5248_v51 = vsub.f32 0.0, %v15974_v42  ;;  %v5264_v18 = vmul.f32 1.442695, %v5243_v63 }
 0x845   : > { %v13178_v26 = vpop.eup %13177  ;;  %v5164_v41 = vmul.f32 %v13176_v17, %v15850_v20  ;;  %5178 = vst.msk [vmem:[#allocation2 + $0x80] sm:$0xff] %vm617_vm0, %v5162_v23  ;;  %13197 = vpow2.f32 %v5256_v7  ;;  %v5249_v54 = vsub.f32 0.0, %v15977_v11  ;;  %v5266_v35 = vmul.f32 1.442695, %v5244_v25 }
 0x846   : > { %v13180_v24 = vpop.eup %13179  ;;  %v5165_v48 = vmul.f32 %v13178_v26, %v15862_v28  ;;  %5179 = vst.msk [vmem:[#allocation2 + $0x98] sm:$0xff] %vm617_vm0, %v5163_v43  ;;  %13199 = vpow2.f32 %v5258_v5  ;;  %v5268_v20 = vmul.f32 1.442695, %v5245_v12  ;;  %v16019_v53 = vpack.c.bf16 %v5855_v40, %v5854_v8 }
 0x847   : > { %v13182_v46 = vpop.eup %13181  ;;  %v5166_v16 = vmul.f32 %v13180_v24, %v15868_v52  ;;  %5180 = vst.msk [vmem:[#allocation2 + $0xb0] sm:$0xff] %vm617_vm0, %v5164_v41  ;;  %13201 = vpow2.f32 %v5260_v9  ;;  %v5250_v28 = vsub.f32 0.0, %v15980_v6  ;;  %v5270_v63 = vmul.f32 1.442695, %v5246_v47 }
 0x848   : > { %v13184_v45 = vpop.eup %13183  ;;  %v5167_v10 = vmul.f32 %v13182_v46, %v15873_v56  ;;  %5181 = vst.msk [vmem:[#allocation2 + $0xc8] sm:$0xff] %vm617_vm0, %v5165_v48  ;;  %13203 = vpow2.f32 %v5262_v50  ;;  %v16024_v15 = vld [vmem:[#allocation2 + $0x20] sm:$0xff]  ;;  %v5251_v2 = vsub.f32 0.0, %v15983_v13  ;;  %v5272_v25 = vmul.f32 1.442695, %v5247_v1 }
 0x849   : > { %v13186_v61 = vpop.eup %13185  ;;  %v5168_v52 = vmul.f32 %v13184_v45, %v15878_v21  ;;  %5182 = vst.msk [vmem:[#allocation2 + $0xe0] sm:$0xff] %vm617_vm0, %v5166_v16  ;;  %13205 = vpow2.f32 %v5264_v18  ;;  %11784 = vmatmul.mubr.msk.f32.vlgmr.msra.gmra.mrb[36].mxu1 %vm617_vm0, %v16024_v15  ;;  %v16031_v56 = vld [vmem:[#allocation2 + $0x38] sm:$0xff]  ;;  %v5252_v62 = vsub.f32 0.0, %v15986_v3  ;;  %v5274_v21 = vmul.f32 1.442695, %v5248_v51 }
 0x84a   : > { %v13188_v7 = vpop.eup %13187  ;;  %v5169_v55 = vmul.f32 %v13186_v61, %v15882_v44  ;;  %5183 = vst.msk [vmem:[#allocation2 + $0xf8] sm:$0xff] %vm617_vm0, %v5167_v10  ;;  %13207 = vpow2.f32 %v5266_v35  ;;  %11786 = vmatprep.mubr.msk.f32.mxu1 %vm617_vm0, %v16031_v56  ;;  %12320 = vmatpush3.bf16.msra.mxu1 %v15742_v19  ;;  %v5253_v27 = vsub.f32 0.0, %v15990_v22  ;;  %v5276_v44 = vmul.f32 1.442695, %v5249_v54  ;;  %v16045_v17 = vld [vmem:[#allocation2 + $0x50] sm:$0xff] }
 0x84b   : > { %v13190_v12 = vpop.eup %13189  ;;  %v5170_v5 = vmul.f32 %v13188_v7, %v15886_v59  ;;  %5184 = vst.msk [vmem:[#allocation2 + $0x110] sm:$0xff] %vm617_vm0, %v5168_v52  ;;  %13209 = vpow2.f32 %v5268_v20  ;;  %12322 = vmatprep.subr.bf16.mxu1 %v16019_v53  ;;  %v5278_v9 = vmul.f32 1.442695, %v5250_v28  ;;  %v5280_v1 = vmul.f32 1.442695, %v5251_v2  ;;  %v16051_v50 = vld [vmem:[#allocation2 + $0x68] sm:$0xff] }
 0x84c   : > { %v13192_v23 = vpop.eup %13191  ;;  %v5171_v47 = vmul.f32 %v13190_v12, %v15890_v31  ;;  %5185 = vst.msk [vmem:[#allocation2 + $0x128] sm:$0xff] %vm617_vm0, %v5169_v55  ;;  %13211 = vpow2.f32 %v5270_v63  ;;  %v5282_v40 = vmul.f32 1.442695, %v5252_v62  ;;  %v5284_v26 = vmul.f32 1.442695, %v5253_v27  ;;  %v16059_v18 = vld [vmem:[#allocation2 + $0x80] sm:$0xff] }
 0x84d   : > { %v13194_v43 = vpop.eup %13193  ;;  %v5172_v59 = vmul.f32 %v13192_v23, %v15894_v0  ;;  %5186 = vst.msk [vmem:[#allocation2 + $0x140] sm:$0xff] %vm617_vm0, %v5170_v5  ;;  %13213 = vpow2.f32 %v5272_v25  ;;  %11787 = vmatmul.mubr.msk.f32.gmra.mrb[38].mxu1 %vm617_vm0, %v16045_v17  ;;  %v16063_v48 = vld [vmem:[#allocation2 + $0x98] sm:$0xff] }
 0x84e   : > { %v13196_v8 = vpop.eup %13195  ;;  %v5173_v31 = vmul.f32 %v13194_v43, %v15898_v49  ;;  %5187 = vst.msk [vmem:[#allocation2 + $0x158] sm:$0xff] %vm617_vm0, %v5171_v47  ;;  %13215 = vpow2.f32 %v5274_v21  ;;  %11789 = vmatprep.mubr.msk.f32.mxu1 %vm617_vm0, %v16051_v50  ;;  %v16067_v10 = vld [vmem:[#allocation2 + $0xb0] sm:$0xff] }
 0x84f   : > { %v13198_v0 = vpop.eup %13197  ;;  %5188 = vst.msk [vmem:[#allocation2 + $0x170] sm:$0xff] %vm617_vm0, %v5172_v59  ;;  %13217 = vpow2.f32 %v5276_v44  ;;  %v5286_v51 = vadd.f32 1.0, %v13196_v8  ;;  %v16071_v61 = vld [vmem:[#allocation2 + $0xc8] sm:$0xff] }
 0x850   : > { %v13200_v41 = vpop.eup %13199  ;;  %5189 = vst.msk [vmem:[#allocation2 + $0x188] sm:$0xff] %vm617_vm0, %v5173_v31  ;;  %13219 = vpow2.f32 %v5278_v9  ;;  %v5287_v24 = vadd.f32 1.0, %v13198_v0  ;;  %v16075_v21 = vld [vmem:[#allocation2 + $0xe0] sm:$0xff] }
 0x851   : > { %v13202_v49 = vpop.eup %13201  ;;  %13221 = vpow2.f32 %v5280_v1  ;;  %11790 = vmatmul.mubr.msk.f32.gmra.mrb[40].mxu1 %vm617_vm0, %v16059_v18  ;;  %v5288_v35 = vadd.f32 1.0, %v13200_v41  ;;  %v16079_v27 = vld [vmem:[#allocation2 + $0xf8] sm:$0xff] }
 0x852   : > { %v13204_v54 = vpop.eup %13203  ;;  %13223 = vpow2.f32 %v5282_v40  ;;  %11792 = vmatprep.mubr.msk.f32.mxu1 %vm617_vm0, %v16063_v48  ;;  %v5289_v16 = vadd.f32 1.0, %v13202_v49  ;;  %v16083_v1 = vld [vmem:[#allocation2 + $0x110] sm:$0xff] }
 0x853   : > { %v13206_v46 = vpop.eup %13205  ;;  %13225 = vpow2.f32 %v5284_v26  ;;  %v5290_v45 = vadd.f32 1.0, %v13204_v54  ;;  %v16087_v40 = vld [vmem:[#allocation2 + $0x128] sm:$0xff] }
 0x854   : > { %v13208_v20 = vpop.eup %13207  ;;  %13227 = vrcp.f32 %v5286_v51  ;;  %v5291_v63 = vadd.f32 1.0, %v13206_v46 }
 0x855   : > { %v13210_v28 = vpop.eup %13209  ;;  %13229 = vrcp.f32 %v5287_v24  ;;  %11793 = vmatmul.mubr.msk.f32.gmra.mrb[42].mxu1 %vm617_vm0, %v16067_v10  ;;  %v5292_v2 = vadd.f32 1.0, %v13208_v20  ;;  %v16099_v20 = vld [vmem:[#allocation2 + $0x158] sm:$0xff] }
 0x856   : > { %v13212_v52 = vpop.eup %13211  ;;  %13231 = vrcp.f32 %v5288_v35  ;;  %11795 = vmatprep.mubr.msk.f32.mxu1 %vm617_vm0, %v16071_v61  ;;  %v5293_v7 = vadd.f32 1.0, %v13210_v28  ;;  %v16093_v35 = vld [vmem:[#allocation2 + $0x140] sm:$0xff]  ;;  %v16107_v28 = vld [vmem:[#allocation2 + $0x1b8] sm:$0xff] }
 0x857   : > { %v13214_v25 = vpop.eup %13213  ;;  %13233 = vrcp.f32 %v5289_v16  ;;  %v5294_v62 = vadd.f32 1.0, %v13212_v52  ;;  %v16352_v29 = vld [vmem:[#allocation2 + $0x159] sm:$0xff]  ;;  %v16358_v39 = vld [vmem:[#allocation2 + $0x171] sm:$0xff] }
 0x858   : > { %v13216_v55 = vpop.eup %13215  ;;  %13235 = vrcp.f32 %v5290_v45  ;;  %v5295_v5 = vadd.f32 1.0, %v13214_v25 }
 0x859   : > { %v13218_v12 = vpop.eup %13217  ;;  %13237 = vrcp.f32 %v5291_v63  ;;  %11796 = vmatmul.mubr.msk.f32.gmra.mrb[44].mxu1 %vm617_vm0, %v16075_v21  ;;  %v5296_v23 = vadd.f32 1.0, %v13216_v55 }
 0x85a   : > { %v13220_v44 = vpop.eup %13219  ;;  %13239 = vrcp.f32 %v5292_v2  ;;  %11798 = vmatprep.mubr.msk.f32.mxu1 %vm617_vm0, %v16079_v27  ;;  %v5297_v9 = vadd.f32 1.0, %v13218_v12  ;;  %v16111_v2 = vld [vmem:[#allocation2 + $0x170] sm:$0xff] }
 0x85b   : > { %v13222_v47 = vpop.eup %13221  ;;  %13241 = vrcp.f32 %v5293_v7  ;;  %v5298_v59 = vadd.f32 1.0, %v13220_v44 }
 0x85c   : > { %v13224_v43 = vpop.eup %13223  ;;  %13243 = vrcp.f32 %v5294_v62  ;;  %v5299_v31 = vadd.f32 1.0, %v13222_v47  ;;  %v6597_v62 = vld [vmem:[#allocation15 + $0x30] sm:$0xff] }
 0x85d   : > { %v13226_v8 = vpop.eup %13225  ;;  %13245 = vrcp.f32 %v5295_v5  ;;  %11799 = vmatmul.mubr.msk.f32.gmra.mrb[46].mxu1 %vm617_vm0, %v16083_v1  ;;  %v5300_v26 = vadd.f32 1.0, %v13224_v43 }
 0x85e   : > { %v13228_v0 = vpop.eup %13227  ;;  %13247 = vrcp.f32 %v5296_v23  ;;  %11801 = vmatprep.mubr.msk.f32.mxu1 %vm617_vm0, %v16087_v40  ;;  %v5301_v51 = vadd.f32 1.0, %v13226_v8 }
 0x85f   : > { %v13230_v41 = vpop.eup %13229  ;;  %13249 = vrcp.f32 %v5297_v9  ;;  %v5318_v49 = vmul.f32 %v13228_v0, %v15944_v38 }
 0x860   : > { %v13232_v24 = vpop.eup %13231  ;;  %13251 = vrcp.f32 %v5298_v59  ;;  %v5319_v54 = vmul.f32 %v13230_v41, %v15947_v58 }
 0x861   : > { %v13234_v46 = vpop.eup %13233  ;;  %13253 = vrcp.f32 %v5299_v31  ;;  %v5320_v16 = vmul.f32 %v13232_v24, %v15950_v60  ;;  %5334 = vst.msk [vmem:[#allocation2 + $0x1d0] sm:$0xff] %vm617_vm0, %v5318_v49  ;;  %11802 = vmatmul.mubr.msk.f32.gmra.mrb[48].mxu1 %vm617_vm0, %v16093_v35 }
 0x862   : > { %v13236_v45 = vpop.eup %13235  ;;  %13255 = vrcp.f32 %v5300_v26  ;;  %v5321_v38 = vmul.f32 %v13234_v46, %v15953_v34  ;;  %5335 = vst.msk [vmem:[#allocation2 + $0x1e8] sm:$0xff] %vm617_vm0, %v5319_v54  ;;  %11804 = vmatprep.mubr.msk.f32.mxu1 %vm617_vm0, %v16099_v20 }
 0x863   : > { %v13238_v58 = vpop.eup %13237  ;;  %13257 = vrcp.f32 %v5301_v51  ;;  %v5322_v60 = vmul.f32 %v13236_v45, %v15956_v4  ;;  %5336 = vst.msk [vmem:[#allocation2 + $0x200] sm:$0xff] %vm617_vm0, %v5320_v16 }
 0x864   : > { %v13240_v63 = vpop.eup %13239  ;;  %v5323_v52 = vmul.f32 %v13238_v58, %v15959_v30  ;;  %5337 = vst.msk [vmem:[#allocation2 + $0x218] sm:$0xff] %vm617_vm0, %v5321_v38 }
 0x865   : > { %v13242_v34 = vpop.eup %13241  ;;  %v5324_v25 = vmul.f32 %v13240_v63, %v15962_v14  ;;  %5338 = vst.msk [vmem:[#allocation2 + $0x230] sm:$0xff] %vm617_vm0, %v5322_v60  ;;  %11805 = vmatmul.mubr.msk.f32.gmra.mrb[50].mxu1 %vm617_vm0, %v16111_v2 }
 0x866   : > { %v13244_v4 = vpop.eup %13243  ;;  %v5325_v7 = vmul.f32 %v13242_v34, %v15965_v37  ;;  %5339 = vst.msk [vmem:[#allocation2 + $0x248] sm:$0xff] %vm617_vm0, %v5323_v52  ;;  %11811 = vmatprep.mubr.msk.f32.mxu1 %vm617_vm0, %v16107_v28  ;;  %v6598_v37 = vld [vmem:[#allocation15 + $0x38] sm:$0xff] }
 0x867   : > { %v13246_v30 = vpop.eup %13245  ;;  %v5326_v55 = vmul.f32 %v13244_v4, %v15968_v57  ;;  %5340 = vst.msk [vmem:[#allocation2 + $0x260] sm:$0xff] %vm617_vm0, %v5324_v25 }
 0x868   : > { %v13248_v14 = vpop.eup %13247  ;;  %v5327_v12 = vmul.f32 %v13246_v30, %v15971_v33  ;;  %5341 = vst.msk [vmem:[#allocation2 + $0x278] sm:$0xff] %vm617_vm0, %v5325_v7  ;;  %v16125_v5 = vld [vmem:[#allocation2 + $0x1cf] sm:$0xff] }
 0x869   : > { %v16127_v44 = vld [vmem:[#allocation2 + $0x1d0] sm:$0xff]  ;;  %v13250_v23 = vpop.eup %13249  ;;  %v5328_v47 = vmul.f32 %v13248_v14, %v15974_v42  ;;  %5342 = vst.msk [vmem:[#allocation2 + $0x290] sm:$0xff] %vm617_vm0, %v5326_v55  ;;  %11700 = vmatmul.mubr.msk.f32.vlgmr.msra.gmra.mrb[36].mxu0 %vm617_vm0, %v16125_v5  ;;  %v16133_v57 = vld [vmem:[#allocation2 + $0x1e7] sm:$0xff] }
 0x86a   : > { %11812 = vmatmul.mubr.msk.f32.vlgmr.msra.gmra.mrb[36].mxu1 %vm617_vm0, %v16127_v44  ;;  %v13252_v33 = vpop.eup %13251  ;;  %v5329_v9 = vmul.f32 %v13250_v23, %v15977_v11  ;;  %5343 = vst.msk [vmem:[#allocation2 + $0x2a8] sm:$0xff] %vm617_vm0, %v5327_v12  ;;  %11702 = vmatprep.mubr.msk.f32.mxu0 %vm617_vm0, %v16133_v57  ;;  %v16142_v42 = vld [vmem:[#allocation2 + $0x1e8] sm:$0xff]  ;;  %v16149_v11 = vpack.c.bf16 %v6598_v37, %v6597_v62  ;;  %v16156_v0 = vld [vmem:[#allocation2 + $0x200] sm:$0xff] }
 0x86b   : > { %12308 = vmatpush3.bf16.msra.mxu0 %v15742_v19  ;;  %v13254_v43 = vpop.eup %13253  ;;  %v5330_v59 = vmul.f32 %v13252_v33, %v15980_v6  ;;  %5344 = vst.msk [vmem:[#allocation2 + $0x2c0] sm:$0xff] %vm617_vm0, %v5328_v47  ;;  %11814 = vmatprep.mubr.msk.f32.mxu1 %vm617_vm0, %v16142_v42  ;;  %v16153_v19 = vld [vmem:[#allocation2 + $0x1ff] sm:$0xff]  ;;  %v16162_v41 = vld [vmem:[#allocation2 + $0x217] sm:$0xff]  ;;  %v5404_v14 = vld [vmem:[#allocation2 + $0x9] sm:$0xff] }
 0x86c   : > { %12310 = vmatprep.subr.bf16.mxu0 %v16019_v53  ;;  %v13256_v8 = vpop.eup %13255  ;;  %v5331_v31 = vmul.f32 %v13254_v43, %v15983_v13  ;;  %5345 = vst.msk [vmem:[#allocation2 + $0x2d8] sm:$0xff] %vm617_vm0, %v5329_v9  ;;  %12324 = vmatpush3.bf16.msra.mxu1 %v16019_v53  ;;  %v16166_v13 = vld [vmem:[#allocation2 + $0x218] sm:$0xff]  ;;  %v16179_v49 = vld [vmem:[#allocation2 + $0x230] sm:$0xff]  ;;  %v16268_v23 = vld [vmem:[#allocation2 + $0x21] sm:$0xff] }
 0x86d   : > { %v13258_v6 = vpop.eup %13257  ;;  %v5332_v26 = vmul.f32 %v13256_v8, %v15986_v3  ;;  %5346 = vst.msk [vmem:[#allocation2 + $0x2f0] sm:$0xff] %vm617_vm0, %v5330_v59  ;;  %11703 = vmatmul.mubr.msk.f32.gmra.mrb[38].mxu0 %vm617_vm0, %v16153_v19  ;;  %12338 = vmatprep.subr.bf16.mxu1 %v16149_v11  ;;  %v16177_v3 = vld [vmem:[#allocation2 + $0x22f] sm:$0xff]  ;;  %v6764_v47 = vld [vmem:[#allocation15 + $0x40] sm:$0xff]  ;;  %v6765_v33 = vld [vmem:[#allocation15 + $0x48] sm:$0xff] }
 0x86e   : > { %11815 = vmatmul.mubr.msk.f32.gmra.mrb[38].mxu1 %vm617_vm0, %v16156_v0  ;;  %v5333_v51 = vmul.f32 %v13258_v6, %v15990_v22  ;;  %5347 = vst.msk [vmem:[#allocation2 + $0x308] sm:$0xff] %vm617_vm0, %v5331_v31  ;;  %11705 = vmatprep.mubr.msk.f32.mxu0 %vm617_vm0, %v16162_v41  ;;  %v16183_v22 = vld [vmem:[#allocation2 + $0x247] sm:$0xff]  ;;  %v16193_v54 = vld [vmem:[#allocation2 + $0x25f] sm:$0xff]  ;;  %v16285_v43 = vld [vmem:[#allocation2 + $0x51] sm:$0xff] }
 0x86f   : > { %11817 = vmatprep.mubr.msk.f32.mxu1 %vm617_vm0, %v16166_v13  ;;  %5348 = vst.msk [vmem:[#allocation2 + $0x320] sm:$0xff] %vm617_vm0, %v5332_v26  ;;  %v16187_v24 = vld [vmem:[#allocation2 + $0x248] sm:$0xff]  ;;  %v16195_v46 = vld [vmem:[#allocation2 + $0x260] sm:$0xff]  ;;  %v16199_v16 = vld [vmem:[#allocation2 + $0x277] sm:$0xff] }
 0x870   : > { %5349 = vst.msk [vmem:[#allocation2 + $0x338] sm:$0xff] %vm617_vm0, %v5333_v51  ;;  %v16203_v45 = vld [vmem:[#allocation2 + $0x278] sm:$0xff]  ;;  %v16209_v38 = vld [vmem:[#allocation2 + $0x28f] sm:$0xff]  ;;  %v16298_v59 = vld [vmem:[#allocation2 + $0x81] sm:$0xff] }
 0x871   : > { %11706 = vmatmul.mubr.msk.f32.gmra.mrb[40].mxu0 %vm617_vm0, %v16177_v3  ;;  %v16211_v58 = vld [vmem:[#allocation2 + $0x290] sm:$0xff]  ;;  %v16215_v60 = vld [vmem:[#allocation2 + $0x2a7] sm:$0xff]  ;;  %v16277_v9 = vld [vmem:[#allocation2 + $0x39] sm:$0xff] }
 0x872   : > { %11818 = vmatmul.mubr.msk.f32.gmra.mrb[40].mxu1 %vm617_vm0, %v16179_v49  ;;  %11708 = vmatprep.mubr.msk.f32.mxu0 %vm617_vm0, %v16183_v22  ;;  %v16219_v63 = vld [vmem:[#allocation2 + $0x2a8] sm:$0xff]  ;;  %v16225_v52 = vld [vmem:[#allocation2 + $0x2bf] sm:$0xff]  ;;  %v16310_v31 = vld [vmem:[#allocation2 + $0xb1] sm:$0xff] }
 0x873   : > { %11820 = vmatprep.mubr.msk.f32.mxu1 %vm617_vm0, %v16187_v24  ;;  %v16227_v34 = vld [vmem:[#allocation2 + $0x2c0] sm:$0xff]  ;;  %v16231_v25 = vld [vmem:[#allocation2 + $0x2d7] sm:$0xff]  ;;  %v16316_v6 = vld [vmem:[#allocation2 + $0xc9] sm:$0xff] }
 0x874   : > { %v16235_v4 = vld [vmem:[#allocation2 + $0x2d8] sm:$0xff]  ;;  %v16241_v7 = vld [vmem:[#allocation2 + $0x2ef] sm:$0xff]  ;;  %v16322_v26 = vld [vmem:[#allocation2 + $0xe1] sm:$0xff] }
 0x875   : > { %11709 = vmatmul.mubr.msk.f32.gmra.mrb[42].mxu0 %vm617_vm0, %v16193_v54  ;;  %v16243_v30 = vld [vmem:[#allocation2 + $0x2f0] sm:$0xff]  ;;  %v16247_v55 = vld [vmem:[#allocation2 + $0x307] sm:$0xff]  ;;  %v16304_v8 = vld [vmem:[#allocation2 + $0x99] sm:$0xff] }
 0x876   : > { %11821 = vmatmul.mubr.msk.f32.gmra.mrb[42].mxu1 %vm617_vm0, %v16195_v46  ;;  %11711 = vmatprep.mubr.msk.f32.mxu0 %vm617_vm0, %v16199_v16  ;;  %v16251_v62 = vld [vmem:[#allocation2 + $0x308] sm:$0xff]  ;;  %v16257_v12 = vld [vmem:[#allocation2 + $0x31f] sm:$0xff] }
 0x877   : > { %11823 = vmatprep.mubr.msk.f32.mxu1 %vm617_vm0, %v16203_v45  ;;  %17757 = vst [vmem:[#allocation37_spill] sm:$0xff] %v16257_v12  ;;  %v16259_v37 = vld [vmem:[#allocation2 + $0x320] sm:$0xff] }
 0x878   : > { %v16328_v51 = vld [vmem:[#allocation2 + $0xf9] sm:$0xff] }
 0x879   : > { %11712 = vmatmul.mubr.msk.f32.gmra.mrb[44].mxu0 %vm617_vm0, %v16209_v38 }
 0x87a   : > { %11824 = vmatmul.mubr.msk.f32.gmra.mrb[44].mxu1 %vm617_vm0, %v16211_v58  ;;  %11714 = vmatprep.mubr.msk.f32.mxu0 %vm617_vm0, %v16215_v60 }
 0x87b   : > { %11826 = vmatprep.mubr.msk.f32.mxu1 %vm617_vm0, %v16219_v63 }
 0x87d   : > { %11715 = vmatmul.mubr.msk.f32.gmra.mrb[46].mxu0 %vm617_vm0, %v16225_v52 }
 0x87e   : > { %11827 = vmatmul.mubr.msk.f32.gmra.mrb[46].mxu1 %vm617_vm0, %v16227_v34  ;;  %11717 = vmatprep.mubr.msk.f32.mxu0 %vm617_vm0, %v16231_v25 }
 0x87f   : > { %11829 = vmatprep.mubr.msk.f32.mxu1 %vm617_vm0, %v16235_v4 }
 0x881   : > { %11718 = vmatmul.mubr.msk.f32.gmra.mrb[48].mxu0 %vm617_vm0, %v16241_v7 }
 0x882   : > { %11830 = vmatmul.mubr.msk.f32.gmra.mrb[48].mxu1 %vm617_vm0, %v16243_v30  ;;  %11720 = vmatprep.mubr.msk.f32.mxu0 %vm617_vm0, %v16247_v55 }
 0x883   : > { %11832 = vmatprep.mubr.msk.f32.mxu1 %vm617_vm0, %v16251_v62 }
 0x885   : > { %11721 = vmatmul.mubr.msk.f32.gmra.mrb[50].mxu0 %vm617_vm0, %v16257_v12 }
 0x886   : > { %11833 = vmatmul.mubr.msk.f32.gmra.mrb[50].mxu1 %vm617_vm0, %v16259_v37  ;;  %11727 = vmatprep.mubr.msk.f32.mxu0 %vm617_vm0, %v15738_v32  ;;  %v16282_v32 = vpack.c.bf16 %v6765_v33, %v6764_v47  ;;  %v16340_v47 = vld [vmem:[#allocation2 + $0x129] sm:$0xff]  ;;  %v16346_v33 = vld [vmem:[#allocation2 + $0x141] sm:$0xff] }
 0x887   : > { %11839 = vmatprep.mubr.msk.f32.mxu1 %vm617_vm0, %v5404_v14  ;;  %v16334_v14 = vld [vmem:[#allocation2 + $0x111] sm:$0xff]  ;;  %17758 = vst [vmem:[#allocation38_spill] sm:$0xff] %v16346_v33 }
 0x889   : > { %11728 = vmatmul.mubr.msk.f32.vlgmr.msra.gmra.mrb[36].mxu0 %vm617_vm0, %v16024_v15 }
 0x88a   : > { %11840 = vmatmul.mubr.msk.f32.vlgmr.msra.gmra.mrb[36].mxu1 %vm617_vm0, %v16268_v23  ;;  %11730 = vmatprep.mubr.msk.f32.mxu0 %vm617_vm0, %v16031_v56 }
 0x88b   : > { %12312 = vmatpush3.bf16.msra.mxu0 %v16019_v53  ;;  %11842 = vmatprep.mubr.msk.f32.mxu1 %vm617_vm0, %v16277_v9  ;;  %v16291_v53 = vld [vmem:[#allocation2 + $0x69] sm:$0xff] }
 0x88c   : > { %12326 = vmatprep.subr.bf16.mxu0 %v16149_v11  ;;  %12340 = vmatpush3.bf16.msra.mxu1 %v16149_v11 }
 0x88d   : > { %11731 = vmatmul.mubr.msk.f32.gmra.mrb[38].mxu0 %vm617_vm0, %v16045_v17  ;;  %12342 = vmatprep.subr.bf16.mxu1 %v16282_v32 }
 0x88e   : > { %11843 = vmatmul.mubr.msk.f32.gmra.mrb[38].mxu1 %vm617_vm0, %v16285_v43  ;;  %11733 = vmatprep.mubr.msk.f32.mxu0 %vm617_vm0, %v16051_v50 }
 0x88f   : > { %11845 = vmatprep.mubr.msk.f32.mxu1 %vm617_vm0, %v16291_v53 }
 0x891   : > { %11734 = vmatmul.mubr.msk.f32.gmra.mrb[40].mxu0 %vm617_vm0, %v16059_v18 }
 0x892   : > { %11846 = vmatmul.mubr.msk.f32.gmra.mrb[40].mxu1 %vm617_vm0, %v16298_v59  ;;  %11736 = vmatprep.mubr.msk.f32.mxu0 %vm617_vm0, %v16063_v48 }
 0x893   : > { %11848 = vmatprep.mubr.msk.f32.mxu1 %vm617_vm0, %v16304_v8 }
 0x895   : > { %11737 = vmatmul.mubr.msk.f32.gmra.mrb[42].mxu0 %vm617_vm0, %v16067_v10 }
 0x896   : > { %11849 = vmatmul.mubr.msk.f32.gmra.mrb[42].mxu1 %vm617_vm0, %v16310_v31  ;;  %11739 = vmatprep.mubr.msk.f32.mxu0 %vm617_vm0, %v16071_v61 }
 0x897   : > { %11851 = vmatprep.mubr.msk.f32.mxu1 %vm617_vm0, %v16316_v6 }
 0x899   : > { %11740 = vmatmul.mubr.msk.f32.gmra.mrb[44].mxu0 %vm617_vm0, %v16075_v21 }
 0x89a   : > { %11852 = vmatmul.mubr.msk.f32.gmra.mrb[44].mxu1 %vm617_vm0, %v16322_v26  ;;  %11742 = vmatprep.mubr.msk.f32.mxu0 %vm617_vm0, %v16079_v27 }
 0x89b   : > { %11854 = vmatprep.mubr.msk.f32.mxu1 %vm617_vm0, %v16328_v51 }
 0x89d   : > { %11743 = vmatmul.mubr.msk.f32.gmra.mrb[46].mxu0 %vm617_vm0, %v16083_v1 }
 0x89e   : > { %11855 = vmatmul.mubr.msk.f32.gmra.mrb[46].mxu1 %vm617_vm0, %v16334_v14  ;;  %11745 = vmatprep.mubr.msk.f32.mxu0 %vm617_vm0, %v16087_v40 }
 0x89f   : > { %11857 = vmatprep.mubr.msk.f32.mxu1 %vm617_vm0, %v16340_v47 }
 0x8a1   : > { %11746 = vmatmul.mubr.msk.f32.gmra.mrb[48].mxu0 %vm617_vm0, %v16093_v35 }
 0x8a2   : > { %11858 = vmatmul.mubr.msk.f32.gmra.mrb[48].mxu1 %vm617_vm0, %v16346_v33  ;;  %11748 = vmatprep.mubr.msk.f32.mxu0 %vm617_vm0, %v16099_v20  ;;  %v6932_v33 = vld [vmem:[#allocation15 + $0x58] sm:$0xff] }
 0x8a3   : > { %11860 = vmatprep.mubr.msk.f32.mxu1 %vm617_vm0, %v16352_v29 }
 0x8a5   : > { %11749 = vmatmul.mubr.msk.f32.gmra.mrb[50].mxu0 %vm617_vm0, %v16111_v2 }
 0x8a6   : > { %11861 = vmatmul.mubr.msk.f32.gmra.mrb[50].mxu1 %vm617_vm0, %v16358_v39  ;;  %11755 = vmatprep.mubr.msk.f32.mxu0 %vm617_vm0, %v16107_v28  ;;  %v16378_v28 = vpack.c.bf16 %v6932_v33, %v6931_v36  ;;  %v16430_v36 = vld [vmem:[#allocation2 + $0x188] sm:$0xff]  ;;  %v7585_v33 = vld [vmem:[#allocation15 + $0x68] sm:$0xff] }
 0x8a7   : > { %11951 = vmatprep.mubr.msk.f32.mxu1 %vm617_vm0, %v16024_v15 }
 0x8a9   : > { %11756 = vmatmul.mubr.msk.f32.vlgmr.msra.gmra.mrb[36].mxu0 %vm617_vm0, %v16127_v44 }
 0x8aa   : > { %11952 = vmatmul.mubr.msk.f32.vlgmr.msra.gmra.mrb[36].mxu1 %vm617_vm0, %v16031_v56  ;;  %11758 = vmatprep.mubr.msk.f32.mxu0 %vm617_vm0, %v16142_v42 }
 0x8ab   : > { %12328 = vmatpush3.bf16.msra.mxu0 %v16149_v11  ;;  %11954 = vmatprep.mubr.msk.f32.mxu1 %vm617_vm0, %v16045_v17  ;;  %v7584_v11 = vld [vmem:[#allocation15 + $0x60] sm:$0xff] }
 0x8ac   : > { %12330 = vmatprep.subr.bf16.mxu0 %v16282_v32  ;;  %12344 = vmatpush3.bf16.msra.mxu1 %v16282_v32 }
 0x8ad   : > { %11759 = vmatmul.mubr.msk.f32.gmra.mrb[38].mxu0 %vm617_vm0, %v16156_v0  ;;  %12346 = vmatprep.subr.bf16.mxu1 %v16378_v28 }
 0x8ae   : > { %11955 = vmatmul.mubr.msk.f32.gmra.mrb[38].mxu1 %vm617_vm0, %v16051_v50  ;;  %11761 = vmatprep.mubr.msk.f32.mxu0 %vm617_vm0, %v16166_v13 }
 0x8af   : > { %11957 = vmatprep.mubr.msk.f32.mxu1 %vm617_vm0, %v16059_v18 }
 0x8b1   : > { %11762 = vmatmul.mubr.msk.f32.gmra.mrb[40].mxu0 %vm617_vm0, %v16179_v49 }
 0x8b2   : > { %11958 = vmatmul.mubr.msk.f32.gmra.mrb[40].mxu1 %vm617_vm0, %v16063_v48  ;;  %11764 = vmatprep.mubr.msk.f32.mxu0 %vm617_vm0, %v16187_v24 }
 0x8b3   : > { %11960 = vmatprep.mubr.msk.f32.mxu1 %vm617_vm0, %v16067_v10 }
 0x8b5   : > { %11765 = vmatmul.mubr.msk.f32.gmra.mrb[42].mxu0 %vm617_vm0, %v16195_v46 }
 0x8b6   : > { %11961 = vmatmul.mubr.msk.f32.gmra.mrb[42].mxu1 %vm617_vm0, %v16071_v61  ;;  %11767 = vmatprep.mubr.msk.f32.mxu0 %vm617_vm0, %v16203_v45 }
 0x8b7   : > { %11963 = vmatprep.mubr.msk.f32.mxu1 %vm617_vm0, %v16075_v21 }
 0x8b9   : > { %11768 = vmatmul.mubr.msk.f32.gmra.mrb[44].mxu0 %vm617_vm0, %v16211_v58 }
 0x8ba   : > { %11964 = vmatmul.mubr.msk.f32.gmra.mrb[44].mxu1 %vm617_vm0, %v16079_v27  ;;  %11770 = vmatprep.mubr.msk.f32.mxu0 %vm617_vm0, %v16219_v63 }
 0x8bb   : > { %11966 = vmatprep.mubr.msk.f32.mxu1 %vm617_vm0, %v16083_v1 }
 0x8bd   : > { %11771 = vmatmul.mubr.msk.f32.gmra.mrb[46].mxu0 %vm617_vm0, %v16227_v34 }
 0x8be   : > { %11967 = vmatmul.mubr.msk.f32.gmra.mrb[46].mxu1 %vm617_vm0, %v16087_v40  ;;  %11773 = vmatprep.mubr.msk.f32.mxu0 %vm617_vm0, %v16235_v4 }
 0x8bf   : > { %11969 = vmatprep.mubr.msk.f32.mxu1 %vm617_vm0, %v16093_v35 }
 0x8c1   : > { %11774 = vmatmul.mubr.msk.f32.gmra.mrb[48].mxu0 %vm617_vm0, %v16243_v30 }
 0x8c2   : > { %11970 = vmatmul.mubr.msk.f32.gmra.mrb[48].mxu1 %vm617_vm0, %v16099_v20  ;;  %11776 = vmatprep.mubr.msk.f32.mxu0 %vm617_vm0, %v16251_v62 }
 0x8c3   : > { %11972 = vmatprep.mubr.msk.f32.mxu1 %vm617_vm0, %v16111_v2 }
 0x8c5   : > { %11777 = vmatmul.mubr.msk.f32.gmra.mrb[50].mxu0 %vm617_vm0, %v16259_v37 }
 0x8c6   : > { %11973 = vmatmul.mubr.msk.f32.gmra.mrb[50].mxu1 %vm617_vm0, %v16430_v36  ;;  %11867 = vmatprep.mubr.msk.f32.mxu0 %vm617_vm0, %v16125_v5  ;;  %v16450_v5 = vpack.c.bf16 %v7585_v33, %v7584_v11  ;;  %v16504_v11 = vld [vmem:[#allocation2 + $0x338] sm:$0xff]  ;;  %v7751_v33 = vld [vmem:[#allocation15 + $0x70] sm:$0xff] }
 0x8c7   : > { %11979 = vmatprep.mubr.msk.f32.mxu1 %vm617_vm0, %v16127_v44 }
 0x8c9   : > { %11868 = vmatmul.mubr.msk.f32.vlgmr.msra.gmra.mrb[36].mxu0 %vm617_vm0, %v16133_v57 }
 0x8ca   : > { %11980 = vmatmul.mubr.msk.f32.vlgmr.msra.gmra.mrb[36].mxu1 %vm617_vm0, %v16142_v42  ;;  %11870 = vmatprep.mubr.msk.f32.mxu0 %vm617_vm0, %v16153_v19 }
 0x8cb   : > { %12332 = vmatpush3.bf16.msra.mxu0 %v16282_v32  ;;  %11982 = vmatprep.mubr.msk.f32.mxu1 %vm617_vm0, %v16156_v0  ;;  %v16502_v32 = vld [vmem:[#allocation2 + $0x337] sm:$0xff] }
 0x8cc   : > { %12334 = vmatprep.subr.bf16.mxu0 %v16378_v28  ;;  %12348 = vmatpush3.bf16.msra.mxu1 %v16378_v28 }
 0x8cd   : > { %11871 = vmatmul.mubr.msk.f32.gmra.mrb[38].mxu0 %vm617_vm0, %v16162_v41  ;;  %12362 = vmatprep.subr.bf16.mxu1 %v16450_v5 }
 0x8ce   : > { %11983 = vmatmul.mubr.msk.f32.gmra.mrb[38].mxu1 %vm617_vm0, %v16166_v13  ;;  %11873 = vmatprep.mubr.msk.f32.mxu0 %vm617_vm0, %v16177_v3 }
 0x8cf   : > { %11985 = vmatprep.mubr.msk.f32.mxu1 %vm617_vm0, %v16179_v49 }
 0x8d1   : > { %11874 = vmatmul.mubr.msk.f32.gmra.mrb[40].mxu0 %vm617_vm0, %v16183_v22 }
 0x8d2   : > { %11986 = vmatmul.mubr.msk.f32.gmra.mrb[40].mxu1 %vm617_vm0, %v16187_v24  ;;  %11876 = vmatprep.mubr.msk.f32.mxu0 %vm617_vm0, %v16193_v54 }
 0x8d3   : > { %11988 = vmatprep.mubr.msk.f32.mxu1 %vm617_vm0, %v16195_v46 }
 0x8d5   : > { %11877 = vmatmul.mubr.msk.f32.gmra.mrb[42].mxu0 %vm617_vm0, %v16199_v16 }
 0x8d6   : > { %11989 = vmatmul.mubr.msk.f32.gmra.mrb[42].mxu1 %vm617_vm0, %v16203_v45  ;;  %11879 = vmatprep.mubr.msk.f32.mxu0 %vm617_vm0, %v16209_v38 }
 0x8d7   : > { %11991 = vmatprep.mubr.msk.f32.mxu1 %vm617_vm0, %v16211_v58 }
 0x8d9   : > { %11880 = vmatmul.mubr.msk.f32.gmra.mrb[44].mxu0 %vm617_vm0, %v16215_v60 }
 0x8da   : > { %11992 = vmatmul.mubr.msk.f32.gmra.mrb[44].mxu1 %vm617_vm0, %v16219_v63  ;;  %11882 = vmatprep.mubr.msk.f32.mxu0 %vm617_vm0, %v16225_v52 }
 0x8db   : > { %11994 = vmatprep.mubr.msk.f32.mxu1 %vm617_vm0, %v16227_v34 }
 0x8dd   : > { %11883 = vmatmul.mubr.msk.f32.gmra.mrb[46].mxu0 %vm617_vm0, %v16231_v25 }
 0x8de   : > { %11995 = vmatmul.mubr.msk.f32.gmra.mrb[46].mxu1 %vm617_vm0, %v16235_v4  ;;  %11885 = vmatprep.mubr.msk.f32.mxu0 %vm617_vm0, %v16241_v7 }
 0x8df   : > { %11997 = vmatprep.mubr.msk.f32.mxu1 %vm617_vm0, %v16243_v30 }
 0x8e1   : > { %11886 = vmatmul.mubr.msk.f32.gmra.mrb[48].mxu0 %vm617_vm0, %v16247_v55 }
 0x8e2   : > { %11998 = vmatmul.mubr.msk.f32.gmra.mrb[48].mxu1 %vm617_vm0, %v16251_v62  ;;  %11888 = vmatprep.mubr.msk.f32.mxu0 %vm617_vm0, %v16257_v12  ;;  %v7752_v12 = vld [vmem:[#allocation15 + $0x78] sm:$0xff] }
 0x8e3   : > { %12000 = vmatprep.mubr.msk.f32.mxu1 %vm617_vm0, %v16259_v37 }
 0x8e5   : > { %11889 = vmatmul.mubr.msk.f32.gmra.mrb[50].mxu0 %vm617_vm0, %v16502_v32 }
 0x8e6   : > { %12001 = vmatmul.mubr.msk.f32.gmra.mrb[50].mxu1 %vm617_vm0, %v16504_v11  ;;  %11895 = vmatprep.mubr.msk.f32.mxu0 %vm617_vm0, %v16024_v15  ;;  %v16524_v15 = vpack.c.bf16 %v7752_v12, %v7751_v33  ;;  %v17759_v12 = vld [vmem:[#allocation38_spill] sm:$0xff]  ;;  %v7919_v33 = vld [vmem:[#allocation15 + $0x88] sm:$0xff] }
 0x8e7   : > { %12007 = vmatprep.mubr.msk.f32.mxu1 %vm617_vm0, %v16268_v23  ;;  %v16576_v23 = vld [vmem:[#allocation2 + $0x189] sm:$0xff] }
 0x8e9   : > { %11896 = vmatmul.mubr.msk.f32.vlgmr.msra.gmra.mrb[36].mxu0 %vm617_vm0, %v16031_v56 }
 0x8ea   : > { %12008 = vmatmul.mubr.msk.f32.vlgmr.msra.gmra.mrb[36].mxu1 %vm617_vm0, %v16277_v9  ;;  %11898 = vmatprep.mubr.msk.f32.mxu0 %vm617_vm0, %v16045_v17 }
 0x8eb   : > { %12336 = vmatpush3.bf16.msra.mxu0 %v16378_v28  ;;  %12010 = vmatprep.mubr.msk.f32.mxu1 %vm617_vm0, %v16285_v43  ;;  %v7918_v28 = vld [vmem:[#allocation15 + $0x80] sm:$0xff] }
 0x8ec   : > { %12350 = vmatprep.subr.bf16.mxu0 %v16450_v5  ;;  %12364 = vmatpush3.bf16.msra.mxu1 %v16450_v5 }
 0x8ed   : > { %11899 = vmatmul.mubr.msk.f32.gmra.mrb[38].mxu0 %vm617_vm0, %v16051_v50  ;;  %12366 = vmatprep.subr.bf16.mxu1 %v16524_v15 }
 0x8ee   : > { %12011 = vmatmul.mubr.msk.f32.gmra.mrb[38].mxu1 %vm617_vm0, %v16291_v53  ;;  %11901 = vmatprep.mubr.msk.f32.mxu0 %vm617_vm0, %v16059_v18 }
 0x8ef   : > { %12013 = vmatprep.mubr.msk.f32.mxu1 %vm617_vm0, %v16298_v59 }
 0x8f1   : > { %11902 = vmatmul.mubr.msk.f32.gmra.mrb[40].mxu0 %vm617_vm0, %v16063_v48 }
 0x8f2   : > { %12014 = vmatmul.mubr.msk.f32.gmra.mrb[40].mxu1 %vm617_vm0, %v16304_v8  ;;  %11904 = vmatprep.mubr.msk.f32.mxu0 %vm617_vm0, %v16067_v10 }
 0x8f3   : > { %12016 = vmatprep.mubr.msk.f32.mxu1 %vm617_vm0, %v16310_v31 }
 0x8f5   : > { %11905 = vmatmul.mubr.msk.f32.gmra.mrb[42].mxu0 %vm617_vm0, %v16071_v61 }
 0x8f6   : > { %12017 = vmatmul.mubr.msk.f32.gmra.mrb[42].mxu1 %vm617_vm0, %v16316_v6  ;;  %11907 = vmatprep.mubr.msk.f32.mxu0 %vm617_vm0, %v16075_v21 }
 0x8f7   : > { %12019 = vmatprep.mubr.msk.f32.mxu1 %vm617_vm0, %v16322_v26 }
 0x8f9   : > { %11908 = vmatmul.mubr.msk.f32.gmra.mrb[44].mxu0 %vm617_vm0, %v16079_v27 }
 0x8fa   : > { %12020 = vmatmul.mubr.msk.f32.gmra.mrb[44].mxu1 %vm617_vm0, %v16328_v51  ;;  %11910 = vmatprep.mubr.msk.f32.mxu0 %vm617_vm0, %v16083_v1 }
 0x8fb   : > { %12022 = vmatprep.mubr.msk.f32.mxu1 %vm617_vm0, %v16334_v14 }
 0x8fd   : > { %11911 = vmatmul.mubr.msk.f32.gmra.mrb[46].mxu0 %vm617_vm0, %v16087_v40 }
 0x8fe   : > { %12023 = vmatmul.mubr.msk.f32.gmra.mrb[46].mxu1 %vm617_vm0, %v16340_v47  ;;  %11913 = vmatprep.mubr.msk.f32.mxu0 %vm617_vm0, %v16093_v35 }
 0x8ff   : > { %12025 = vmatprep.mubr.msk.f32.mxu1 %vm617_vm0, %v17759_v12 }
 0x901   : > { %11914 = vmatmul.mubr.msk.f32.gmra.mrb[48].mxu0 %vm617_vm0, %v16099_v20 }
 0x902   : > { %12026 = vmatmul.mubr.msk.f32.gmra.mrb[48].mxu1 %vm617_vm0, %v16352_v29  ;;  %11916 = vmatprep.mubr.msk.f32.mxu0 %vm617_vm0, %v16111_v2 }
 0x903   : > { %12028 = vmatprep.mubr.msk.f32.mxu1 %vm617_vm0, %v16358_v39 }
 0x905   : > { %11917 = vmatmul.mubr.msk.f32.gmra.mrb[50].mxu0 %vm617_vm0, %v16430_v36 }
 0x906   : > { %12029 = vmatmul.mubr.msk.f32.gmra.mrb[50].mxu1 %vm617_vm0, %v16576_v23  ;;  %11923 = vmatprep.mubr.msk.f32.mxu0 %vm617_vm0, %v16127_v44  ;;  %v16596_v44 = vpack.c.bf16 %v7919_v33, %v7918_v28 }
 0x907   : > { %12119 = vmatprep.mubr.msk.f32.mxu1 %vm617_vm0, %v16031_v56 }
 0x909   : > { %11924 = vmatmul.mubr.msk.f32.vlgmr.msra.gmra.mrb[36].mxu0 %vm617_vm0, %v16142_v42 }
 0x90a   : > { %12120 = vmatmul.mubr.msk.f32.vlgmr.msra.gmra.mrb[36].mxu1 %vm617_vm0, %v16045_v17  ;;  %11926 = vmatprep.mubr.msk.f32.mxu0 %vm617_vm0, %v16156_v0 }
 0x90b   : > { %12352 = vmatpush3.bf16.msra.mxu0 %v16450_v5  ;;  %12122 = vmatprep.mubr.msk.f32.mxu1 %vm617_vm0, %v16051_v50  ;;  %v16648_v5 = vld [vmem:[#allocation2 + $0x1a0] sm:$0xff] }
 0x90c   : > { %12354 = vmatprep.subr.bf16.mxu0 %v16524_v15  ;;  %12368 = vmatpush3.bf16.msra.mxu1 %v16524_v15 }
 0x90d   : > { %11927 = vmatmul.mubr.msk.f32.gmra.mrb[38].mxu0 %vm617_vm0, %v16166_v13  ;;  %12370 = vmatprep.subr.bf16.mxu1 %v16596_v44 }
 0x90e   : > { %12123 = vmatmul.mubr.msk.f32.gmra.mrb[38].mxu1 %vm617_vm0, %v16059_v18  ;;  %11929 = vmatprep.mubr.msk.f32.mxu0 %vm617_vm0, %v16179_v49 }
 0x90f   : > { %12125 = vmatprep.mubr.msk.f32.mxu1 %vm617_vm0, %v16063_v48 }
 0x911   : > { %11930 = vmatmul.mubr.msk.f32.gmra.mrb[40].mxu0 %vm617_vm0, %v16187_v24 }
 0x912   : > { %12126 = vmatmul.mubr.msk.f32.gmra.mrb[40].mxu1 %vm617_vm0, %v16067_v10  ;;  %11932 = vmatprep.mubr.msk.f32.mxu0 %vm617_vm0, %v16195_v46 }
 0x913   : > { %12128 = vmatprep.mubr.msk.f32.mxu1 %vm617_vm0, %v16071_v61 }
 0x915   : > { %11933 = vmatmul.mubr.msk.f32.gmra.mrb[42].mxu0 %vm617_vm0, %v16203_v45 }
 0x916   : > { %12129 = vmatmul.mubr.msk.f32.gmra.mrb[42].mxu1 %vm617_vm0, %v16075_v21  ;;  %11935 = vmatprep.mubr.msk.f32.mxu0 %vm617_vm0, %v16211_v58 }
 0x917   : > { %12131 = vmatprep.mubr.msk.f32.mxu1 %vm617_vm0, %v16079_v27 }
 0x919   : > { %11936 = vmatmul.mubr.msk.f32.gmra.mrb[44].mxu0 %vm617_vm0, %v16219_v63 }
 0x91a   : > { %12132 = vmatmul.mubr.msk.f32.gmra.mrb[44].mxu1 %vm617_vm0, %v16083_v1  ;;  %11938 = vmatprep.mubr.msk.f32.mxu0 %vm617_vm0, %v16227_v34 }
 0x91b   : > { %12134 = vmatprep.mubr.msk.f32.mxu1 %vm617_vm0, %v16087_v40 }
 0x91d   : > { %11939 = vmatmul.mubr.msk.f32.gmra.mrb[46].mxu0 %vm617_vm0, %v16235_v4 }
 0x91e   : > { %12135 = vmatmul.mubr.msk.f32.gmra.mrb[46].mxu1 %vm617_vm0, %v16093_v35  ;;  %11941 = vmatprep.mubr.msk.f32.mxu0 %vm617_vm0, %v16243_v30 }
 0x91f   : > { %12137 = vmatprep.mubr.msk.f32.mxu1 %vm617_vm0, %v16099_v20 }
 0x921   : > { %11942 = vmatmul.mubr.msk.f32.gmra.mrb[48].mxu0 %vm617_vm0, %v16251_v62 }
 0x922   : > { %12138 = vmatmul.mubr.msk.f32.gmra.mrb[48].mxu1 %vm617_vm0, %v16111_v2  ;;  %11944 = vmatprep.mubr.msk.f32.mxu0 %vm617_vm0, %v16259_v37 }
 0x923   : > { %12140 = vmatprep.mubr.msk.f32.mxu1 %vm617_vm0, %v16430_v36 }
 0x925   : > { %11945 = vmatmul.mubr.msk.f32.gmra.mrb[50].mxu0 %vm617_vm0, %v16504_v11 }
 0x926   : > { %12141 = vmatmul.mubr.msk.f32.gmra.mrb[50].mxu1 %vm617_vm0, %v16648_v5  ;;  %12035 = vmatprep.mubr.msk.f32.mxu0 %vm617_vm0, %v16133_v57  ;;  %v17760_v57 = vmov 0.0  }
 0x927   : > { %12147 = vmatprep.mubr.msk.f32.mxu1 %vm617_vm0, %v16142_v42 }
 0x929   : > { %12036 = vmatmul.mubr.msk.f32.vlgmr.msra.gmra.mrb[36].mxu0 %vm617_vm0, %v16153_v19  ;;  %v17761_v19 = vld [vmem:[#allocation37_spill] sm:$0xff] }
 0x92a   : > { %12148 = vmatmul.mubr.msk.f32.vlgmr.msra.gmra.mrb[36].mxu1 %vm617_vm0, %v16156_v0  ;;  %12038 = vmatprep.mubr.msk.f32.mxu0 %vm617_vm0, %v16162_v41  ;;  %v5403_v41 = vld [vmem:[#allocation2 + $0x34f] sm:$0xff] }
 0x92b   : > { %12356 = vmatpush3.bf16.msra.mxu0 %v16524_v15  ;;  %12150 = vmatprep.mubr.msk.f32.mxu1 %vm617_vm0, %v16166_v13 }
 0x92c   : > { %12358 = vmatprep.subr.bf16.mxu0 %v16596_v44  ;;  %12372 = vmatpush3.bf16.msra.mxu1 %v16596_v44 }
 0x92d   : > { %12039 = vmatmul.mubr.msk.f32.gmra.mrb[38].mxu0 %vm617_vm0, %v16177_v3  ;;  %12206 = vmatprep.subr.mxu1 %v17760_v57  ;;  %v5385_v3 = vld [vmem:[#allocation2 + $0x350] sm:$0xff] }
 0x92e   : > { %12151 = vmatmul.mubr.msk.f32.gmra.mrb[38].mxu1 %vm617_vm0, %v16179_v49  ;;  %12041 = vmatprep.mubr.msk.f32.mxu0 %vm617_vm0, %v16183_v22  ;;  %v17762_v22 = vmov 0.0|0.0  }
 0x92f   : > { %12153 = vmatprep.mubr.msk.f32.mxu1 %vm617_vm0, %v16187_v24 }
 0x931   : > { %12042 = vmatmul.mubr.msk.f32.gmra.mrb[40].mxu0 %vm617_vm0, %v16193_v54 }
 0x932   : > { %12154 = vmatmul.mubr.msk.f32.gmra.mrb[40].mxu1 %vm617_vm0, %v16195_v46  ;;  %12044 = vmatprep.mubr.msk.f32.mxu0 %vm617_vm0, %v16199_v16 }
 0x933   : > { %12156 = vmatprep.mubr.msk.f32.mxu1 %vm617_vm0, %v16203_v45 }
 0x935   : > { %12045 = vmatmul.mubr.msk.f32.gmra.mrb[42].mxu0 %vm617_vm0, %v16209_v38 }
 0x936   : > { %12157 = vmatmul.mubr.msk.f32.gmra.mrb[42].mxu1 %vm617_vm0, %v16211_v58  ;;  %12047 = vmatprep.mubr.msk.f32.mxu0 %vm617_vm0, %v16215_v60 }
 0x937   : > { %12159 = vmatprep.mubr.msk.f32.mxu1 %vm617_vm0, %v16219_v63 }
 0x939   : > { %12048 = vmatmul.mubr.msk.f32.gmra.mrb[44].mxu0 %vm617_vm0, %v16225_v52 }
 0x93a   : > { %12160 = vmatmul.mubr.msk.f32.gmra.mrb[44].mxu1 %vm617_vm0, %v16227_v34  ;;  %12050 = vmatprep.mubr.msk.f32.mxu0 %vm617_vm0, %v16231_v25 }
 0x93b   : > { %12162 = vmatprep.mubr.msk.f32.mxu1 %vm617_vm0, %v16235_v4 }
 0x93d   : > { %12051 = vmatmul.mubr.msk.f32.gmra.mrb[46].mxu0 %vm617_vm0, %v16241_v7 }
 0x93e   : > { %12163 = vmatmul.mubr.msk.f32.gmra.mrb[46].mxu1 %vm617_vm0, %v16243_v30  ;;  %12053 = vmatprep.mubr.msk.f32.mxu0 %vm617_vm0, %v16247_v55 }
 0x93f   : > { %12165 = vmatprep.mubr.msk.f32.mxu1 %vm617_vm0, %v16251_v62 }
 0x941   : > { %12054 = vmatmul.mubr.msk.f32.gmra.mrb[48].mxu0 %vm617_vm0, %v17761_v19 }
 0x942   : > { %12166 = vmatmul.mubr.msk.f32.gmra.mrb[48].mxu1 %vm617_vm0, %v16259_v37  ;;  %12056 = vmatprep.mubr.msk.f32.mxu0 %vm617_vm0, %v16502_v32 }
 0x943   : > { %12168 = vmatprep.mubr.msk.f32.mxu1 %vm617_vm0, %v16504_v11 }
 0x945   : > { %12057 = vmatmul.mubr.msk.f32.gmra.mrb[50].mxu0 %vm617_vm0, %v5403_v41 }
 0x946   : > { %12169 = vmatmul.mubr.msk.f32.gmra.mrb[50].mxu1 %vm617_vm0, %v5385_v3  ;;  %12063 = vmatprep.mubr.msk.f32.mxu0 %vm617_vm0, %v16031_v56  ;;  %v5421_v56 = vld [vmem:[#allocation2 + $0x1a1] sm:$0xff] }
 0x947   : > { %12175 = vmatprep.mubr.msk.f32.mxu1 %vm617_vm0, %v16277_v9 }
 0x949   : > { %12064 = vmatmul.mubr.msk.f32.vlgmr.msra.gmra.mrb[36].mxu0 %vm617_vm0, %v16045_v17 }
 0x94a   : > { %12176 = vmatmul.mubr.msk.f32.vlgmr.msra.gmra.mrb[36].mxu1 %vm617_vm0, %v16285_v43  ;;  %12066 = vmatprep.mubr.msk.f32.mxu0 %vm617_vm0, %v16051_v50  ;;  %v16824_v50 = vld [vmem:[#allocation23] sm:$0xf] }
 0x94b   : > { %12360 = vmatpush3.bf16.msra.mxu0 %v16596_v44  ;;  %12178 = vmatprep.mubr.msk.f32.mxu1 %vm617_vm0, %v16291_v53 }
 0x94c   : > { %12373 = vmatprep.subr.bf16.mxu0 %v17762_v22  ;;  %12207 = vmatpush3.msk.msra.mxu1 %vm4647_vm3, %v16824_v50 }
 0x94d   : > { %12067 = vmatmul.mubr.msk.f32.gmra.mrb[38].mxu0 %vm617_vm0, %v16059_v18  ;;  %12218 = vmatprep.subr.mxu1 %v17760_v57  ;;  %v16829_v18 = vld [vmem:[#allocation17] ss:$0 sm:$0xff] }
 0x94e   : > { %12179 = vmatmul.mubr.msk.f32.gmra.mrb[38].mxu1 %vm617_vm0, %v16298_v59  ;;  %12069 = vmatprep.mubr.msk.f32.mxu0 %vm617_vm0, %v16063_v48 }
 0x94f   : > { %12181 = vmatprep.mubr.msk.f32.mxu1 %vm617_vm0, %v16304_v8 }
 0x951   : > { %12070 = vmatmul.mubr.msk.f32.gmra.mrb[40].mxu0 %vm617_vm0, %v16067_v10 }
 0x952   : > { %12182 = vmatmul.mubr.msk.f32.gmra.mrb[40].mxu1 %vm617_vm0, %v16310_v31  ;;  %12072 = vmatprep.mubr.msk.f32.mxu0 %vm617_vm0, %v16071_v61 }
 0x953   : > { %12184 = vmatprep.mubr.msk.f32.mxu1 %vm617_vm0, %v16316_v6 }
 0x955   : > { %12073 = vmatmul.mubr.msk.f32.gmra.mrb[42].mxu0 %vm617_vm0, %v16075_v21 }
 0x956   : > { %12185 = vmatmul.mubr.msk.f32.gmra.mrb[42].mxu1 %vm617_vm0, %v16322_v26  ;;  %12075 = vmatprep.mubr.msk.f32.mxu0 %vm617_vm0, %v16079_v27 }
 0x957   : > { %12187 = vmatprep.mubr.msk.f32.mxu1 %vm617_vm0, %v16328_v51 }
 0x959   : > { %12076 = vmatmul.mubr.msk.f32.gmra.mrb[44].mxu0 %vm617_vm0, %v16083_v1 }
 0x95a   : > { %12188 = vmatmul.mubr.msk.f32.gmra.mrb[44].mxu1 %vm617_vm0, %v16334_v14  ;;  %12078 = vmatprep.mubr.msk.f32.mxu0 %vm617_vm0, %v16087_v40 }
 0x95b   : > { %12190 = vmatprep.mubr.msk.f32.mxu1 %vm617_vm0, %v16340_v47 }
 0x95d   : > { %12079 = vmatmul.mubr.msk.f32.gmra.mrb[46].mxu0 %vm617_vm0, %v16093_v35 }
 0x95e   : > { %12191 = vmatmul.mubr.msk.f32.gmra.mrb[46].mxu1 %vm617_vm0, %v17759_v12  ;;  %12081 = vmatprep.mubr.msk.f32.mxu0 %vm617_vm0, %v16099_v20 }
 0x95f   : > { %12193 = vmatprep.mubr.msk.f32.mxu1 %vm617_vm0, %v16352_v29  ;;  %v8645_v29 = vld [vmem:[#allocation21] sm:$0xff] }
 0x961   : > { %12082 = vmatmul.mubr.msk.f32.gmra.mrb[48].mxu0 %vm617_vm0, %v16111_v2 }
 0x962   : > { %12194 = vmatmul.mubr.msk.f32.gmra.mrb[48].mxu1 %vm617_vm0, %v16358_v39  ;;  %12084 = vmatprep.mubr.msk.f32.mxu0 %vm617_vm0, %v16430_v36  ;;  %v8646_v39 = vld [vmem:[#allocation21 + $0x8] sm:$0xff] }
 0x963   : > { %12196 = vmatprep.mubr.msk.f32.mxu1 %vm617_vm0, %v16576_v23  ;;  %v16820_v17 = vpack.c.bf16 %v8646_v39, %v8645_v29 }
 0x965   : > { %12085 = vmatmul.mubr.msk.f32.gmra.mrb[50].mxu0 %vm617_vm0, %v16648_v5 }
 0x966   : > { %12197 = vmatmul.mubr.msk.f32.gmra.mrb[50].mxu1 %vm617_vm0, %v5421_v56  ;;  %12091 = vmatprep.mubr.msk.f32.mxu0 %vm617_vm0, %v16142_v42 }
 0x967   : > { %12208 = vmatprep.mubr.msk.f32.mxu1 %vm13864_vm2, %v17760_v57 }
 0x969   : > { %12092 = vmatmul.mubr.msk.f32.vlgmr.msra.gmra.mrb[36].mxu0 %vm617_vm0, %v16156_v0 }
 0x96a   : > { %12094 = vmatprep.mubr.msk.f32.mxu0 %vm617_vm0, %v16166_v13  ;;  %12375 = vmatpush3.bf16.msra.mxu0 %v16820_v17 }
 0x96b   : > { %12376 = vmatprep.subr.bf16.mxu0 %v17762_v22 }
 0x96d   : > { %12095 = vmatmul.mubr.msk.f32.gmra.mrb[38].mxu0 %vm617_vm0, %v16179_v49 }
 0x96e   : > { %12097 = vmatprep.mubr.msk.f32.mxu0 %vm617_vm0, %v16187_v24 }
 0x971   : > { %12098 = vmatmul.mubr.msk.f32.gmra.mrb[40].mxu0 %vm617_vm0, %v16195_v46 }
 0x972   : > { %12100 = vmatprep.mubr.msk.f32.mxu0 %vm617_vm0, %v16203_v45 }
 0x975   : > { %12101 = vmatmul.mubr.msk.f32.gmra.mrb[42].mxu0 %vm617_vm0, %v16211_v58 }
 0x976   : > { %12103 = vmatprep.mubr.msk.f32.mxu0 %vm617_vm0, %v16219_v63 }
 0x979   : > { %12104 = vmatmul.mubr.msk.f32.gmra.mrb[44].mxu0 %vm617_vm0, %v16227_v34 }
 0x97a   : > { %12106 = vmatprep.mubr.msk.f32.mxu0 %vm617_vm0, %v16235_v4 }
 0x97d   : > { %12107 = vmatmul.mubr.msk.f32.gmra.mrb[46].mxu0 %vm617_vm0, %v16243_v30 }
 0x97e   : > { %12109 = vmatprep.mubr.msk.f32.mxu0 %vm617_vm0, %v16251_v62 }
 0x981   : > { %12110 = vmatmul.mubr.msk.f32.gmra.mrb[48].mxu0 %vm617_vm0, %v16259_v37 }
 0x982   : > { %12112 = vmatprep.mubr.msk.f32.mxu0 %vm617_vm0, %v16504_v11 }
 0x985   : > { %12113 = vmatmul.mubr.msk.f32.gmra.mrb[50].mxu0 %vm617_vm0, %v5385_v3 }
 0x986   : > { %12203 = vmatprep.mubr.msk.f32.mxu0 %vm13864_vm2, %v17760_v57 }
 0xa1d   : > { %v12177_v48 = vpop.f32.mrb[36].mxu1 }
 0xa1e   : > { %v16832_v10 = vadd.f32 %v12177_v48, %v16829_v18  ;;  %v8475_v61 = vpop.f32.mrb[37].mxu1 }
 0xa1f   : > { %v16835_v21 = vadd.f32 %v16829_v18, %v8475_v61 }
 0xa20   : > { %v8608_v27 = vsel %vm617_vm0, %v16832_v10, 0.0 }
 0xa21   : > { %v8607_v1 = vsel %vm617_vm0, %v16835_v21, 0.0  ;;  %v12180_v40 = vpop.f32.mrb[38].mxu1 }
 0xa22   : > { %v8485_v35 = vpop.f32.mrb[39].mxu1  ;;  %v16842_v20 = vadd.f32 %v12180_v40, %v16829_v18  ;;  %v8609_v42 = vadd.f32 %v8608_v27, %v8607_v1 }
 0xa23   : > { %v16845_v2 = vadd.f32 %v16829_v18, %v8485_v35 }
 0xa24   : > { %v8612_v54 = vsel %vm617_vm0, %v16842_v20, 0.0 }
 0xa25   : > { %v8610_v0 = vsel %vm617_vm0, %v16845_v2, 0.0  ;;  %v12183_v13 = vpop.f32.mrb[40].mxu1 }
 0xa26   : > { %v8611_v49 = vadd.f32 %v8610_v0, %v8609_v42  ;;  %v8495_v24 = vpop.f32.mrb[41].mxu1  ;;  %v16852_v46 = vadd.f32 %v12183_v13, %v16829_v18 }
 0xa27   : > { %v16855_v16 = vadd.f32 %v16829_v18, %v8495_v24 }
 0xa28   : > { %v8613_v45 = vadd.f32 %v8612_v54, %v8611_v49  ;;  %v8616_v52 = vsel %vm617_vm0, %v16852_v46, 0.0 }
 0xa29   : > { %v8614_v38 = vsel %vm617_vm0, %v16855_v16, 0.0  ;;  %v12186_v58 = vpop.f32.mrb[42].mxu1 }
 0xa2a   : > { %v8615_v60 = vadd.f32 %v8614_v38, %v8613_v45  ;;  %v8505_v63 = vpop.f32.mrb[43].mxu1  ;;  %v16865_v4 = vadd.f32 %v12186_v58, %v16829_v18 }
 0xa2b   : > { %v16862_v34 = vadd.f32 %v16829_v18, %v8505_v63 }
 0xa2c   : > { %v8617_v25 = vadd.f32 %v8616_v52, %v8615_v60  ;;  %v8620_v9 = vsel %vm617_vm0, %v16865_v4, 0.0 }
 0xa2d   : > { %v8618_v7 = vsel %vm617_vm0, %v16862_v34, 0.0  ;;  %v12189_v30 = vpop.f32.mrb[44].mxu1 }
 0xa2e   : > { %v8619_v55 = vadd.f32 %v8618_v7, %v8617_v25  ;;  %v8515_v62 = vpop.f32.mrb[45].mxu1  ;;  %v16877_v31 = vadd.f32 %v12189_v30, %v16829_v18 }
 0xa2f   : > { %v16870_v37 = vadd.f32 %v16829_v18, %v8515_v62 }
 0xa30   : > { %v8621_v53 = vadd.f32 %v8620_v9, %v8619_v55  ;;  %v8624_v47 = vsel %vm617_vm0, %v16877_v31, 0.0 }
 0xa31   : > { %v12192_v43 = vpop.f32.mrb[46].mxu1  ;;  %v8622_v8 = vsel %vm617_vm0, %v16870_v37, 0.0 }
 0xa32   : > { %v8525_v59 = vpop.f32.mrb[47].mxu1  ;;  %v8623_v26 = vadd.f32 %v8622_v8, %v8621_v53  ;;  %v16887_v23 = vadd.f32 %v12192_v43, %v16829_v18 }
 0xa33   : > { %v16880_v14 = vadd.f32 %v16829_v18, %v8525_v59 }
 0xa34   : > { %v8625_v32 = vadd.f32 %v8624_v47, %v8623_v26  ;;  %v8628_v56 = vsel %vm617_vm0, %v16887_v23, 0.0 }
 0xa35   : > { %v12195_v6 = vpop.f32.mrb[48].mxu1  ;;  %v8626_v15 = vsel %vm617_vm0, %v16880_v14, 0.0 }
 0xa36   : > { %v8535_v51 = vpop.f32.mrb[49].mxu1  ;;  %v8627_v44 = vadd.f32 %v8626_v15, %v8625_v32  ;;  %v16915_v42 = vadd.f32 %v12195_v6, %v16829_v18 }
 0xa37   : > { %v16896_v19 = vadd.f32 %v16829_v18, %v8535_v51 }
 0xa38   : > { %v8629_v39 = vadd.f32 %v8628_v56, %v8627_v44  ;;  %v8632_v52 = vsel %vm617_vm0, %v16915_v42, 0.0 }
 0xa39   : > { %v12198_v36 = vpop.f32.mrb[50].mxu1  ;;  %v8630_v27 = vsel %vm617_vm0, %v16896_v19, 0.0 }
 0xa3a   : > { %v8545_v11 = vpop.f32.mrb[51].mxu1  ;;  %v8631_v49 = vadd.f32 %v8630_v27, %v8629_v39  ;;  %v16945_v6 = vadd.f32 %v12198_v36, %v16829_v18 }
 0xa3b   : > { %v16926_v38 = vadd.f32 %v16829_v18, %v8545_v11 }
 0xa3c   : > { %v12093_v12 = vpop.f32.mrb[36].mxu0  ;;  %v8633_v30 = vadd.f32 %v8632_v52, %v8631_v49  ;;  %v8636_v36 = vsel %vm617_vm0, %v16945_v6, 0.0 }
 0xa3d   : > { %v16890_v28 = vadd.f32 %v12093_v12, %v16829_v18  ;;  %v7989_v33 = vpop.f32.mrb[37].mxu0  ;;  %v8634_v43 = vsel %vm617_vm0, %v16926_v38, 0.0 }
 0xa3e   : > { %v16893_v5 = vadd.f32 %v16829_v18, %v7989_v33  ;;  %v8635_v47 = vadd.f32 %v8634_v43, %v8633_v30 }
 0xa3f   : > { %v8571_v41 = vsel %vm617_vm0, %v16890_v28, 0.0 }
 0xa40   : > { %v8570_v3 = vsel %vm617_vm0, %v16893_v5, 0.0  ;;  %v12096_v22 = vpop.f32.mrb[38].mxu0 }
 0xa41   : > { %v7999_v29 = vpop.f32.mrb[39].mxu0  ;;  %v16905_v48 = vadd.f32 %v12096_v22, %v16829_v18  ;;  %v8572_v1 = vadd.f32 %v8571_v41, %v8570_v3  ;;  %v8637_v22 = vadd.f32 %v8636_v36, %v8635_v47 }
 0xa42   : > { %v16908_v61 = vadd.f32 %v16829_v18, %v7999_v29 }
 0xa43   : > { %v8575_v24 = vsel %vm617_vm0, %v16905_v48, 0.0 }
 0xa44   : > { %v8573_v40 = vsel %vm617_vm0, %v16908_v61, 0.0  ;;  %v12099_v35 = vpop.f32.mrb[40].mxu0 }
 0xa45   : > { %v8574_v0 = vadd.f32 %v8573_v40, %v8572_v1  ;;  %v8009_v13 = vpop.f32.mrb[41].mxu0  ;;  %v16920_v54 = vadd.f32 %v12099_v35, %v16829_v18 }
 0xa46   : > { %v16923_v45 = vadd.f32 %v16829_v18, %v8009_v13  ;;  %v8638_v13 = vrot.slane %v8637_v22, 4 }
 0xa47   : > { %v8576_v58 = vadd.f32 %v8575_v24, %v8574_v0  ;;  %v8579_v55 = vsel %vm617_vm0, %v16920_v54, 0.0 }
 0xa48   : > { %v8577_v60 = vsel %vm617_vm0, %v16923_v45, 0.0  ;;  %v12102_v63 = vpop.f32.mrb[42].mxu0  ;;  %v8639_v30 = vadd.f32 %v8638_v13, %v8637_v22 }
 0xa49   : > { %v8578_v25 = vadd.f32 %v8577_v60, %v8576_v58  ;;  %v8019_v7 = vpop.f32.mrb[43].mxu0  ;;  %v16935_v62 = vadd.f32 %v12102_v63, %v16829_v18 }
 0xa4a   : > { %v16938_v9 = vadd.f32 %v16829_v18, %v8019_v7 }
 0xa4b   : > { %v8580_v53 = vadd.f32 %v8579_v55, %v8578_v25  ;;  %v8583_v32 = vsel %vm617_vm0, %v16935_v62, 0.0 }
 0xa4c   : > { %v8581_v59 = vsel %vm617_vm0, %v16938_v9, 0.0  ;;  %v12105_v8 = vpop.f32.mrb[44].mxu0 }
 0xa4d   : > { %v8582_v26 = vadd.f32 %v8581_v59, %v8580_v53  ;;  %v8029_v51 = vpop.f32.mrb[45].mxu0  ;;  %v16950_v11 = vadd.f32 %v12105_v8, %v16829_v18 }
 0xa4e   : > { %v16953_v15 = vadd.f32 %v16829_v18, %v8029_v51  ;;  %v8640_v51 = vrot.slane %v8639_v30, 2 }
 0xa4f   : > { %v8584_v12 = vadd.f32 %v8583_v32, %v8582_v26  ;;  %v8587_v56 = vsel %vm617_vm0, %v16950_v11, 0.0 }
 0xa50   : > { %v8585_v33 = vsel %vm617_vm0, %v16953_v15, 0.0  ;;  %v12108_v44 = vpop.f32.mrb[46].mxu0 }
 0xa51   : > { %v8586_v41 = vadd.f32 %v8585_v33, %v8584_v12  ;;  %v8039_v3 = vpop.f32.mrb[47].mxu0  ;;  %v16962_v29 = vadd.f32 %v12108_v44, %v16829_v18  ;;  %v8641_v33 = vadd.f32 %v8640_v51, %v8639_v30 }
 0xa52   : > { %v16965_v39 = vadd.f32 %v16829_v18, %v8039_v3 }
 0xa53   : > { %v8588_v27 = vadd.f32 %v8587_v56, %v8586_v41  ;;  %v8591_v49 = vsel %vm617_vm0, %v16962_v29, 0.0  ;;  %v8642_v41 = vrot.slane %v8641_v33, 1 }
 0xa54   : > { %v8589_v1 = vsel %vm617_vm0, %v16965_v39, 0.0  ;;  %v12111_v40 = vpop.f32.mrb[48].mxu0 }
 0xa55   : > { %v8590_v35 = vadd.f32 %v8589_v1, %v8588_v27  ;;  %v8049_v0 = vpop.f32.mrb[49].mxu0  ;;  %v16972_v24 = vadd.f32 %v12111_v40, %v16829_v18  ;;  %v8643_v56 = vadd.f32 %v8642_v41, %v8641_v33 }
 0xa56   : > { %v16975_v58 = vadd.f32 %v16829_v18, %v8049_v0 }
 0xa57   : > { %v8592_v60 = vadd.f32 %v8591_v49, %v8590_v35  ;;  %v8595_v55 = vsel %vm617_vm0, %v16972_v24, 0.0  ;;  %v17763_v49 = vld [vmem:[#allocation36_spill] sm:$0xff] }
 0xa58   : > { %v8593_v63 = vsel %vm617_vm0, %v16975_v58, 0.0  ;;  %v12114_v52 = vpop.f32.mrb[50].mxu0 }
 0xa59   : > { %v8594_v25 = vadd.f32 %v8593_v63, %v8592_v60  ;;  %v8059_v7 = vpop.f32.mrb[51].mxu0  ;;  %v16982_v43 = vadd.f32 %v12114_v52, %v16829_v18 }
 0xa5a   : > { %v16985_v53 = vadd.f32 %v16829_v18, %v8059_v7 }
 0xa5b   : > { %v8596_v59 = vadd.f32 %v8595_v55, %v8594_v25  ;;  %v8599_v47 = vsel %vm617_vm0, %v16982_v43, 0.0 }
 0xa5c   : > { %v8597_v8 = vsel %vm617_vm0, %v16985_v53, 0.0 }
 0xa5d   : > { %v8598_v26 = vadd.f32 %v8597_v8, %v8596_v59 }
 0xa5f   : > { %v8600_v32 = vadd.f32 %v8599_v47, %v8598_v26 }
 0xa61   : > { %v8601_v12 = vrot.slane %v8600_v32, 4 }
 0xa63   : > { %v8602_v44 = vadd.f32 %v8601_v12, %v8600_v32 }
 0xa65   : > { %v8603_v36 = vrot.slane %v8602_v44, 2 }
 0xa67   : > { %v8604_v3 = vadd.f32 %v8603_v36, %v8602_v44 }
 0xa69   : > { %v8605_v22 = vrot.slane %v8604_v3, 1 }
 0xa6b   : > { %v8606_v18 = vadd.f32 %v8605_v22, %v8604_v3 }
 0xa6d   : > { %v8644_v27 = vadd.f32 %v8643_v56, %v8606_v18 }
 0xa6f   : > { %12204 = vmatmul.mubr.msk.f32.vlgmr.msra.gmra.mrb[52].mxu0 %vm617_vm0, %v8644_v27 }
 0xa70   : > { %12378 = vmatpush3.bf16.msra.mxu0 %v16820_v17  ;;  %12215 = vmatprep.mubr.msk.f32.mxu0 %vm13864_vm2, %v17760_v57 }
 0xb42   : > { %v8716_v1 = vpop.f32.mrb[52].mxu0 }
 0xb43   : > { %v8720_v40 = vmul.f32 0.0009765625, %v8716_v1  ;;  %v12205_v35 = vpop.f32.mrb[53].mxu0 }
 0xb45   : > { %12209 = vmatmul.mubr.msk.f32.vlgmr.msra.gmra.mrb[52].mxu1 %vm4643_vm4, %v8720_v40 }
 0xb46   : > { %12219 = vmatpush3.msk.msra.mxu1 %vm4647_vm3, %v16824_v50  ;;  %12220 = vmatprep.mubr.msk.f32.mxu1 %vm13864_vm2, %v17760_v57 }
 0xc18   : > { %v8794_v0 = vpop.f32.mrb[52].mxu1 }
 0xc19   : > { %v12210_v13 = vpop.f32.mrb[53].mxu1  ;;  %v17001_v60 = vrot.slane %v8794_v0, %v17763_v49 }
 0xc1b   : > { %v17005_v17 = vsub.f32 %v16893_v5, %v17001_v60  ;;  %v17009_v63 = vsub.f32 %v16890_v28, %v17001_v60  ;;  %v17013_v52 = vsub.f32 %v16908_v61, %v17001_v60  ;;  %v17017_v57 = vsub.f32 %v16905_v48, %v17001_v60 }
 0xc1c   : > { %v17021_v50 = vsub.f32 %v16835_v21, %v17001_v60  ;;  %v17025_v5 = vsub.f32 %v16832_v10, %v17001_v60  ;;  %v17033_v61 = vsub.f32 %v16923_v45, %v17001_v60  ;;  %v17037_v48 = vsub.f32 %v16845_v2, %v17001_v60 }
 0xc1d   : > { %v8834_v28 = vmul.f32 %v17005_v17, %v17005_v17  ;;  %v8835_v25 = vmul.f32 %v17009_v63, %v17009_v63  ;;  %v8836_v21 = vmul.f32 %v17013_v52, %v17013_v52  ;;  %v17043_v10 = vsub.f32 %v16920_v54, %v17001_v60 }
 0xc1e   : > { %v17047_v7 = vsub.f32 %v16842_v20, %v17001_v60  ;;  %v8837_v30 = vmul.f32 %v17017_v57, %v17017_v57  ;;  %v8887_v45 = vmul.f32 %v17021_v50, %v17021_v50  ;;  %v8888_v2 = vmul.f32 %v17025_v5, %v17025_v5 }
 0xc1f   : > { %v8850_v55 = vsel %vm617_vm0, %v8834_v28, 0.0  ;;  %v8851_v59 = vsel %vm617_vm0, %v8835_v25, 0.0  ;;  %v17059_v54 = vsub.f32 %v16938_v9, %v17001_v60  ;;  %v17063_v20 = vsub.f32 %v16855_v16, %v17001_v60 }
 0xc20   : > { %v8852_v8 = vadd.f32 %v8851_v59, %v8850_v55  ;;  %v8838_v26 = vmul.f32 %v17033_v61, %v17033_v61  ;;  %v8889_v51 = vmul.f32 %v17037_v48, %v17037_v48  ;;  %v8853_v47 = vsel %vm617_vm0, %v8836_v21, 0.0 }
 0xc21   : > { %v17072_v32 = vsub.f32 %v16935_v62, %v17001_v60  ;;  %v17076_v9 = vsub.f32 %v16852_v46, %v17001_v60  ;;  %v8839_v16 = vmul.f32 %v17043_v10, %v17043_v10  ;;  %v8890_v33 = vmul.f32 %v17047_v7, %v17047_v7 }
 0xc22   : > { %v8854_v12 = vadd.f32 %v8853_v47, %v8852_v8  ;;  %v8855_v44 = vsel %vm617_vm0, %v8837_v30, 0.0  ;;  %v8903_v36 = vsel %vm617_vm0, %v8887_v45, 0.0  ;;  %v8904_v41 = vsel %vm617_vm0, %v8888_v2, 0.0 }
 0xc23   : > { %v17087_v62 = vsub.f32 %v16953_v15, %v17001_v60  ;;  %v17091_v46 = vsub.f32 %v16862_v34, %v17001_v60  ;;  %v8905_v22 = vadd.f32 %v8904_v41, %v8903_v36  ;;  %v8840_v56 = vmul.f32 %v17059_v54, %v17059_v54 }
 0xc24   : > { %v8856_v3 = vadd.f32 %v8855_v44, %v8854_v12  ;;  %v8891_v18 = vmul.f32 %v17063_v20, %v17063_v20  ;;  %v8857_v27 = vsel %vm617_vm0, %v8838_v26, 0.0  ;;  %v8906_v1 = vsel %vm617_vm0, %v8889_v51, 0.0 }
 0xc25   : > { %v17101_v15 = vsub.f32 %v16950_v11, %v17001_v60  ;;  %v17105_v34 = vsub.f32 %v16865_v4, %v17001_v60  ;;  %v8907_v35 = vadd.f32 %v8906_v1, %v8905_v22  ;;  %v8841_v0 = vmul.f32 %v17072_v32, %v17072_v32 }
 0xc26   : > { %v8858_v40 = vadd.f32 %v8857_v27, %v8856_v3  ;;  %v8892_v13 = vmul.f32 %v17076_v9, %v17076_v9  ;;  %v8859_v28 = vsel %vm617_vm0, %v8839_v16, 0.0  ;;  %v8908_v25 = vsel %vm617_vm0, %v8890_v33, 0.0 }
 0xc27   : > { %v17115_v11 = vsub.f32 %v16965_v39, %v17001_v60  ;;  %v17119_v4 = vsub.f32 %v16870_v37, %v17001_v60  ;;  %v8909_v30 = vadd.f32 %v8908_v25, %v8907_v35  ;;  %v8842_v45 = vmul.f32 %v17087_v62, %v17087_v62 }
 0xc28   : > { %v8860_v21 = vadd.f32 %v8859_v28, %v8858_v40  ;;  %v8893_v2 = vmul.f32 %v17091_v46, %v17091_v46  ;;  %v8861_v55 = vsel %vm617_vm0, %v8840_v56, 0.0  ;;  %v8910_v59 = vsel %vm617_vm0, %v8891_v18, 0.0 }
 0xc29   : > { %v17129_v39 = vsub.f32 %v16962_v29, %v17001_v60  ;;  %v17133_v37 = vsub.f32 %v16877_v31, %v17001_v60  ;;  %v8911_v26 = vadd.f32 %v8910_v59, %v8909_v30  ;;  %v8843_v51 = vmul.f32 %v17101_v15, %v17101_v15 }
 0xc2a   : > { %v8862_v8 = vadd.f32 %v8861_v55, %v8860_v21  ;;  %v8894_v47 = vmul.f32 %v17105_v34, %v17105_v34  ;;  %v8863_v16 = vsel %vm617_vm0, %v8841_v0, 0.0  ;;  %v8912_v12 = vsel %vm617_vm0, %v8892_v13, 0.0 }
 0xc2b   : > { %v17143_v29 = vsub.f32 %v16975_v58, %v17001_v60  ;;  %v17147_v31 = vsub.f32 %v16880_v14, %v17001_v60  ;;  %v8913_v44 = vadd.f32 %v8912_v12, %v8911_v26  ;;  %v8844_v36 = vmul.f32 %v17115_v11, %v17115_v11 }
 0xc2c   : > { %v8864_v33 = vadd.f32 %v8863_v16, %v8862_v8  ;;  %v8895_v41 = vmul.f32 %v17119_v4, %v17119_v4  ;;  %v8865_v3 = vsel %vm617_vm0, %v8842_v45, 0.0  ;;  %v8914_v22 = vsel %vm617_vm0, %v8893_v2, 0.0 }
 0xc2d   : > { %v17157_v58 = vsub.f32 %v16972_v24, %v17001_v60  ;;  %v17161_v14 = vsub.f32 %v16887_v23, %v17001_v60  ;;  %v8915_v18 = vadd.f32 %v8914_v22, %v8913_v44  ;;  %v8845_v27 = vmul.f32 %v17129_v39, %v17129_v39 }
 0xc2e   : > { %v8866_v56 = vadd.f32 %v8865_v3, %v8864_v33  ;;  %v8896_v1 = vmul.f32 %v17133_v37, %v17133_v37  ;;  %v8867_v40 = vsel %vm617_vm0, %v8843_v51, 0.0  ;;  %v8916_v35 = vsel %vm617_vm0, %v8894_v47, 0.0 }
 0xc2f   : > { %v17171_v24 = vsub.f32 %v16985_v53, %v17001_v60  ;;  %v17175_v23 = vsub.f32 %v16896_v19, %v17001_v60  ;;  %v8917_v13 = vadd.f32 %v8916_v35, %v8915_v18  ;;  %v8846_v28 = vmul.f32 %v17143_v29, %v17143_v29 }
 0xc30   : > { %v8868_v0 = vadd.f32 %v8867_v40, %v8866_v56  ;;  %v8897_v25 = vmul.f32 %v17147_v31, %v17147_v31  ;;  %v8869_v21 = vsel %vm617_vm0, %v8844_v36, 0.0  ;;  %v8918_v30 = vsel %vm617_vm0, %v8895_v41, 0.0 }
 0xc31   : > { %v17185_v53 = vsub.f32 %v16982_v43, %v17001_v60  ;;  %v17189_v19 = vsub.f32 %v16915_v42, %v17001_v60  ;;  %v8919_v2 = vadd.f32 %v8918_v30, %v8917_v13  ;;  %v8847_v55 = vmul.f32 %v17157_v58, %v17157_v58 }
 0xc32   : > { %v8870_v45 = vadd.f32 %v8869_v21, %v8868_v0  ;;  %v8898_v59 = vmul.f32 %v17161_v14, %v17161_v14  ;;  %v8871_v8 = vsel %vm617_vm0, %v8845_v27, 0.0  ;;  %v8920_v26 = vsel %vm617_vm0, %v8896_v1, 0.0 }
 0xc33   : > { %v17199_v43 = vsub.f32 %v16926_v38, %v17001_v60  ;;  %v8921_v47 = vadd.f32 %v8920_v26, %v8919_v2  ;;  %v8848_v42 = vmul.f32 %v17171_v24, %v17171_v24  ;;  %v8899_v16 = vmul.f32 %v17175_v23, %v17175_v23 }
 0xc34   : > { %v8872_v51 = vadd.f32 %v8871_v8, %v8870_v45  ;;  %v8873_v12 = vsel %vm617_vm0, %v8846_v28, 0.0  ;;  %v8922_v33 = vsel %vm617_vm0, %v8897_v25, 0.0  ;;  %v17209_v44 = vsub.f32 %v16945_v6, %v17001_v60 }
 0xc35   : > { %v8923_v41 = vadd.f32 %v8922_v33, %v8921_v47  ;;  %v8849_v38 = vmul.f32 %v17185_v53, %v17185_v53  ;;  %v8900_v3 = vmul.f32 %v17189_v19, %v17189_v19  ;;  %v8875_v22 = vsel %vm617_vm0, %v8847_v55, 0.0 }
 0xc36   : > { %v8874_v36 = vadd.f32 %v8873_v12, %v8872_v51  ;;  %v8924_v56 = vsel %vm617_vm0, %v8898_v59, 0.0  ;;  %v8901_v1 = vmul.f32 %v17199_v43, %v17199_v43  ;;  %v8877_v6 = vsel %vm617_vm0, %v8848_v42, 0.0 }
 0xc37   : > { %v8925_v27 = vadd.f32 %v8924_v56, %v8923_v41  ;;  %v8926_v60 = vsel %vm617_vm0, %v8899_v16, 0.0  ;;  %v8902_v0 = vmul.f32 %v17209_v44, %v17209_v44  ;;  %v8879_v13 = vsel %vm617_vm0, %v8849_v38, 0.0 }
 0xc38   : > { %v8876_v18 = vadd.f32 %v8875_v22, %v8874_v36  ;;  %v8928_v28 = vsel %vm617_vm0, %v8900_v3, 0.0  ;;  %v8930_v30 = vsel %vm617_vm0, %v8901_v1, 0.0 }
 0xc39   : > { %v8927_v35 = vadd.f32 %v8926_v60, %v8925_v27  ;;  %v8932_v55 = vsel %vm617_vm0, %v8902_v0, 0.0 }
 0xc3a   : > { %v8878_v40 = vadd.f32 %v8877_v6, %v8876_v18 }
 0xc3b   : > { %v8929_v21 = vadd.f32 %v8928_v28, %v8927_v35 }
 0xc3c   : > { %v8880_v25 = vadd.f32 %v8879_v13, %v8878_v40 }
 0xc3d   : > { %v8931_v2 = vadd.f32 %v8930_v30, %v8929_v21 }
 0xc3e   : > { %v8881_v45 = vrot.slane %v8880_v25, 4 }
 0xc3f   : > { %v8933_v8 = vadd.f32 %v8932_v55, %v8931_v2  ;;  %v17238_v2 = vld [vmem:[#allocation18] ss:$0 sm:$0xff] }
 0xc40   : > { %v8882_v59 = vadd.f32 %v8881_v45, %v8880_v25 }
 0xc41   : > { %v8934_v51 = vrot.slane %v8933_v8, 4 }
 0xc42   : > { %v8883_v26 = vrot.slane %v8882_v59, 2 }
 0xc43   : > { %v8935_v42 = vadd.f32 %v8934_v51, %v8933_v8 }
 0xc44   : > { %v8884_v47 = vadd.f32 %v8883_v26, %v8882_v59 }
 0xc45   : > { %v8936_v12 = vrot.slane %v8935_v42, 2 }
 0xc46   : > { %v8885_v16 = vrot.slane %v8884_v47, 1 }
 0xc47   : > { %v8937_v33 = vadd.f32 %v8936_v12, %v8935_v42 }
 0xc48   : > { %v8886_v41 = vadd.f32 %v8885_v16, %v8884_v47 }
 0xc49   : > { %v8938_v36 = vrot.slane %v8937_v33, 1 }
 0xc4b   : > { %v8939_v38 = vadd.f32 %v8938_v36, %v8937_v33 }
 0xc4d   : > { %v8940_v3 = vadd.f32 %v8939_v38, %v8886_v41 }
 0xc4f   : > { %12216 = vmatmul.mubr.msk.f32.vlgmr.msra.gmra.mrb[54].mxu0 %vm617_vm0, %v8940_v3 }
 0xd22   : > { %v9010_v22 = vpop.f32.mrb[54].mxu0 }
 0xd23   : > { %v9014_v56 = vmul.f32 0.0009765625, %v9010_v22  ;;  %v12217_v18 = vpop.f32.mrb[55].mxu0 }
 0xd25   : > { %12221 = vmatmul.mubr.msk.f32.vlgmr.msra.gmra.mrb[54].mxu1 %vm4643_vm4, %v9014_v56 }
 0xdf8   : > { %v9084_v27 = vpop.f32.mrb[54].mxu1 }
 0xdf9   : > { %v12222_v1 = vpop.f32.mrb[55].mxu1  ;;  %v9085_v6 = vadd.f32 1e-05, %v9084_v27 }
 0xdfb   : > { %13259 = vrsqrt.f32 %v9085_v6 }
 0xe05   : > { %v13260_v60 = vpop.eup %13259 }
 0xe06   : > { %v9094_v40 = vrot.slane %v13260_v60, %v17763_v49 }
 0xe08   : > { %v9095_v35 = vmul.f32 %v9094_v40, %v17005_v17  ;;  %v9096_v0 = vmul.f32 %v9094_v40, %v17009_v63  ;;  %v9097_v13 = vmul.f32 %v9094_v40, %v17013_v52  ;;  %v9098_v28 = vmul.f32 %v9094_v40, %v17017_v57 }
 0xe09   : > { %v9099_v25 = vmul.f32 %v9094_v40, %v17033_v61  ;;  %v9100_v21 = vmul.f32 %v9094_v40, %v17043_v10  ;;  %v9101_v30 = vmul.f32 %v9094_v40, %v17059_v54  ;;  %v9102_v45 = vmul.f32 %v9094_v40, %v17072_v32 }
 0xe0a   : > { %v9103_v49 = vmul.f32 %v9094_v40, %v17087_v62  ;;  %v9104_v17 = vmul.f32 %v9094_v40, %v17101_v15  ;;  %v9105_v63 = vmul.f32 %v9094_v40, %v17115_v11  ;;  %v9106_v52 = vmul.f32 %v9094_v40, %v17129_v39 }
 0xe0b   : > { %v9107_v57 = vmul.f32 %v9094_v40, %v17143_v29  ;;  %v9108_v61 = vmul.f32 %v9094_v40, %v17157_v58  ;;  %v9109_v10 = vmul.f32 %v9094_v40, %v17171_v24  ;;  %v9110_v54 = vmul.f32 %v9094_v40, %v17185_v53  ;;  %v17258_v24 = vld [vmem:[#allocation20] ss:$0 sm:$0xff] }
 0xe0c   : > { %v9299_v32 = vmul.f32 %v9094_v40, %v17021_v50  ;;  %v9300_v55 = vmul.f32 %v9094_v40, %v17025_v5  ;;  %v9301_v62 = vmul.f32 %v9094_v40, %v17037_v48  ;;  %v9302_v15 = vmul.f32 %v9094_v40, %v17047_v7 }
 0xe0d   : > { %v17253_v11 = vmul.f32 %v9094_v40, %v17063_v20  ;;  %v9117_v39 = vmul.f32 %v17238_v2, %v9095_v35  ;;  %v9118_v29 = vmul.f32 %v17238_v2, %v9096_v0  ;;  %v9119_v58 = vmul.f32 %v17238_v2, %v9097_v13 }
 0xe0e   : > { %v17261_v53 = vmul.f32 %v9094_v40, %v17076_v9  ;;  %v17264_v50 = vmul.f32 %v9094_v40, %v17091_v46  ;;  %v17267_v5 = vmul.f32 %v9094_v40, %v17105_v34  ;;  %v9120_v48 = vmul.f32 %v17238_v2, %v9098_v28 }
 0xe0f   : > { %v17271_v7 = vmul.f32 %v9094_v40, %v17119_v4  ;;  %v17274_v20 = vmul.f32 %v9094_v40, %v17133_v37  ;;  %v17277_v59 = vmul.f32 %v9094_v40, %v17147_v31  ;;  %v9121_v9 = vmul.f32 %v17238_v2, %v9099_v25 }
 0xe10   : > { %v17281_v8 = vmul.f32 %v9094_v40, %v17161_v14  ;;  %v17284_v46 = vmul.f32 %v9094_v40, %v17175_v23  ;;  %v9122_v34 = vmul.f32 %v17238_v2, %v9100_v21  ;;  %v9123_v26 = vmul.f32 %v17238_v2, %v9101_v30 }
 0xe11   : > { %v17289_v4 = vmul.f32 %v9094_v40, %v17189_v19  ;;  %v17292_v37 = vadd.f32 %v17258_v24, %v9117_v39  ;;  %v17295_v31 = vadd.f32 %v17258_v24, %v9118_v29  ;;  %v17298_v51 = vadd.f32 %v17258_v24, %v9119_v58 }
 0xe12   : > { %v17301_v14 = vmul.f32 %v9094_v40, %v17199_v43  ;;  %v17304_v23 = vmul.f32 %v9094_v40, %v17209_v44  ;;  %v9124_v47 = vmul.f32 %v17238_v2, %v9102_v45  ;;  %v17308_v19 = vadd.f32 %v17258_v24, %v9120_v48 }
 0xe13   : > { %v9125_v42 = vmul.f32 %v17238_v2, %v9103_v49  ;;  %v9126_v16 = vmul.f32 %v17238_v2, %v9104_v17  ;;  %v9127_v12 = vmul.f32 %v17238_v2, %v9105_v63  ;;  %v17314_v33 = vadd.f32 %v17258_v24, %v9121_v9 }
 0xe14   : > { %v9128_v43 = vmul.f32 %v17238_v2, %v9106_v52  ;;  %v9129_v36 = vmul.f32 %v17238_v2, %v9107_v57  ;;  %v17319_v44 = vadd.f32 %v17258_v24, %v9122_v34  ;;  %v17322_v41 = vadd.f32 %v17258_v24, %v9123_v26 }
 0xe15   : > { %v9130_v38 = vmul.f32 %v17238_v2, %v9108_v61  ;;  %v9155_v3 = vsub.f32 0.0, %v17292_v37  ;;  %v9156_v22 = vsub.f32 0.0, %v17295_v31  ;;  %v9157_v56 = vsub.f32 0.0, %v17298_v51 }
 0xe16   : > { %v9131_v18 = vmul.f32 %v17238_v2, %v9109_v10  ;;  %v9132_v27 = vmul.f32 %v17238_v2, %v9110_v54  ;;  %v17331_v1 = vadd.f32 %v17258_v24, %v9124_v47  ;;  %v9158_v6 = vsub.f32 0.0, %v17308_v19 }
 0xe17   : > { %v17335_v60 = vmul.f32 %v17238_v2, %v9299_v32  ;;  %v17338_v40 = vmul.f32 %v17238_v2, %v9300_v55  ;;  %v17341_v35 = vadd.f32 %v17258_v24, %v9125_v42  ;;  %v9159_v0 = vsub.f32 0.0, %v17314_v33 }
 0xe18   : > { %v17345_v13 = vmul.f32 %v17238_v2, %v9301_v62  ;;  %v17348_v28 = vadd.f32 %v17258_v24, %v9126_v16  ;;  %v9160_v25 = vsub.f32 0.0, %v17319_v44  ;;  %v9161_v21 = vsub.f32 0.0, %v17322_v41 }
 0xe19   : > { %v17353_v30 = vadd.f32 %v17258_v24, %v9127_v12  ;;  %v9171_v45 = vmul.f32 1.442695, %v9155_v3  ;;  %v9173_v49 = vmul.f32 1.442695, %v9156_v22  ;;  %v9175_v17 = vmul.f32 1.442695, %v9157_v56 }
 0xe1a   : > { %v17356_v63 = vmul.f32 %v17238_v2, %v9302_v15  ;;  %v17359_v52 = vadd.f32 %v17258_v24, %v9128_v43  ;;  %v9162_v57 = vsub.f32 0.0, %v17331_v1  ;;  %v9177_v61 = vmul.f32 1.442695, %v9158_v6 }
 0xe1b   : > { %v17363_v10 = vadd.f32 %v17258_v24, %v9129_v36  ;;  %v9163_v54 = vsub.f32 0.0, %v17341_v35  ;;  %13261 = vpow2.f32 %v9171_v45  ;;  %v9179_v32 = vmul.f32 1.442695, %v9159_v0 }
 0xe1c   : > { %v17367_v55 = vadd.f32 %v17258_v24, %v9130_v38  ;;  %v9164_v62 = vsub.f32 0.0, %v17348_v28  ;;  %13263 = vpow2.f32 %v9173_v49  ;;  %v9181_v15 = vmul.f32 1.442695, %v9160_v25 }
 0xe1d   : > { %v17371_v39 = vadd.f32 %v17258_v24, %v9131_v18  ;;  %v9165_v29 = vsub.f32 0.0, %v17353_v30  ;;  %13265 = vpow2.f32 %v9175_v17  ;;  %v9183_v58 = vmul.f32 1.442695, %v9161_v21 }
 0xe1e   : > { %v17375_v48 = vadd.f32 %v17258_v24, %v9132_v27  ;;  %v9166_v9 = vsub.f32 0.0, %v17359_v52  ;;  %13267 = vpow2.f32 %v9177_v61  ;;  %v9185_v34 = vmul.f32 1.442695, %v9162_v57 }
 0xe1f   : > { %v9319_v26 = vmul.f32 %v17238_v2, %v17253_v11  ;;  %v9167_v47 = vsub.f32 0.0, %v17363_v10  ;;  %13269 = vpow2.f32 %v9179_v32  ;;  %v9187_v42 = vmul.f32 1.442695, %v9163_v54 }
 0xe20   : > { %v9320_v16 = vmul.f32 %v17238_v2, %v17261_v53  ;;  %v9168_v12 = vsub.f32 0.0, %v17367_v55  ;;  %13271 = vpow2.f32 %v9181_v15  ;;  %v9189_v43 = vmul.f32 1.442695, %v9164_v62 }
 0xe21   : > { %v9321_v36 = vmul.f32 %v17238_v2, %v17264_v50  ;;  %v9169_v38 = vsub.f32 0.0, %v17371_v39  ;;  %13273 = vpow2.f32 %v9183_v58  ;;  %v9191_v3 = vmul.f32 1.442695, %v9165_v29 }
 0xe22   : > { %v9322_v11 = vmul.f32 %v17238_v2, %v17267_v5  ;;  %v9170_v22 = vsub.f32 0.0, %v17375_v48  ;;  %13275 = vpow2.f32 %v9185_v34  ;;  %v9193_v56 = vmul.f32 1.442695, %v9166_v9 }
 0xe23   : > { %v9323_v53 = vmul.f32 %v17238_v2, %v17271_v7  ;;  %v9324_v18 = vmul.f32 %v17238_v2, %v17274_v20  ;;  %13277 = vpow2.f32 %v9187_v42  ;;  %v9195_v27 = vmul.f32 1.442695, %v9167_v47 }
 0xe24   : > { %v9325_v50 = vmul.f32 %v17238_v2, %v17277_v59  ;;  %v9326_v6 = vmul.f32 %v17238_v2, %v17281_v8  ;;  %13279 = vpow2.f32 %v9189_v43  ;;  %v9197_v5 = vmul.f32 1.442695, %v9168_v12 }
 0xe25   : > { %v13262_v0 = vpop.eup %13261  ;;  %v9327_v25 = vmul.f32 %v17238_v2, %v17284_v46  ;;  %v9328_v7 = vmul.f32 %v17238_v2, %v17289_v4  ;;  %13281 = vpow2.f32 %v9191_v3  ;;  %v9199_v21 = vmul.f32 1.442695, %v9169_v38 }
 0xe26   : > { %v13264_v20 = vpop.eup %13263  ;;  %v9329_v45 = vmul.f32 %v17238_v2, %v17301_v14  ;;  %v9330_v59 = vmul.f32 %v17238_v2, %v17304_v23  ;;  %13283 = vpow2.f32 %v9193_v56  ;;  %v9201_v8 = vmul.f32 1.442695, %v9170_v22 }
 0xe27   : > { %v13266_v49 = vpop.eup %13265  ;;  %13285 = vpow2.f32 %v9195_v27  ;;  %v9203_v17 = vadd.f32 1.0, %v13262_v0  ;;  %v17408_v46 = vadd.f32 %v17258_v24, %v17335_v60  ;;  %v17412_v4 = vadd.f32 %v17258_v24, %v17338_v40 }
 0xe28   : > { %v13268_v57 = vpop.eup %13267  ;;  %13287 = vpow2.f32 %v9197_v5  ;;  %v9204_v61 = vadd.f32 1.0, %v13264_v20  ;;  %v17416_v14 = vadd.f32 %v17258_v24, %v17345_v13  ;;  %v17420_v2 = vadd.f32 %v17258_v24, %v17356_v63 }
 0xe29   : > { %v13270_v23 = vpop.eup %13269  ;;  %13289 = vpow2.f32 %v9199_v21  ;;  %v9205_v54 = vadd.f32 1.0, %v13266_v49  ;;  %v17423_v60 = vadd.f32 %v17258_v24, %v9319_v26  ;;  %v17426_v40 = vadd.f32 %v17258_v24, %v9320_v16 }
 0xe2a   : > { %v13272_v32 = vpop.eup %13271  ;;  %13291 = vpow2.f32 %v9201_v8  ;;  %v9206_v62 = vadd.f32 1.0, %v13268_v57  ;;  %v17429_v15 = vadd.f32 %v17258_v24, %v9321_v36  ;;  %v17432_v13 = vadd.f32 %v17258_v24, %v9322_v11 }
 0xe2b   : > { %v13274_v63 = vpop.eup %13273  ;;  %v9207_v29 = vadd.f32 1.0, %v13270_v23  ;;  %13293 = vrcp.f32 %v9203_v17  ;;  %v17435_v58 = vadd.f32 %v17258_v24, %v9323_v53  ;;  %v17438_v9 = vadd.f32 %v17258_v24, %v9324_v18 }
 0xe2c   : > { %v13276_v34 = vpop.eup %13275  ;;  %v9208_v26 = vadd.f32 1.0, %v13272_v32  ;;  %13295 = vrcp.f32 %v9204_v61  ;;  %v17441_v47 = vadd.f32 %v17258_v24, %v9325_v50  ;;  %v17444_v42 = vadd.f32 %v17258_v24, %v9326_v6 }
 0xe2d   : > { %v13278_v16 = vpop.eup %13277  ;;  %v9209_v12 = vadd.f32 1.0, %v13274_v63  ;;  %13297 = vrcp.f32 %v9205_v54  ;;  %v17447_v43 = vadd.f32 %v17258_v24, %v9327_v25  ;;  %v17450_v36 = vadd.f32 %v17258_v24, %v9328_v7 }
 0xe2e   : > { %v13280_v38 = vpop.eup %13279  ;;  %v9210_v3 = vadd.f32 1.0, %v13276_v34  ;;  %13299 = vrcp.f32 %v9206_v62  ;;  %v17453_v11 = vadd.f32 %v17258_v24, %v9329_v45  ;;  %v17456_v22 = vadd.f32 %v17258_v24, %v9330_v59 }
 0xe2f   : > { %v13282_v56 = vpop.eup %13281  ;;  %v9211_v53 = vadd.f32 1.0, %v13278_v16  ;;  %13301 = vrcp.f32 %v9207_v29  ;;  %v9347_v18 = vsub.f32 0.0, %v17408_v46  ;;  %v9348_v27 = vsub.f32 0.0, %v17412_v4 }
 0xe30   : > { %v13284_v50 = vpop.eup %13283  ;;  %v9212_v6 = vadd.f32 1.0, %v13280_v38  ;;  %13303 = vrcp.f32 %v9208_v26  ;;  %v9349_v5 = vsub.f32 0.0, %v17416_v14  ;;  %v9350_v0 = vsub.f32 0.0, %v17420_v2 }
 0xe31   : > { %v13286_v25 = vpop.eup %13285  ;;  %v9213_v7 = vadd.f32 1.0, %v13282_v56  ;;  %13305 = vrcp.f32 %v9209_v12  ;;  %v9351_v24 = vsub.f32 0.0, %v17423_v60  ;;  %v9352_v21 = vsub.f32 0.0, %v17426_v40 }
 0xe32   : > { %v13288_v20 = vpop.eup %13287  ;;  %v9214_v45 = vadd.f32 1.0, %v13284_v50  ;;  %13307 = vrcp.f32 %v9210_v3  ;;  %v9353_v59 = vsub.f32 0.0, %v17429_v15  ;;  %v9354_v8 = vsub.f32 0.0, %v17432_v13 }
 0xe33   : > { %v13290_v49 = vpop.eup %13289  ;;  %v9215_v17 = vadd.f32 1.0, %v13286_v25  ;;  %13309 = vrcp.f32 %v9211_v53  ;;  %v9355_v57 = vsub.f32 0.0, %v17435_v58  ;;  %v9356_v61 = vsub.f32 0.0, %v17438_v9  ;;  %v9251_v53 = vld [vmem:[%s14495_s25] sm:$0xff] }
 0xe34   : > { %v13292_v23 = vpop.eup %13291  ;;  %v9216_v54 = vadd.f32 1.0, %v13288_v20  ;;  %13311 = vrcp.f32 %v9212_v6  ;;  %v9357_v32 = vsub.f32 0.0, %v17441_v47  ;;  %v9358_v62 = vsub.f32 0.0, %v17444_v42  ;;  %v9252_v20 = vld [vmem:[%s14495_s25 + $0x8] sm:$0xff] }
 0xe35   : > { %v13294_v63 = vpop.eup %13293  ;;  %v9217_v29 = vadd.f32 1.0, %v13290_v49  ;;  %13313 = vrcp.f32 %v9213_v7  ;;  %v9359_v34 = vsub.f32 0.0, %v17447_v43  ;;  %v9360_v26 = vsub.f32 0.0, %v17450_v36 }
 0xe36   : > { %v13296_v16 = vpop.eup %13295  ;;  %v9218_v12 = vadd.f32 1.0, %v13292_v23  ;;  %13315 = vrcp.f32 %v9214_v45  ;;  %v9235_v38 = vmul.f32 %v13294_v63, %v17292_v37  ;;  %v9363_v25 = vmul.f32 1.442695, %v9347_v18  ;;  %v9253_v63 = vld [vmem:[%s14495_s25 + $0x10] sm:$0xff]  ;;  %v9254_v18 = vld [vmem:[%s14495_s25 + $0x18] sm:$0xff] }
 0xe37   : > { %v13298_v56 = vpop.eup %13297  ;;  %13317 = vrcp.f32 %v9215_v17  ;;  %v9236_v50 = vmul.f32 %v13296_v16, %v17295_v31  ;;  %v9365_v37 = vmul.f32 1.442695, %v9348_v27  ;;  %v9367_v16 = vmul.f32 1.442695, %v9349_v5 }
 0xe38   : > { %v13300_v7 = vpop.eup %13299  ;;  %13319 = vrcp.f32 %v9216_v54  ;;  %v9237_v45 = vmul.f32 %v13298_v56, %v17298_v51  ;;  %v9267_v49 = vadd.f32 %v9251_v53, %v9235_v38  ;;  %v9369_v51 = vmul.f32 1.442695, %v9350_v0  ;;  %v9255_v38 = vld [vmem:[%s14495_s25 + $0x20] sm:$0xff]  ;;  %v9256_v56 = vld [vmem:[%s14495_s25 + $0x28] sm:$0xff] }
 0xe39   : > { %v13302_v23 = vpop.eup %13301  ;;  %13321 = vrcp.f32 %v9217_v29  ;;  %v9238_v17 = vmul.f32 %v13300_v7, %v17308_v19  ;;  %v9268_v31 = vadd.f32 %v9252_v20, %v9236_v50  ;;  %v9371_v5 = vmul.f32 1.442695, %v9351_v24  ;;  %v9257_v50 = vld [vmem:[%s14495_s25 + $0x30] sm:$0xff] }
 0xe3a   : > { %v13304_v6 = vpop.eup %13303  ;;  %13323 = vrcp.f32 %v9218_v12  ;;  %v9239_v54 = vmul.f32 %v13302_v23, %v17314_v33  ;;  %v9269_v3 = vadd.f32 %v9253_v63, %v9237_v45  ;;  %9283 = vst.msk [vmem:[%s14495_s25] sm:$0xff] %vm617_vm0, %v9267_v49  ;;  %v9373_v0 = vmul.f32 1.442695, %v9352_v21  ;;  %v9259_v45 = vld [vmem:[%s14495_s25 + $0x40] sm:$0xff]  ;;  %v9260_v23 = vld [vmem:[%s14495_s25 + $0x48] sm:$0xff] }
 0xe3b   : > { %v13306_v27 = vpop.eup %13305  ;;  %v9240_v29 = vmul.f32 %v13304_v6, %v17319_v44  ;;  %v9270_v19 = vadd.f32 %v9254_v18, %v9238_v17  ;;  %9284 = vst.msk [vmem:[%s14495_s25 + $0x8] sm:$0xff] %vm617_vm0, %v9268_v31  ;;  %13325 = vpow2.f32 %v9363_v25  ;;  %v9261_v31 = vld [vmem:[%s14495_s25 + $0x50] sm:$0xff] }
 0xe3c   : > { %v13308_v12 = vpop.eup %13307  ;;  %v9241_v33 = vmul.f32 %v13306_v27, %v17322_v41  ;;  %v9271_v53 = vadd.f32 %v9255_v38, %v9239_v54  ;;  %9285 = vst.msk [vmem:[%s14495_s25 + $0x10] sm:$0xff] %vm617_vm0, %v9269_v3  ;;  %13327 = vpow2.f32 %v9365_v37  ;;  %v9375_v41 = vmul.f32 1.442695, %v9353_v59  ;;  %v9258_v3 = vld [vmem:[%s14495_s25 + $0x38] sm:$0xff]  ;;  %v9263_v38 = vld [vmem:[%s14495_s25 + $0x60] sm:$0xff] }
 0xe3d   : > { %v13310_v44 = vpop.eup %13309  ;;  %v9242_v6 = vmul.f32 %v13308_v12, %v17331_v1  ;;  %v9272_v24 = vadd.f32 %v9256_v56, %v9240_v29  ;;  %9286 = vst.msk [vmem:[%s14495_s25 + $0x18] sm:$0xff] %vm617_vm0, %v9270_v19  ;;  %13329 = vpow2.f32 %v9367_v16  ;;  %v9377_v1 = vmul.f32 1.442695, %v9354_v8  ;;  %v9262_v54 = vld [vmem:[%s14495_s25 + $0x58] sm:$0xff] }
 0xe3e   : > { %v13312_v25 = vpop.eup %13311  ;;  %v9243_v7 = vmul.f32 %v13310_v44, %v17341_v35  ;;  %v9273_v21 = vadd.f32 %v9257_v50, %v9241_v33  ;;  %9287 = vst.msk [vmem:[%s14495_s25 + $0x20] sm:$0xff] %vm617_vm0, %v9271_v53  ;;  %13331 = vpow2.f32 %v9369_v51  ;;  %v9379_v35 = vmul.f32 1.442695, %v9355_v57  ;;  %v9265_v33 = vld [vmem:[%s14495_s25 + $0x70] sm:$0xff]  ;;  %v9266_v50 = vld [vmem:[%s14495_s25 + $0x78] sm:$0xff] }
 0xe3f   : > { %v13314_v20 = vpop.eup %13313  ;;  %v9244_v49 = vmul.f32 %v13312_v25, %v17348_v28  ;;  %v9274_v59 = vadd.f32 %v9258_v3, %v9242_v6  ;;  %9288 = vst.msk [vmem:[%s14495_s25 + $0x28] sm:$0xff] %vm617_vm0, %v9272_v24  ;;  %13333 = vpow2.f32 %v9371_v5  ;;  %v9381_v28 = vmul.f32 1.442695, %v9356_v61  ;;  %v9264_v5 = vld [vmem:[%s14495_s25 + $0x68] sm:$0xff] }
 0xe40   : > { %v13316_v37 = vpop.eup %13315  ;;  %v9245_v63 = vmul.f32 %v13314_v20, %v17353_v30  ;;  %v9275_v8 = vadd.f32 %v9259_v45, %v9243_v7  ;;  %9289 = vst.msk [vmem:[%s14495_s25 + $0x30] sm:$0xff] %vm617_vm0, %v9273_v21  ;;  %13335 = vpow2.f32 %v9373_v0  ;;  %v9383_v30 = vmul.f32 1.442695, %v9357_v32 }
 0xe41   : > { %v13318_v17 = vpop.eup %13317  ;;  %v9246_v16 = vmul.f32 %v13316_v37, %v17359_v52  ;;  %v9276_v57 = vadd.f32 %v9260_v23, %v9244_v49  ;;  %9290 = vst.msk [vmem:[%s14495_s25 + $0x38] sm:$0xff] %vm617_vm0, %v9274_v59  ;;  %13337 = vpow2.f32 %v9375_v41  ;;  %v9385_v52 = vmul.f32 1.442695, %v9358_v62 }
 0xe42   : > { %v13320_v18 = vpop.eup %13319  ;;  %v9247_v51 = vmul.f32 %v13318_v17, %v17363_v10  ;;  %v9277_v61 = vadd.f32 %v9261_v31, %v9245_v63  ;;  %9291 = vst.msk [vmem:[%s14495_s25 + $0x40] sm:$0xff] %vm617_vm0, %v9275_v8  ;;  %13339 = vpow2.f32 %v9377_v1  ;;  %v9387_v10 = vmul.f32 1.442695, %v9359_v34 }
 0xe43   : > { %v13322_v27 = vpop.eup %13321  ;;  %v9248_v29 = vmul.f32 %v13320_v18, %v17367_v55  ;;  %v9278_v32 = vadd.f32 %v9262_v54, %v9246_v16  ;;  %9292 = vst.msk [vmem:[%s14495_s25 + $0x48] sm:$0xff] %vm617_vm0, %v9276_v57  ;;  %13341 = vpow2.f32 %v9379_v35  ;;  %v9389_v55 = vmul.f32 1.442695, %v9360_v26 }
 0xe44   : > { %v13324_v19 = vpop.eup %13323  ;;  %v9249_v12 = vmul.f32 %v13322_v27, %v17371_v39  ;;  %v9279_v62 = vadd.f32 %v9263_v38, %v9247_v51  ;;  %9293 = vst.msk [vmem:[%s14495_s25 + $0x50] sm:$0xff] %vm617_vm0, %v9277_v61  ;;  %13343 = vpow2.f32 %v9381_v28  ;;  %v17764_v34 = vsub.f32 0.0, %v17453_v11 }
 0xe45   : > { %v13326_v56 = vpop.eup %13325  ;;  %v9250_v53 = vmul.f32 %v13324_v19, %v17375_v48  ;;  %v9280_v0 = vadd.f32 %v9264_v5, %v9248_v29  ;;  %9294 = vst.msk [vmem:[%s14495_s25 + $0x58] sm:$0xff] %vm617_vm0, %v9278_v32  ;;  %13345 = vpow2.f32 %v9383_v30  ;;  %v17765_v26 = vsub.f32 0.0, %v17456_v22 }
 0xe46   : > { %v9391_v39 = vmul.f32 1.442695, %v17764_v34  ;;  %v13328_v44 = vpop.eup %13327  ;;  %v9281_v6 = vadd.f32 %v9265_v33, %v9249_v12  ;;  %9295 = vst.msk [vmem:[%s14495_s25 + $0x60] sm:$0xff] %vm617_vm0, %v9279_v62  ;;  %13347 = vpow2.f32 %v9385_v52  ;;  %v9395_v25 = vadd.f32 1.0, %v13326_v56  ;;  %v10368_v62 = vld [vmem:[%s14495_s25 + $0x80] sm:$0xff]  ;;  %v10369_v33 = vld [vmem:[%s14495_s25 + $0x88] sm:$0xff] }
 0xe47   : > { %v9393_v24 = vmul.f32 1.442695, %v17765_v26  ;;  %v13330_v41 = vpop.eup %13329  ;;  %v9282_v48 = vadd.f32 %v9266_v50, %v9250_v53  ;;  %9296 = vst.msk [vmem:[%s14495_s25 + $0x68] sm:$0xff] %vm617_vm0, %v9280_v0  ;;  %13349 = vpow2.f32 %v9387_v10  ;;  %v9396_v7 = vadd.f32 1.0, %v13328_v44 }
 0xe48   : > { %v13332_v3 = vpop.eup %13331  ;;  %9297 = vst.msk [vmem:[%s14495_s25 + $0x70] sm:$0xff] %vm617_vm0, %v9281_v6  ;;  %13351 = vpow2.f32 %v9389_v55  ;;  %v9397_v1 = vadd.f32 1.0, %v13330_v41  ;;  %v10371_v6 = vld [vmem:[%s14495_s25 + $0x98] sm:$0xff] }
 0xe49   : > { %v13334_v21 = vpop.eup %13333  ;;  %9298 = vst.msk [vmem:[%s14495_s25 + $0x78] sm:$0xff] %vm617_vm0, %v9282_v48  ;;  %13353 = vpow2.f32 %v9391_v39  ;;  %v9398_v45 = vadd.f32 1.0, %v13332_v3  ;;  %v10370_v39 = vld [vmem:[%s14495_s25 + $0x90] sm:$0xff] }
 0xe4a   : > { %v13336_v20 = vpop.eup %13335  ;;  %13355 = vpow2.f32 %v9393_v24  ;;  %v9399_v59 = vadd.f32 1.0, %v13334_v21  ;;  %v10372_v24 = vld [vmem:[%s14495_s25 + $0xa0] sm:$0xff]  ;;  %v10374_v21 = vld [vmem:[%s14495_s25 + $0xb0] sm:$0xff] }
 0xe4b   : > { %v13338_v49 = vpop.eup %13337  ;;  %13357 = vrcp.f32 %v9395_v25  ;;  %v9400_v37 = vadd.f32 1.0, %v13336_v20  ;;  %v10373_v25 = vld [vmem:[%s14495_s25 + $0xa8] sm:$0xff] }
 0xe4c   : > { %v13340_v35 = vpop.eup %13339  ;;  %13359 = vrcp.f32 %v9396_v7  ;;  %v9401_v63 = vadd.f32 1.0, %v13338_v49 }
 0xe4d   : > { %v13342_v23 = vpop.eup %13341  ;;  %13361 = vrcp.f32 %v9397_v1  ;;  %v9402_v28 = vadd.f32 1.0, %v13340_v35  ;;  %v10376_v35 = vld [vmem:[%s14495_s25 + $0xc0] sm:$0xff] }
 0xe4e   : > { %v13344_v8 = vpop.eup %13343  ;;  %13363 = vrcp.f32 %v9398_v45  ;;  %v9403_v31 = vadd.f32 1.0, %v13342_v23  ;;  %v10375_v45 = vld [vmem:[%s14495_s25 + $0xb8] sm:$0xff] }
 0xe4f   : > { %v13346_v17 = vpop.eup %13345  ;;  %13365 = vrcp.f32 %v9399_v59  ;;  %v9404_v57 = vadd.f32 1.0, %v13344_v8 }
 0xe50   : > { %v13348_v16 = vpop.eup %13347  ;;  %13367 = vrcp.f32 %v9400_v37  ;;  %v9405_v18 = vadd.f32 1.0, %v13346_v17  ;;  %v10378_v17 = vld [vmem:[%s14495_s25 + $0xd0] sm:$0xff] }
 0xe51   : > { %v13350_v30 = vpop.eup %13349  ;;  %13369 = vrcp.f32 %v9401_v63  ;;  %v9406_v51 = vadd.f32 1.0, %v13348_v16  ;;  %v10377_v63 = vld [vmem:[%s14495_s25 + $0xc8] sm:$0xff] }
 0xe52   : > { %v13352_v54 = vpop.eup %13351  ;;  %13371 = vrcp.f32 %v9402_v28  ;;  %v9407_v52 = vadd.f32 1.0, %v13350_v30 }
 0xe53   : > { %v13354_v61 = vpop.eup %13353  ;;  %13373 = vrcp.f32 %v9403_v31  ;;  %v9408_v38 = vadd.f32 1.0, %v13352_v54  ;;  %v10380_v54 = vld [vmem:[%s14495_s25 + $0xe0] sm:$0xff] }
 0xe54   : > { %v13356_v27 = vpop.eup %13355  ;;  %13375 = vrcp.f32 %v9404_v57  ;;  %v9409_v32 = vadd.f32 1.0, %v13354_v61  ;;  %v10379_v57 = vld [vmem:[%s14495_s25 + $0xd8] sm:$0xff] }
 0xe55   : > { %v13358_v29 = vpop.eup %13357  ;;  %13377 = vrcp.f32 %v9405_v18  ;;  %v9410_v19 = vadd.f32 1.0, %v13356_v27 }
 0xe56   : > { %v13360_v10 = vpop.eup %13359  ;;  %13379 = vrcp.f32 %v9406_v51  ;;  %v9427_v5 = vmul.f32 %v13358_v29, %v17408_v46 }
 0xe57   : > { %v13362_v12 = vpop.eup %13361  ;;  %13381 = vrcp.f32 %v9407_v52  ;;  %v9428_v55 = vmul.f32 %v13360_v10, %v17412_v4  ;;  %v10381_v52 = vld [vmem:[%s14495_s25 + $0xe8] sm:$0xff] }
 0xe58   : > { %v13364_v56 = vpop.eup %13363  ;;  %13383 = vrcp.f32 %v9408_v38  ;;  %v9429_v53 = vmul.f32 %v13362_v12, %v17416_v14  ;;  %v9459_v0 = vadd.f32 %v10368_v62, %v9427_v5  ;;  %v10382_v38 = vld [vmem:[%s14495_s25 + $0xf0] sm:$0xff] }
 0xe59   : > { %v13366_v34 = vpop.eup %13365  ;;  %13385 = vrcp.f32 %v9409_v32  ;;  %v9430_v46 = vmul.f32 %v13364_v56, %v17420_v2  ;;  %v9460_v44 = vadd.f32 %v10369_v33, %v9428_v55  ;;  %v10383_v32 = vld [vmem:[%s14495_s25 + $0xf8] sm:$0xff] }
 0xe5a   : > { %v13368_v50 = vpop.eup %13367  ;;  %13387 = vrcp.f32 %v9410_v19  ;;  %v9431_v4 = vmul.f32 %v13366_v34, %v17423_v60  ;;  %v9461_v26 = vadd.f32 %v10370_v39, %v9429_v53  ;;  %10384 = vst.msk [vmem:[%s14495_s25 + $0x80] sm:$0xff] %vm617_vm0, %v9459_v0 }
 0xe5b   : > { %v13370_v14 = vpop.eup %13369  ;;  %v9432_v41 = vmul.f32 %v13368_v50, %v17426_v40  ;;  %v9462_v48 = vadd.f32 %v10371_v6, %v9430_v46  ;;  %10385 = vst.msk [vmem:[%s14495_s25 + $0x88] sm:$0xff] %vm617_vm0, %v9460_v44 }
 0xe5c   : > { %v13372_v2 = vpop.eup %13371  ;;  %v9433_v3 = vmul.f32 %v13370_v14, %v17429_v15  ;;  %v9463_v7 = vadd.f32 %v10372_v24, %v9431_v4  ;;  %10386 = vst.msk [vmem:[%s14495_s25 + $0x90] sm:$0xff] %vm617_vm0, %v9461_v26 }
 0xe5d   : > { %v13374_v60 = vpop.eup %13373  ;;  %v9434_v1 = vmul.f32 %v13372_v2, %v17432_v13  ;;  %v9464_v20 = vadd.f32 %v10373_v25, %v9432_v41  ;;  %10387 = vst.msk [vmem:[%s14495_s25 + $0x98] sm:$0xff] %vm617_vm0, %v9462_v48 }
 0xe5e   : > { %v13376_v40 = vpop.eup %13375  ;;  %v9435_v49 = vmul.f32 %v13374_v60, %v17435_v58  ;;  %v9465_v59 = vadd.f32 %v10374_v21, %v9433_v3  ;;  %10388 = vst.msk [vmem:[%s14495_s25 + $0xa0] sm:$0xff] %vm617_vm0, %v9463_v7 }
 0xe5f   : > { %v13378_v15 = vpop.eup %13377  ;;  %v9436_v37 = vmul.f32 %v13376_v40, %v17438_v9  ;;  %v9466_v23 = vadd.f32 %v10375_v45, %v9434_v1  ;;  %10389 = vst.msk [vmem:[%s14495_s25 + $0xa8] sm:$0xff] %vm617_vm0, %v9464_v20 }
 0xe60   : > { %v13380_v13 = vpop.eup %13379  ;;  %v9437_v8 = vmul.f32 %v13378_v15, %v17441_v47  ;;  %v9467_v28 = vadd.f32 %v10376_v35, %v9435_v49  ;;  %10390 = vst.msk [vmem:[%s14495_s25 + $0xb0] sm:$0xff] %vm617_vm0, %v9465_v59 }
 0xe61   : > { %v13382_v58 = vpop.eup %13381  ;;  %v9438_v31 = vmul.f32 %v13380_v13, %v17444_v42  ;;  %v9468_v9 = vadd.f32 %v10377_v63, %v9436_v37  ;;  %10391 = vst.msk [vmem:[%s14495_s25 + $0xb8] sm:$0xff] %vm617_vm0, %v9466_v23 }
 0xe62   : > { %v13384_v16 = vpop.eup %13383  ;;  %v9439_v47 = vmul.f32 %v13382_v58, %v17447_v43  ;;  %v9469_v30 = vadd.f32 %v10378_v17, %v9437_v8  ;;  %10392 = vst.msk [vmem:[%s14495_s25 + $0xc0] sm:$0xff] %vm617_vm0, %v9467_v28 }
 0xe63   : > { %v13386_v18 = vpop.eup %13385  ;;  %v9440_v51 = vmul.f32 %v13384_v16, %v17450_v36  ;;  %v9470_v42 = vadd.f32 %v10379_v57, %v9438_v31  ;;  %10393 = vst.msk [vmem:[%s14495_s25 + $0xc8] sm:$0xff] %vm617_vm0, %v9468_v9 }
 0xe64   : > { %v13388_v61 = vpop.eup %13387  ;;  %v9441_v43 = vmul.f32 %v13386_v18, %v17453_v11  ;;  %v9471_v27 = vadd.f32 %v10380_v54, %v9439_v47  ;;  %10394 = vst.msk [vmem:[%s14495_s25 + $0xd0] sm:$0xff] %vm617_vm0, %v9469_v30 }
 0xe65   : > { %v9442_v36 = vmul.f32 %v13388_v61, %v17456_v22  ;;  %v9472_v29 = vadd.f32 %v10381_v52, %v9440_v51  ;;  %10395 = vst.msk [vmem:[%s14495_s25 + $0xd8] sm:$0xff] %vm617_vm0, %v9470_v42 }
 0xe66   : > { %v9473_v10 = vadd.f32 %v10382_v38, %v9441_v43  ;;  %10396 = vst.msk [vmem:[%s14495_s25 + $0xe0] sm:$0xff] %vm617_vm0, %v9471_v27 }
 0xe67   : > { %v9474_v11 = vadd.f32 %v10383_v32, %v9442_v36  ;;  %10397 = vst.msk [vmem:[%s14495_s25 + $0xe8] sm:$0xff] %vm617_vm0, %v9472_v29 }
 0xe68   : > { %10398 = vst.msk [vmem:[%s14495_s25 + $0xf0] sm:$0xff] %vm617_vm0, %v9473_v10 }
 0xe69   : > { %10399 = vst.msk [vmem:[%s14495_s25 + $0xf8] sm:$0xff] %vm617_vm0, %v9474_v11 }
 0xe6a   : > { %13768 = shalt.err (!%p13765_p7)
}
 0xe6b   : > { %s13769_s3 = scalar_lea.hbm %s17623_s16, 4096  ;;  %s13773_s29 = scalar_lea.hbm %s17766_s1, 8192 }
 0xe6c   : > { %p13770_p6 = scmp.ne.s32.totalorder %s17623_s16, %s13769_s3  ;;  %p13774_p1 = scmp.lt.u32.totalorder %s17623_s16, %s17766_s1 }
 0xe6d   : > { %p13775_p13 = scmp.lt.u32.totalorder %s13773_s29, %s13769_s3  ;;  %p13777_p2 = scmp.lt.u32.totalorder %s13769_s3, %s17623_s16 }
 0xe6e   : > { %p13771_p9 = pnand %p13770_p6, %p17767_p8 }
 0xe6f   : > { %p13776_p0 = por %p13775_p13, %p13774_p1 }
 0xe70   : > { %p13772_p12 = pneg %p13771_p9 }
 0xe71   : > { %p13778_p4 = por %p13777_p2, %p13776_p0 }
 0xe73   : > { %p13779_p10 = pnand %p13778_p4, %p13772_p12 }
 0xe75   : > { %13782 = shalt.err (!%p13779_p10)
}
 0xe76   : > { %s13866_s30 = smov 128   ;;  %s13867_s15 = smov 8  }
 0xe77   : > { %13005 = dma.vmem_to_hbm [thread:$0]  (%p17767_p8), %s17625_s22, 4096, %s17623_s16, %s9492_s19, %s13866_s30, %s13866_s30, %s13867_s15  }
 0xe78 PF: > { %s17768_s2 = sld [smem:[#allocation33_spill]]  ;;  %p17769_p11 = scmp.ne.s32.totalorder %s17735_s0, 0 }
 0xe79   : > { %p17770_p3 = scmp.ge.s32.totalorder %s13845_s28, 2 }
 0xe7b   : > { %p13049_p5 = pnand %p17770_p3, %p17769_p11 }
 0xe7e   : > { %s9520_s25 = sand.u32 1, %s17768_s2  }
 0xe7f   : > { %s9521_s3 = scalar_lea.sflag [#allocation5], %s9520_s25 }
 0xe80   : > { %13828 = dma.done.wait (!%p13049_p5), %s9521_s3, 4096  }
 0xe81   : > { %13830 = vsyncadd (!%p13049_p5), %s9521_s3, 4294963200  ;;  %p32_p7 = scmp.ge.s32.totalorder %s14235_s18, 4   ;;  %s17771_s25 = smov %s13837_s26 }
 0xe82   : > { %s17772_s26 = smov %s13841_s27  ;;  %s17773_s27 = smov %s14246_s13 }
 0xe83   : > { %s17774_s28 = smov %s14235_s18  ;;  %34 = sbr.rel (!%p32_p7) target bundleno = 17 (0x11), region = 189 }
 0xe8a   :  { %9526 = vsyncpa [#allocation4], 1 }
 0xe8b   :  { %9528 = vsyncpa [#allocation4 + $0x1], 1 }
 0xe8c   :  { %9529 = vsyncpa [#allocation7], 1 }
 0xe8d   :  { %9530 = vsyncpa [#allocation10], 1 }
 0xe8e   :  { %9531 = vsyncpa [#allocation13], 1 }
 0xe8f   :  { %9532 = vsyncpa [#allocation16], 1 }
 0xe90   :  { %9533 = vsyncpa [#allocation19], 1 }
 0xe91   :  { %9534 = vsyncpa [#allocation22], 1 }
 0xe92   :  { %9535 = vsyncpa [#allocation5], 1 }
 0xe93   :  { %9537 = vsyncpa [#allocation5 + $0x1], 1 }

</bundles_post_ra>
